<compile_context>
chip_gen: v7x
topology: tpu7x:2x2x1
jax: 0.10.0
libtpu: 0.0.40
codegen_flags: <defaults>
</compile_context>

<pallas_src>
import functools

import jax
import jax.numpy as jnp
from jax.experimental import pallas as pl
from jax.experimental.pallas import tpu as pltpu

LANE = 128


def _silu(z):
    return z * jax.nn.sigmoid(z)


def _round_up(n, m):
    return ((n + m - 1) // m) * m


# ---------------------------------------------------------------------------
# Kernel
# ---------------------------------------------------------------------------
def efficientnet_kernel(
    x_ref,                         # (TB, K_pad)   bf16
    w_in_ref,                      # (K_pad, H)    bf16  (BN scale folded in)
    w1a_ref, w1b_ref,              # (H, 4H), (4H, H) bf16 (w*b BN-folded)
    w2a_ref, w2b_ref,
    w3a_ref, w3b_ref,
    w_out_ref,                     # (H, O_pad)    bf16
    bias_h_ref,                    # (4, H)  f32: [t_in, t_b1, t_b2, t_b3]
    bias_4h_ref,                   # (3, 4H) f32: [b_a1, b_a2, b_a3]
    b_out_ref,                     # (1, O_pad) f32
    o_ref,                         # (TB, O_pad) f32
):
    """One batch tile of the whole forward pass; weights resident in VMEM."""
    x = x_ref[...]                                                   # bf16

    # fc_in (+ folded bn_in) -> SiLU -> (dropout = identity in eval)
    h = jnp.dot(x, w_in_ref[...], preferred_element_type=jnp.float32)
    h = _silu(h + bias_h_ref[0:1, :])

    def residual_block(h, wa_ref, wb_ref, i):
        # Linear(H -> 4H) -> SiLU -> Linear(4H -> H) (+folded BN) -> SiLU -> (+h)
        z = jnp.dot(h.astype(jnp.bfloat16), wa_ref[...],
                    preferred_element_type=jnp.float32)
        z = _silu(z + bias_4h_ref[i:i + 1, :])
        z = jnp.dot(z.astype(jnp.bfloat16), wb_ref[...],
                    preferred_element_type=jnp.float32)
        z = _silu(z + bias_h_ref[i + 1:i + 2, :])
        return h + z

    h = residual_block(h, w1a_ref, w1b_ref, 0)
    h = residual_block(h, w2a_ref, w2b_ref, 1)
    h = residual_block(h, w3a_ref, w3b_ref, 2)

    # fc_out (lane-dense, padded output columns)
    o_ref[...] = jnp.dot(h.astype(jnp.bfloat16), w_out_ref[...],
                         preferred_element_type=jnp.float32) + b_out_ref[...]


# ---------------------------------------------------------------------------
# Parameter construction (PyTorch-equivalent init) and BN/bias folding
# ---------------------------------------------------------------------------
def _linear_init(key, fan_in, fan_out):
    """PyTorch nn.Linear default init: U(-1/sqrt(fan_in), 1/sqrt(fan_in))."""
    kw, kb = jax.random.split(key)
    bound = 1.0 / (fan_in ** 0.5)
    w = jax.random.uniform(kw, (fan_in, fan_out), jnp.float32, -bound, bound)
    b = jax.random.uniform(kb, (fan_out,), jnp.float32, -bound, bound)
    return w, b


def _bn_fold(key, num_features, eps=1e-5):
    """BatchNorm1d (eval mode) reduced to per-feature scale/shift."""
    kg, kb = jax.random.split(key)
    gamma = 1.0 + 0.1 * jax.random.normal(kg, (num_features,), jnp.float32)
    beta = 0.1 * jax.random.normal(kb, (num_features,), jnp.float32)
    running_mean = jnp.zeros((num_features,), jnp.float32)
    running_var = jnp.ones((num_features,), jnp.float32)
    scale = gamma / jnp.sqrt(running_var + eps)
    shift = beta - running_mean * scale
    return scale, shift


def init_raw_params(key, input_size, hidden_size, output_size):
    keys = jax.random.split(key, 12)
    w_in, b_in = _linear_init(keys[0], input_size, hidden_size)
    s_in, t_in = _bn_fold(keys[1], hidden_size)
    blocks = []
    for i in range(3):
        wa, ba = _linear_init(keys[2 + 3 * i], hidden_size, hidden_size * 4)
        wb, bb = _linear_init(keys[3 + 3 * i], hidden_size * 4, hidden_size)
        s, t = _bn_fold(keys[4 + 3 * i], hidden_size)
        blocks.append((wa, ba, wb, bb, s, t))
    w_out, b_out = _linear_init(keys[11], hidden_size, output_size)
    return dict(w_in=w_in, b_in=b_in, s_in=s_in, t_in=t_in,
                blocks=blocks, w_out=w_out, b_out=b_out)


def fold_params(raw):
    """Fold BN into weights/biases, pad K and O to lane width, pack vectors."""
    K, H = raw["w_in"].shape
    O = raw["w_out"].shape[1]
    K_pad = _round_up(K, LANE)
    O_pad = _round_up(O, LANE)

    # fc_in + bn_in folded
    w_in = raw["w_in"] * raw["s_in"][None, :]
    w_in = jnp.pad(w_in, ((0, K_pad - K), (0, 0))).astype(jnp.bfloat16)
    bias_h_rows = [raw["b_in"] * raw["s_in"] + raw["t_in"]]

    wmats = []
    bias_4h_rows = []
    for (wa, ba, wb, bb, s, t) in raw["blocks"]:
        wmats.append(wa.astype(jnp.bfloat16))
        bias_4h_rows.append(ba)
        wmats.append((wb * s[None, :]).astype(jnp.bfloat16))   # BN scale folded
        bias_h_rows.append(bb * s + t)                          # BN shift folded

    w_out = jnp.pad(raw["w_out"], ((0, 0), (0, O_pad - O))).astype(jnp.bfloat16)
    b_out = jnp.pad(raw["b_out"], (0, O_pad - O))[None, :]      # (1, O_pad) f32

    bias_h = jnp.stack(bias_h_rows, axis=0)                     # (4, H)  f32
    bias_4h = jnp.stack(bias_4h_rows, axis=0)                   # (3, 4H) f32

    return (w_in, wmats[0], wmats[1], wmats[2], wmats[3], wmats[4], wmats[5],
            w_out, bias_h, bias_4h, b_out)


# ---------------------------------------------------------------------------
# Wrapper
# ---------------------------------------------------------------------------
@functools.partial(jax.jit, static_argnames=("output_size", "block_batch"))
def efficientnet_forward(x, kparams, *, output_size, block_batch=128):
    (w_in, w1a, w1b, w2a, w2b, w3a, w3b,
     w_out, bias_h, bias_4h, b_out) = kparams

    B, K = x.shape
    K_pad = w_in.shape[0]
    O_pad = w_out.shape[1]

    # Pad batch to a multiple of the tile and features to a full lane tile,
    # then cast to bf16 for the MXU.
    B_pad = _round_up(B, block_batch)
    x_p = jnp.pad(x, ((0, B_pad - B), (0, K_pad - K))).astype(jnp.bfloat16)
    grid = (B_pad // block_batch,)

    def const_spec(a):
        # Whole-array block with a constant index map: stays VMEM-resident
        # across grid iterations (no re-DMA when the block index is unchanged).
        return pl.BlockSpec(a.shape, lambda i: (0, 0))

    consts = (w_in, w1a, w1b, w2a, w2b, w3a, w3b, w_out, bias_h, bias_4h, b_out)

    out = pl.pallas_call(
        efficientnet_kernel,
        out_shape=jax.ShapeDtypeStruct((B_pad, O_pad), jnp.float32),
        grid=grid,
        in_specs=[pl.BlockSpec((block_batch, K_pad), lambda i: (i, 0))]
                 + [const_spec(a) for a in consts],
        out_specs=pl.BlockSpec((block_batch, O_pad), lambda i: (i, 0)),
        compiler_params=pltpu.CompilerParams(
            dimension_semantics=("parallel",)),   # megacore split on v7x
    )(x_p, *consts)

    return out[:B, :output_size]


# ---------------------------------------------------------------------------
# References
# ---------------------------------------------------------------------------
def reference_matched(x, kparams, output_size):
    """Same folded-bf16 math as the kernel (tight-tolerance check)."""
    (w_in, w1a, w1b, w2a, w2b, w3a, w3b,
     w_out, bias_h, bias_4h, b_out) = kparams
    K_pad = w_in.shape[0]
    xp = jnp.pad(x, ((0, 0), (0, K_pad - x.shape[1]))).astype(jnp.bfloat16)

    h = jnp.dot(xp, w_in, preferred_element_type=jnp.float32)
    h = _silu(h + bias_h[0:1, :])
    for i, (wa, wb) in enumerate(((w1a, w1b), (w2a, w2b), (w3a, w3b))):
        z = jnp.dot(h.astype(jnp.bfloat16), wa, preferred_element_type=jnp.float32)
        z = _silu(z + bias_4h[i:i + 1, :])
        z = jnp.dot(z.astype(jnp.bfloat16), wb, preferred_element_type=jnp.float32)
        z = _silu(z + bias_h[i + 1:i + 2, :])
        h = h + z
    out = jnp.dot(h.astype(jnp.bfloat16), w_out,
                  preferred_element_type=jnp.float32) + b_out
    return out[:, :output_size]


def reference_f32(x, raw):
    """Unfolded full-f32 reference of the original PyTorch module (eval mode)."""
    h = x @ raw["w_in"] + raw["b_in"]
    h = h * raw["s_in"] + raw["t_in"]
    h = _silu(h)
    for (wa, ba, wb, bb, s, t) in raw["blocks"]:
        z = _silu(h @ wa + ba)
        z = (z @ wb + bb) * s + t
        h = h + _silu(z)
    return h @ raw["w_out"] + raw["b_out"]


if __name__ == "__main__":
    # Small shapes consistent with the module (input -> H -> 4H -> H -> output).
    batch = 256           # 2 batch tiles of 128 -> exercises the grid
    input_size = 32
    hidden_size = 256
    output_size = 16

    key = jax.random.PRNGKey(0)
    kx, kp = jax.random.split(key)
    x = jax.random.normal(kx, (batch, input_size), jnp.float32)

    raw = init_raw_params(kp, input_size, hidden_size, output_size)
    kparams = fold_params(raw)

    out = efficientnet_forward(x, kparams, output_size=output_size)
    out = jax.block_until_ready(out)
    assert out.shape == (batch, output_size)

    ref_m = reference_matched(x, kparams, output_size)
    ref_f = reference_f32(x, raw)
    assert jnp.allclose(out, ref_m, atol=2e-2, rtol=2e-2), \
        "mismatch vs matched (bf16) reference"
    assert jnp.allclose(out, ref_f, atol=1e-1, rtol=1e-1), \
        "mismatch vs f32 module reference"

    print("KERNEL_OK")
</pallas_src>

<mosaic_0001>
module attributes {stable_mosaic.version = 11 : i64} {
  func.func @efficientnet_kernel(%arg0: i32, %arg1: memref<128x128xbf16, #tpu.memory_space<vmem>>, %arg2: memref<128x256xbf16, #tpu.memory_space<vmem>>, %arg3: memref<256x1024xbf16, #tpu.memory_space<vmem>>, %arg4: memref<1024x256xbf16, #tpu.memory_space<vmem>>, %arg5: memref<256x1024xbf16, #tpu.memory_space<vmem>>, %arg6: memref<1024x256xbf16, #tpu.memory_space<vmem>>, %arg7: memref<256x1024xbf16, #tpu.memory_space<vmem>>, %arg8: memref<1024x256xbf16, #tpu.memory_space<vmem>>, %arg9: memref<256x128xbf16, #tpu.memory_space<vmem>>, %arg10: memref<4x256xf32, #tpu.memory_space<vmem>>, %arg11: memref<3x1024xf32, #tpu.memory_space<vmem>>, %arg12: memref<1x128xf32, #tpu.memory_space<vmem>>, %arg13: memref<128x128xf32, #tpu.memory_space<vmem>>) attributes {dimension_semantics = [#tpu.dimension_semantics<parallel>], iteration_bounds = array<i64: 2>, scalar_prefetch = 0 : i64, scratch_operands = 0 : i64, tpu.core_type = #tpu.core_type<tc>, window_params = [{transform_indices = @transform_0, window_bounds = array<i64: 128, 128>}, {pipeline_mode = #tpu.pipeline_mode<synchronous>, transform_indices = @transform_1, window_bounds = array<i64: 128, 256>}, {pipeline_mode = #tpu.pipeline_mode<synchronous>, transform_indices = @transform_2, window_bounds = array<i64: 256, 1024>}, {pipeline_mode = #tpu.pipeline_mode<synchronous>, transform_indices = @transform_3, window_bounds = array<i64: 1024, 256>}, {pipeline_mode = #tpu.pipeline_mode<synchronous>, transform_indices = @transform_4, window_bounds = array<i64: 256, 1024>}, {pipeline_mode = #tpu.pipeline_mode<synchronous>, transform_indices = @transform_5, window_bounds = array<i64: 1024, 256>}, {pipeline_mode = #tpu.pipeline_mode<synchronous>, transform_indices = @transform_6, window_bounds = array<i64: 256, 1024>}, {pipeline_mode = #tpu.pipeline_mode<synchronous>, transform_indices = @transform_7, window_bounds = array<i64: 1024, 256>}, {pipeline_mode = #tpu.pipeline_mode<synchronous>, transform_indices = @transform_8, window_bounds = array<i64: 256, 128>}, {pipeline_mode = #tpu.pipeline_mode<synchronous>, transform_indices = @transform_9, window_bounds = array<i64: 4, 256>}, {pipeline_mode = #tpu.pipeline_mode<synchronous>, transform_indices = @transform_10, window_bounds = array<i64: 3, 1024>}, {pipeline_mode = #tpu.pipeline_mode<synchronous>, transform_indices = @transform_11, window_bounds = array<i64: 1, 128>}, {transform_indices = @transform_12, window_bounds = array<i64: 128, 128>}]} {
    %c0 = arith.constant 0 : index
    %c0_0 = arith.constant 0 : index
    %0 = vector.load %arg1[%c0, %c0_0] : memref<128x128xbf16, #tpu.memory_space<vmem>>, vector<128x128xbf16>
    %c0_1 = arith.constant 0 : index
    %c0_2 = arith.constant 0 : index
    %1 = vector.load %arg2[%c0_1, %c0_2] : memref<128x256xbf16, #tpu.memory_space<vmem>>, vector<128x256xbf16>
    %cst = arith.constant dense<0.000000e+00> : vector<128x256xf32>
    %2 = tpu.matmul %0, %1, %cst {dimension_numbers = #tpu.dot_dimension_numbers<[1], [0], [0], [1], [0, 0, 1, 1], [], []>} : vector<128x128xbf16>, vector<128x256xbf16>, vector<128x256xf32> -> vector<128x256xf32>
    %c0_3 = arith.constant 0 : index
    %c0_4 = arith.constant 0 : index
    %3 = vector.load %arg10[%c0_3, %c0_4] : memref<4x256xf32, #tpu.memory_space<vmem>>, vector<1x256xf32>
    %4 = vector.broadcast %3 : vector<1x256xf32> to vector<128x256xf32>
    %5 = arith.addf %2, %4 : vector<128x256xf32>
    %6 = arith.negf %5 : vector<128x256xf32>
    %7 = math.exp %6 : vector<128x256xf32>
    %cst_5 = arith.constant 1.000000e+00 : f32
    %8 = vector.broadcast %cst_5 : f32 to vector<128x256xf32>
    %9 = arith.addf %8, %7 : vector<128x256xf32>
    %10 = arith.divf %8, %9 : vector<128x256xf32>
    %11 = arith.mulf %5, %10 : vector<128x256xf32>
    %12 = arith.truncf %11 : vector<128x256xf32> to vector<128x256xbf16>
    %c0_6 = arith.constant 0 : index
    %c0_7 = arith.constant 0 : index
    %13 = vector.load %arg3[%c0_6, %c0_7] : memref<256x1024xbf16, #tpu.memory_space<vmem>>, vector<256x1024xbf16>
    %cst_8 = arith.constant dense<0.000000e+00> : vector<128x1024xf32>
    %14 = tpu.matmul %12, %13, %cst_8 {dimension_numbers = #tpu.dot_dimension_numbers<[1], [0], [0], [1], [0, 0, 1, 1], [], []>} : vector<128x256xbf16>, vector<256x1024xbf16>, vector<128x1024xf32> -> vector<128x1024xf32>
    %c0_9 = arith.constant 0 : index
    %c0_10 = arith.constant 0 : index
    %15 = vector.load %arg11[%c0_9, %c0_10] : memref<3x1024xf32, #tpu.memory_space<vmem>>, vector<1x1024xf32>
    %16 = vector.broadcast %15 : vector<1x1024xf32> to vector<128x1024xf32>
    %17 = arith.addf %14, %16 : vector<128x1024xf32>
    %18 = arith.negf %17 : vector<128x1024xf32>
    %19 = math.exp %18 : vector<128x1024xf32>
    %cst_11 = arith.constant 1.000000e+00 : f32
    %20 = vector.broadcast %cst_11 : f32 to vector<128x1024xf32>
    %21 = arith.addf %20, %19 : vector<128x1024xf32>
    %22 = arith.divf %20, %21 : vector<128x1024xf32>
    %23 = arith.mulf %17, %22 : vector<128x1024xf32>
    %24 = arith.truncf %23 : vector<128x1024xf32> to vector<128x1024xbf16>
    %c0_12 = arith.constant 0 : index
    %c0_13 = arith.constant 0 : index
    %25 = vector.load %arg4[%c0_12, %c0_13] : memref<1024x256xbf16, #tpu.memory_space<vmem>>, vector<1024x256xbf16>
    %cst_14 = arith.constant dense<0.000000e+00> : vector<128x256xf32>
    %26 = tpu.matmul %24, %25, %cst_14 {dimension_numbers = #tpu.dot_dimension_numbers<[1], [0], [0], [1], [0, 0, 1, 1], [], []>} : vector<128x1024xbf16>, vector<1024x256xbf16>, vector<128x256xf32> -> vector<128x256xf32>
    %c1 = arith.constant 1 : index
    %c0_15 = arith.constant 0 : index
    %27 = vector.load %arg10[%c1, %c0_15] : memref<4x256xf32, #tpu.memory_space<vmem>>, vector<1x256xf32>
    %28 = vector.broadcast %27 : vector<1x256xf32> to vector<128x256xf32>
    %29 = arith.addf %26, %28 : vector<128x256xf32>
    %30 = arith.negf %29 : vector<128x256xf32>
    %31 = math.exp %30 : vector<128x256xf32>
    %cst_16 = arith.constant 1.000000e+00 : f32
    %32 = vector.broadcast %cst_16 : f32 to vector<128x256xf32>
    %33 = arith.addf %32, %31 : vector<128x256xf32>
    %34 = arith.divf %32, %33 : vector<128x256xf32>
    %35 = arith.mulf %29, %34 : vector<128x256xf32>
    %36 = arith.addf %11, %35 : vector<128x256xf32>
    %37 = arith.truncf %36 : vector<128x256xf32> to vector<128x256xbf16>
    %c0_17 = arith.constant 0 : index
    %c0_18 = arith.constant 0 : index
    %38 = vector.load %arg5[%c0_17, %c0_18] : memref<256x1024xbf16, #tpu.memory_space<vmem>>, vector<256x1024xbf16>
    %cst_19 = arith.constant dense<0.000000e+00> : vector<128x1024xf32>
    %39 = tpu.matmul %37, %38, %cst_19 {dimension_numbers = #tpu.dot_dimension_numbers<[1], [0], [0], [1], [0, 0, 1, 1], [], []>} : vector<128x256xbf16>, vector<256x1024xbf16>, vector<128x1024xf32> -> vector<128x1024xf32>
    %c1_20 = arith.constant 1 : index
    %c0_21 = arith.constant 0 : index
    %40 = vector.load %arg11[%c1_20, %c0_21] : memref<3x1024xf32, #tpu.memory_space<vmem>>, vector<1x1024xf32>
    %41 = vector.broadcast %40 : vector<1x1024xf32> to vector<128x1024xf32>
    %42 = arith.addf %39, %41 : vector<128x1024xf32>
    %43 = arith.negf %42 : vector<128x1024xf32>
    %44 = math.exp %43 : vector<128x1024xf32>
    %cst_22 = arith.constant 1.000000e+00 : f32
    %45 = vector.broadcast %cst_22 : f32 to vector<128x1024xf32>
    %46 = arith.addf %45, %44 : vector<128x1024xf32>
    %47 = arith.divf %45, %46 : vector<128x1024xf32>
    %48 = arith.mulf %42, %47 : vector<128x1024xf32>
    %49 = arith.truncf %48 : vector<128x1024xf32> to vector<128x1024xbf16>
    %c0_23 = arith.constant 0 : index
    %c0_24 = arith.constant 0 : index
    %50 = vector.load %arg6[%c0_23, %c0_24] : memref<1024x256xbf16, #tpu.memory_space<vmem>>, vector<1024x256xbf16>
    %cst_25 = arith.constant dense<0.000000e+00> : vector<128x256xf32>
    %51 = tpu.matmul %49, %50, %cst_25 {dimension_numbers = #tpu.dot_dimension_numbers<[1], [0], [0], [1], [0, 0, 1, 1], [], []>} : vector<128x1024xbf16>, vector<1024x256xbf16>, vector<128x256xf32> -> vector<128x256xf32>
    %c2 = arith.constant 2 : index
    %c0_26 = arith.constant 0 : index
    %52 = vector.load %arg10[%c2, %c0_26] : memref<4x256xf32, #tpu.memory_space<vmem>>, vector<1x256xf32>
    %53 = vector.broadcast %52 : vector<1x256xf32> to vector<128x256xf32>
    %54 = arith.addf %51, %53 : vector<128x256xf32>
    %55 = arith.negf %54 : vector<128x256xf32>
    %56 = math.exp %55 : vector<128x256xf32>
    %cst_27 = arith.constant 1.000000e+00 : f32
    %57 = vector.broadcast %cst_27 : f32 to vector<128x256xf32>
    %58 = arith.addf %57, %56 : vector<128x256xf32>
    %59 = arith.divf %57, %58 : vector<128x256xf32>
    %60 = arith.mulf %54, %59 : vector<128x256xf32>
    %61 = arith.addf %36, %60 : vector<128x256xf32>
    %62 = arith.truncf %61 : vector<128x256xf32> to vector<128x256xbf16>
    %c0_28 = arith.constant 0 : index
    %c0_29 = arith.constant 0 : index
    %63 = vector.load %arg7[%c0_28, %c0_29] : memref<256x1024xbf16, #tpu.memory_space<vmem>>, vector<256x1024xbf16>
    %cst_30 = arith.constant dense<0.000000e+00> : vector<128x1024xf32>
    %64 = tpu.matmul %62, %63, %cst_30 {dimension_numbers = #tpu.dot_dimension_numbers<[1], [0], [0], [1], [0, 0, 1, 1], [], []>} : vector<128x256xbf16>, vector<256x1024xbf16>, vector<128x1024xf32> -> vector<128x1024xf32>
    %c2_31 = arith.constant 2 : index
    %c0_32 = arith.constant 0 : index
    %65 = vector.load %arg11[%c2_31, %c0_32] : memref<3x1024xf32, #tpu.memory_space<vmem>>, vector<1x1024xf32>
    %66 = vector.broadcast %65 : vector<1x1024xf32> to vector<128x1024xf32>
    %67 = arith.addf %64, %66 : vector<128x1024xf32>
    %68 = arith.negf %67 : vector<128x1024xf32>
    %69 = math.exp %68 : vector<128x1024xf32>
    %cst_33 = arith.constant 1.000000e+00 : f32
    %70 = vector.broadcast %cst_33 : f32 to vector<128x1024xf32>
    %71 = arith.addf %70, %69 : vector<128x1024xf32>
    %72 = arith.divf %70, %71 : vector<128x1024xf32>
    %73 = arith.mulf %67, %72 : vector<128x1024xf32>
    %74 = arith.truncf %73 : vector<128x1024xf32> to vector<128x1024xbf16>
    %c0_34 = arith.constant 0 : index
    %c0_35 = arith.constant 0 : index
    %75 = vector.load %arg8[%c0_34, %c0_35] : memref<1024x256xbf16, #tpu.memory_space<vmem>>, vector<1024x256xbf16>
    %cst_36 = arith.constant dense<0.000000e+00> : vector<128x256xf32>
    %76 = tpu.matmul %74, %75, %cst_36 {dimension_numbers = #tpu.dot_dimension_numbers<[1], [0], [0], [1], [0, 0, 1, 1], [], []>} : vector<128x1024xbf16>, vector<1024x256xbf16>, vector<128x256xf32> -> vector<128x256xf32>
    %c3 = arith.constant 3 : index
    %c0_37 = arith.constant 0 : index
    %77 = vector.load %arg10[%c3, %c0_37] : memref<4x256xf32, #tpu.memory_space<vmem>>, vector<1x256xf32>
    %78 = vector.broadcast %77 : vector<1x256xf32> to vector<128x256xf32>
    %79 = arith.addf %76, %78 : vector<128x256xf32>
    %80 = arith.negf %79 : vector<128x256xf32>
    %81 = math.exp %80 : vector<128x256xf32>
    %cst_38 = arith.constant 1.000000e+00 : f32
    %82 = vector.broadcast %cst_38 : f32 to vector<128x256xf32>
    %83 = arith.addf %82, %81 : vector<128x256xf32>
    %84 = arith.divf %82, %83 : vector<128x256xf32>
    %85 = arith.mulf %79, %84 : vector<128x256xf32>
    %86 = arith.addf %61, %85 : vector<128x256xf32>
    %87 = arith.truncf %86 : vector<128x256xf32> to vector<128x256xbf16>
    %c0_39 = arith.constant 0 : index
    %c0_40 = arith.constant 0 : index
    %88 = vector.load %arg9[%c0_39, %c0_40] : memref<256x128xbf16, #tpu.memory_space<vmem>>, vector<256x128xbf16>
    %cst_41 = arith.constant dense<0.000000e+00> : vector<128x128xf32>
    %89 = tpu.matmul %87, %88, %cst_41 {dimension_numbers = #tpu.dot_dimension_numbers<[1], [0], [0], [1], [0, 0, 1, 1], [], []>} : vector<128x256xbf16>, vector<256x128xbf16>, vector<128x128xf32> -> vector<128x128xf32>
    %c0_42 = arith.constant 0 : index
    %c0_43 = arith.constant 0 : index
    %90 = vector.load %arg12[%c0_42, %c0_43] : memref<1x128xf32, #tpu.memory_space<vmem>>, vector<1x128xf32>
    %91 = vector.broadcast %90 : vector<1x128xf32> to vector<128x128xf32>
    %92 = arith.addf %89, %91 : vector<128x128xf32>
    %c0_44 = arith.constant 0 : index
    %c0_45 = arith.constant 0 : index
    %93 = vector.load %arg13[%c0_44, %c0_45] : memref<128x128xf32, #tpu.memory_space<vmem>>, vector<128x128xf32>
    tpu.vector_store %arg13[%c0_44, %c0_45], %92 {strides = array<i32>} : memref<128x128xf32, #tpu.memory_space<vmem>>, vector<128x128xf32>,
    return
  }
  func.func @transform_0(%arg0: i32) -> (i32, i32) {
    %c0_i32 = arith.constant 0 : i32
    %c0_i32_0 = arith.constant 0 : i32
    return %arg0, %c0_i32 : i32, i32
  }
  func.func @transform_1(%arg0: i32) -> (i32, i32) {
    %c0_i32 = arith.constant 0 : i32
    %c0_i32_0 = arith.constant 0 : i32
    %c0_i32_1 = arith.constant 0 : i32
    return %c0_i32, %c0_i32_0 : i32, i32
  }
  func.func @transform_2(%arg0: i32) -> (i32, i32) {
    %c0_i32 = arith.constant 0 : i32
    %c0_i32_0 = arith.constant 0 : i32
    %c0_i32_1 = arith.constant 0 : i32
    return %c0_i32, %c0_i32_0 : i32, i32
  }
  func.func @transform_3(%arg0: i32) -> (i32, i32) {
    %c0_i32 = arith.constant 0 : i32
    %c0_i32_0 = arith.constant 0 : i32
    %c0_i32_1 = arith.constant 0 : i32
    return %c0_i32, %c0_i32_0 : i32, i32
  }
  func.func @transform_4(%arg0: i32) -> (i32, i32) {
    %c0_i32 = arith.constant 0 : i32
    %c0_i32_0 = arith.constant 0 : i32
    %c0_i32_1 = arith.constant 0 : i32
    return %c0_i32, %c0_i32_0 : i32, i32
  }
  func.func @transform_5(%arg0: i32) -> (i32, i32) {
    %c0_i32 = arith.constant 0 : i32
    %c0_i32_0 = arith.constant 0 : i32
    %c0_i32_1 = arith.constant 0 : i32
    return %c0_i32, %c0_i32_0 : i32, i32
  }
  func.func @transform_6(%arg0: i32) -> (i32, i32) {
    %c0_i32 = arith.constant 0 : i32
    %c0_i32_0 = arith.constant 0 : i32
    %c0_i32_1 = arith.constant 0 : i32
    return %c0_i32, %c0_i32_0 : i32, i32
  }
  func.func @transform_7(%arg0: i32) -> (i32, i32) {
    %c0_i32 = arith.constant 0 : i32
    %c0_i32_0 = arith.constant 0 : i32
    %c0_i32_1 = arith.constant 0 : i32
    return %c0_i32, %c0_i32_0 : i32, i32
  }
  func.func @transform_8(%arg0: i32) -> (i32, i32) {
    %c0_i32 = arith.constant 0 : i32
    %c0_i32_0 = arith.constant 0 : i32
    %c0_i32_1 = arith.constant 0 : i32
    return %c0_i32, %c0_i32_0 : i32, i32
  }
  func.func @transform_9(%arg0: i32) -> (i32, i32) {
    %c0_i32 = arith.constant 0 : i32
    %c0_i32_0 = arith.constant 0 : i32
    %c0_i32_1 = arith.constant 0 : i32
    return %c0_i32, %c0_i32_0 : i32, i32
  }
  func.func @transform_10(%arg0: i32) -> (i32, i32) {
    %c0_i32 = arith.constant 0 : i32
    %c0_i32_0 = arith.constant 0 : i32
    %c0_i32_1 = arith.constant 0 : i32
    return %c0_i32, %c0_i32_0 : i32, i32
  }
  func.func @transform_11(%arg0: i32) -> (i32, i32) {
    %c0_i32 = arith.constant 0 : i32
    %c0_i32_0 = arith.constant 0 : i32
    %c0_i32_1 = arith.constant 0 : i32
    return %c0_i32, %c0_i32_0 : i32, i32
  }
  func.func @transform_12(%arg0: i32) -> (i32, i32) {
    %c0_i32 = arith.constant 0 : i32
    %c0_i32_0 = arith.constant 0 : i32
    return %arg0, %c0_i32 : i32, i32
  }
}

</mosaic_0001>

<bundles_post_ra>
// kernel: efficientnet_forward.1
= control target key start
LH: loop header
LB: loop body
LE: loop exit
PB: predicated region body
PF: predicated region fallthrough
CT: control target
= control target key end

     0   :  { %s22171_s0 = inlined_call_operand.vmem [shape: bf16[256,128], index: 0, kind: input, shape index: {}]   ;;  %s22172_s1 = inlined_call_operand.vmem [shape: bf16[128,256], index: 1, kind: input, shape index: {}]   ;;  %s22173_s2 = inlined_call_operand.hbm [shape: bf16[256,1024], index: 2, kind: input, shape index: {}]   ;;  %s22174_s3 = inlined_call_operand.hbm [shape: bf16[1024,256], index: 3, kind: input, shape index: {}]   ;;  %s22175_s4 = inlined_call_operand.hbm [shape: bf16[256,1024], index: 4, kind: input, shape index: {}]   ;;  %s22176_s5 = inlined_call_operand.hbm [shape: bf16[1024,256], index: 5, kind: input, shape index: {}]   ;;  %s22177_s6 = inlined_call_operand.hbm [shape: bf16[256,1024], index: 6, kind: input, shape index: {}]   ;;  %s22178_s7 = inlined_call_operand.hbm [shape: bf16[1024,256], index: 7, kind: input, shape index: {}]   ;;  %s22179_s8 = inlined_call_operand.vmem [shape: bf16[256,128], index: 8, kind: input, shape index: {}]   ;;  %s22180_s9 = inlined_call_operand.vmem [shape: f32[4,256], index: 9, kind: input, shape index: {}]   ;;  %s22181_s10 = inlined_call_operand.vmem [shape: f32[3,1024], index: 10, kind: input, shape index: {}]   ;;  %s22182_s11 = inlined_call_operand.vmem [shape: f32[1,128], index: 11, kind: input, shape index: {}]   ;;  %s22183_s12 = inlined_call_operand.vmem [shape: f32[256,128], index: 12, kind: output, shape index: {}]  }
   0x1   :  { %22317 = sst [smem:[#allocation98_spill]] %s22183_s12 }
   0x2   :  { %17 = vsyncpa [#allocation3], 0 }
   0x3   :  { %18 = vsyncpa [#allocation5], 0 }
   0x4   :  { %19 = vsyncpa [#allocation8], 0 }
   0x5   :  { %20 = vsyncpa [#allocation11], 0  ;;  %s17392_s21 = smov 0  }
   0x6 LB: > { %s17316_s22 = smov [#allocation4]   ;;  %s22184_s24 = sadd.s32 4294967295, %s17314_s21   ;;  %s17314_s21 = sphi %s17392_s21, %s26_s21  }
   0x7   : > { %s342_s23 = sshll.u32 %s17316_s22, 4  ;;  %p12580_p0 = scmp.ge.s32.totalorder %s17314_s21, 1  ;;  %s17406_s23 = int_to_ptr.vmem [resolvable:$true] %s342_s23 }
   0x8   : > { %p314_p1 = scmp.lt.s32.totalorder %s17314_s21, 3  ;;  %p17402_p2 = scmp.eq.s32.totalorder %s22184_s24, 0 }
   0x9   : > { %s17317_s27 = smov [#allocation7]   ;;  %s17318_s30 = smov [#allocation2]  }
   0xa   : > { %s22318_s25 = scalar_select %p17402_p2, 1, 0 }
   0xb   : > { %p17408_p3 = pnand %p12580_p0, %p314_p1  ;;  %s368_s28 = sshll.u32 %s17317_s27, 4  ;;  %s17414_s28 = int_to_ptr.vmem [resolvable:$true] %s368_s28 }
   0xc   : > { %s329_s13 = sshll.u32 %s17318_s30, 4  ;;  %s17124_s16 = scalar_lea.hbm %s22174_s3, 16384  ;;  %s17422_s13 = int_to_ptr.vmem [resolvable:$true] %s329_s13 }
   0xd   : > { %s22319_s26 = scalar_select %p17408_p3, 1, 0 }
   0xe   : > { %p14399_p4 = pneg %p17408_p3  ;;  %p17125_p6 = scmp.ne.s32.totalorder %s22174_s3, %s17124_s16 }
   0xf   : > { %p17131_p10 = scmp.lt.u32.totalorder %s17124_s16, %s22174_s3 }
  0x10   : > { %p17418_p5 = pnand %p17402_p2, %p14399_p4 }
  0x12   : > { %p17432_p7 = pneg %p17418_p5 }
  0x14   : > { %p17127_p8 = pnand %p17432_p7, %p17125_p6 }
  0x16   : > { %p17128_p9 = pneg %p17127_p8 }
  0x18   : > { %p17133_p11 = pnand %p17131_p10, %p17128_p9 }
  0x1a   : > { %17136 = shalt.err (!%p17133_p11)
}
  0x1b   : > { %s17137_s27 = scalar_lea.vmem %s17406_s23, 16384  ;;  %p17145_p1 = scmp.lt.s32.totalorder %s17406_s23, %s17406_s23 }
  0x1c   : > { %p17138_p12 = scmp.ne.s32.totalorder %s17406_s23, %s17137_s27  ;;  %p17146_p4 = scmp.lt.s32.totalorder %s17137_s27, %s17137_s27 }
  0x1e   : > { %p17140_p13 = pnand %p17138_p12, %p17432_p7  ;;  %p17147_p6 = por %p17146_p4, %p17145_p1 }
  0x20   : > { %p17141_p0 = pneg %p17140_p13 }
  0x22   : > { %p17148_p8 = pnand %p17147_p6, %p17141_p0 }
  0x24   : > { %17151 = shalt.err (!%p17148_p8)
}
  0x25   : > { %s22185_s30 = smov 128   ;;  %s22186_s14 = smov 8  }
  0x26   : > { %14405 = dma.hbm_to_vmem [thread:$0]  (!%p17418_p5), %s22174_s3, 16384, %s17406_s23, [#allocation5], %s22185_s30, %s22185_s30, %s22186_s14  }
  0x27   : > { %s17152_s20 = scalar_lea.hbm %s22176_s5, 16384 }
  0x28   : > { %p17153_p9 = scmp.ne.s32.totalorder %s22176_s5, %s17152_s20  ;;  %p17159_p12 = scmp.lt.u32.totalorder %s17152_s20, %s22176_s5 }
  0x2a   : > { %p17155_p10 = pnand %p17153_p9, %p17432_p7 }
  0x2c   : > { %p17156_p11 = pneg %p17155_p10 }
  0x2e   : > { %p17161_p13 = pnand %p17159_p12, %p17156_p11 }
  0x30   : > { %17164 = shalt.err (!%p17161_p13)
}
  0x31   : > { %s17165_s23 = scalar_lea.vmem %s17414_s28, 16384  ;;  %p17173_p6 = scmp.lt.s32.totalorder %s17414_s28, %s17414_s28 }
  0x32   : > { %p17166_p0 = scmp.ne.s32.totalorder %s17414_s28, %s17165_s23  ;;  %p17174_p8 = scmp.lt.s32.totalorder %s17165_s23, %s17165_s23 }
  0x34   : > { %p17168_p1 = pnand %p17166_p0, %p17432_p7  ;;  %p17175_p9 = por %p17174_p8, %p17173_p6 }
  0x36   : > { %p17169_p4 = pneg %p17168_p1 }
  0x38   : > { %p17176_p10 = pnand %p17175_p9, %p17169_p4 }
  0x3a   : > { %17179 = shalt.err (!%p17176_p10)
}
  0x3b   : > { %14411 = dma.hbm_to_vmem [thread:$0]  (!%p17418_p5), %s22176_s5, 16384, %s17414_s28, [#allocation8], %s22185_s30, %s22185_s30, %s22186_s14  }
  0x3c   : > { %s17180_s17 = scalar_lea.hbm %s22173_s2, 16384 }
  0x3d   : > { %p17181_p11 = scmp.ne.s32.totalorder %s22173_s2, %s17180_s17  ;;  %p17187_p0 = scmp.lt.u32.totalorder %s17180_s17, %s22173_s2 }
  0x3f   : > { %p17183_p12 = pnand %p17181_p11, %p17432_p7 }
  0x41   : > { %p17184_p13 = pneg %p17183_p12 }
  0x43   : > { %p17189_p1 = pnand %p17187_p0, %p17184_p13 }
  0x45   : > { %17192 = shalt.err (!%p17189_p1)
}
  0x46   : > { %s17193_s28 = scalar_lea.vmem %s17422_s13, 16384  ;;  %p17201_p9 = scmp.lt.s32.totalorder %s17422_s13, %s17422_s13 }
  0x47   : > { %p17194_p4 = scmp.ne.s32.totalorder %s17422_s13, %s17193_s28  ;;  %p17202_p10 = scmp.lt.s32.totalorder %s17193_s28, %s17193_s28 }
  0x49   : > { %p17196_p6 = pnand %p17194_p4, %p17432_p7  ;;  %p17203_p11 = por %p17202_p10, %p17201_p9 }
  0x4b   : > { %p17197_p8 = pneg %p17196_p6 }
  0x4d   : > { %p17204_p12 = pnand %p17203_p11, %p17197_p8 }
  0x4f   : > { %17207 = shalt.err (!%p17204_p12)
}
  0x50   : > { %s17321_s23 = smov 512   ;;  %s17322_s12 = smov 32  }
  0x51   : > { %14402 = dma.hbm_to_vmem [thread:$0]  (!%p17418_p5), %s22173_s2, 16384, %s17422_s13, [#allocation3], %s17321_s23, %s17321_s23, %s17322_s12  }
  0x52   : > { %s17323_s16 = smov [#allocation6]   ;;  %s17324_s18 = smov [#allocation9]  }
  0x53   : > { %s355_s17 = sshll.u32 %s17323_s16, 4  ;;  %s381_s20 = sshll.u32 %s17324_s18, 4  ;;  %s356_s17 = int_to_ptr.vmem [resolvable:$true] %s355_s17  ;;  %s17508_s20 = int_to_ptr.vmem [resolvable:$true] %s381_s20 }
  0x54   : > { %s17208_s28 = scalar_lea.hbm %s22175_s4, 16384 }
  0x55   : > { %p17209_p13 = scmp.ne.s32.totalorder %s22175_s4, %s17208_s28  ;;  %p17215_p4 = scmp.lt.u32.totalorder %s17208_s28, %s22175_s4 }
  0x57   : > { %p17211_p0 = pnand %p17209_p13, %p17432_p7 }
  0x59   : > { %p17212_p1 = pneg %p17211_p0 }
  0x5b   : > { %p17217_p6 = pnand %p17215_p4, %p17212_p1 }
  0x5d   : > { %17220 = shalt.err (!%p17217_p6)
}
  0x5e   : > { %s17221_s15 = scalar_lea.vmem %s356_s17, 16384  ;;  %p17229_p11 = scmp.lt.s32.totalorder %s356_s17, %s356_s17 }
  0x5f   : > { %p17222_p8 = scmp.ne.s32.totalorder %s356_s17, %s17221_s15  ;;  %p17230_p12 = scmp.lt.s32.totalorder %s17221_s15, %s17221_s15 }
  0x61   : > { %p17224_p9 = pnand %p17222_p8, %p17432_p7  ;;  %p17231_p2 = por %p17230_p12, %p17229_p11 }
  0x63   : > { %p17225_p10 = pneg %p17224_p9 }
  0x65   : > { %p17232_p3 = pnand %p17231_p2, %p17225_p10 }
  0x67   : > { %17235 = shalt.err (!%p17232_p3)
}
  0x68   : > { %14408 = dma.hbm_to_vmem [thread:$0]  (!%p17418_p5), %s22175_s4, 16384, %s356_s17, [#allocation5], %s17321_s23, %s17321_s23, %s17322_s12  }
  0x69   : > { %s17236_s22 = scalar_lea.hbm %s22177_s6, 16384 }
  0x6a   : > { %p17237_p13 = scmp.ne.s32.totalorder %s22177_s6, %s17236_s22  ;;  %p17243_p0 = scmp.lt.u32.totalorder %s17236_s22, %s22177_s6 }
  0x6c   : > { %p17239_p2 = pnand %p17237_p13, %p17432_p7 }
  0x6e   : > { %p17240_p3 = pneg %p17239_p2 }
  0x70   : > { %p17245_p1 = pnand %p17243_p0, %p17240_p3 }
  0x72   : > { %17248 = shalt.err (!%p17245_p1)
}
  0x73   : > { %s17249_s17 = scalar_lea.vmem %s17508_s20, 16384  ;;  %p17257_p9 = scmp.lt.s32.totalorder %s17508_s20, %s17508_s20 }
  0x74   : > { %p17250_p4 = scmp.ne.s32.totalorder %s17508_s20, %s17249_s17  ;;  %p17258_p10 = scmp.lt.s32.totalorder %s17249_s17, %s17249_s17 }
  0x76   : > { %p17252_p6 = pnand %p17250_p4, %p17432_p7  ;;  %p17259_p11 = por %p17258_p10, %p17257_p9 }
  0x78   : > { %p17253_p8 = pneg %p17252_p6 }
  0x7a   : > { %p17260_p12 = pnand %p17259_p11, %p17253_p8 }
  0x7c   : > { %17263 = shalt.err (!%p17260_p12)
}
  0x7d   : > { %14414 = dma.hbm_to_vmem [thread:$0]  (!%p17418_p5), %s22177_s6, 16384, %s17508_s20, [#allocation8], %s17321_s23, %s17321_s23, %s17322_s12  }
  0x7e   : > { %s17325_s14 = smov [#allocation10]   ;;  %s17264_s27 = scalar_lea.hbm %s22178_s7, 16384 }
  0x7f   : > { %s394_s16 = sshll.u32 %s17325_s14, 4  ;;  %p17265_p13 = scmp.ne.s32.totalorder %s22178_s7, %s17264_s27  ;;  %s395_s16 = int_to_ptr.vmem [resolvable:$true] %s394_s16 }
  0x80   : > { %p17271_p0 = scmp.lt.u32.totalorder %s17264_s27, %s22178_s7 }
  0x81   : > { %p17267_p2 = pnand %p17265_p13, %p17432_p7 }
  0x83   : > { %p17268_p3 = pneg %p17267_p2 }
  0x85   : > { %p17273_p1 = pnand %p17271_p0, %p17268_p3 }
  0x87   : > { %17276 = shalt.err (!%p17273_p1)
}
  0x88   : > { %s17277_s23 = scalar_lea.vmem %s395_s16, 16384  ;;  %p17285_p9 = scmp.lt.s32.totalorder %s395_s16, %s395_s16 }
  0x89   : > { %p17278_p4 = scmp.ne.s32.totalorder %s395_s16, %s17277_s23  ;;  %p17286_p10 = scmp.lt.s32.totalorder %s17277_s23, %s17277_s23 }
  0x8b   : > { %p17280_p6 = pnand %p17278_p4, %p17432_p7  ;;  %p17287_p11 = por %p17286_p10, %p17285_p9 }
  0x8d   : > { %p17281_p8 = pneg %p17280_p6 }
  0x8f   : > { %p17288_p12 = pnand %p17287_p11, %p17281_p8 }
  0x91   : > { %17291 = shalt.err (!%p17288_p12)
}
  0x92   : > { %s22322_s12 = smov 8   ;;  %s22323_s20 = smov 128  }
  0x93   : > { %14417 = dma.hbm_to_vmem [thread:$0]  (!%p17418_p5), %s22178_s7, 16384, %s395_s16, [#allocation11], %s22323_s20, %s22323_s20, %s22322_s12  }
  0x94   : > { %p22324_p13 = scmp.ne.s32.totalorder %s22319_s26, 0 }
  0x96   : > { %431 = sbr.rel (%p22324_p13) target bundleno = 2888 (0xb48), region = 68 }
  0x9d   : > { %p22325_p7 = scmp.ne.s32.totalorder %s22318_s25, 0 }
  0x9f   : > { %17297 = dma.done.wait (%p22325_p7), [#allocation3], 16384  }
  0xa0   : > { %17299 = vsyncadd (%p22325_p7), [#allocation3], 4294950912 }
  0xa1   : > { %17301 = dma.done.wait (%p22325_p7), [#allocation5], 32768  }
  0xa2   : > { %17303 = vsyncadd (%p22325_p7), [#allocation5], 4294934528 }
  0xa3   : > { %17305 = dma.done.wait (%p22325_p7), [#allocation8], 32768  }
  0xa4   : > { %17307 = vsyncadd (%p22325_p7), [#allocation8], 4294934528 }
  0xa5   : > { %17309 = dma.done.wait (%p22325_p7), [#allocation11], 16384  }
  0xa6   : > { %17311 = vsyncadd (%p22325_p7), [#allocation11], 4294950912  ;;  %v17326_v0 = vmov 0   ;;  %s22326_s26 = sadd.s32 4294967295, %s17314_s21   ;;  %v14449_v1 = vld [vmem:[%s22172_s1 + $0x4] ss:$8 sps:$4 sm:$0xff]  }
  0xa7   : > { %710 = vmatprep.mubr.bf16.mxu0 %v17326_v0  ;;  %s12595_s29 = sshll.u32 %s22326_s26, 4  ;;  %v14451_v2 = vld [vmem:[%s22172_s1] ss:$8 sps:$4 sm:$0xff]   ;;  %678 = vmatprep.subr.bf16.mxu0 %v14449_v1  ;;  %v14452_v3 = vld [vmem:[%s22172_s1 + $0x14] ss:$8 sps:$4 sm:$0xff]   ;;  %s22656_s24 = sld [smem:[#allocation98_spill]] }
  0xa8   : > { %p494_p5 = scmp.lt.s32.totalorder %s12595_s29, 31  ;;  %679 = vmatpush1.bf16.msra.mxu0 %v14451_v2  ;;  %v14454_v4 = vld [vmem:[%s22172_s1 + $0x10] ss:$8 sps:$4 sm:$0xff]   ;;  %v14455_v5 = vld [vmem:[%s22172_s1 + $0x24] ss:$8 sps:$4 sm:$0xff]  }
  0xa9   : > { %680 = vmatprep.subr.bf16.mxu0 %v14452_v3  ;;  %v14457_v6 = vld [vmem:[%s22172_s1 + $0x20] ss:$8 sps:$4 sm:$0xff]   ;;  %v14458_v7 = vld [vmem:[%s22172_s1 + $0x34] ss:$8 sps:$4 sm:$0xff]   ;;  %v14460_v8 = vld [vmem:[%s22172_s1 + $0x30] ss:$8 sps:$4 sm:$0xff]  }
  0xaa   : > { %s22658_s29 = smov (!%p494_p5, %s12595_s29), 31  ;;  %v14461_v9 = vld [vmem:[%s22172_s1 + $0x44] ss:$8 sps:$4 sm:$0xff]   ;;  %v14463_v10 = vld [vmem:[%s22172_s1 + $0x40] ss:$8 sps:$4 sm:$0xff]   ;;  %v1033_v13 = vld [vmem:[#allocation2 + $0x10] sm:$0xff] }
  0xab   : > { %s12596_s17 = sshll.u32 %s22658_s29, 2  ;;  %v14464_v11 = vld [vmem:[%s22172_s1 + $0x54] ss:$8 sps:$4 sm:$0xff]   ;;  %v14466_v12 = vld [vmem:[%s22172_s1 + $0x50] ss:$8 sps:$4 sm:$0xff]   ;;  %v1031_v26 = vld [vmem:[#allocation2] sm:$0xff] }
  0xac   : > { %681 = vmatpush1.bf16.msra.mxu0 %v14454_v4  ;;  %s17626_s19 = scalar_lea.vmem %s22171_s0, %s12596_s17  ;;  %v1037_v14 = vld [vmem:[#allocation2 + $0x30] sm:$0xff]  ;;  %v14467_v15 = vld [vmem:[%s22172_s1 + $0x64] ss:$8 sps:$4 sm:$0xff]   ;;  %v14469_v23 = vld [vmem:[%s22172_s1 + $0x60] ss:$8 sps:$4 sm:$0xff]   ;;  %s12598_s18 = sshll.u32 %s22658_s29, 3 }
  0xad   : > { %682 = vmatprep.subr.bf16.mxu0 %v14455_v5  ;;  %v12660_v16 = vcombine.high %v1033_v13, %v1037_v14  ;;  %v12659_v17 = vcombine.low %v1033_v13, %v1037_v14  ;;  %v1041_v18 = vld [vmem:[#allocation2 + $0x50] sm:$0xff]  ;;  %v1035_v28 = vld [vmem:[#allocation2 + $0x20] sm:$0xff]  ;;  %v14474_v51 = vld [vmem:[%s17626_s19 + $0x8] sm:$0xff]   ;;  %s22134_s13 = scalar_lea.vmem %s22656_s24, %s12598_s18 }
  0xae   : > { %v1045_v19 = vld [vmem:[#allocation2 + $0x70] sm:$0xff]  ;;  %v1039_v32 = vld [vmem:[#allocation2 + $0x40] sm:$0xff]  ;;  %v12656_v36 = vcombine.high %v1031_v26, %v1035_v28  ;;  %v12655_v40 = vcombine.low %v1031_v26, %v1035_v28 }
  0xaf   : > { %2067 = vmatprep.subr.bf16.mxu1 %v12660_v16  ;;  %v12668_v20 = vcombine.high %v1041_v18, %v1045_v19  ;;  %v1049_v21 = vld [vmem:[#allocation2 + $0x90] sm:$0xff]  ;;  %v12667_v24 = vcombine.low %v1041_v18, %v1045_v19  ;;  %v1043_v33 = vld [vmem:[#allocation2 + $0x60] sm:$0xff] }
  0xb0   : > { %683 = vmatpush1.bf16.msra.mxu0 %v14457_v6  ;;  %v1053_v22 = vld [vmem:[#allocation2 + $0xb0] sm:$0xff]  ;;  %2068 = vmatpush1.bf16.msra.mxu1 %v12659_v17  ;;  %v14473_v35 = vld [vmem:[%s17626_s19] sm:$0xff]   ;;  %v12664_v43 = vcombine.high %v1039_v32, %v1043_v33  ;;  %v12663_v48 = vcombine.low %v1039_v32, %v1043_v33  ;;  %v14480_v17 = vld [vmem:[%s17626_s19 + $0x38] sm:$0xff]  }
  0xb1   : > { %684 = vmatprep.subr.bf16.mxu0 %v14458_v7  ;;  %v14470_v25 = vld [vmem:[%s22172_s1 + $0x74] ss:$8 sps:$4 sm:$0xff]   ;;  %2069 = vmatprep.subr.bf16.mxu1 %v12668_v20  ;;  %v12676_v27 = vcombine.high %v1049_v21, %v1053_v22  ;;  %v14472_v31 = vld [vmem:[%s22172_s1 + $0x70] ss:$8 sps:$4 sm:$0xff]   ;;  %v12675_v34 = vcombine.low %v1049_v21, %v1053_v22  ;;  %v1047_v41 = vld [vmem:[#allocation2 + $0x80] sm:$0xff] }
  0xb2   : > { %v1057_v29 = vld [vmem:[#allocation2 + $0xd0] sm:$0xff]  ;;  %v1051_v42 = vld [vmem:[#allocation2 + $0xa0] sm:$0xff] }
  0xb3   : > { %v1061_v30 = vld [vmem:[#allocation2 + $0xf0] sm:$0xff]  ;;  %v1055_v49 = vld [vmem:[#allocation2 + $0xc0] sm:$0xff]  ;;  %v12672_v52 = vcombine.high %v1047_v41, %v1051_v42  ;;  %v12671_v57 = vcombine.low %v1047_v41, %v1051_v42 }
  0xb4   : > { %685 = vmatpush1.bf16.msra.mxu0 %v14460_v8  ;;  %2070 = vmatpush1.bf16.msra.mxu1 %v12667_v24  ;;  %v12684_v37 = vcombine.high %v1057_v29, %v1061_v30  ;;  %v1065_v38 = vld [vmem:[#allocation2 + $0x110] sm:$0xff]  ;;  %v12683_v44 = vcombine.low %v1057_v29, %v1061_v30  ;;  %v1059_v50 = vld [vmem:[#allocation2 + $0xe0] sm:$0xff] }
  0xb5   : > { %686 = vmatprep.subr.bf16.mxu0 %v14461_v9  ;;  %2071 = vmatprep.subr.bf16.mxu1 %v12676_v27  ;;  %v1069_v39 = vld [vmem:[#allocation2 + $0x130] sm:$0xff]  ;;  %v1063_v58 = vld [vmem:[#allocation2 + $0x100] sm:$0xff]  ;;  %v12680_v60 = vcombine.high %v1055_v49, %v1059_v50  ;;  %v12679_v63 = vcombine.low %v1055_v49, %v1059_v50 }
  0xb6   : > { %v1073_v45 = vld [vmem:[#allocation2 + $0x150] sm:$0xff]  ;;  %v12692_v47 = vcombine.high %v1065_v38, %v1069_v39  ;;  %v12691_v53 = vcombine.low %v1065_v38, %v1069_v39  ;;  %v1067_v59 = vld [vmem:[#allocation2 + $0x120] sm:$0xff] }
  0xb7   : > { %v1077_v46 = vld [vmem:[#allocation2 + $0x170] sm:$0xff]  ;;  %v1071_v1 = vld [vmem:[#allocation2 + $0x140] sm:$0xff]  ;;  %v12688_v4 = vcombine.high %v1063_v58, %v1067_v59  ;;  %v12687_v6 = vcombine.low %v1063_v58, %v1067_v59 }
  0xb8   : > { %687 = vmatpush1.bf16.msra.mxu0 %v14463_v10  ;;  %2072 = vmatpush1.bf16.msra.mxu1 %v12675_v34  ;;  %v1081_v54 = vld [vmem:[#allocation2 + $0x190] sm:$0xff]  ;;  %v12700_v56 = vcombine.high %v1073_v45, %v1077_v46  ;;  %v12699_v61 = vcombine.low %v1073_v45, %v1077_v46  ;;  %v1075_v2 = vld [vmem:[#allocation2 + $0x160] sm:$0xff] }
  0xb9   : > { %688 = vmatprep.subr.bf16.mxu0 %v14464_v11  ;;  %2073 = vmatprep.subr.bf16.mxu1 %v12684_v37  ;;  %v1085_v55 = vld [vmem:[#allocation2 + $0x1b0] sm:$0xff]  ;;  %v1079_v7 = vld [vmem:[#allocation2 + $0x180] sm:$0xff]  ;;  %v12696_v9 = vcombine.high %v1071_v1, %v1075_v2  ;;  %v12695_v10 = vcombine.low %v1071_v1, %v1075_v2  ;;  %v14476_v11 = vld [vmem:[%s17626_s19 + $0x18] sm:$0xff]  }
  0xba   : > { %v12708_v62 = vcombine.high %v1081_v54, %v1085_v55  ;;  %v14475_v3 = vld [vmem:[%s17626_s19 + $0x10] sm:$0xff]   ;;  %v12707_v5 = vcombine.low %v1081_v54, %v1085_v55  ;;  %v1083_v8 = vld [vmem:[#allocation2 + $0x1a0] sm:$0xff] }
  0xbb   : > { %v12703_v13 = vcombine.low %v1079_v7, %v1083_v8  ;;  %v14477_v14 = vld [vmem:[%s17626_s19 + $0x20] sm:$0xff]   ;;  %v14479_v16 = vld [vmem:[%s17626_s19 + $0x30] sm:$0xff]  }
  0xbc   : > { %689 = vmatpush1.bf16.msra.mxu0 %v14466_v12  ;;  %2074 = vmatpush1.bf16.msra.mxu1 %v12683_v44  ;;  %v12704_v12 = vcombine.high %v1079_v7, %v1083_v8  ;;  %v1087_v18 = vld [vmem:[#allocation2 + $0x1c0] sm:$0xff]  ;;  %v1089_v20 = vld [vmem:[#allocation2 + $0x1d0] sm:$0xff] }
  0xbd   : > { %690 = vmatprep.subr.bf16.mxu0 %v14467_v15  ;;  %2075 = vmatprep.subr.bf16.mxu1 %v12692_v47  ;;  %v14478_v15 = vld [vmem:[%s17626_s19 + $0x28] sm:$0xff]   ;;  %v1091_v19 = vld [vmem:[#allocation2 + $0x1e0] sm:$0xff]  ;;  %v1093_v22 = vld [vmem:[#allocation2 + $0x1f0] sm:$0xff] }
  0xbe   : > { %v12712_v21 = vcombine.high %v1087_v18, %v1091_v19  ;;  %v12716_v24 = vcombine.high %v1089_v20, %v1093_v22  ;;  %v1095_v26 = vld [vmem:[#allocation2 + $0x200] sm:$0xff]  ;;  %v1097_v28 = vld [vmem:[#allocation2 + $0x210] sm:$0xff] }
  0xbf   : > { %v1099_v27 = vld [vmem:[#allocation2 + $0x220] sm:$0xff]  ;;  %v1101_v30 = vld [vmem:[#allocation2 + $0x230] sm:$0xff] }
  0xc0   : > { %691 = vmatpush1.bf16.msra.mxu0 %v14469_v23  ;;  %2076 = vmatpush1.bf16.msra.mxu1 %v12691_v53  ;;  %v12711_v23 = vcombine.low %v1087_v18, %v1091_v19  ;;  %v12720_v29 = vcombine.high %v1095_v26, %v1099_v27  ;;  %v12723_v32 = vcombine.low %v1097_v28, %v1101_v30  ;;  %v1103_v33 = vld [vmem:[#allocation2 + $0x240] sm:$0xff]  ;;  %v1109_v37 = vld [vmem:[#allocation2 + $0x270] sm:$0xff] }
  0xc1   : > { %692 = vmatprep.subr.bf16.mxu0 %v14470_v25  ;;  %2077 = vmatprep.subr.bf16.mxu1 %v12700_v56  ;;  %v12715_v25 = vcombine.low %v1089_v20, %v1093_v22  ;;  %v1107_v34 = vld [vmem:[#allocation2 + $0x260] sm:$0xff]  ;;  %v1117_v45 = vld [vmem:[#allocation2 + $0x2b0] sm:$0xff] }
  0xc2   : > { %v12727_v38 = vcombine.low %v1103_v33, %v1107_v34  ;;  %v1111_v41 = vld [vmem:[#allocation2 + $0x280] sm:$0xff]  ;;  %v1125_v53 = vld [vmem:[#allocation2 + $0x2f0] sm:$0xff] }
  0xc3   : > { %v1115_v42 = vld [vmem:[#allocation2 + $0x2a0] sm:$0xff]  ;;  %v1129_v59 = vld [vmem:[#allocation2 + $0x310] sm:$0xff] }
  0xc4   : > { %693 = vmatpush1.bf16.msra.mxu0 %v14472_v31  ;;  %2078 = vmatpush1.bf16.msra.mxu1 %v12699_v61  ;;  %v12724_v31 = vcombine.high %v1097_v28, %v1101_v30  ;;  %v12736_v44 = vcombine.high %v1111_v41, %v1115_v42  ;;  %v12735_v46 = vcombine.low %v1111_v41, %v1115_v42  ;;  %v1119_v49 = vld [vmem:[#allocation2 + $0x2c0] sm:$0xff]  ;;  %v1133_v61 = vld [vmem:[#allocation2 + $0x330] sm:$0xff]  ;;  %v540_v30 = vlaneseq }
  0xc5   : > { %1841 = vmatprep.subr.bf16.mxu0 %v12656_v36  ;;  %2079 = vmatprep.subr.bf16.mxu1 %v12708_v62  ;;  %v12728_v36 = vcombine.high %v1103_v33, %v1107_v34  ;;  %v1123_v50 = vld [vmem:[#allocation2 + $0x2e0] sm:$0xff]  ;;  %v12755_v1 = vcombine.low %v1129_v59, %v1133_v61  ;;  %v1153_v20 = vld [vmem:[#allocation2 + $0x3d0] sm:$0xff] }
  0xc6   : > { %v12743_v54 = vcombine.low %v1119_v49, %v1123_v50  ;;  %v1131_v58 = vld [vmem:[#allocation2 + $0x320] sm:$0xff]  ;;  %v1157_v22 = vld [vmem:[#allocation2 + $0x3f0] sm:$0xff] }
  0xc7   : > { %711 = vmatmul.mubr.bf16.vlgmr.msra.gmra.mrb[0].mxu0 %v14473_v35  ;;  %v1105_v35 = vld [vmem:[#allocation2 + $0x250] sm:$0xff]  ;;  %v1135_v2 = vld [vmem:[#allocation2 + $0x340] sm:$0xff] }
  0xc8   : > { %720 = vmatprep.mubr.bf16.mxu0 %v17326_v0  ;;  %1842 = vmatpush1.bf16.msra.mxu0 %v12655_v40  ;;  %v12732_v39 = vcombine.high %v1105_v35, %v1109_v37  ;;  %v12731_v40 = vcombine.low %v1105_v35, %v1109_v37  ;;  %v1151_v18 = vld [vmem:[#allocation2 + $0x3c0] sm:$0xff] }
  0xc9   : > { %1843 = vmatprep.subr.bf16.mxu0 %v12664_v43  ;;  %2080 = vmatpush1.bf16.msra.mxu1 %v12707_v5  ;;  %v1113_v43 = vld [vmem:[#allocation2 + $0x290] sm:$0xff]  ;;  %v1155_v19 = vld [vmem:[#allocation2 + $0x3e0] sm:$0xff] }
  0xca   : > { %2081 = vmatprep.subr.bf16.mxu1 %v12716_v24  ;;  %v12740_v47 = vcombine.high %v1113_v43, %v1117_v45  ;;  %v12780_v24 = vcombine.high %v1153_v20, %v1157_v22 }
  0xcc   : > { %1844 = vmatpush1.bf16.msra.mxu0 %v12663_v48  ;;  %v12739_v48 = vcombine.low %v1113_v43, %v1117_v45 }
  0xcd   : > { %1845 = vmatprep.subr.bf16.mxu0 %v12672_v52  ;;  %2082 = vmatpush1.bf16.msra.mxu1 %v12715_v25  ;;  %v12744_v52 = vcombine.high %v1119_v49, %v1123_v50  ;;  %v12779_v25 = vcombine.low %v1153_v20, %v1157_v22 }
  0xce   : > { %2083 = vmatprep.subr.bf16.mxu1 %v12724_v31 }
  0xcf   : > { %721 = vmatmul.mubr.bf16.gmra.mrb[4].mxu0 %v14474_v51  ;;  %v1121_v51 = vld [vmem:[#allocation2 + $0x2d0] sm:$0xff] }
  0xd0   : > { %730 = vmatprep.mubr.bf16.mxu0 %v17326_v0  ;;  %1846 = vmatpush1.bf16.msra.mxu0 %v12671_v57  ;;  %v12748_v55 = vcombine.high %v1121_v51, %v1125_v53  ;;  %v12747_v56 = vcombine.low %v1121_v51, %v1125_v53  ;;  %v1127_v57 = vld [vmem:[#allocation2 + $0x300] sm:$0xff] }
  0xd1   : > { %1847 = vmatprep.subr.bf16.mxu0 %v12680_v60  ;;  %2084 = vmatpush1.bf16.msra.mxu1 %v12723_v32  ;;  %v12752_v60 = vcombine.high %v1127_v57, %v1131_v58  ;;  %v12751_v62 = vcombine.low %v1127_v57, %v1131_v58  ;;  %v538_v32 = vld [vmem:[%s22180_s9] ss:$4 sm:$0x3] }
  0xd2   : > { %2085 = vmatprep.subr.bf16.mxu1 %v12732_v39 }
  0xd4   : > { %1848 = vmatpush1.bf16.msra.mxu0 %v12679_v63  ;;  %v12756_v63 = vcombine.high %v1129_v59, %v1133_v61 }
  0xd5   : > { %1849 = vmatprep.subr.bf16.mxu0 %v12688_v4  ;;  %2086 = vmatpush1.bf16.msra.mxu1 %v12731_v40  ;;  %v1137_v4 = vld [vmem:[#allocation2 + $0x350] sm:$0xff] }
  0xd6   : > { %2087 = vmatprep.subr.bf16.mxu1 %v12740_v47 }
  0xd7   : > { %731 = vmatmul.mubr.bf16.gmra.mrb[8].mxu0 %v14475_v3  ;;  %v1139_v3 = vld [vmem:[#allocation2 + $0x360] sm:$0xff] }
  0xd8   : > { %740 = vmatprep.mubr.bf16.mxu0 %v17326_v0  ;;  %1850 = vmatpush1.bf16.msra.mxu0 %v12687_v6  ;;  %v12760_v5 = vcombine.high %v1135_v2, %v1139_v3  ;;  %v1141_v6 = vld [vmem:[#allocation2 + $0x370] sm:$0xff]  ;;  %v12759_v7 = vcombine.low %v1135_v2, %v1139_v3 }
  0xd9   : > { %1851 = vmatprep.subr.bf16.mxu0 %v12696_v9  ;;  %2088 = vmatpush1.bf16.msra.mxu1 %v12739_v48  ;;  %v12764_v8 = vcombine.high %v1137_v4, %v1141_v6  ;;  %v12763_v9 = vcombine.low %v1137_v4, %v1141_v6 }
  0xda   : > { %2089 = vmatprep.subr.bf16.mxu1 %v12748_v55 }
  0xdc   : > { %1852 = vmatpush1.bf16.msra.mxu0 %v12695_v10  ;;  %v1143_v10 = vld [vmem:[#allocation2 + $0x380] sm:$0xff] }
  0xdd   : > { %1853 = vmatprep.subr.bf16.mxu0 %v12704_v12  ;;  %2090 = vmatpush1.bf16.msra.mxu1 %v12747_v56  ;;  %v1145_v12 = vld [vmem:[#allocation2 + $0x390] sm:$0xff] }
  0xde   : > { %2091 = vmatprep.subr.bf16.mxu1 %v12756_v63 }
  0xdf   : > { %741 = vmatmul.mubr.bf16.gmra.mrb[12].mxu0 %v14476_v11  ;;  %v1147_v11 = vld [vmem:[#allocation2 + $0x3a0] sm:$0xff] }
  0xe0   : > { %750 = vmatprep.mubr.bf16.mxu0 %v17326_v0  ;;  %1854 = vmatpush1.bf16.msra.mxu0 %v12703_v13  ;;  %v12768_v13 = vcombine.high %v1143_v10, %v1147_v11 }
  0xe1   : > { %1855 = vmatprep.subr.bf16.mxu0 %v12712_v21  ;;  %2092 = vmatpush1.bf16.msra.mxu1 %v12755_v1  ;;  %v12776_v21 = vcombine.high %v1151_v18, %v1155_v19 }
  0xe2   : > { %2093 = vmatprep.subr.bf16.mxu1 %v12764_v8 }
  0xe4   : > { %1856 = vmatpush1.bf16.msra.mxu0 %v12711_v23  ;;  %v12775_v23 = vcombine.low %v1151_v18, %v1155_v19 }
  0xe5   : > { %1857 = vmatprep.subr.bf16.mxu0 %v12720_v29  ;;  %2094 = vmatpush1.bf16.msra.mxu1 %v12763_v9 }
  0xe7   : > { %751 = vmatmul.mubr.bf16.gmra.mrb[16].mxu0 %v14477_v14  ;;  %v1149_v14 = vld [vmem:[#allocation2 + $0x3b0] sm:$0xff] }
  0xe8   : > { %760 = vmatprep.mubr.bf16.mxu0 %v17326_v0 }
  0xef   : > { %761 = vmatmul.mubr.bf16.gmra.mrb[20].mxu0 %v14478_v15  ;;  %v12767_v15 = vcombine.low %v1143_v10, %v1147_v11 }
  0xf0   : > { %770 = vmatprep.mubr.bf16.mxu0 %v17326_v0 }
  0xf7   : > { %771 = vmatmul.mubr.bf16.gmra.mrb[24].mxu0 %v14479_v16  ;;  %v12772_v16 = vcombine.high %v1145_v12, %v1149_v14 }
  0xf8   : > { %780 = vmatprep.mubr.bf16.mxu0 %v17326_v0  ;;  %v12719_v0 = vcombine.low %v1095_v26, %v1099_v27  ;;  %v17670_v26 = vld [vmem:[#allocation2 + $0x8] sm:$0xff] }
  0xf9   : > { %2095 = vmatprep.subr.bf16.mxu1 %v12772_v16  ;;  %v17672_v27 = vld [vmem:[#allocation2 + $0x28] sm:$0xff] }
  0xfa   : > { %1858 = vmatpush1.bf16.msra.mxu0 %v12719_v0  ;;  %v12658_v28 = vcombine.high %v17670_v26, %v17672_v27  ;;  %v12657_v29 = vcombine.low %v17670_v26, %v17672_v27  ;;  %v17678_v0 = vshrl.u32 %v540_v30, 7 }
  0xfb   : > { %1859 = vmatprep.subr.bf16.mxu0 %v12728_v36 }
  0xfc   : > { %22327 = vst [vmem:[#allocation16_spill] sm:$0xff] %v17678_v0  ;;  %v17681_v31 = vsub.s32 0, %v17678_v0  ;;  %v17687_v33 = vsub.s32 1, %v17678_v0 }
  0xfe   : > { %1860 = vmatpush1.bf16.msra.mxu0 %v12727_v38  ;;  %22328 = vst [vmem:[#allocation17_spill] sm:$0xff] %v17681_v31  ;;  %22329 = vst [vmem:[#allocation18_spill] sm:$0xff] %v17687_v33  ;;  %v17690_v34 = vrot.slane %v538_v32, %v17681_v31  ;;  %v17693_v35 = vrot.slane %v538_v32, %v17687_v33 }
  0xff   : > { %781 = vmatmul.mubr.bf16.gmra.mrb[28].mxu0 %v14480_v17  ;;  %1861 = vmatprep.subr.bf16.mxu0 %v12736_v44  ;;  %v12771_v17 = vcombine.low %v1145_v12, %v1149_v14 }
 0x101   : > { %2096 = vmatpush1.bf16.msra.mxu1 %v12771_v17 }
 0x102   : > { %1862 = vmatpush1.bf16.msra.mxu0 %v12735_v46  ;;  %2097 = vmatprep.subr.bf16.mxu1 %v12780_v24 }
 0x103   : > { %1863 = vmatprep.subr.bf16.mxu0 %v12744_v52 }
 0x105   : > { %2098 = vmatpush1.bf16.msra.mxu1 %v12779_v25 }
 0x106   : > { %1864 = vmatpush1.bf16.msra.mxu0 %v12743_v54 }
 0x107   : > { %1865 = vmatprep.subr.bf16.mxu0 %v12752_v60 }
 0x10a   : > { %1866 = vmatpush1.bf16.msra.mxu0 %v12751_v62 }
 0x10b   : > { %1867 = vmatprep.subr.bf16.mxu0 %v12760_v5 }
 0x10e   : > { %1868 = vmatpush1.bf16.msra.mxu0 %v12759_v7 }
 0x10f   : > { %1869 = vmatprep.subr.bf16.mxu0 %v12768_v13 }
 0x112   : > { %1870 = vmatpush1.bf16.msra.mxu0 %v12767_v15 }
 0x113   : > { %1871 = vmatprep.subr.bf16.mxu0 %v12776_v21 }
 0x116   : > { %1872 = vmatpush1.bf16.msra.mxu0 %v12775_v23 }
 0x117   : > { %1954 = vmatprep.subr.bf16.mxu0 %v12658_v28 }
 0x19a   : > { %v712_v36 = vpop.f32.mrb[0].mxu0 }
 0x19b   : > { %v17696_v37 = vadd.f32 %v712_v36, %v17690_v34  ;;  %v714_v38 = vpop.f32.mrb[1].mxu0 }
 0x19c   : > { %v17699_v39 = vadd.f32 %v714_v38, %v17693_v35  ;;  %v716_v40 = vpop.f32.mrb[2].mxu0 }
 0x19d   : > { %v12623_v41 = vmul.f32 -1.442695, %v17696_v37  ;;  %v17703_v42 = vadd.f32 %v716_v40, %v17690_v34  ;;  %v718_v43 = vpop.f32.mrb[3].mxu0 }
 0x19e   : > { %v12624_v44 = vmul.f32 -1.442695, %v17699_v39  ;;  %v17707_v45 = vadd.f32 %v718_v43, %v17693_v35 }
 0x19f   : > { %15073 = vpow2.f32 %v12623_v41  ;;  %v12625_v46 = vmul.f32 -1.442695, %v17703_v42 }
 0x1a0   : > { %15075 = vpow2.f32 %v12624_v44  ;;  %v12626_v47 = vmul.f32 -1.442695, %v17707_v45 }
 0x1a1   : > { %15077 = vpow2.f32 %v12625_v46 }
 0x1a2   : > { %15079 = vpow2.f32 %v12626_v47  ;;  %v722_v48 = vpop.f32.mrb[4].mxu0 }
 0x1a3   : > { %v17712_v49 = vadd.f32 %v722_v48, %v17690_v34  ;;  %v724_v50 = vpop.f32.mrb[5].mxu0 }
 0x1a4   : > { %v17715_v51 = vadd.f32 %v724_v50, %v17693_v35  ;;  %v726_v52 = vpop.f32.mrb[6].mxu0 }
 0x1a5   : > { %v12627_v53 = vmul.f32 -1.442695, %v17712_v49  ;;  %v17719_v54 = vadd.f32 %v726_v52, %v17690_v34  ;;  %v728_v55 = vpop.f32.mrb[7].mxu0 }
 0x1a6   : > { %v12628_v56 = vmul.f32 -1.442695, %v17715_v51  ;;  %v17723_v57 = vadd.f32 %v728_v55, %v17693_v35  ;;  %v17761_v55 = vld [vmem:[#allocation2 + $0x68] sm:$0xff] }
 0x1a7   : > { %15081 = vpow2.f32 %v12627_v53  ;;  %v12629_v58 = vmul.f32 -1.442695, %v17719_v54  ;;  %v17759_v53 = vld [vmem:[#allocation2 + $0x48] sm:$0xff] }
 0x1a8   : > { %15083 = vpow2.f32 %v12628_v56  ;;  %v12630_v59 = vmul.f32 -1.442695, %v17723_v57 }
 0x1a9   : > { %v15074_v60 = vpop.eup %15073  ;;  %15085 = vpow2.f32 %v12629_v58 }
 0x1aa   : > { %v15076_v61 = vpop.eup %15075  ;;  %v887_v62 = vadd.f32 1.0, %v15074_v60  ;;  %15087 = vpow2.f32 %v12630_v59  ;;  %v732_v63 = vpop.f32.mrb[8].mxu0 }
 0x1ab   : > { %v15078_v1 = vpop.eup %15077  ;;  %v888_v2 = vadd.f32 1.0, %v15076_v61  ;;  %v17728_v3 = vadd.f32 %v732_v63, %v17690_v34  ;;  %v734_v4 = vpop.f32.mrb[9].mxu0 }
 0x1ac   : > { %v15080_v5 = vpop.eup %15079  ;;  %15089 = vrcp.f32 %v887_v62  ;;  %v889_v6 = vadd.f32 1.0, %v15078_v1  ;;  %v17731_v7 = vadd.f32 %v734_v4, %v17693_v35  ;;  %v736_v8 = vpop.f32.mrb[10].mxu0 }
 0x1ad   : > { %15091 = vrcp.f32 %v888_v2  ;;  %v890_v9 = vadd.f32 1.0, %v15080_v5  ;;  %v12631_v10 = vmul.f32 -1.442695, %v17728_v3  ;;  %v17735_v11 = vadd.f32 %v736_v8, %v17690_v34  ;;  %v738_v12 = vpop.f32.mrb[11].mxu0 }
 0x1ae   : > { %15093 = vrcp.f32 %v889_v6  ;;  %v12632_v13 = vmul.f32 -1.442695, %v17731_v7  ;;  %v17739_v14 = vadd.f32 %v738_v12, %v17693_v35  ;;  %v12666_v5 = vcombine.high %v17759_v53, %v17761_v55 }
 0x1af   : > { %15095 = vrcp.f32 %v890_v9  ;;  %v12633_v15 = vmul.f32 -1.442695, %v17735_v11 }
 0x1b0   : > { %15097 = vpow2.f32 %v12631_v10  ;;  %v12634_v16 = vmul.f32 -1.442695, %v17739_v14 }
 0x1b1   : > { %v15082_v17 = vpop.eup %15081  ;;  %15099 = vpow2.f32 %v12632_v13 }
 0x1b2   : > { %v15084_v18 = vpop.eup %15083  ;;  %v891_v19 = vadd.f32 1.0, %v15082_v17  ;;  %15101 = vpow2.f32 %v12633_v15  ;;  %v742_v20 = vpop.f32.mrb[12].mxu0  ;;  %v17795_v17 = vld [vmem:[#allocation2 + $0x88] sm:$0xff] }
 0x1b3   : > { %v15086_v21 = vpop.eup %15085  ;;  %v892_v22 = vadd.f32 1.0, %v15084_v18  ;;  %15103 = vpow2.f32 %v12634_v16  ;;  %v17744_v23 = vadd.f32 %v742_v20, %v17690_v34  ;;  %v744_v24 = vpop.f32.mrb[13].mxu0  ;;  %v17797_v18 = vld [vmem:[#allocation2 + $0xa8] sm:$0xff] }
 0x1b4   : > { %v15088_v25 = vpop.eup %15087  ;;  %15105 = vrcp.f32 %v891_v19  ;;  %v893_v28 = vadd.f32 1.0, %v15086_v21  ;;  %v17747_v30 = vadd.f32 %v744_v24, %v17693_v35  ;;  %v746_v32 = vpop.f32.mrb[14].mxu0 }
 0x1b5   : > { %15107 = vrcp.f32 %v892_v22  ;;  %v894_v36 = vadd.f32 1.0, %v15088_v25  ;;  %v12635_v38 = vmul.f32 -1.442695, %v17744_v23  ;;  %v17751_v40 = vadd.f32 %v746_v32, %v17690_v34  ;;  %v748_v41 = vpop.f32.mrb[15].mxu0  ;;  %v17810_v32 = vld [vmem:[#allocation2 + $0xe8] sm:$0xff] }
 0x1b6   : > { %v15090_v43 = vpop.eup %15089  ;;  %15109 = vrcp.f32 %v893_v28  ;;  %v12636_v44 = vmul.f32 -1.442695, %v17747_v30  ;;  %v17755_v46 = vadd.f32 %v748_v41, %v17693_v35  ;;  %v17808_v28 = vld [vmem:[#allocation2 + $0xc8] sm:$0xff]  ;;  %v12665_v41 = vcombine.low %v17759_v53, %v17761_v55 }
 0x1b7   : > { %v15092_v47 = vpop.eup %15091  ;;  %15111 = vrcp.f32 %v894_v36  ;;  %v12637_v48 = vmul.f32 -1.442695, %v17751_v40  ;;  %v17767_v60 = vmul.f32 %v15090_v43, %v17696_v37  ;;  %v12674_v43 = vcombine.high %v17795_v17, %v17797_v18 }
 0x1b8   : > { %v15094_v50 = vpop.eup %15093  ;;  %15113 = vpow2.f32 %v12635_v38  ;;  %v12638_v52 = vmul.f32 -1.442695, %v17755_v46  ;;  %v17770_v61 = vmul.f32 %v15092_v47, %v17699_v39 }
 0x1b9   : > { %v15096_v56 = vpop.eup %15095  ;;  %v17764_v58 = vmul.f32 %v15094_v50, %v17703_v42  ;;  %15115 = vpow2.f32 %v12636_v44  ;;  %22331 = vst [vmem:[#allocation20_spill] sm:$0xff] %v17767_v60  ;;  %v12673_v50 = vcombine.low %v17795_v17, %v17797_v18  ;;  %v17862_v17 = vld [vmem:[#allocation2 + $0x128] sm:$0xff] }
 0x1ba   : > { %v15098_v59 = vpop.eup %15097  ;;  %22332 = vst [vmem:[#allocation21_spill] sm:$0xff] %v17770_v61  ;;  %v17773_v62 = vmul.f32 %v15096_v56, %v17707_v45  ;;  %15117 = vpow2.f32 %v12637_v48  ;;  %v752_v63 = vpop.f32.mrb[16].mxu0 }
 0x1bb   : > { %22330 = vst [vmem:[#allocation19_spill] sm:$0xff] %v17764_v58  ;;  %v15100_v1 = vpop.eup %15099  ;;  %v895_v2 = vadd.f32 1.0, %v15098_v59  ;;  %15119 = vpow2.f32 %v12638_v52  ;;  %v17776_v4 = vadd.f32 %v752_v63, %v17690_v34  ;;  %v754_v42 = vpop.f32.mrb[17].mxu0  ;;  %v17782_v39 = vpack.c.bf16 %v17764_v58, %v17767_v60 }
 0x1bc   : > { %22333 = vst [vmem:[#allocation22_spill] sm:$0xff] %v17773_v62  ;;  %v15102_v37 = vpop.eup %15101  ;;  %v896_v6 = vadd.f32 1.0, %v15100_v1  ;;  %v17785_v45 = vadd.f32 %v754_v42, %v17693_v35  ;;  %v756_v8 = vpop.f32.mrb[18].mxu0  ;;  %v17789_v9 = vpack.c.bf16 %v17773_v62, %v17770_v61 }
 0x1bd   : > { %v15104_v10 = vpop.eup %15103  ;;  %15121 = vrcp.f32 %v895_v2  ;;  %v897_v12 = vadd.f32 1.0, %v15102_v37  ;;  %v12639_v13 = vmul.f32 -1.442695, %v17776_v4  ;;  %v17793_v15 = vadd.f32 %v756_v8, %v17690_v34  ;;  %v758_v16 = vpop.f32.mrb[19].mxu0 }
 0x1be   : > { %v15106_v19 = vpop.eup %15105  ;;  %15123 = vrcp.f32 %v896_v6  ;;  %v898_v20 = vadd.f32 1.0, %v15104_v10  ;;  %v12640_v21 = vmul.f32 -1.442695, %v17785_v45  ;;  %v17801_v22 = vadd.f32 %v758_v16, %v17693_v35  ;;  %1873 = vmatprep.mubr.bf16.mxu0 %v17789_v9  ;;  %2099 = vmatprep.mubr.bf16.mxu1 %v17789_v9  ;;  %v17860_v16 = vld [vmem:[#allocation2 + $0x108] sm:$0xff] }
 0x1bf   : > { %v15108_v24 = vpop.eup %15107  ;;  %15125 = vrcp.f32 %v897_v12  ;;  %v12641_v25 = vmul.f32 -1.442695, %v17793_v15  ;;  %1874 = vmatmul.mubr.bf16.vlgmr.msra.gmra.mrb[32].mxu0 %v17782_v39  ;;  %2100 = vmatmul.mubr.bf16.vlgmr.msra.gmra.mrb[0].mxu1 %v17782_v39  ;;  %v17821_v47 = vmul.f32 %v15106_v19, %v17712_v49  ;;  %v12682_v49 = vcombine.high %v17808_v28, %v17810_v32 }
 0x1c0   : > { %v15110_v36 = vpop.eup %15109  ;;  %15127 = vrcp.f32 %v898_v20  ;;  %v12642_v38 = vmul.f32 -1.442695, %v17801_v22  ;;  %1955 = vmatpush1.bf16.msra.mxu0 %v12657_v29  ;;  %v17829_v27 = vmul.f32 %v15108_v24, %v17715_v51  ;;  %v12681_v24 = vcombine.low %v17808_v28, %v17810_v32 }
 0x1c1   : > { %v15112_v44 = vpop.eup %15111  ;;  %22334 = vst [vmem:[#allocation23_spill] sm:$0xff] %v17821_v47  ;;  %v17824_v48 = vmul.f32 %v15110_v36, %v17719_v54  ;;  %15129 = vpow2.f32 %v12639_v13  ;;  %1956 = vmatprep.subr.bf16.mxu0 %v12666_v5  ;;  %v12690_v36 = vcombine.high %v17860_v16, %v17862_v17  ;;  %v12689_v28 = vcombine.low %v17860_v16, %v17862_v17 }
 0x1c2   : > { %v15114_v26 = vpop.eup %15113  ;;  %22336 = vst [vmem:[#allocation25_spill] sm:$0xff] %v17829_v27  ;;  %v17832_v29 = vmul.f32 %v15112_v44, %v17723_v57  ;;  %15131 = vpow2.f32 %v12640_v21  ;;  %v762_v52 = vpop.f32.mrb[20].mxu0 }
 0x1c3   : > { %22335 = vst [vmem:[#allocation24_spill] sm:$0xff] %v17824_v48  ;;  %v15116_v53 = vpop.eup %15115  ;;  %v899_v54 = vadd.f32 1.0, %v15114_v26  ;;  %15133 = vpow2.f32 %v12641_v25  ;;  %v17837_v55 = vadd.f32 %v762_v52, %v17690_v34  ;;  %v764_v56 = vpop.f32.mrb[21].mxu0  ;;  %v17841_v59 = vpack.c.bf16 %v17824_v48, %v17821_v47 }
 0x1c4   : > { %22337 = vst [vmem:[#allocation26_spill] sm:$0xff] %v17832_v29  ;;  %v15118_v51 = vpop.eup %15117  ;;  %v900_v63 = vadd.f32 1.0, %v15116_v53  ;;  %15135 = vpow2.f32 %v12642_v38  ;;  %v17844_v57 = vadd.f32 %v764_v56, %v17693_v35  ;;  %1957 = vmatpush1.bf16.msra.mxu0 %v12665_v41  ;;  %v766_v1 = vpop.f32.mrb[22].mxu0  ;;  %v17848_v2 = vpack.c.bf16 %v17832_v29, %v17829_v27  ;;  %v17872_v38 = vld [vmem:[#allocation2 + $0x148] sm:$0xff] }
 0x1c5   : > { %v15120_v42 = vpop.eup %15119  ;;  %15137 = vrcp.f32 %v899_v54  ;;  %v901_v5 = vadd.f32 1.0, %v15118_v51  ;;  %v12643_v37 = vmul.f32 -1.442695, %v17837_v55  ;;  %v17852_v6 = vadd.f32 %v766_v1, %v17690_v34  ;;  %v768_v8 = vpop.f32.mrb[23].mxu0  ;;  %1958 = vmatprep.subr.bf16.mxu0 %v12674_v43  ;;  %v17874_v41 = vld [vmem:[#allocation2 + $0x168] sm:$0xff] }
 0x1c6   : > { %15139 = vrcp.f32 %v900_v63  ;;  %v902_v10 = vadd.f32 1.0, %v15120_v42  ;;  %v12644_v12 = vmul.f32 -1.442695, %v17844_v57  ;;  %v17856_v13 = vadd.f32 %v768_v8, %v17693_v35  ;;  %1883 = vmatprep.mubr.bf16.mxu0 %v17848_v2  ;;  %2109 = vmatprep.mubr.bf16.mxu1 %v17848_v2 }
 0x1c7   : > { %v15122_v18 = vpop.eup %15121  ;;  %15141 = vrcp.f32 %v901_v5  ;;  %v12645_v19 = vmul.f32 -1.442695, %v17852_v6  ;;  %1884 = vmatmul.mubr.bf16.gmra.mrb[36].mxu0 %v17841_v59  ;;  %2110 = vmatmul.mubr.bf16.gmra.mrb[4].mxu1 %v17841_v59 }
 0x1c8   : > { %v15124_v20 = vpop.eup %15123  ;;  %15143 = vrcp.f32 %v902_v10  ;;  %v12646_v21 = vmul.f32 -1.442695, %v17856_v13  ;;  %1959 = vmatpush1.bf16.msra.mxu0 %v12673_v50  ;;  %v17877_v44 = vmul.f32 %v15122_v18, %v17728_v3 }
 0x1c9   : > { %v15126_v25 = vpop.eup %15125  ;;  %15145 = vpow2.f32 %v12643_v37  ;;  %1960 = vmatprep.subr.bf16.mxu0 %v12682_v49  ;;  %v17885_v52 = vmul.f32 %v15124_v20, %v17731_v7  ;;  %v12698_v7 = vcombine.high %v17872_v38, %v17874_v41  ;;  %v17916_v20 = vld [vmem:[#allocation2 + $0x188] sm:$0xff] }
 0x1ca   : > { %v15128_v43 = vpop.eup %15127  ;;  %22338 = vst [vmem:[#allocation27_spill] sm:$0xff] %v17877_v44  ;;  %v17880_v26 = vmul.f32 %v15126_v25, %v17735_v11  ;;  %15147 = vpow2.f32 %v12644_v12  ;;  %v772_v50 = vpop.f32.mrb[24].mxu0 }
 0x1cb   : > { %v15130_v32 = vpop.eup %15129  ;;  %22340 = vst [vmem:[#allocation29_spill] sm:$0xff] %v17885_v52  ;;  %v17888_v49 = vmul.f32 %v15128_v43, %v17739_v14  ;;  %15149 = vpow2.f32 %v12645_v19  ;;  %v17891_v53 = vadd.f32 %v772_v50, %v17690_v34  ;;  %v774_v3 = vpop.f32.mrb[25].mxu0  ;;  %v12697_v50 = vcombine.low %v17872_v38, %v17874_v41 }
 0x1cc   : > { %22339 = vst [vmem:[#allocation28_spill] sm:$0xff] %v17880_v26  ;;  %v15132_v54 = vpop.eup %15131  ;;  %v903_v11 = vadd.f32 1.0, %v15130_v32  ;;  %15151 = vpow2.f32 %v12646_v21  ;;  %v17894_v56 = vadd.f32 %v774_v3, %v17693_v35  ;;  %1961 = vmatpush1.bf16.msra.mxu0 %v12681_v24  ;;  %v776_v51 = vpop.f32.mrb[26].mxu0  ;;  %v17907_v37 = vpack.c.bf16 %v17880_v26, %v17877_v44  ;;  %v17918_v21 = vld [vmem:[#allocation2 + $0x1a8] sm:$0xff] }
 0x1cd   : > { %22341 = vst [vmem:[#allocation30_spill] sm:$0xff] %v17888_v49  ;;  %v15134_v63 = vpop.eup %15133  ;;  %v904_v1 = vadd.f32 1.0, %v15132_v54  ;;  %v17899_v14 = vadd.f32 %v776_v51, %v17690_v34  ;;  %v778_v42 = vpop.f32.mrb[27].mxu0  ;;  %v17903_v5 = vpack.c.bf16 %v17888_v49, %v17885_v52  ;;  %1962 = vmatprep.subr.bf16.mxu0 %v12690_v36  ;;  %v12647_v12 = vmul.f32 -1.442695, %v17891_v53 }
 0x1ce   : > { %v15136_v8 = vpop.eup %15135  ;;  %15153 = vrcp.f32 %v903_v11  ;;  %v905_v10 = vadd.f32 1.0, %v15134_v63  ;;  %v17911_v16 = vadd.f32 %v778_v42, %v17693_v35  ;;  %v12648_v19 = vmul.f32 -1.442695, %v17894_v56 }
 0x1cf   : > { %v15138_v17 = vpop.eup %15137  ;;  %15155 = vrcp.f32 %v904_v1  ;;  %v906_v18 = vadd.f32 1.0, %v15136_v8  ;;  %1893 = vmatprep.mubr.bf16.mxu0 %v17903_v5  ;;  %2119 = vmatprep.mubr.bf16.mxu1 %v17903_v5  ;;  %v12649_v25 = vmul.f32 -1.442695, %v17899_v14  ;;  %v12705_v54 = vcombine.low %v17916_v20, %v17918_v21 }
 0x1d0   : > { %v15140_v24 = vpop.eup %15139  ;;  %15157 = vrcp.f32 %v905_v10  ;;  %1894 = vmatmul.mubr.bf16.gmra.mrb[40].mxu0 %v17907_v37  ;;  %2120 = vmatmul.mubr.bf16.gmra.mrb[8].mxu1 %v17907_v37  ;;  %v12650_v43 = vmul.f32 -1.442695, %v17911_v16  ;;  %v12706_v11 = vcombine.high %v17916_v20, %v17918_v21  ;;  %v17931_v63 = vmul.f32 %v15138_v17, %v17744_v23 }
 0x1d1   : > { %v15142_v36 = vpop.eup %15141  ;;  %15159 = vrcp.f32 %v906_v18  ;;  %1963 = vmatpush1.bf16.msra.mxu0 %v12689_v28 }
 0x1d2   : > { %v15144_v32 = vpop.eup %15143  ;;  %15161 = vpow2.f32 %v12647_v12  ;;  %v782_v3 = vpop.f32.mrb[28].mxu0  ;;  %1964 = vmatprep.subr.bf16.mxu0 %v12698_v7  ;;  %22342 = vst [vmem:[#allocation31_spill] sm:$0xff] %v17931_v63  ;;  %v17940_v7 = vmul.f32 %v15142_v36, %v17751_v40  ;;  %v17946_v12 = vmul.f32 %v15140_v24, %v17747_v30  ;;  %v1092_v40 = vld [vmem:[#allocation2 + $0x1e8] sm:$0xff] }
 0x1d3   : > { %v15146_v51 = vpop.eup %15145  ;;  %v17934_v1 = vmul.f32 %v15144_v32, %v17755_v46  ;;  %15163 = vpow2.f32 %v12648_v19  ;;  %v17937_v38 = vadd.f32 %v782_v3, %v17690_v34  ;;  %v784_v41 = vpop.f32.mrb[29].mxu0  ;;  %v1088_v19 = vld [vmem:[#allocation2 + $0x1c8] sm:$0xff] }
 0x1d4   : > { %v15148_v28 = vpop.eup %15147  ;;  %22344 = vst [vmem:[#allocation33_spill] sm:$0xff] %v17940_v7  ;;  %v907_v42 = vadd.f32 1.0, %v15146_v51  ;;  %15165 = vpow2.f32 %v12649_v25  ;;  %v17943_v8 = vadd.f32 %v784_v41, %v17693_v35  ;;  %v786_v10 = vpop.f32.mrb[30].mxu0  ;;  %22345 = vst [vmem:[#allocation34_spill] sm:$0xff] %v17946_v12  ;;  %v17963_v32 = vpack.c.bf16 %v17940_v7, %v17931_v63  ;;  %v1100_v51 = vld [vmem:[#allocation2 + $0x228] sm:$0xff] }
 0x1d5   : > { %22343 = vst [vmem:[#allocation32_spill] sm:$0xff] %v17934_v1  ;;  %v15150_v23 = vpop.eup %15149  ;;  %v908_v46 = vadd.f32 1.0, %v15148_v28  ;;  %15167 = vpow2.f32 %v12650_v43  ;;  %1965 = vmatpush1.bf16.msra.mxu0 %v12697_v50  ;;  %v17949_v17 = vadd.f32 %v786_v10, %v17690_v34  ;;  %v788_v18 = vpop.f32.mrb[31].mxu0  ;;  %v12651_v25 = vmul.f32 -1.442695, %v17937_v38 }
 0x1d6   : > { %v15152_v20 = vpop.eup %15151  ;;  %15169 = vrcp.f32 %v907_v42  ;;  %v909_v21 = vadd.f32 1.0, %v15150_v23  ;;  %v17953_v36 = vadd.f32 %v788_v18, %v17693_v35  ;;  %1966 = vmatprep.subr.bf16.mxu0 %v12706_v11  ;;  %v12652_v24 = vmul.f32 -1.442695, %v17943_v8  ;;  %v1096_v35 = vld [vmem:[#allocation2 + $0x208] sm:$0xff] }
 0x1d7   : > { %15171 = vrcp.f32 %v908_v46  ;;  %v910_v30 = vadd.f32 1.0, %v15152_v20  ;;  %v17958_v34 = vpack.c.bf16 %v17934_v1, %v17946_v12  ;;  %v12653_v50 = vmul.f32 -1.442695, %v17949_v17  ;;  %v1104_v1 = vld [vmem:[#allocation2 + $0x248] sm:$0xff] }
 0x1d8   : > { %v15154_v43 = vpop.eup %15153  ;;  %15173 = vrcp.f32 %v909_v21  ;;  %v12714_v3 = vcombine.high %v1088_v19, %v1092_v40  ;;  %v12654_v41 = vmul.f32 -1.442695, %v17953_v36  ;;  %v12713_v10 = vcombine.low %v1088_v19, %v1092_v40 }
 0x1d9   : > { %v15156_v11 = vpop.eup %15155  ;;  %15175 = vrcp.f32 %v910_v30  ;;  %1903 = vmatprep.mubr.bf16.mxu0 %v17958_v34  ;;  %2129 = vmatprep.mubr.bf16.mxu1 %v17958_v34  ;;  %v12722_v23 = vcombine.high %v1096_v35, %v1100_v51  ;;  %v17980_v19 = vmul.f32 %v15154_v43, %v17776_v4 }
 0x1da   : > { %v15158_v28 = vpop.eup %15157  ;;  %15177 = vpow2.f32 %v12651_v25  ;;  %1904 = vmatmul.mubr.bf16.gmra.mrb[44].mxu0 %v17963_v32  ;;  %2130 = vmatmul.mubr.bf16.gmra.mrb[12].mxu1 %v17963_v32  ;;  %v17971_v18 = vmul.f32 %v15156_v11, %v17785_v45 }
 0x1db   : > { %v15160_v42 = vpop.eup %15159  ;;  %15179 = vpow2.f32 %v12652_v24  ;;  %1967 = vmatpush1.bf16.msra.mxu0 %v12705_v54  ;;  %v17974_v20 = vmul.f32 %v15158_v28, %v17793_v15  ;;  %v1108_v24 = vld [vmem:[#allocation2 + $0x268] sm:$0xff]  ;;  %22349 = vst [vmem:[#allocation38_spill] sm:$0xff] %v17980_v19 }
 0x1dc   : > { %v15162_v46 = vpop.eup %15161  ;;  %22346 = vst [vmem:[#allocation35_spill] sm:$0xff] %v17971_v18  ;;  %v17977_v21 = vmul.f32 %v15160_v42, %v17801_v22  ;;  %15181 = vpow2.f32 %v12653_v50  ;;  %1968 = vmatprep.subr.bf16.mxu0 %v12714_v3  ;;  %v12721_v50 = vcombine.low %v1096_v35, %v1100_v51  ;;  %v12730_v43 = vcombine.high %v1104_v1, %v1108_v24  ;;  %v1112_v28 = vld [vmem:[#allocation2 + $0x288] sm:$0xff] }
 0x1dd   : > { %22347 = vst [vmem:[#allocation36_spill] sm:$0xff] %v17974_v20  ;;  %v15164_v25 = vpop.eup %15163  ;;  %v911_v30 = vadd.f32 1.0, %v15162_v46  ;;  %15183 = vpow2.f32 %v12654_v41  ;;  %v17989_v4 = vpack.c.bf16 %v17974_v20, %v17980_v19  ;;  %v1116_v42 = vld [vmem:[#allocation2 + $0x2a8] sm:$0xff]  ;;  %v12729_v51 = vcombine.low %v1104_v1, %v1108_v24 }
 0x1de   : > { %22348 = vst [vmem:[#allocation37_spill] sm:$0xff] %v17977_v21  ;;  %v15166_v54 = vpop.eup %15165  ;;  %v912_v40 = vadd.f32 1.0, %v15164_v25  ;;  %v17984_v45 = vpack.c.bf16 %v17977_v21, %v17971_v18 }
 0x1df   : > { %v15168_v15 = vpop.eup %15167  ;;  %15185 = vrcp.f32 %v911_v30  ;;  %v913_v22 = vadd.f32 1.0, %v15166_v54  ;;  %1969 = vmatpush1.bf16.msra.mxu0 %v12713_v10  ;;  %v12738_v54 = vcombine.high %v1112_v28, %v1116_v42 }
 0x1e0   : > { %v15170_v3 = vpop.eup %15169  ;;  %15187 = vrcp.f32 %v912_v40  ;;  %v914_v11 = vadd.f32 1.0, %v15168_v15  ;;  %1913 = vmatprep.mubr.bf16.mxu0 %v17984_v45  ;;  %1970 = vmatprep.subr.bf16.mxu0 %v12722_v23 }
 0x1e1   : > { %v15172_v41 = vpop.eup %15171  ;;  %15189 = vrcp.f32 %v913_v22  ;;  %2139 = vmatprep.mubr.bf16.mxu1 %v17984_v45  ;;  %v1120_v22 = vld [vmem:[#allocation2 + $0x2c8] sm:$0xff] }
 0x1e2   : > { %v15174_v46 = vpop.eup %15173  ;;  %15191 = vrcp.f32 %v914_v11  ;;  %1914 = vmatmul.mubr.bf16.gmra.mrb[48].mxu0 %v17989_v4  ;;  %2140 = vmatmul.mubr.bf16.gmra.mrb[16].mxu1 %v17989_v4  ;;  %v17995_v23 = vmul.f32 %v15172_v41, %v17844_v57  ;;  %v1124_v11 = vld [vmem:[#allocation2 + $0x2e8] sm:$0xff] }
 0x1e3   : > { %v15176_v35 = vpop.eup %15175  ;;  %1971 = vmatpush1.bf16.msra.mxu0 %v12721_v50  ;;  %v17998_v25 = vmul.f32 %v15174_v46, %v17852_v6  ;;  %v18004_v50 = vmul.f32 %v15170_v3, %v17837_v55  ;;  %v12746_v55 = vcombine.high %v1120_v22, %v1124_v11  ;;  %v1128_v46 = vld [vmem:[#allocation2 + $0x308] sm:$0xff] }
 0x1e4   : > { %v15178_v10 = vpop.eup %15177  ;;  %22350 = vst [vmem:[#allocation39_spill] sm:$0xff] %v17995_v23  ;;  %v18001_v30 = vmul.f32 %v15176_v35, %v17856_v13  ;;  %1972 = vmatprep.subr.bf16.mxu0 %v12730_v43  ;;  %v12737_v13 = vcombine.low %v1112_v28, %v1116_v42  ;;  %v1132_v35 = vld [vmem:[#allocation2 + $0x328] sm:$0xff]  ;;  %v12745_v28 = vcombine.low %v1120_v22, %v1124_v11 }
 0x1e5   : > { %22351 = vst [vmem:[#allocation40_spill] sm:$0xff] %v17998_v25  ;;  %v15180_v40 = vpop.eup %15179  ;;  %v915_v15 = vadd.f32 1.0, %v15178_v10  ;;  %22353 = vst [vmem:[#allocation42_spill] sm:$0xff] %v18004_v50  ;;  %v18013_v41 = vpack.c.bf16 %v17998_v25, %v18004_v50 }
 0x1e6   : > { %22352 = vst [vmem:[#allocation41_spill] sm:$0xff] %v18001_v30  ;;  %v15182_v19 = vpop.eup %15181  ;;  %v916_v1 = vadd.f32 1.0, %v15180_v40  ;;  %v18008_v57 = vpack.c.bf16 %v18001_v30, %v17995_v23 }
 0x1e7   : > { %v15184_v6 = vpop.eup %15183  ;;  %15193 = vrcp.f32 %v915_v15  ;;  %v917_v24 = vadd.f32 1.0, %v15182_v19  ;;  %1973 = vmatpush1.bf16.msra.mxu0 %v12729_v51 }
 0x1e8   : > { %15195 = vrcp.f32 %v916_v1  ;;  %v918_v43 = vadd.f32 1.0, %v15184_v6  ;;  %1923 = vmatprep.mubr.bf16.mxu0 %v18008_v57  ;;  %1974 = vmatprep.subr.bf16.mxu0 %v12738_v54  ;;  %v12754_v54 = vcombine.high %v1128_v46, %v1132_v35  ;;  %v1136_v1 = vld [vmem:[#allocation2 + $0x348] sm:$0xff] }
 0x1e9   : > { %v15186_v3 = vpop.eup %15185  ;;  %15197 = vrcp.f32 %v917_v24  ;;  %2149 = vmatprep.mubr.bf16.mxu1 %v18008_v57  ;;  %v1140_v6 = vld [vmem:[#allocation2 + $0x368] sm:$0xff] }
 0x1ea   : > { %v15188_v10 = vpop.eup %15187  ;;  %15199 = vrcp.f32 %v918_v43  ;;  %1924 = vmatmul.mubr.bf16.gmra.mrb[52].mxu0 %v18013_v41  ;;  %2150 = vmatmul.mubr.bf16.gmra.mrb[20].mxu1 %v18013_v41  ;;  %v18028_v24 = vmul.f32 %v15186_v3, %v17891_v53  ;;  %v1148_v53 = vld [vmem:[#allocation2 + $0x3a8] sm:$0xff]  ;;  %v12761_v3 = vcombine.low %v1136_v1, %v1140_v6 }
 0x1eb   : > { %v15190_v19 = vpop.eup %15189  ;;  %1975 = vmatpush1.bf16.msra.mxu0 %v12737_v13  ;;  %v18022_v40 = vmul.f32 %v15188_v10, %v17894_v56  ;;  %v12762_v56 = vcombine.high %v1136_v1, %v1140_v6  ;;  %v1034_v6 = vld [vmem:[#allocation2 + $0x18] sm:$0xff] }
 0x1ec   : > { %v15192_v42 = vpop.eup %15191  ;;  %v18019_v51 = vmul.f32 %v15190_v19, %v17899_v14  ;;  %1976 = vmatprep.subr.bf16.mxu0 %v12746_v55  ;;  %22357 = vst [vmem:[#allocation46_spill] sm:$0xff] %v18028_v24  ;;  %v12753_v14 = vcombine.low %v1128_v46, %v1132_v35  ;;  %v14481_v46 = vld [vmem:[#allocation4] ss:$8 sps:$4 sm:$0xff]   ;;  %v14483_v35 = vld [vmem:[#allocation4 + $0x4] ss:$8 sps:$4 sm:$0xff]  }
 0x1ed   : > { %22355 = vst [vmem:[#allocation44_spill] sm:$0xff] %v18022_v40  ;;  %v18025_v15 = vmul.f32 %v15192_v42, %v17911_v16  ;;  %v1144_v16 = vld [vmem:[#allocation2 + $0x388] sm:$0xff]  ;;  %4034 = vmatprep.subr.bf16.mxu1 %v14483_v35  ;;  %v14492_v35 = vld [vmem:[#allocation4 + $0x34] ss:$8 sps:$4 sm:$0xff]  }
 0x1ee   : > { %22354 = vst [vmem:[#allocation43_spill] sm:$0xff] %v18019_v51  ;;  %v18036_v11 = vpack.c.bf16 %v18019_v51, %v18028_v24  ;;  %v1152_v24 = vld [vmem:[#allocation2 + $0x3c8] sm:$0xff]  ;;  %4035 = vmatpush1.bf16.msra.mxu1 %v14481_v46  ;;  %v12769_v1 = vcombine.low %v1144_v16, %v1148_v53 }
 0x1ef   : > { %22356 = vst [vmem:[#allocation45_spill] sm:$0xff] %v18025_v15  ;;  %1977 = vmatpush1.bf16.msra.mxu0 %v12745_v28  ;;  %v18032_v22 = vpack.c.bf16 %v18025_v15, %v18022_v40  ;;  %v12770_v28 = vcombine.high %v1144_v16, %v1148_v53  ;;  %v1156_v15 = vld [vmem:[#allocation2 + $0x3e8] sm:$0xff] }
 0x1f0   : > { %1978 = vmatprep.subr.bf16.mxu0 %v12754_v54  ;;  %v12777_v16 = vcombine.low %v1152_v24, %v1156_v15  ;;  %v14489_v53 = vld [vmem:[#allocation4 + $0x24] ss:$8 sps:$4 sm:$0xff]   ;;  %v14487_v46 = vld [vmem:[#allocation4 + $0x20] ss:$8 sps:$4 sm:$0xff]  }
 0x1f1   : > { %v15194_v13 = vpop.eup %15193  ;;  %1933 = vmatprep.mubr.bf16.mxu0 %v18032_v22  ;;  %2159 = vmatprep.mubr.bf16.mxu1 %v18032_v22 }
 0x1f2   : > { %v15196_v43 = vpop.eup %15195  ;;  %1934 = vmatmul.mubr.bf16.gmra.mrb[56].mxu0 %v18036_v11  ;;  %2160 = vmatmul.mubr.bf16.gmra.mrb[24].mxu1 %v18036_v11 }
 0x1f3   : > { %v15198_v55 = vpop.eup %15197  ;;  %1979 = vmatpush1.bf16.msra.mxu0 %v12753_v14  ;;  %v18046_v42 = vmul.f32 %v15196_v43, %v17943_v8  ;;  %v18052_v14 = vmul.f32 %v15194_v13, %v17937_v38  ;;  %v1038_v38 = vld [vmem:[#allocation2 + $0x38] sm:$0xff] }
 0x1f4   : > { %v15200_v10 = vpop.eup %15199  ;;  %v18043_v19 = vmul.f32 %v15198_v55, %v17949_v17  ;;  %1980 = vmatprep.subr.bf16.mxu0 %v12762_v56  ;;  %v14484_v56 = vld [vmem:[#allocation4 + $0x10] ss:$8 sps:$4 sm:$0xff]   ;;  %v14486_v13 = vld [vmem:[#allocation4 + $0x14] ss:$8 sps:$4 sm:$0xff]   ;;  %v12662_v43 = vcombine.high %v1034_v6, %v1038_v38 }
 0x1f5   : > { %22359 = vst [vmem:[#allocation48_spill] sm:$0xff] %v18046_v42  ;;  %v18049_v54 = vmul.f32 %v15200_v10, %v17953_v36  ;;  %22361 = vst [vmem:[#allocation50_spill] sm:$0xff] %v18052_v14  ;;  %v12778_v36 = vcombine.high %v1152_v24, %v1156_v15  ;;  %4036 = vmatprep.subr.bf16.mxu1 %v14486_v13  ;;  %v1042_v55 = vld [vmem:[#allocation2 + $0x58] sm:$0xff]  ;;  %v12661_v10 = vcombine.low %v1034_v6, %v1038_v38  ;;  %v14495_v15 = vld [vmem:[#allocation4 + $0x44] ss:$8 sps:$4 sm:$0xff]  }
 0x1f6   : > { %22358 = vst [vmem:[#allocation47_spill] sm:$0xff] %v18043_v19  ;;  %v18060_v8 = vpack.c.bf16 %v18043_v19, %v18052_v14  ;;  %4037 = vmatpush1.bf16.msra.mxu1 %v14484_v56  ;;  %v1050_v14 = vld [vmem:[#allocation2 + $0x98] sm:$0xff]  ;;  %v14493_v6 = vld [vmem:[#allocation4 + $0x40] ss:$8 sps:$4 sm:$0xff]  }
 0x1f7   : > { %22360 = vst [vmem:[#allocation49_spill] sm:$0xff] %v18049_v54  ;;  %1981 = vmatpush1.bf16.msra.mxu0 %v12761_v3  ;;  %v18056_v17 = vpack.c.bf16 %v18049_v54, %v18046_v42  ;;  %v1046_v3 = vld [vmem:[#allocation2 + $0x78] sm:$0xff]  ;;  %4038 = vmatprep.subr.bf16.mxu1 %v14489_v53 }
 0x1f8   : > { %1982 = vmatprep.subr.bf16.mxu0 %v12770_v28  ;;  %v12670_v28 = vcombine.high %v1042_v55, %v1046_v3  ;;  %v1054_v54 = vld [vmem:[#allocation2 + $0xb8] sm:$0xff]  ;;  %v12669_v24 = vcombine.low %v1042_v55, %v1046_v3  ;;  %v14501_v55 = vld [vmem:[#allocation4 + $0x64] ss:$8 sps:$4 sm:$0xff]  }
 0x1f9   : > { %1943 = vmatprep.mubr.bf16.mxu0 %v18056_v17  ;;  %2169 = vmatprep.mubr.bf16.mxu1 %v18056_v17  ;;  %v1058_v56 = vld [vmem:[#allocation2 + $0xd8] sm:$0xff] }
 0x1fa   : > { %1944 = vmatmul.mubr.bf16.gmra.mrb[60].mxu0 %v18060_v8  ;;  %2170 = vmatmul.mubr.bf16.gmra.mrb[28].mxu1 %v18060_v8  ;;  %v1062_v13 = vld [vmem:[#allocation2 + $0xf8] sm:$0xff] }
 0x1fb   : > { %1983 = vmatpush1.bf16.msra.mxu0 %v12769_v1  ;;  %1986 = vmatprep.mubr.bf16.mxu0 %v17789_v9  ;;  %v14490_v1 = vld [vmem:[#allocation4 + $0x30] ss:$8 sps:$4 sm:$0xff]   ;;  %v14498_v38 = vld [vmem:[#allocation4 + $0x54] ss:$8 sps:$4 sm:$0xff]   ;;  %v12686_v53 = vcombine.high %v1058_v56, %v1062_v13  ;;  %v12685_v3 = vcombine.low %v1058_v56, %v1062_v13 }
 0x1fc   : > { %1984 = vmatprep.subr.bf16.mxu0 %v12778_v36  ;;  %4039 = vmatpush1.bf16.msra.mxu1 %v14487_v46  ;;  %v12678_v36 = vcombine.high %v1050_v14, %v1054_v54  ;;  %v1070_v46 = vld [vmem:[#allocation2 + $0x138] sm:$0xff] }
 0x1fd   : > { %4040 = vmatprep.subr.bf16.mxu1 %v14492_v35  ;;  %v14496_v35 = vld [vmem:[#allocation4 + $0x50] ss:$8 sps:$4 sm:$0xff]  }
 0x1ff   : > { %1985 = vmatpush1.bf16.msra.mxu0 %v12777_v16  ;;  %v12677_v16 = vcombine.low %v1050_v14, %v1054_v54  ;;  %v14499_v54 = vld [vmem:[#allocation4 + $0x60] ss:$8 sps:$4 sm:$0xff]  }
 0x200   : > { %2180 = vmatprep.subr.bf16.mxu0 %v12662_v43  ;;  %4041 = vmatpush1.bf16.msra.mxu1 %v14490_v1  ;;  %v1066_v43 = vld [vmem:[#allocation2 + $0x118] sm:$0xff] }
 0x201   : > { %4042 = vmatprep.subr.bf16.mxu1 %v14495_v15  ;;  %v1078_v1 = vld [vmem:[#allocation2 + $0x178] sm:$0xff]  ;;  %v12693_v14 = vcombine.low %v1066_v43, %v1070_v46 }
 0x202   : > { %1987 = vmatmul.mubr.bf16.vlgmr.msra.gmra.mrb[64].mxu0 %v17782_v39 }
 0x203   : > { %1996 = vmatprep.mubr.bf16.mxu0 %v17848_v2  ;;  %2181 = vmatpush1.bf16.msra.mxu0 %v12661_v10  ;;  %v12694_v10 = vcombine.high %v1066_v43, %v1070_v46 }
 0x204   : > { %2182 = vmatprep.subr.bf16.mxu0 %v12670_v28  ;;  %4043 = vmatpush1.bf16.msra.mxu1 %v14493_v6  ;;  %v1074_v28 = vld [vmem:[#allocation2 + $0x158] sm:$0xff] }
 0x205   : > { %4044 = vmatprep.subr.bf16.mxu1 %v14498_v38  ;;  %v12702_v15 = vcombine.high %v1074_v28, %v1078_v1  ;;  %v12701_v56 = vcombine.low %v1074_v28, %v1078_v1  ;;  %v14504_v6 = vld [vmem:[#allocation4 + $0x74] ss:$8 sps:$4 sm:$0xff]  }
 0x206   : > { %v1090_v38 = vld [vmem:[#allocation2 + $0x1d8] sm:$0xff] }
 0x207   : > { %2183 = vmatpush1.bf16.msra.mxu0 %v12669_v24  ;;  %v1082_v24 = vld [vmem:[#allocation2 + $0x198] sm:$0xff] }
 0x208   : > { %2184 = vmatprep.subr.bf16.mxu0 %v12678_v36  ;;  %4045 = vmatpush1.bf16.msra.mxu1 %v14496_v35  ;;  %v1086_v36 = vld [vmem:[#allocation2 + $0x1b8] sm:$0xff] }
 0x209   : > { %4046 = vmatprep.subr.bf16.mxu1 %v14501_v55  ;;  %v12710_v13 = vcombine.high %v1082_v24, %v1086_v36  ;;  %v12709_v43 = vcombine.low %v1082_v24, %v1086_v36  ;;  %v1098_v35 = vld [vmem:[#allocation2 + $0x218] sm:$0xff] }
 0x20a   : > { %1997 = vmatmul.mubr.bf16.gmra.mrb[68].mxu0 %v17841_v59  ;;  %v1102_v55 = vld [vmem:[#allocation2 + $0x238] sm:$0xff] }
 0x20b   : > { %2006 = vmatprep.mubr.bf16.mxu0 %v17903_v5  ;;  %2185 = vmatpush1.bf16.msra.mxu0 %v12677_v16  ;;  %v1094_v16 = vld [vmem:[#allocation2 + $0x1f8] sm:$0xff]  ;;  %v12726_v1 = vcombine.high %v1098_v35, %v1102_v55  ;;  %v12725_v36 = vcombine.low %v1098_v35, %v1102_v55 }
 0x20c   : > { %2186 = vmatprep.subr.bf16.mxu0 %v12686_v53  ;;  %4047 = vmatpush1.bf16.msra.mxu1 %v14499_v54  ;;  %v14502_v53 = vld [vmem:[#allocation4 + $0x70] ss:$8 sps:$4 sm:$0xff]   ;;  %v12718_v46 = vcombine.high %v1090_v38, %v1094_v16  ;;  %v12717_v28 = vcombine.low %v1090_v38, %v1094_v16 }
 0x20d   : > { %4048 = vmatprep.subr.bf16.mxu1 %v14504_v6  ;;  %v1106_v54 = vld [vmem:[#allocation2 + $0x258] sm:$0xff] }
 0x20e   : > { %v14508_v24 = vld [vmem:[#allocation4 + $0x90] ss:$8 sps:$4 sm:$0xff]  }
 0x20f   : > { %2187 = vmatpush1.bf16.msra.mxu0 %v12685_v3  ;;  %v14507_v3 = vld [vmem:[#allocation4 + $0x84] ss:$8 sps:$4 sm:$0xff]   ;;  %v1118_v6 = vld [vmem:[#allocation2 + $0x2b8] sm:$0xff] }
 0x210   : > { %2188 = vmatprep.subr.bf16.mxu0 %v12694_v10  ;;  %4049 = vmatpush1.bf16.msra.mxu1 %v14502_v53  ;;  %v14505_v10 = vld [vmem:[#allocation4 + $0x80] ss:$8 sps:$4 sm:$0xff]   ;;  %v1122_v53 = vld [vmem:[#allocation2 + $0x2d8] sm:$0xff] }
 0x211   : > { %4050 = vmatprep.subr.bf16.mxu1 %v14507_v3  ;;  %v1130_v55 = vld [vmem:[#allocation2 + $0x318] sm:$0xff] }
 0x212   : > { %2007 = vmatmul.mubr.bf16.gmra.mrb[72].mxu0 %v17907_v37  ;;  %v1134_v3 = vld [vmem:[#allocation2 + $0x338] sm:$0xff] }
 0x213   : > { %2016 = vmatprep.mubr.bf16.mxu0 %v17958_v34  ;;  %2189 = vmatpush1.bf16.msra.mxu0 %v12693_v14  ;;  %v1110_v14 = vld [vmem:[#allocation2 + $0x278] sm:$0xff] }
 0x214   : > { %2190 = vmatprep.subr.bf16.mxu0 %v12702_v15  ;;  %4051 = vmatpush1.bf16.msra.mxu1 %v14505_v10  ;;  %v14510_v15 = vld [vmem:[#allocation4 + $0x94] ss:$8 sps:$4 sm:$0xff]   ;;  %v12733_v38 = vcombine.low %v1106_v54, %v1110_v14 }
 0x215   : > { %4052 = vmatprep.subr.bf16.mxu1 %v14510_v15  ;;  %v12757_v15 = vcombine.low %v1130_v55, %v1134_v3 }
 0x217   : > { %2191 = vmatpush1.bf16.msra.mxu0 %v12701_v56  ;;  %v12734_v56 = vcombine.high %v1106_v54, %v1110_v14  ;;  %v1142_v54 = vld [vmem:[#allocation2 + $0x378] sm:$0xff]  ;;  %v14513_v14 = vld [vmem:[#allocation4 + $0xa4] ss:$8 sps:$4 sm:$0xff]  }
 0x218   : > { %2192 = vmatprep.subr.bf16.mxu0 %v12710_v13  ;;  %v1114_v13 = vld [vmem:[#allocation2 + $0x298] sm:$0xff]  ;;  %4053 = vmatpush1.bf16.msra.mxu1 %v14508_v24  ;;  %v14511_v24 = vld [vmem:[#allocation4 + $0xa0] ss:$8 sps:$4 sm:$0xff]  }
 0x219   : > { %v12742_v16 = vcombine.high %v1114_v13, %v1118_v6  ;;  %4054 = vmatprep.subr.bf16.mxu1 %v14513_v14  ;;  %v14525_v14 = vld [vmem:[#allocation4 + $0xe4] ss:$8 sps:$4 sm:$0xff]  }
 0x21a   : > { %2017 = vmatmul.mubr.bf16.gmra.mrb[76].mxu0 %v17963_v32 }
 0x21b   : > { %2026 = vmatprep.mubr.bf16.mxu0 %v17984_v45  ;;  %2193 = vmatpush1.bf16.msra.mxu0 %v12709_v43  ;;  %v1126_v43 = vld [vmem:[#allocation2 + $0x2f8] sm:$0xff] }
 0x21c   : > { %2194 = vmatprep.subr.bf16.mxu0 %v12718_v46  ;;  %v12741_v46 = vcombine.low %v1114_v13, %v1118_v6  ;;  %v12750_v35 = vcombine.high %v1122_v53, %v1126_v43  ;;  %v12749_v10 = vcombine.low %v1122_v53, %v1126_v43  ;;  %v1150_v13 = vld [vmem:[#allocation2 + $0x3b8] sm:$0xff]  ;;  %4055 = vmatpush1.bf16.msra.mxu1 %v14511_v24 }
 0x21d   : > { %v14516_v6 = vld [vmem:[#allocation4 + $0xb4] ss:$8 sps:$4 sm:$0xff]  }
 0x21e   : > { %4056 = vmatprep.subr.bf16.mxu1 %v14516_v6  ;;  %v1154_v43 = vld [vmem:[#allocation2 + $0x3d8] sm:$0xff] }
 0x21f   : > { %2195 = vmatpush1.bf16.msra.mxu0 %v12717_v28  ;;  %v12758_v28 = vcombine.high %v1130_v55, %v1134_v3  ;;  %v14517_v3 = vld [vmem:[#allocation4 + $0xc0] ss:$8 sps:$4 sm:$0xff]   ;;  %v14528_v24 = vld [vmem:[#allocation4 + $0xf4] ss:$8 sps:$4 sm:$0xff]  }
 0x220   : > { %2196 = vmatprep.subr.bf16.mxu0 %v12726_v1  ;;  %v1138_v1 = vld [vmem:[#allocation2 + $0x358] sm:$0xff] }
 0x222   : > { %2027 = vmatmul.mubr.bf16.gmra.mrb[80].mxu0 %v17989_v4 }
 0x223   : > { %2036 = vmatprep.mubr.bf16.mxu0 %v18008_v57  ;;  %2197 = vmatpush1.bf16.msra.mxu0 %v12725_v36  ;;  %v12766_v36 = vcombine.high %v1138_v1, %v1142_v54 }
 0x224   : > { %2198 = vmatprep.subr.bf16.mxu0 %v12734_v56  ;;  %v1146_v56 = vld [vmem:[#allocation2 + $0x398] sm:$0xff] }
 0x225   : > { %v12774_v53 = vcombine.high %v1146_v56, %v1150_v13  ;;  %v12773_v55 = vcombine.low %v1146_v56, %v1150_v13 }
 0x227   : > { %2199 = vmatpush1.bf16.msra.mxu0 %v12733_v38  ;;  %v12765_v38 = vcombine.low %v1138_v1, %v1142_v54  ;;  %v14520_v54 = vld [vmem:[#allocation4 + $0xd0] ss:$8 sps:$4 sm:$0xff]  }
 0x228   : > { %2200 = vmatprep.subr.bf16.mxu0 %v12742_v16  ;;  %v14514_v16 = vld [vmem:[#allocation4 + $0xb0] ss:$8 sps:$4 sm:$0xff]  }
 0x229   : > { %4057 = vmatpush1.bf16.msra.mxu1 %v14514_v16 }
 0x22a   : > { %2037 = vmatmul.mubr.bf16.gmra.mrb[84].mxu0 %v18013_v41 }
 0x22b   : > { %2046 = vmatprep.mubr.bf16.mxu0 %v18032_v22  ;;  %2201 = vmatpush1.bf16.msra.mxu0 %v12741_v46  ;;  %v1158_v46 = vld [vmem:[#allocation2 + $0x3f8] sm:$0xff] }
 0x22c   : > { %2202 = vmatprep.subr.bf16.mxu0 %v12750_v35  ;;  %v14519_v35 = vld [vmem:[#allocation4 + $0xc4] ss:$8 sps:$4 sm:$0xff]   ;;  %v12781_v1 = vcombine.low %v1154_v43, %v1158_v46 }
 0x22d   : > { %4058 = vmatprep.subr.bf16.mxu1 %v14519_v35 }
 0x22e   : > { %4059 = vmatpush1.bf16.msra.mxu1 %v14517_v3 }
 0x22f   : > { %2203 = vmatpush1.bf16.msra.mxu0 %v12749_v10  ;;  %v12782_v10 = vcombine.high %v1154_v43, %v1158_v46 }
 0x230   : > { %2204 = vmatprep.subr.bf16.mxu0 %v12758_v28  ;;  %v14522_v28 = vld [vmem:[#allocation4 + $0xd4] ss:$8 sps:$4 sm:$0xff]  }
 0x231   : > { %4060 = vmatprep.subr.bf16.mxu1 %v14522_v28 }
 0x232   : > { %2047 = vmatmul.mubr.bf16.gmra.mrb[88].mxu0 %v18036_v11  ;;  %4061 = vmatpush1.bf16.msra.mxu1 %v14520_v54 }
 0x233   : > { %2056 = vmatprep.mubr.bf16.mxu0 %v18056_v17  ;;  %2205 = vmatpush1.bf16.msra.mxu0 %v12757_v15  ;;  %v14523_v15 = vld [vmem:[#allocation4 + $0xe0] ss:$8 sps:$4 sm:$0xff]  }
 0x234   : > { %2206 = vmatprep.subr.bf16.mxu0 %v12766_v36  ;;  %4062 = vmatprep.subr.bf16.mxu1 %v14525_v14 }
 0x236   : > { %4063 = vmatpush1.bf16.msra.mxu1 %v14523_v15 }
 0x237   : > { %2207 = vmatpush1.bf16.msra.mxu0 %v12765_v38  ;;  %4064 = vmatprep.subr.bf16.mxu1 %v14528_v24 }
 0x238   : > { %2208 = vmatprep.subr.bf16.mxu0 %v12774_v53 }
 0x23a   : > { %2057 = vmatmul.mubr.bf16.gmra.mrb[92].mxu0 %v18060_v8 }
 0x23b   : > { %2209 = vmatpush1.bf16.msra.mxu0 %v12773_v55  ;;  %2212 = vmatprep.mubr.bf16.mxu0 %v17789_v9  ;;  %v14526_v9 = vld [vmem:[#allocation4 + $0xf0] ss:$8 sps:$4 sm:$0xff]  }
 0x23c   : > { %2210 = vmatprep.subr.bf16.mxu0 %v12782_v10  ;;  %4065 = vmatpush1.bf16.msra.mxu1 %v14526_v9 }
 0x23f   : > { %2211 = vmatpush1.bf16.msra.mxu0 %v12781_v1 }
 0x242   : > { %2213 = vmatmul.mubr.bf16.vlgmr.msra.gmra.mrb[96].mxu0 %v17782_v39  ;;  %v14531_v39 = vld [vmem:[#allocation4 + $0x104] ss:$8 sps:$4 sm:$0xff]  }
 0x243   : > { %2222 = vmatprep.mubr.bf16.mxu0 %v17848_v2  ;;  %4147 = vmatprep.subr.bf16.mxu1 %v14531_v39  ;;  %v1159_v2 = vld [vmem:[%s22181_s10] ss:$4 sm:$0xff] }
 0x24a   : > { %2223 = vmatmul.mubr.bf16.gmra.mrb[100].mxu0 %v17841_v59  ;;  %v18099_v59 = vsub.s32 4, %v17678_v0 }
 0x24b   : > { %2232 = vmatprep.mubr.bf16.mxu0 %v17903_v5  ;;  %v18105_v5 = vsub.s32 5, %v17678_v0 }
 0x24c   : > { %22362 = vst [vmem:[#allocation51_spill] sm:$0xff] %v18099_v59 }
 0x24d   : > { %22363 = vst [vmem:[#allocation52_spill] sm:$0xff] %v18105_v5 }
 0x252   : > { %2233 = vmatmul.mubr.bf16.gmra.mrb[104].mxu0 %v17907_v37  ;;  %v18108_v37 = vrot.slane %v1159_v2, %v17681_v31 }
 0x253   : > { %2242 = vmatprep.mubr.bf16.mxu0 %v17958_v34  ;;  %v18111_v34 = vrot.slane %v1159_v2, %v18099_v59 }
 0x25a   : > { %2243 = vmatmul.mubr.bf16.gmra.mrb[108].mxu0 %v17963_v32  ;;  %v18114_v32 = vrot.slane %v1159_v2, %v17687_v33 }
 0x25b   : > { %2252 = vmatprep.mubr.bf16.mxu0 %v17984_v45  ;;  %v18117_v45 = vrot.slane %v1159_v2, %v18105_v5 }
 0x262   : > { %2253 = vmatmul.mubr.bf16.gmra.mrb[112].mxu0 %v17989_v4 }
 0x263   : > { %2262 = vmatprep.mubr.bf16.mxu0 %v18008_v57 }
 0x26a   : > { %2263 = vmatmul.mubr.bf16.gmra.mrb[116].mxu0 %v18013_v41 }
 0x26b   : > { %2272 = vmatprep.mubr.bf16.mxu0 %v18032_v22 }
 0x272   : > { %2273 = vmatmul.mubr.bf16.gmra.mrb[120].mxu0 %v18036_v11 }
 0x273   : > { %2282 = vmatprep.mubr.bf16.mxu0 %v18056_v17 }
 0x27a   : > { %2283 = vmatmul.mubr.bf16.gmra.mrb[124].mxu0 %v18060_v8 }
 0x292   : > { %v1875_v4 = vpop.f32.mrb[32].mxu0  ;;  %v2101_v57 = vpop.f32.mrb[0].mxu1 }
 0x293   : > { %v18120_v41 = vadd.f32 %v1875_v4, %v18108_v37  ;;  %v18123_v22 = vadd.f32 %v2101_v57, %v18111_v34  ;;  %v1877_v11 = vpop.f32.mrb[33].mxu0  ;;  %v2103_v17 = vpop.f32.mrb[1].mxu1 }
 0x294   : > { %v18126_v8 = vadd.f32 %v1877_v11, %v18114_v32  ;;  %v18129_v36 = vadd.f32 %v2103_v17, %v18117_v45  ;;  %v1879_v56 = vpop.f32.mrb[34].mxu0  ;;  %v2105_v13 = vpop.f32.mrb[2].mxu1 }
 0x295   : > { %v12783_v6 = vmul.f32 -1.442695, %v18120_v41  ;;  %v12787_v38 = vmul.f32 -1.442695, %v18123_v22  ;;  %v18134_v16 = vadd.f32 %v1879_v56, %v18108_v37  ;;  %v18137_v53 = vadd.f32 %v2105_v13, %v18111_v34  ;;  %v1881_v43 = vpop.f32.mrb[35].mxu0  ;;  %v2107_v46 = vpop.f32.mrb[3].mxu1 }
 0x296   : > { %v12784_v35 = vmul.f32 -1.442695, %v18126_v8  ;;  %v12788_v55 = vmul.f32 -1.442695, %v18129_v36  ;;  %v18142_v3 = vadd.f32 %v1881_v43, %v18114_v32  ;;  %v18145_v10 = vadd.f32 %v2107_v46, %v18117_v45 }
 0x297   : > { %15201 = vpow2.f32 %v12783_v6  ;;  %v12791_v28 = vmul.f32 -1.442695, %v18134_v16  ;;  %v12795_v1 = vmul.f32 -1.442695, %v18137_v53 }
 0x298   : > { %15203 = vpow2.f32 %v12787_v38  ;;  %v12792_v54 = vmul.f32 -1.442695, %v18142_v3  ;;  %v12796_v14 = vmul.f32 -1.442695, %v18145_v10 }
 0x299   : > { %15205 = vpow2.f32 %v12784_v35 }
 0x29a   : > { %15207 = vpow2.f32 %v12788_v55  ;;  %v1885_v15 = vpop.f32.mrb[36].mxu0  ;;  %v2111_v24 = vpop.f32.mrb[4].mxu1 }
 0x29b   : > { %15209 = vpow2.f32 %v12791_v28  ;;  %v18152_v9 = vadd.f32 %v1885_v15, %v18108_v37  ;;  %v18155_v39 = vadd.f32 %v2111_v24, %v18111_v34  ;;  %v1887_v2 = vpop.f32.mrb[37].mxu0  ;;  %v2113_v4 = vpop.f32.mrb[5].mxu1 }
 0x29c   : > { %15211 = vpow2.f32 %v12795_v1  ;;  %v18158_v57 = vadd.f32 %v1887_v2, %v18114_v32  ;;  %v18161_v11 = vadd.f32 %v2113_v4, %v18117_v45  ;;  %v1889_v17 = vpop.f32.mrb[38].mxu0  ;;  %v2115_v56 = vpop.f32.mrb[6].mxu1 }
 0x29d   : > { %15213 = vpow2.f32 %v12792_v54  ;;  %v12799_v13 = vmul.f32 -1.442695, %v18152_v9  ;;  %v12803_v6 = vmul.f32 -1.442695, %v18155_v39  ;;  %v18166_v38 = vadd.f32 %v1889_v17, %v18108_v37  ;;  %v1891_v43 = vpop.f32.mrb[39].mxu0  ;;  %v2117_v46 = vpop.f32.mrb[7].mxu1 }
 0x29e   : > { %15215 = vpow2.f32 %v12796_v14  ;;  %v12800_v35 = vmul.f32 -1.442695, %v18158_v57  ;;  %v12804_v55 = vmul.f32 -1.442695, %v18161_v11 }
 0x29f   : > { %15217 = vpow2.f32 %v12799_v13  ;;  %v12807_v28 = vmul.f32 -1.442695, %v18166_v38 }
 0x2a0   : > { %15219 = vpow2.f32 %v12803_v6 }
 0x2a1   : > { %v15202_v1 = vpop.eup %15201  ;;  %15221 = vpow2.f32 %v12800_v35 }
 0x2a2   : > { %v15204_v54 = vpop.eup %15203  ;;  %v2677_v15 = vadd.f32 1.0, %v15202_v1  ;;  %15223 = vpow2.f32 %v12804_v55 }
 0x2a3   : > { %v15206_v24 = vpop.eup %15205  ;;  %v2681_v2 = vadd.f32 1.0, %v15204_v54  ;;  %15225 = vpow2.f32 %v12807_v28  ;;  %v1895_v4 = vpop.f32.mrb[40].mxu0 }
 0x2a4   : > { %v2121_v17 = vpop.f32.mrb[8].mxu1  ;;  %v15208_v5 = vpop.eup %15207  ;;  %15227 = vrcp.f32 %v2677_v15  ;;  %v2678_v14 = vadd.f32 1.0, %v15206_v24  ;;  %v18172_v15 = vadd.f32 %v2115_v56, %v18111_v34 }
 0x2a5   : > { %v1897_v59 = vpop.f32.mrb[41].mxu0  ;;  %v2123_v42 = vpop.f32.mrb[9].mxu1  ;;  %15229 = vrcp.f32 %v2681_v2  ;;  %v2682_v13 = vadd.f32 1.0, %v15208_v5 }
 0x2a6   : > { %v15210_v19 = vpop.eup %15209  ;;  %v1899_v40 = vpop.f32.mrb[42].mxu0  ;;  %15231 = vrcp.f32 %v2678_v14  ;;  %v18175_v14 = vadd.f32 %v1891_v43, %v18114_v32  ;;  %v12811_v56 = vmul.f32 -1.442695, %v18172_v15  ;;  %v18185_v43 = vadd.f32 %v2121_v17, %v18111_v34 }
 0x2a7   : > { %v2125_v6 = vpop.f32.mrb[10].mxu1  ;;  %v15212_v51 = vpop.eup %15211  ;;  %v2685_v35 = vadd.f32 1.0, %v15210_v19  ;;  %15233 = vrcp.f32 %v2682_v13  ;;  %v18192_v25 = vadd.f32 %v2123_v42, %v18117_v45 }
 0x2a8   : > { %v1901_v1 = vpop.f32.mrb[43].mxu0  ;;  %v15214_v55 = vpop.eup %15213  ;;  %v2689_v54 = vadd.f32 1.0, %v15212_v51  ;;  %v18178_v51 = vadd.f32 %v2117_v46, %v18117_v45  ;;  %22364 = vst [vmem:[#allocation53_spill] sm:$0xff] %v18185_v43  ;;  %v18216_v7 = vadd.f32 %v2125_v6, %v18111_v34 }
 0x2a9   : > { %v2127_v28 = vpop.f32.mrb[11].mxu1  ;;  %v15216_v50 = vpop.eup %15215  ;;  %15235 = vrcp.f32 %v2685_v35  ;;  %v2686_v30 = vadd.f32 1.0, %v15214_v55  ;;  %22365 = vst [vmem:[#allocation54_spill] sm:$0xff] %v18192_v25  ;;  %v18220_v49 = vadd.f32 %v1901_v1, %v18114_v32 }
 0x2aa   : > { %v15218_v24 = vpop.eup %15217  ;;  %15237 = vrcp.f32 %v2689_v54  ;;  %v2690_v2 = vadd.f32 1.0, %v15216_v50  ;;  %v18182_v54 = vadd.f32 %v1895_v4, %v18108_v37  ;;  %v12812_v17 = vmul.f32 -1.442695, %v18178_v51 }
 0x2ab   : > { %v15220_v5 = vpop.eup %15219  ;;  %15239 = vrcp.f32 %v2686_v30  ;;  %v2693_v23 = vadd.f32 1.0, %v15218_v24  ;;  %v18188_v24 = vadd.f32 %v1897_v59, %v18114_v32  ;;  %v18200_v59 = vadd.f32 %v1899_v40, %v18108_v37 }
 0x2ac   : > { %v15222_v19 = vpop.eup %15221  ;;  %15241 = vrcp.f32 %v2690_v2  ;;  %v2697_v13 = vadd.f32 1.0, %v15220_v5  ;;  %v12815_v42 = vmul.f32 -1.442695, %v18182_v54  ;;  %v18223_v52 = vadd.f32 %v2127_v28, %v18117_v45 }
 0x2ad   : > { %v15224_v35 = vpop.eup %15223  ;;  %15243 = vrcp.f32 %v2693_v23  ;;  %v2694_v55 = vadd.f32 1.0, %v15222_v19  ;;  %v1905_v2 = vpop.f32.mrb[44].mxu0  ;;  %v12808_v19 = vmul.f32 -1.442695, %v18175_v14  ;;  %v12816_v40 = vmul.f32 -1.442695, %v18188_v24 }
 0x2ae   : > { %v15226_v50 = vpop.eup %15225  ;;  %15245 = vrcp.f32 %v2697_v13  ;;  %v2698_v30 = vadd.f32 1.0, %v15224_v35  ;;  %v2131_v46 = vpop.f32.mrb[12].mxu1  ;;  %22366 = vst [vmem:[#allocation55_spill] sm:$0xff] %v18223_v52  ;;  %v12823_v6 = vmul.f32 -1.442695, %v18200_v59  ;;  %v18239_v28 = vadd.f32 %v1905_v2, %v18108_v37 }
 0x2af   : > { %v15228_v5 = vpop.eup %15227  ;;  %15247 = vrcp.f32 %v2694_v55  ;;  %v2701_v23 = vadd.f32 1.0, %v15226_v50  ;;  %v18194_v4 = vpop.f32.mrb[45].mxu0  ;;  %v12824_v2 = vmul.f32 -1.442695, %v18220_v49 }
 0x2b0   : > { %v18196_v13 = vpop.f32.mrb[13].mxu1  ;;  %v15230_v35 = vpop.eup %15229  ;;  %15249 = vrcp.f32 %v2698_v30  ;;  %v12819_v30 = vmul.f32 -1.442695, %v18185_v43  ;;  %22369 = vst [vmem:[#allocation58_spill] sm:$0xff] %v18239_v28 }
 0x2b1   : > { %v18202_v21 = vpop.f32.mrb[46].mxu0  ;;  %v18204_v55 = vpop.f32.mrb[14].mxu1  ;;  %15251 = vrcp.f32 %v2701_v23  ;;  %v12820_v23 = vmul.f32 -1.442695, %v18192_v25 }
 0x2b2   : > { %v15232_v50 = vpop.eup %15231  ;;  %v18207_v18 = vpop.f32.mrb[47].mxu0  ;;  %15253 = vpow2.f32 %v12811_v56  ;;  %v18226_v56 = vmul.f32 %v15228_v5, %v18120_v41  ;;  %v12827_v41 = vmul.f32 -1.442695, %v18216_v7 }
 0x2b3   : > { %v18209_v20 = vpop.f32.mrb[15].mxu1  ;;  %v18211_v12 = vpop.eup %15233  ;;  %15255 = vpow2.f32 %v12808_v19  ;;  %v18233_v19 = vmul.f32 %v15230_v35, %v18123_v22 }
 0x2b4   : > { %v15236_v63 = vpop.eup %15235  ;;  %15257 = vpow2.f32 %v12812_v17 }
 0x2b5   : > { %v15238_v26 = vpop.eup %15237  ;;  %v18229_v44 = vmul.f32 %v15236_v63, %v18134_v16  ;;  %22367 = vst [vmem:[#allocation56_spill] sm:$0xff] %v18233_v19  ;;  %15259 = vpow2.f32 %v12815_v42  ;;  %v18247_v16 = vadd.f32 %v2131_v46, %v18111_v34  ;;  %v18249_v22 = vpop.f32.mrb[48].mxu0  ;;  %v12828_v46 = vmul.f32 -1.442695, %v18223_v52 }
 0x2b6   : > { %v15240_v47 = vpop.eup %15239  ;;  %v18236_v1 = vmul.f32 %v15238_v26, %v18137_v53  ;;  %15261 = vpow2.f32 %v12819_v30  ;;  %v18251_v5 = vpop.f32.mrb[16].mxu1  ;;  %v3062_v19 = vmul.f32 %v15232_v50, %v18126_v8  ;;  %v14534_v8 = vld [vmem:[#allocation4 + $0x114] ss:$8 sps:$4 sm:$0xff]  }
 0x2b7   : > { %v18241_v29 = vpop.eup %15241  ;;  %22370 = vst [vmem:[#allocation59_spill] sm:$0xff] %v18247_v16  ;;  %15263 = vpow2.f32 %v12816_v40  ;;  %v18258_v35 = vpop.f32.mrb[49].mxu0  ;;  %v12831_v40 = vmul.f32 -1.442695, %v18239_v28  ;;  %v3070_v58 = vmul.f32 %v15240_v47, %v18142_v3  ;;  %v14529_v3 = vld [vmem:[#allocation4 + $0x100] ss:$8 sps:$4 sm:$0xff]  }
 0x2b8   : > { %22368 = vst [vmem:[#allocation57_spill] sm:$0xff] %v18236_v1  ;;  %v18253_v26 = vpop.eup %15243  ;;  %v18260_v17 = vpop.f32.mrb[17].mxu1  ;;  %15265 = vpow2.f32 %v12820_v23  ;;  %v12835_v23 = vmul.f32 -1.442695, %v18247_v16 }
 0x2b9   : > { %v18262_v42 = vpop.eup %15245  ;;  %v18265_v30 = vpop.f32.mrb[50].mxu0  ;;  %15267 = vpow2.f32 %v12823_v6  ;;  %v3190_v47 = vpack.c.bf16 %v3070_v58, %v3062_v19 }
 0x2ba   : > { %v18267_v63 = vpop.f32.mrb[18].mxu1  ;;  %v18269_v48 = vpop.eup %15247  ;;  %15269 = vpow2.f32 %v12827_v41 }
 0x2bb   : > { %v18272_v53 = vpop.f32.mrb[51].mxu0  ;;  %v18274_v27 = vpop.f32.mrb[19].mxu1  ;;  %15271 = vpow2.f32 %v12824_v2  ;;  %4066 = vmatprep.mubr.bf16.mxu1 %v3190_v47 }
 0x2bc   : > { %v18276_v60 = vpop.eup %15249  ;;  %15273 = vpow2.f32 %v12828_v46 }
 0x2bd   : > { %v15252_v62 = vpop.eup %15251  ;;  %15275 = vpow2.f32 %v12831_v40  ;;  %v18281_v0 = vpop.f32.mrb[52].mxu0 }
 0x2be   : > { %v15254_v61 = vpop.eup %15253  ;;  %15277 = vpow2.f32 %v12835_v23  ;;  %v18283_v16 = vpop.f32.mrb[20].mxu1 }
 0x2bf   : > { %v15256_v33 = vpop.eup %15255  ;;  %v2705_v31 = vadd.f32 1.0, %v15254_v61  ;;  %v18285_v46 = vpop.f32.mrb[53].mxu0 }
 0x2c0   : > { %v15258_v6 = vpop.eup %15257  ;;  %v2702_v1 = vadd.f32 1.0, %v15256_v33  ;;  %v18287_v61 = vpop.f32.mrb[21].mxu1 }
 0x2c1   : > { %v15260_v28 = vpop.eup %15259  ;;  %15279 = vrcp.f32 %v2705_v31  ;;  %v2706_v41 = vadd.f32 1.0, %v15258_v6  ;;  %v18289_v50 = vpop.f32.mrb[54].mxu0 }
 0x2c2   : > { %v15262_v2 = vpop.eup %15261  ;;  %15281 = vrcp.f32 %v2702_v1  ;;  %v2709_v25 = vadd.f32 1.0, %v15260_v28  ;;  %v18291_v23 = vpop.f32.mrb[22].mxu1 }
 0x2c3   : > { %v15264_v40 = vpop.eup %15263  ;;  %15283 = vrcp.f32 %v2706_v41  ;;  %v2713_v33 = vadd.f32 1.0, %v15262_v2  ;;  %v18293_v1 = vpop.f32.mrb[55].mxu0  ;;  %v18299_v41 = vadd.f32 %v18194_v4, %v18114_v32  ;;  %v22371_v2 = vpack.c.bf16 %v18229_v44, %v18226_v56  ;;  %v14537_v44 = vld [vmem:[#allocation4 + $0x124] ss:$8 sps:$4 sm:$0xff]  }
 0x2c4   : > { %v15266_v31 = vpop.eup %15265  ;;  %15285 = vrcp.f32 %v2709_v25  ;;  %v2710_v6 = vadd.f32 1.0, %v15264_v40  ;;  %v18295_v58 = vpop.f32.mrb[23].mxu1  ;;  %v18305_v25 = vmul.f32 %v15252_v62, %v18166_v38  ;;  %v14532_v40 = vld [vmem:[#allocation4 + $0x110] ss:$8 sps:$4 sm:$0xff]   ;;  %v18313_v4 = vadd.f32 %v18202_v21, %v18108_v37 }
 0x2c5   : > { %v15268_v19 = vpop.eup %15267  ;;  %15287 = vrcp.f32 %v2713_v33  ;;  %v2714_v28 = vadd.f32 1.0, %v15266_v31  ;;  %4067 = vmatmul.mubr.bf16.vlgmr.msra.gmra.mrb[32].mxu1 %v22371_v2  ;;  %v18309_v31 = vadd.f32 %v18196_v13, %v18117_v45  ;;  %v18317_v62 = vmul.f32 %v18253_v26, %v18152_v9  ;;  %v18325_v13 = vpop.f32.mrb[24].mxu1  ;;  %v14540_v2 = vld [vmem:[#allocation4 + $0x134] ss:$8 sps:$4 sm:$0xff]  }
 0x2c6   : > { %v15270_v43 = vpop.eup %15269  ;;  %15289 = vrcp.f32 %v2710_v6  ;;  %v2717_v47 = vadd.f32 1.0, %v15268_v19  ;;  %4148 = vmatpush1.bf16.msra.mxu1 %v14529_v3  ;;  %v18323_v3 = vpop.f32.mrb[56].mxu0  ;;  %v14535_v19 = vld [vmem:[#allocation4 + $0x120] ss:$8 sps:$4 sm:$0xff]  }
 0x2c7   : > { %v15272_v52 = vpop.eup %15271  ;;  %15291 = vrcp.f32 %v2714_v28  ;;  %v2721_v33 = vadd.f32 1.0, %v15270_v43  ;;  %22372 = vst [vmem:[#allocation60_spill] sm:$0xff] %v18309_v31  ;;  %4149 = vmatprep.subr.bf16.mxu1 %v14534_v8  ;;  %v18321_v43 = vadd.f32 %v18204_v55, %v18111_v34  ;;  %v12832_v8 = vmul.f32 -1.442695, %v18299_v41  ;;  %v18328_v28 = vpop.f32.mrb[57].mxu0 }
 0x2c8   : > { %v15274_v56 = vpop.eup %15273  ;;  %15293 = vrcp.f32 %v2717_v47  ;;  %v2718_v38 = vadd.f32 1.0, %v15272_v52  ;;  %22373 = vst [vmem:[#allocation61_spill] sm:$0xff] %v18328_v28  ;;  %v18332_v52 = vadd.f32 %v18207_v18, %v18114_v32  ;;  %v3197_v55 = vpack.c.bf16 %v18305_v25, %v18317_v62  ;;  %v18336_v47 = vpop.f32.mrb[25].mxu1 }
 0x2c9   : > { %v15276_v6 = vpop.eup %15275  ;;  %15295 = vrcp.f32 %v2721_v33  ;;  %v2722_v21 = vadd.f32 1.0, %v15274_v56  ;;  %v18338_v33 = vpop.f32.mrb[58].mxu0  ;;  %v12839_v62 = vmul.f32 -1.442695, %v18313_v4 }
 0x2ca   : > { %v15278_v9 = vpop.eup %15277  ;;  %15297 = vrcp.f32 %v2718_v38  ;;  %v2725_v26 = vadd.f32 1.0, %v15276_v6  ;;  %4150 = vmatpush1.bf16.msra.mxu1 %v14532_v40  ;;  %22374 = vst [vmem:[#allocation62_spill] sm:$0xff] %v18338_v33  ;;  %v12836_v38 = vmul.f32 -1.442695, %v18309_v31  ;;  %v18345_v6 = vadd.f32 %v18209_v20, %v18117_v45  ;;  %v18347_v18 = vpop.f32.mrb[26].mxu1 }
 0x2cb   : > { %v18340_v56 = vpop.eup %15279  ;;  %15299 = vrcp.f32 %v2722_v21  ;;  %v2729_v28 = vadd.f32 1.0, %v15278_v9  ;;  %4151 = vmatprep.subr.bf16.mxu1 %v14537_v44  ;;  %22375 = vst [vmem:[#allocation63_spill] sm:$0xff] %v18347_v18  ;;  %v18349_v40 = vpop.f32.mrb[59].mxu0  ;;  %v12843_v33 = vmul.f32 -1.442695, %v18321_v43  ;;  %v18355_v21 = vadd.f32 %v18249_v22, %v18108_v37 }
 0x2cc   : > { %22376 = vst [vmem:[#allocation64_spill] sm:$0xff] %v18349_v40  ;;  %v15282_v25 = vpop.eup %15281  ;;  %15301 = vrcp.f32 %v2725_v26  ;;  %v18357_v9 = vpop.f32.mrb[27].mxu1  ;;  %v3078_v20 = vmul.f32 %v18269_v48, %v18158_v57  ;;  %v18366_v26 = vadd.f32 %v18251_v5, %v18111_v34  ;;  %v12840_v18 = vmul.f32 -1.442695, %v18332_v52  ;;  %v14538_v5 = vld [vmem:[#allocation4 + $0x130] ss:$8 sps:$4 sm:$0xff]  }
 0x2cd   : > { %22377 = vst [vmem:[#allocation65_spill] sm:$0xff] %v18355_v21  ;;  %22378 = vst [vmem:[#allocation66_spill] sm:$0xff] %v18357_v9  ;;  %v18359_v31 = vpop.eup %15283  ;;  %v3086_v44 = vmul.f32 %v15282_v25, %v18175_v14  ;;  %15303 = vrcp.f32 %v2729_v28  ;;  %v18371_v22 = vadd.f32 %v18258_v35, %v18114_v32  ;;  %v12844_v48 = vmul.f32 -1.442695, %v18345_v6  ;;  %v18389_v25 = vpop.f32.mrb[60].mxu0 }
 0x2ce   : > { %22379 = vst [vmem:[#allocation67_spill] sm:$0xff] %v18366_v26  ;;  %v15286_v40 = vpop.eup %15285  ;;  %15305 = vpow2.f32 %v12832_v8  ;;  %4152 = vmatpush1.bf16.msra.mxu1 %v14535_v19  ;;  %v18378_v57 = vadd.f32 %v18260_v17, %v18117_v45  ;;  %v12847_v28 = vmul.f32 -1.442695, %v18355_v21  ;;  %v18383_v35 = vadd.f32 %v18265_v30, %v18108_v37  ;;  %22382 = vst [vmem:[#allocation70_spill] sm:$0xff] %v18389_v25  ;;  %v18391_v17 = vpop.f32.mrb[28].mxu1 }
 0x2cf   : > { %22380 = vst [vmem:[#allocation68_spill] sm:$0xff] %v18371_v22  ;;  %v18373_v9 = vpop.eup %15287  ;;  %15307 = vpow2.f32 %v12836_v38  ;;  %v3198_v14 = vpack.c.bf16 %v3086_v44, %v3078_v20  ;;  %4153 = vmatprep.subr.bf16.mxu1 %v14540_v2  ;;  %v18387_v19 = vadd.f32 %v18267_v63, %v18111_v34  ;;  %v14543_v38 = vld [vmem:[#allocation4 + $0x144] ss:$8 sps:$4 sm:$0xff]   ;;  %22383 = vst [vmem:[#allocation71_spill] sm:$0xff] %v18391_v17  ;;  %v12851_v2 = vmul.f32 -1.442695, %v18366_v26 }
 0x2d0   : > { %22381 = vst [vmem:[#allocation69_spill] sm:$0xff] %v18378_v57  ;;  %v15290_v8 = vpop.eup %15289  ;;  %15309 = vpow2.f32 %v12839_v62  ;;  %v18396_v62 = vpop.f32.mrb[61].mxu0  ;;  %v12848_v63 = vmul.f32 -1.442695, %v18371_v22  ;;  %v18403_v21 = vadd.f32 %v18272_v53, %v18114_v32  ;;  %v14546_v22 = vld [vmem:[#allocation4 + $0x154] ss:$8 sps:$4 sm:$0xff]  }
 0x2d1   : > { %v18393_v20 = vpop.eup %15291  ;;  %15311 = vpow2.f32 %v12843_v33  ;;  %4076 = vmatprep.mubr.bf16.mxu1 %v3198_v14  ;;  %22384 = vst [vmem:[#allocation72_spill] sm:$0xff] %v18396_v62  ;;  %v18398_v44 = vpop.f32.mrb[29].mxu1  ;;  %v3093_v14 = vmul.f32 %v15286_v40, %v18182_v54 }
 0x2d2   : > { %22385 = vst [vmem:[#allocation73_spill] sm:$0xff] %v18398_v44  ;;  %v15294_v30 = vpop.eup %15293  ;;  %15313 = vpow2.f32 %v12840_v18  ;;  %4077 = vmatmul.mubr.bf16.gmra.mrb[36].mxu1 %v3197_v55  ;;  %v18405_v17 = vpop.f32.mrb[62].mxu0  ;;  %v12852_v18 = vmul.f32 -1.442695, %v18378_v57  ;;  %v14541_v44 = vld [vmem:[#allocation4 + $0x140] ss:$8 sps:$4 sm:$0xff]  }
 0x2d3   : > { %22386 = vst [vmem:[#allocation74_spill] sm:$0xff] %v18405_v17  ;;  %v18407_v25 = vpop.f32.mrb[30].mxu1  ;;  %v18409_v33 = vpop.eup %15295  ;;  %v3101_v62 = vmul.f32 %v15294_v30, %v18200_v59  ;;  %15315 = vpow2.f32 %v12844_v48  ;;  %4154 = vmatpush1.bf16.msra.mxu1 %v14538_v5  ;;  %v12855_v17 = vmul.f32 -1.442695, %v18383_v35  ;;  %v3094_v59 = vmul.f32 %v15290_v8, %v18188_v24  ;;  %v14549_v57 = vld [vmem:[#allocation4 + $0x164] ss:$8 sps:$4 sm:$0xff]  }
 0x2d4   : > { %22387 = vst [vmem:[#allocation75_spill] sm:$0xff] %v18407_v25  ;;  %v18414_v26 = vpop.f32.mrb[63].mxu0  ;;  %v18416_v53 = vpop.f32.mrb[31].mxu1  ;;  %15317 = vpow2.f32 %v12847_v28  ;;  %v12859_v25 = vmul.f32 -1.442695, %v18387_v19  ;;  %4155 = vmatprep.subr.bf16.mxu1 %v14543_v38  ;;  %v18433_v8 = vmul.f32 %v18211_v12, %v18129_v36 }
 0x2d5   : > { %22388 = vst [vmem:[#allocation76_spill] sm:$0xff] %v18414_v26  ;;  %22389 = vst [vmem:[#allocation77_spill] sm:$0xff] %v18416_v53  ;;  %v15298_v55 = vpop.eup %15297  ;;  %15319 = vpow2.f32 %v12851_v2  ;;  %v3205_v48 = vpack.c.bf16 %v3101_v62, %v3093_v14  ;;  %v12856_v30 = vmul.f32 -1.442695, %v18403_v21  ;;  %v14544_v38 = vld [vmem:[#allocation4 + $0x150] ss:$8 sps:$4 sm:$0xff]   ;;  %v18437_v62 = vadd.f32 %v18274_v27, %v18117_v45 }
 0x2d6   : > { %v18420_v54 = vpop.eup %15299  ;;  %v3102_v40 = vmul.f32 %v15298_v55, %v18220_v49  ;;  %15321 = vpow2.f32 %v12848_v63  ;;  %v18429_v24 = vpop.f32.mrb[64].mxu0  ;;  %22390 = vst [vmem:[#allocation78_spill] sm:$0xff] %v18433_v8 }
 0x2d7   : > { %v18424_v5 = vpop.eup %15301  ;;  %15323 = vpow2.f32 %v12852_v18  ;;  %4156 = vmatpush1.bf16.msra.mxu1 %v14541_v44  ;;  %v18439_v44 = vpop.f32.mrb[65].mxu0  ;;  %v18463_v18 = vadd.f32 %v18285_v46, %v18114_v32 }
 0x2d8   : > { %v18427_v28 = vpop.eup %15303  ;;  %v3206_v53 = vpack.c.bf16 %v3102_v40, %v3094_v59  ;;  %15325 = vpow2.f32 %v12855_v17  ;;  %4157 = vmatprep.subr.bf16.mxu1 %v14546_v22  ;;  %v18443_v22 = vmul.f32 %v18241_v29, %v18145_v10  ;;  %v18447_v17 = vmul.f32 %v18262_v42, %v18155_v39  ;;  %v18449_v36 = vpop.f32.mrb[66].mxu0  ;;  %v14547_v10 = vld [vmem:[#allocation4 + $0x160] ss:$8 sps:$4 sm:$0xff]  }
 0x2d9   : > { %v15306_v26 = vpop.eup %15305  ;;  %15327 = vpow2.f32 %v12859_v25  ;;  %v18453_v25 = vadd.f32 %v18281_v0, %v18108_v37  ;;  %v18457_v29 = vadd.f32 %v18283_v16, %v18111_v34  ;;  %v18459_v39 = vpop.f32.mrb[67].mxu0  ;;  %v14552_v0 = vld [vmem:[#allocation4 + $0x174] ss:$8 sps:$4 sm:$0xff]   ;;  %v18471_v16 = vmul.f32 %v18276_v60, %v18161_v11 }
 0x2da   : > { %v15308_v49 = vpop.eup %15307  ;;  %v2726_v2 = vadd.f32 1.0, %v15306_v26  ;;  %4086 = vmatprep.mubr.bf16.mxu1 %v3206_v53  ;;  %22391 = vst [vmem:[#allocation79_spill] sm:$0xff] %v18443_v22  ;;  %22392 = vst [vmem:[#allocation80_spill] sm:$0xff] %v18447_v17  ;;  %15329 = vpow2.f32 %v12856_v30  ;;  %v18467_v53 = vadd.f32 %v18287_v61, %v18117_v45  ;;  %v18474_v40 = vmul.f32 -1.442695, %v18437_v62 }
 0x2db   : > { %v15310_v63 = vpop.eup %15309  ;;  %v2730_v12 = vadd.f32 1.0, %v15308_v49  ;;  %4087 = vmatmul.mubr.bf16.gmra.mrb[40].mxu1 %v3205_v48  ;;  %22393 = vst [vmem:[#allocation81_spill] sm:$0xff] %v18459_v39  ;;  %22394 = vst [vmem:[#allocation82_spill] sm:$0xff] %v18471_v16  ;;  %v18478_v30 = vadd.f32 %v18289_v50, %v18108_v37  ;;  %v18482_v61 = vadd.f32 %v18291_v23, %v18111_v34  ;;  %v18485_v49 = vmul.f32 -1.442695, %v18453_v25 }
 0x2dc   : > { %v15312_v26 = vpop.eup %15311  ;;  %15331 = vrcp.f32 %v2726_v2  ;;  %v2733_v27 = vadd.f32 1.0, %v15310_v63  ;;  %4158 = vmatpush1.bf16.msra.mxu1 %v14544_v38  ;;  %v14555_v38 = vld [vmem:[#allocation4 + $0x184] ss:$8 sps:$4 sm:$0xff]   ;;  %v18488_v2 = vmul.f32 -1.442695, %v18457_v29 }
 0x2dd   : > { %v15314_v42 = vpop.eup %15313  ;;  %15333 = vrcp.f32 %v2730_v12  ;;  %v2737_v14 = vadd.f32 1.0, %v15312_v26  ;;  %4159 = vmatprep.subr.bf16.mxu1 %v14549_v57  ;;  %v14550_v57 = vld [vmem:[#allocation4 + $0x170] ss:$8 sps:$4 sm:$0xff]   ;;  %v18491_v12 = vmul.f32 -1.442695, %v18463_v18  ;;  %v18496_v26 = vpop.f32.mrb[68].mxu0 }
 0x2de   : > { %v15316_v55 = vpop.eup %15315  ;;  %15335 = vrcp.f32 %v2733_v27  ;;  %v2734_v59 = vadd.f32 1.0, %v15314_v42  ;;  %v18494_v23 = vmul.f32 -1.442695, %v18467_v53  ;;  %22395 = vst [vmem:[#allocation83_spill] sm:$0xff] %v18496_v26  ;;  %v18528_v26 = vmul.f32 %v18409_v33, %v18216_v7  ;;  %v22406_v33 = vld [vmem:[#allocation54_spill] sm:$0xff] }
 0x2df   : > { %v15318_v48 = vpop.eup %15317  ;;  %15337 = vrcp.f32 %v2737_v14  ;;  %v2738_v46 = vadd.f32 1.0, %v15316_v55  ;;  %v18500_v14 = vadd.f32 %v18293_v1, %v18114_v32  ;;  %v18506_v55 = vpop.f32.mrb[69].mxu0  ;;  %v18518_v1 = vmul.f32 %v18340_v56, %v18172_v15 }
 0x2e0   : > { %v15320_v60 = vpop.eup %15319  ;;  %15339 = vrcp.f32 %v2734_v59  ;;  %v2741_v11 = vadd.f32 1.0, %v15318_v48  ;;  %4160 = vmatpush1.bf16.msra.mxu1 %v14547_v10  ;;  %v18504_v10 = vadd.f32 %v18295_v58, %v18117_v45  ;;  %22396 = vst [vmem:[#allocation84_spill] sm:$0xff] %v18506_v55  ;;  %v18522_v58 = vmul.f32 %v18359_v31, %v18178_v51  ;;  %22401 = vst [vmem:[#allocation89_spill] sm:$0xff] %v18528_v26  ;;  %v14558_v51 = vld [vmem:[#allocation4 + $0x194] ss:$8 sps:$4 sm:$0xff]  }
 0x2e1   : > { %v15322_v63 = vpop.eup %15321  ;;  %15341 = vrcp.f32 %v2738_v46  ;;  %v2745_v50 = vadd.f32 1.0, %v15320_v60  ;;  %4161 = vmatprep.subr.bf16.mxu1 %v14552_v0  ;;  %v18509_v0 = vmul.f32 -1.442695, %v18478_v30  ;;  %v18512_v46 = vmul.f32 -1.442695, %v18482_v61  ;;  %v18514_v60 = vpop.f32.mrb[70].mxu0 }
 0x2e2   : > { %v15324_v27 = vpop.eup %15323  ;;  %15343 = vrcp.f32 %v2741_v11  ;;  %v2742_v42 = vadd.f32 1.0, %v15322_v63  ;;  %22397 = vst [vmem:[#allocation85_spill] sm:$0xff] %v18514_v60  ;;  %22398 = vst [vmem:[#allocation86_spill] sm:$0xff] %v18518_v1  ;;  %v22402_v60 = vld [vmem:[#allocation55_spill] sm:$0xff]  ;;  %v22432_v1 = vld [vmem:[#allocation74_spill] sm:$0xff] }
 0x2e3   : > { %v15326_v59 = vpop.eup %15325  ;;  %15345 = vrcp.f32 %v2745_v50  ;;  %v2746_v48 = vadd.f32 1.0, %v15324_v27  ;;  %22399 = vst [vmem:[#allocation87_spill] sm:$0xff] %v18522_v58  ;;  %v14553_v50 = vld [vmem:[#allocation4 + $0x180] ss:$8 sps:$4 sm:$0xff]   ;;  %v18524_v27 = vpop.f32.mrb[71].mxu0  ;;  %v18532_v39 = vmul.f32 %v18420_v54, %v22402_v60  ;;  %v18544_v54 = vmul.f32 %v18393_v20, %v22406_v33 }
 0x2e4   : > { %v15328_v11 = vpop.eup %15327  ;;  %15347 = vrcp.f32 %v2742_v42  ;;  %v2749_v63 = vadd.f32 1.0, %v15326_v59  ;;  %4162 = vmatpush1.bf16.msra.mxu1 %v14550_v57  ;;  %22400 = vst [vmem:[#allocation88_spill] sm:$0xff] %v18524_v27  ;;  %v12872_v57 = vmul.f32 -1.442695, %v18500_v14  ;;  %v18536_v42 = vmul.f32 -1.442695, %v18504_v10 }
 0x2e5   : > { %v15330_v55 = vpop.eup %15329  ;;  %22403 = vst [vmem:[#allocation55_spill] sm:$0xff] %v18532_v39  ;;  %15349 = vrcp.f32 %v2746_v48  ;;  %v2753_v15 = vadd.f32 1.0, %v15328_v11  ;;  %4163 = vmatprep.subr.bf16.mxu1 %v14555_v38  ;;  %v22404_v27 = vld [vmem:[#allocation53_spill] sm:$0xff]  ;;  %22407 = vst [vmem:[#allocation54_spill] sm:$0xff] %v18544_v54  ;;  %v14556_v11 = vld [vmem:[#allocation4 + $0x190] ss:$8 sps:$4 sm:$0xff]  }
 0x2e6   : > { %v15332_v31 = vpop.eup %15331  ;;  %15351 = vrcp.f32 %v2749_v63  ;;  %v2750_v56 = vadd.f32 1.0, %v15330_v55  ;;  %v18540_v7 = vmul.f32 %v18373_v9, %v22404_v27  ;;  %v22408_v55 = vld [vmem:[#allocation58_spill] sm:$0xff]  ;;  %v18556_v33 = vpop.f32.mrb[72].mxu0  ;;  %v22430_v39 = vld [vmem:[#allocation72_spill] sm:$0xff] }
 0x2e7   : > { %v15334_v59 = vpop.eup %15333  ;;  %15353 = vrcp.f32 %v2753_v15  ;;  %v3109_v60 = vmul.f32 %v18424_v5, %v22408_v55  ;;  %v14561_v15 = vld [vmem:[#allocation4 + $0x1a4] ss:$8 sps:$4 sm:$0xff]   ;;  %v3110_v55 = vmul.f32 %v15332_v31, %v18299_v41  ;;  %v14576_v54 = vld [vmem:[#allocation4 + $0x1f4] ss:$8 sps:$4 sm:$0xff]   ;;  %v18676_v17 = vadd.f32 %v22430_v39, %v18114_v32 }
 0x2e8   : > { %22405 = vst [vmem:[#allocation53_spill] sm:$0xff] %v18540_v7  ;;  %v15336_v48 = vpop.eup %15335  ;;  %15355 = vrcp.f32 %v2750_v56  ;;  %4164 = vmatpush1.bf16.msra.mxu1 %v14553_v50 }
 0x2e9   : > { %v15338_v27 = vpop.eup %15337  ;;  %v3117_v20 = vmul.f32 %v15336_v48, %v18313_v4  ;;  %15357 = vpow2.f32 %v18474_v40  ;;  %4165 = vmatprep.subr.bf16.mxu1 %v14558_v51  ;;  %v18566_v4 = vadd.f32 %v18323_v3, %v18108_v37  ;;  %v18570_v40 = vadd.f32 %v18325_v13, %v18111_v34  ;;  %v18572_v51 = vpop.f32.mrb[73].mxu0  ;;  %v22411_v13 = vld [vmem:[#allocation61_spill] sm:$0xff] }
 0x2ea   : > { %v15340_v56 = vpop.eup %15339  ;;  %15359 = vpow2.f32 %v18485_v49  ;;  %v18575_v5 = vmul.f32 %v15338_v27, %v18321_v43  ;;  %v18579_v49 = vpop.f32.mrb[74].mxu0  ;;  %v18587_v9 = vadd.f32 %v22411_v13, %v18114_v32  ;;  %v18591_v43 = vadd.f32 %v18336_v47, %v18117_v45 }
 0x2eb   : > { %v15342_v48 = vpop.eup %15341  ;;  %v3118_v50 = vmul.f32 %v15340_v56, %v18332_v52  ;;  %15361 = vpow2.f32 %v18488_v2  ;;  %v3213_v41 = vpack.c.bf16 %v3117_v20, %v3109_v60  ;;  %v18593_v52 = vpop.f32.mrb[75].mxu0  ;;  %v22412_v60 = vld [vmem:[#allocation59_spill] sm:$0xff]  ;;  %v14559_v56 = vld [vmem:[#allocation4 + $0x1a0] ss:$8 sps:$4 sm:$0xff]   ;;  %v12879_v47 = vmul.f32 -1.442695, %v18566_v4 }
 0x2ec   : > { %22409 = vst [vmem:[#allocation58_spill] sm:$0xff] %v18575_v5  ;;  %v15344_v31 = vpop.eup %15343  ;;  %v18582_v3 = vmul.f32 %v15342_v48, %v18345_v6  ;;  %15363 = vpow2.f32 %v18491_v12  ;;  %4166 = vmatpush1.bf16.msra.mxu1 %v14556_v11  ;;  %v18597_v27 = vmul.f32 %v18427_v28, %v22412_v60  ;;  %v22414_v6 = vld [vmem:[#allocation60_spill] sm:$0xff]  ;;  %v14564_v11 = vld [vmem:[#allocation4 + $0x1b4] ss:$8 sps:$4 sm:$0xff]   ;;  %v12883_v28 = vmul.f32 -1.442695, %v18570_v40 }
 0x2ed   : > { %v15346_v2 = vpop.eup %15345  ;;  %v18600_v20 = vmul.f32 %v15334_v59, %v22414_v6  ;;  %15365 = vpow2.f32 %v18494_v23  ;;  %v3214_v12 = vpack.c.bf16 %v3118_v50, %v3110_v55  ;;  %4167 = vmatprep.subr.bf16.mxu1 %v14561_v15  ;;  %v22416_v55 = vld [vmem:[#allocation65_spill] sm:$0xff]  ;;  %v18618_v59 = vpop.f32.mrb[76].mxu0  ;;  %v22417_v23 = vld [vmem:[#allocation68_spill] sm:$0xff] }
 0x2ee   : > { %22410 = vst [vmem:[#allocation90_spill] sm:$0xff] %v18582_v3  ;;  %22413 = vst [vmem:[#allocation61_spill] sm:$0xff] %v18597_v27  ;;  %v15348_v48 = vpop.eup %15347  ;;  %15367 = vpow2.f32 %v18509_v0  ;;  %v12880_v0 = vmul.f32 -1.442695, %v18587_v9  ;;  %v3125_v60 = vmul.f32 %v15344_v31, %v22416_v55 }
 0x2ef   : > { %22415 = vst [vmem:[#allocation59_spill] sm:$0xff] %v18600_v20  ;;  %v18605_v13 = vpop.eup %15349  ;;  %15369 = vpow2.f32 %v18512_v46  ;;  %4096 = vmatprep.mubr.bf16.mxu1 %v3214_v12  ;;  %v12884_v46 = vmul.f32 -1.442695, %v18591_v43  ;;  %v14562_v12 = vld [vmem:[#allocation4 + $0x1b0] ss:$8 sps:$4 sm:$0xff]   ;;  %v3126_v38 = vmul.f32 %v15348_v48, %v22417_v23 }
 0x2f0   : > { %v15352_v15 = vpop.eup %15351  ;;  %15371 = vpow2.f32 %v12872_v57  ;;  %4097 = vmatmul.mubr.bf16.gmra.mrb[44].mxu1 %v3213_v41  ;;  %v14567_v57 = vld [vmem:[#allocation4 + $0x1c4] ss:$8 sps:$4 sm:$0xff]   ;;  %v18621_v41 = vpop.f32.mrb[77].mxu0 }
 0x2f1   : > { %v15354_v50 = vpop.eup %15353  ;;  %v3133_v6 = vmul.f32 %v15352_v15, %v18383_v35  ;;  %15373 = vpow2.f32 %v18536_v42  ;;  %4168 = vmatpush1.bf16.msra.mxu1 %v14559_v56  ;;  %v18627_v56 = vpop.f32.mrb[78].mxu0 }
 0x2f2   : > { %v15356_v63 = vpop.eup %15355  ;;  %15375 = vpow2.f32 %v12879_v47  ;;  %4169 = vmatprep.subr.bf16.mxu1 %v14564_v11  ;;  %v18624_v31 = vmul.f32 %v15354_v50, %v18387_v19  ;;  %v18629_v5 = vpop.f32.mrb[79].mxu0  ;;  %v22419_v47 = vld [vmem:[#allocation67_spill] sm:$0xff]  ;;  %v14565_v19 = vld [vmem:[#allocation4 + $0x1c0] ss:$8 sps:$4 sm:$0xff]  }
 0x2f3   : > { %v15358_v27 = vpop.eup %15357  ;;  %v3134_v35 = vmul.f32 %v15356_v63, %v18403_v21  ;;  %15377 = vpow2.f32 %v12883_v28  ;;  %v3221_v42 = vpack.c.bf16 %v3133_v6, %v3125_v60  ;;  %v18632_v11 = vmul.f32 %v15346_v2, %v22419_v47  ;;  %v14570_v63 = vld [vmem:[#allocation4 + $0x1d4] ss:$8 sps:$4 sm:$0xff]  }
 0x2f4   : > { %22418 = vst [vmem:[#allocation60_spill] sm:$0xff] %v18624_v31  ;;  %v15360_v15 = vpop.eup %15359  ;;  %v2754_v55 = vadd.f32 1.0, %v15358_v27  ;;  %15379 = vpow2.f32 %v12880_v0  ;;  %v22421_v6 = vld [vmem:[#allocation62_spill] sm:$0xff] }
 0x2f5   : > { %v15362_v48 = vpop.eup %15361  ;;  %22420 = vst [vmem:[#allocation65_spill] sm:$0xff] %v18632_v11  ;;  %v2757_v23 = vadd.f32 1.0, %v15360_v15  ;;  %15381 = vpow2.f32 %v12884_v46  ;;  %v3222_v20 = vpack.c.bf16 %v3134_v35, %v3126_v38  ;;  %4170 = vmatpush1.bf16.msra.mxu1 %v14562_v12  ;;  %v18638_v38 = vadd.f32 %v22421_v6, %v18108_v37 }
 0x2f6   : > { %v15364_v50 = vpop.eup %15363  ;;  %15383 = vrcp.f32 %v2754_v55  ;;  %v2761_v21 = vadd.f32 1.0, %v15362_v48  ;;  %4171 = vmatprep.subr.bf16.mxu1 %v14567_v57  ;;  %v22422_v57 = vld [vmem:[#allocation63_spill] sm:$0xff]  ;;  %v18648_v48 = vpop.f32.mrb[80].mxu0 }
 0x2f7   : > { %v15366_v28 = vpop.eup %15365  ;;  %15385 = vrcp.f32 %v2757_v23  ;;  %v2758_v27 = vadd.f32 1.0, %v15364_v50  ;;  %4106 = vmatprep.mubr.bf16.mxu1 %v3222_v20  ;;  %v18642_v35 = vadd.f32 %v22422_v57, %v18111_v34  ;;  %v22423_v20 = vld [vmem:[#allocation64_spill] sm:$0xff]  ;;  %v14568_v55 = vld [vmem:[#allocation4 + $0x1d0] ss:$8 sps:$4 sm:$0xff]   ;;  %v18650_v50 = vpop.f32.mrb[81].mxu0 }
 0x2f8   : > { %v15368_v60 = vpop.eup %15367  ;;  %15387 = vrcp.f32 %v2761_v21  ;;  %v2762_v2 = vadd.f32 1.0, %v15366_v28  ;;  %4107 = vmatmul.mubr.bf16.gmra.mrb[48].mxu1 %v3221_v42  ;;  %v18646_v15 = vadd.f32 %v22423_v20, %v18114_v32  ;;  %v14573_v42 = vld [vmem:[#allocation4 + $0x1e4] ss:$8 sps:$4 sm:$0xff]   ;;  %v18655_v6 = vpop.f32.mrb[82].mxu0  ;;  %v12887_v20 = vmul.f32 -1.442695, %v18638_v38 }
 0x2f9   : > { %v15370_v46 = vpop.eup %15369  ;;  %15389 = vrcp.f32 %v2758_v27  ;;  %v2765_v12 = vadd.f32 1.0, %v15368_v60  ;;  %4172 = vmatpush1.bf16.msra.mxu1 %v14565_v19  ;;  %v22424_v27 = vld [vmem:[#allocation16_spill] sm:$0xff]  ;;  %v18662_v0 = vpop.f32.mrb[83].mxu0 }
 0x2fa   : > { %v15372_v47 = vpop.eup %15371  ;;  %15391 = vrcp.f32 %v2762_v2  ;;  %v2769_v23 = vadd.f32 1.0, %v15370_v46  ;;  %4173 = vmatprep.subr.bf16.mxu1 %v14570_v63  ;;  %v18653_v60 = vsub.s32 2, %v22424_v27  ;;  %v22426_v2 = vld [vmem:[#allocation66_spill] sm:$0xff]  ;;  %v14571_v63 = vld [vmem:[#allocation4 + $0x1e0] ss:$8 sps:$4 sm:$0xff]   ;;  %22427 = vst [vmem:[#allocation67_spill] sm:$0xff] %v18662_v0 }
 0x2fb   : > { %v15374_v21 = vpop.eup %15373  ;;  %15393 = vrcp.f32 %v2765_v12  ;;  %v2766_v28 = vadd.f32 1.0, %v15372_v47  ;;  %v18660_v46 = vadd.f32 %v22426_v2, %v18117_v45  ;;  %v12891_v47 = vmul.f32 -1.442695, %v18642_v35  ;;  %v22429_v2 = vld [vmem:[#allocation71_spill] sm:$0xff] }
 0x2fc   : > { %22425 = vst [vmem:[#allocation68_spill] sm:$0xff] %v18653_v60  ;;  %v15376_v57 = vpop.eup %15375  ;;  %15395 = vrcp.f32 %v2769_v23  ;;  %v2770_v19 = vadd.f32 1.0, %v15374_v21  ;;  %v12888_v31 = vmul.f32 -1.442695, %v18646_v15  ;;  %v22428_v21 = vld [vmem:[#allocation70_spill] sm:$0xff]  ;;  %v18672_v26 = vadd.f32 %v22429_v2, %v18111_v34 }
 0x2fd   : > { %v15378_v11 = vpop.eup %15377  ;;  %15397 = vrcp.f32 %v2766_v28  ;;  %v2773_v12 = vadd.f32 1.0, %v15376_v57  ;;  %4174 = vmatpush1.bf16.msra.mxu1 %v14568_v55  ;;  %v18668_v7 = vadd.f32 %v22428_v21, %v18108_v37  ;;  %v22431_v55 = vld [vmem:[#allocation73_spill] sm:$0xff]  ;;  %v18684_v2 = vadd.f32 %v22432_v1, %v18108_v37  ;;  %v14574_v37 = vld [vmem:[#allocation4 + $0x1f0] ss:$8 sps:$4 sm:$0xff]   ;;  %v18701_v1 = vpop.f32.mrb[84].mxu0 }
 0x2fe   : > { %v15380_v3 = vpop.eup %15379  ;;  %15399 = vrcp.f32 %v2770_v19  ;;  %v2777_v23 = vadd.f32 1.0, %v15378_v11  ;;  %4175 = vmatprep.subr.bf16.mxu1 %v14573_v42  ;;  %v18680_v11 = vadd.f32 %v22431_v55, %v18117_v45  ;;  %v22433_v42 = vld [vmem:[#allocation75_spill] sm:$0xff]  ;;  %22438 = vst [vmem:[#allocation64_spill] sm:$0xff] %v18701_v1 }
 0x2ff   : > { %v15382_v28 = vpop.eup %15381  ;;  %15401 = vrcp.f32 %v2773_v12  ;;  %v2774_v57 = vadd.f32 1.0, %v15380_v3  ;;  %v18688_v16 = vadd.f32 %v22433_v42, %v18111_v34  ;;  %v22434_v12 = vld [vmem:[#allocation69_spill] sm:$0xff]  ;;  %v12892_v34 = vmul.f32 -1.442695, %v18660_v46 }
 0x300   : > { %v15384_v19 = vpop.eup %15383  ;;  %15403 = vrcp.f32 %v2777_v23  ;;  %v2778_v21 = vadd.f32 1.0, %v15382_v28  ;;  %v18692_v39 = vmul.f32 %v18605_v13, %v22434_v12  ;;  %v22437_v23 = vld [vmem:[#allocation76_spill] sm:$0xff] }
 0x301   : > { %v15386_v3 = vpop.eup %15385  ;;  %v18695_v58 = vmul.f32 %v15384_v19, %v18437_v62  ;;  %15405 = vrcp.f32 %v2774_v57  ;;  %v18699_v28 = vadd.f32 %v22437_v23, %v18114_v32  ;;  %4176 = vmatpush1.bf16.msra.mxu1 %v14571_v63  ;;  %v18707_v13 = vld [vmem:[%s22181_s10] ss:$4 sm:$0xff]  ;;  %v18713_v57 = vpop.f32.mrb[85].mxu0  ;;  %v12895_v19 = vmul.f32 -1.442695, %v18668_v7 }
 0x302   : > { %22435 = vst [vmem:[#allocation62_spill] sm:$0xff] %v18692_v39  ;;  %v15388_v55 = vpop.eup %15387  ;;  %15407 = vrcp.f32 %v2778_v21  ;;  %22439 = vst [vmem:[#allocation16_spill] sm:$0xff] %v18707_v13  ;;  %v18711_v62 = vrot.slane %v18707_v13, %v18653_v60  ;;  %4177 = vmatprep.subr.bf16.mxu1 %v14576_v54  ;;  %v14579_v32 = vld [vmem:[#allocation4 + $0x204] ss:$8 sps:$4 sm:$0xff]   ;;  %v12899_v21 = vmul.f32 -1.442695, %v18672_v26  ;;  %v3141_v12 = vmul.f32 %v15386_v3, %v18453_v25 }
 0x303   : > { %22436 = vst [vmem:[#allocation63_spill] sm:$0xff] %v18695_v58  ;;  %22440 = vst [vmem:[#allocation66_spill] sm:$0xff] %v18713_v57  ;;  %v15390_v63 = vpop.eup %15389  ;;  %15409 = vpow2.f32 %v12887_v20  ;;  %v18717_v42 = vpop.f32.mrb[86].mxu0  ;;  %v12896_v60 = vmul.f32 -1.442695, %v18676_v17  ;;  %v22443_v39 = vld [vmem:[#allocation77_spill] sm:$0xff] }
 0x304   : > { %22441 = vst [vmem:[#allocation70_spill] sm:$0xff] %v18717_v42  ;;  %v15392_v23 = vpop.eup %15391  ;;  %15411 = vpow2.f32 %v12891_v47  ;;  %v12900_v54 = vmul.f32 -1.442695, %v18680_v11  ;;  %v18723_v8 = vpop.f32.mrb[87].mxu0  ;;  %v12903_v20 = vmul.f32 -1.442695, %v18684_v2  ;;  %v18732_v58 = vadd.f32 %v22443_v39, %v18117_v45 }
 0x305   : > { %22442 = vst [vmem:[#allocation71_spill] sm:$0xff] %v18723_v8  ;;  %v15394_v22 = vpop.eup %15393  ;;  %15413 = vpow2.f32 %v12888_v31  ;;  %v12907_v57 = vmul.f32 -1.442695, %v18688_v16  ;;  %v12904_v1 = vmul.f32 -1.442695, %v18699_v28  ;;  %4178 = vmatpush1.bf16.msra.mxu1 %v14574_v37  ;;  %v18735_v31 = vmul.f32 %v15388_v55, %v18457_v29  ;;  %v18754_v39 = vpop.f32.mrb[88].mxu0 }
 0x306   : > { %v15396_v42 = vpop.eup %15395  ;;  %v3149_v47 = vmul.f32 %v15394_v22, %v18478_v30  ;;  %15415 = vpow2.f32 %v12892_v34  ;;  %4260 = vmatprep.subr.bf16.mxu1 %v14579_v32  ;;  %v18742_v37 = vadd.f32 %v18429_v24, %v18711_v62  ;;  %v3142_v22 = vmul.f32 %v15390_v63, %v18463_v18 }
 0x307   : > { %v15398_v8 = vpop.eup %15397  ;;  %22444 = vst [vmem:[#allocation72_spill] sm:$0xff] %v18735_v31  ;;  %v18738_v0 = vmul.f32 %v15396_v42, %v18482_v61  ;;  %15417 = vpow2.f32 %v12895_v19  ;;  %v18749_v29 = vmul.f32 %v15392_v23, %v18467_v53  ;;  %v22457_v31 = vld [vmem:[#allocation88_spill] sm:$0xff] }
 0x308   : > { %v15400_v25 = vpop.eup %15399  ;;  %v3150_v30 = vmul.f32 %v15398_v8, %v18500_v14  ;;  %15419 = vpow2.f32 %v12899_v21  ;;  %v3229_v45 = vpack.c.bf16 %v3149_v47, %v3141_v12  ;;  %v12908_v8 = vmul.f32 -1.442695, %v18732_v58  ;;  %v18761_v14 = vpop.f32.mrb[89].mxu0 }
 0x309   : > { %22445 = vst [vmem:[#allocation73_spill] sm:$0xff] %v18738_v0  ;;  %v18746_v3 = vpop.eup %15401  ;;  %22446 = vst [vmem:[#allocation74_spill] sm:$0xff] %v18749_v29  ;;  %v18752_v61 = vmul.f32 %v15400_v25, %v18504_v10  ;;  %15421 = vpow2.f32 %v12896_v60  ;;  %v12785_v53 = vmul.f32 -1.442695, %v18742_v37  ;;  %v18767_v10 = vsub.s32 3, %v22424_v27  ;;  %v18769_v60 = vpop.f32.mrb[90].mxu0 }
 0x30a   : > { %v18758_v55 = vpop.eup %15403  ;;  %15423 = vpow2.f32 %v12900_v54  ;;  %v3230_v18 = vpack.c.bf16 %v3150_v30, %v3142_v22  ;;  %v18775_v19 = vpop.f32.mrb[91].mxu0 }
 0x30b   : > { %22447 = vst [vmem:[#allocation75_spill] sm:$0xff] %v18752_v61  ;;  %v18763_v34 = vpop.eup %15405  ;;  %15425 = vpow2.f32 %v12903_v20  ;;  %22448 = vst [vmem:[#allocation69_spill] sm:$0xff] %v18767_v10  ;;  %v18779_v20 = vrot.slane %v18707_v13, %v18767_v10 }
 0x30c   : > { %v18773_v63 = vpop.eup %15407  ;;  %15427 = vpow2.f32 %v12907_v57  ;;  %4116 = vmatprep.mubr.bf16.mxu1 %v3230_v18 }
 0x30d   : > { %v15410_v21 = vpop.eup %15409  ;;  %15429 = vpow2.f32 %v12904_v1  ;;  %4117 = vmatmul.mubr.bf16.gmra.mrb[52].mxu1 %v3229_v45  ;;  %v18781_v30 = vpop.f32.mrb[92].mxu0 }
 0x30e   : > { %v15412_v42 = vpop.eup %15411  ;;  %v2781_v12 = vadd.f32 1.0, %v15410_v21  ;;  %15431 = vpow2.f32 %v12908_v8  ;;  %22449 = vst [vmem:[#allocation76_spill] sm:$0xff] %v18781_v30  ;;  %v18783_v18 = vpop.f32.mrb[93].mxu0  ;;  %v18787_v21 = vadd.f32 %v18439_v44, %v18779_v20 }
 0x30f   : > { %v15414_v23 = vpop.eup %15413  ;;  %v2785_v54 = vadd.f32 1.0, %v15412_v42  ;;  %15433 = vpow2.f32 %v12785_v53  ;;  %22450 = vst [vmem:[#allocation77_spill] sm:$0xff] %v18783_v18  ;;  %v18791_v42 = vadd.f32 %v18449_v36, %v18711_v62  ;;  %v22455_v36 = vld [vmem:[#allocation84_spill] sm:$0xff] }
 0x310   : > { %v15416_v47 = vpop.eup %15415  ;;  %15435 = vrcp.f32 %v2781_v12  ;;  %v2782_v25 = vadd.f32 1.0, %v15414_v23  ;;  %v18793_v12 = vpop.f32.mrb[94].mxu0  ;;  %v18807_v32 = vadd.f32 %v22455_v36, %v18779_v20 }
 0x311   : > { %v15418_v57 = vpop.eup %15417  ;;  %15437 = vrcp.f32 %v2785_v54  ;;  %v2786_v22 = vadd.f32 1.0, %v15416_v47  ;;  %22451 = vst [vmem:[#allocation91_spill] sm:$0xff] %v18793_v12  ;;  %v22452_v47 = vld [vmem:[#allocation81_spill] sm:$0xff] }
 0x312   : > { %v15420_v1 = vpop.eup %15419  ;;  %15439 = vrcp.f32 %v2782_v25  ;;  %v2789_v45 = vadd.f32 1.0, %v15418_v57  ;;  %v18797_v25 = vadd.f32 %v22452_v47, %v18779_v20  ;;  %v22453_v57 = vld [vmem:[#allocation83_spill] sm:$0xff] }
 0x313   : > { %v15422_v8 = vpop.eup %15421  ;;  %15441 = vrcp.f32 %v2786_v22  ;;  %v2793_v53 = vadd.f32 1.0, %v15420_v1  ;;  %v18801_v22 = vadd.f32 %v22453_v57, %v18711_v62  ;;  %v18803_v1 = vpop.f32.mrb[95].mxu0  ;;  %v18815_v57 = vadd.f32 %v22457_v31, %v18779_v20 }
 0x314   : > { %v15424_v23 = vpop.eup %15423  ;;  %15443 = vrcp.f32 %v2789_v45  ;;  %v2790_v54 = vadd.f32 1.0, %v15422_v8  ;;  %22454 = vst [vmem:[#allocation81_spill] sm:$0xff] %v18803_v1  ;;  %v22456_v45 = vld [vmem:[#allocation85_spill] sm:$0xff]  ;;  %v12802_v31 = vmul.f32 -1.442695, %v18807_v32 }
 0x315   : > { %v15426_v44 = vpop.eup %15425  ;;  %15445 = vrcp.f32 %v2793_v53  ;;  %v2794_v24 = vadd.f32 1.0, %v15424_v23  ;;  %v18811_v8 = vadd.f32 %v22456_v45, %v18711_v62  ;;  %v12786_v53 = vmul.f32 -1.442695, %v18787_v21 }
 0x316   : > { %v15428_v10 = vpop.eup %15427  ;;  %15447 = vrcp.f32 %v2790_v54  ;;  %v2797_v47 = vadd.f32 1.0, %v15426_v44  ;;  %v12793_v23 = vmul.f32 -1.442695, %v18791_v42  ;;  %v12794_v45 = vmul.f32 -1.442695, %v18797_v25 }
 0x317   : > { %v15430_v0 = vpop.eup %15429  ;;  %15449 = vrcp.f32 %v2794_v24  ;;  %v2801_v29 = vadd.f32 1.0, %v15428_v10  ;;  %v12801_v1 = vmul.f32 -1.442695, %v18801_v22  ;;  %v12809_v12 = vmul.f32 -1.442695, %v18811_v8  ;;  %v18823_v24 = vpop.f32.mrb[96].mxu0 }
 0x318   : > { %v15432_v36 = vpop.eup %15431  ;;  %15451 = vrcp.f32 %v2797_v47  ;;  %v2798_v61 = vadd.f32 1.0, %v15430_v0  ;;  %22458 = vst [vmem:[#allocation83_spill] sm:$0xff] %v18823_v24  ;;  %v12810_v13 = vmul.f32 -1.442695, %v18815_v57  ;;  %v18828_v0 = vadd.f32 %v18556_v33, %v18711_v62  ;;  %v18830_v47 = vpop.f32.mrb[97].mxu0 }
 0x319   : > { %v15434_v54 = vpop.eup %15433  ;;  %15453 = vrcp.f32 %v2801_v29  ;;  %v2802_v44 = vadd.f32 1.0, %v15432_v36  ;;  %22459 = vst [vmem:[#allocation84_spill] sm:$0xff] %v18830_v47  ;;  %v3157_v29 = vmul.f32 %v18746_v3, %v18566_v4  ;;  %v18837_v24 = vadd.f32 %v18572_v51, %v18779_v20 }
 0x31a   : > { %v15436_v10 = vpop.eup %15435  ;;  %15455 = vrcp.f32 %v2798_v61  ;;  %v2679_v18 = vadd.f32 1.0, %v15434_v54  ;;  %v18839_v61 = vpop.f32.mrb[98].mxu0  ;;  %v18843_v33 = vmul.f32 %v18758_v55, %v18570_v40  ;;  %v18850_v4 = vadd.f32 %v18579_v49, %v18711_v62 }
 0x31b   : > { %v15438_v30 = vpop.eup %15437  ;;  %v3165_v36 = vmul.f32 %v15436_v10, %v18638_v38  ;;  %15457 = vrcp.f32 %v2802_v44  ;;  %v18852_v38 = vpop.f32.mrb[99].mxu0  ;;  %v3158_v51 = vmul.f32 %v18763_v34, %v18587_v9  ;;  %v18866_v49 = vadd.f32 %v18593_v52, %v18779_v20 }
 0x31c   : > { %v15440_v54 = vpop.eup %15439  ;;  %22460 = vst [vmem:[#allocation85_spill] sm:$0xff] %v18843_v33  ;;  %v18846_v47 = vmul.f32 %v15438_v30, %v18642_v35  ;;  %15459 = vrcp.f32 %v2679_v18  ;;  %v18859_v35 = vmul.f32 %v18773_v63, %v18591_v43  ;;  %v18877_v63 = vadd.f32 %v18621_v41, %v18779_v20 }
 0x31d   : > { %v15442_v3 = vpop.eup %15441  ;;  %v3166_v44 = vmul.f32 %v15440_v54, %v18646_v15  ;;  %15461 = vpow2.f32 %v12786_v53  ;;  %v3237_v10 = vpack.c.bf16 %v3165_v36, %v3157_v29  ;;  %v18870_v15 = vadd.f32 %v18618_v59, %v18711_v62  ;;  %v18882_v59 = vpop.f32.mrb[100].mxu0 }
 0x31e   : > { %22461 = vst [vmem:[#allocation88_spill] sm:$0xff] %v18846_v47  ;;  %v15444_v40 = vpop.eup %15443  ;;  %22462 = vst [vmem:[#allocation92_spill] sm:$0xff] %v18859_v35  ;;  %v18862_v55 = vmul.f32 %v15442_v3, %v18660_v46  ;;  %15463 = vpow2.f32 %v12793_v23  ;;  %v12817_v46 = vmul.f32 -1.442695, %v18828_v0  ;;  %v12818_v53 = vmul.f32 -1.442695, %v18837_v24 }
 0x31f   : > { %v15446_v30 = vpop.eup %15445  ;;  %15465 = vpow2.f32 %v12794_v45  ;;  %v3238_v9 = vpack.c.bf16 %v3166_v44, %v3158_v51  ;;  %v12826_v45 = vmul.f32 -1.442695, %v18866_v49  ;;  %v18886_v29 = vpop.f32.mrb[101].mxu0  ;;  %v3173_v36 = vmul.f32 %v15444_v40, %v18668_v7 }
 0x320   : > { %22463 = vst [vmem:[#allocation93_spill] sm:$0xff] %v18862_v55  ;;  %v15448_v43 = vpop.eup %15447  ;;  %15467 = vpow2.f32 %v12801_v1  ;;  %v12825_v1 = vmul.f32 -1.442695, %v18850_v4  ;;  %v18891_v3 = vpop.f32.mrb[102].mxu0 }
 0x321   : > { %v15450_v18 = vpop.eup %15449  ;;  %15469 = vpow2.f32 %v12802_v31  ;;  %4126 = vmatprep.mubr.bf16.mxu1 %v3238_v9  ;;  %v12833_v31 = vmul.f32 -1.442695, %v18870_v15  ;;  %v18900_v9 = vpop.f32.mrb[103].mxu0 }
 0x322   : > { %v15452_v23 = vpop.eup %15451  ;;  %15471 = vpow2.f32 %v12809_v12  ;;  %4127 = vmatmul.mubr.bf16.gmra.mrb[56].mxu1 %v3237_v10  ;;  %v18894_v12 = vmul.f32 %v15446_v30, %v18672_v26  ;;  %v12834_v10 = vmul.f32 -1.442695, %v18877_v63  ;;  %v18907_v26 = vmul.f32 %v15450_v18, %v18680_v11 }
 0x323   : > { %v15454_v41 = vpop.eup %15453  ;;  %v3181_v54 = vmul.f32 %v15452_v23, %v18684_v2  ;;  %15473 = vpow2.f32 %v12810_v13  ;;  %v3174_v2 = vmul.f32 %v15448_v43, %v18676_v17 }
 0x324   : > { %v15456_v51 = vpop.eup %15455  ;;  %22464 = vst [vmem:[#allocation94_spill] sm:$0xff] %v18894_v12  ;;  %v18897_v44 = vmul.f32 %v15454_v41, %v18688_v16  ;;  %15475 = vpow2.f32 %v12817_v46  ;;  %22466 = vst [vmem:[#allocation96_spill] sm:$0xff] %v18907_v26  ;;  %v22471_v12 = vld [vmem:[#allocation70_spill] sm:$0xff] }
 0x325   : > { %v15458_v7 = vpop.eup %15457  ;;  %v3182_v13 = vmul.f32 %v15456_v51, %v18699_v28  ;;  %15477 = vpow2.f32 %v12818_v53  ;;  %v3245_v40 = vpack.c.bf16 %v3181_v54, %v3173_v36  ;;  %v18916_v11 = vpop.f32.mrb[104].mxu0 }
 0x326   : > { %22465 = vst [vmem:[#allocation95_spill] sm:$0xff] %v18897_v44  ;;  %v18904_v23 = vpop.eup %15459  ;;  %v18910_v16 = vmul.f32 %v15458_v7, %v18732_v58  ;;  %15479 = vpow2.f32 %v12825_v1  ;;  %v18918_v1 = vpop.f32.mrb[105].mxu0  ;;  %v18971_v44 = vadd.f32 %v22471_v12, %v18711_v62 }
 0x327   : > { %v15462_v30 = vpop.eup %15461  ;;  %15481 = vpow2.f32 %v12826_v45  ;;  %v3246_v46 = vpack.c.bf16 %v3182_v13, %v3174_v2  ;;  %v18920_v51 = vpop.f32.mrb[106].mxu0 }
 0x328   : > { %22467 = vst [vmem:[#allocation97_spill] sm:$0xff] %v18910_v16  ;;  %v15464_v17 = vpop.eup %15463  ;;  %v2680_v43 = vadd.f32 1.0, %v15462_v30  ;;  %15483 = vpow2.f32 %v12833_v31  ;;  %v18922_v2 = vpop.f32.mrb[107].mxu0 }
 0x329   : > { %v15466_v53 = vpop.eup %15465  ;;  %v2687_v36 = vadd.f32 1.0, %v15464_v17  ;;  %15485 = vpow2.f32 %v12834_v10  ;;  %4136 = vmatprep.mubr.bf16.mxu1 %v3246_v46 }
 0x32a   : > { %v15468_v58 = vpop.eup %15467  ;;  %15487 = vrcp.f32 %v2680_v43  ;;  %v2688_v18 = vadd.f32 1.0, %v15466_v53  ;;  %4137 = vmatmul.mubr.bf16.gmra.mrb[60].mxu1 %v3245_v40  ;;  %v18926_v40 = vadd.f32 %v18627_v56, %v18711_v62  ;;  %v18930_v53 = vadd.f32 %v18629_v5, %v18779_v20 }
 0x32b   : > { %v15470_v45 = vpop.eup %15469  ;;  %15489 = vrcp.f32 %v2687_v36  ;;  %v2695_v54 = vadd.f32 1.0, %v15468_v58  ;;  %v18938_v56 = vadd.f32 %v18650_v50, %v18779_v20 }
 0x32c   : > { %v15472_v31 = vpop.eup %15471  ;;  %15491 = vrcp.f32 %v2688_v18  ;;  %v2696_v7 = vadd.f32 1.0, %v15470_v45  ;;  %v18934_v18 = vadd.f32 %v18648_v48, %v18711_v62  ;;  %v22468_v48 = vld [vmem:[#allocation67_spill] sm:$0xff] }
 0x32d   : > { %v15474_v10 = vpop.eup %15473  ;;  %15493 = vrcp.f32 %v2695_v54  ;;  %v2703_v13 = vadd.f32 1.0, %v15472_v31  ;;  %v18942_v31 = vadd.f32 %v18655_v6, %v18711_v62  ;;  %v18944_v5 = vpop.f32.mrb[108].mxu0  ;;  %v22469_v6 = vld [vmem:[#allocation64_spill] sm:$0xff] }
 0x32e   : > { %v15476_v30 = vpop.eup %15475  ;;  %15495 = vrcp.f32 %v2696_v7  ;;  %v2704_v46 = vadd.f32 1.0, %v15474_v10  ;;  %v12849_v28 = vmul.f32 -1.442695, %v18934_v18 }
 0x32f   : > { %v15478_v17 = vpop.eup %15477  ;;  %15497 = vrcp.f32 %v2703_v13  ;;  %v2711_v43 = vadd.f32 1.0, %v15476_v30  ;;  %v12841_v13 = vmul.f32 -1.442695, %v18926_v40  ;;  %v18949_v30 = vadd.f32 %v22468_v48, %v18779_v20  ;;  %v22470_v48 = vld [vmem:[#allocation66_spill] sm:$0xff] }
 0x330   : > { %v15480_v36 = vpop.eup %15479  ;;  %15499 = vrcp.f32 %v2704_v46  ;;  %v2712_v58 = vadd.f32 1.0, %v15478_v17  ;;  %v18951_v46 = vpop.f32.mrb[109].mxu0  ;;  %v18963_v34 = vadd.f32 %v22470_v48, %v18779_v20 }
 0x331   : > { %v15482_v45 = vpop.eup %15481  ;;  %15501 = vrcp.f32 %v2711_v43  ;;  %v2719_v54 = vadd.f32 1.0, %v15480_v36  ;;  %v12842_v43 = vmul.f32 -1.442695, %v18930_v53  ;;  %v18956_v36 = vadd.f32 %v22469_v6, %v18711_v62  ;;  %v18958_v41 = vpop.f32.mrb[110].mxu0 }
 0x332   : > { %v15484_v7 = vpop.eup %15483  ;;  %15503 = vrcp.f32 %v2712_v58  ;;  %v2720_v10 = vadd.f32 1.0, %v15482_v45  ;;  %v18965_v52 = vpop.f32.mrb[111].mxu0  ;;  %v12857_v6 = vmul.f32 -1.442695, %v18942_v31  ;;  %v12858_v48 = vmul.f32 -1.442695, %v18949_v30 }
 0x333   : > { %v15486_v17 = vpop.eup %15485  ;;  %15505 = vrcp.f32 %v2719_v54  ;;  %v2727_v50 = vadd.f32 1.0, %v15484_v7  ;;  %v12850_v7 = vmul.f32 -1.442695, %v18938_v56  ;;  %v12865_v47 = vmul.f32 -1.442695, %v18956_v36 }
 0x334   : > { %v15488_v58 = vpop.eup %15487  ;;  %15507 = vrcp.f32 %v2720_v10  ;;  %v2728_v45 = vadd.f32 1.0, %v15486_v17  ;;  %v3063_v17 = vmul.f32 %v18904_v23, %v18742_v37  ;;  %v12866_v55 = vmul.f32 -1.442695, %v18963_v34  ;;  %v22472_v37 = vld [vmem:[#allocation71_spill] sm:$0xff] }
 0x335   : > { %v15490_v54 = vpop.eup %15489  ;;  %15509 = vrcp.f32 %v2727_v50  ;;  %v3064_v50 = vmul.f32 %v15488_v58, %v18787_v21  ;;  %v18983_v23 = vadd.f32 %v22472_v37, %v18779_v20  ;;  %v12873_v21 = vmul.f32 -1.442695, %v18971_v44 }
 0x336   : > { %v15492_v10 = vpop.eup %15491  ;;  %v3071_v26 = vmul.f32 %v15490_v54, %v18791_v42  ;;  %15511 = vrcp.f32 %v2728_v45  ;;  %v14577_v54 = vld [vmem:[#allocation4 + $0x200] ss:$8 sps:$4 sm:$0xff]  }
 0x337   : > { %v15494_v16 = vpop.eup %15493  ;;  %v3072_v33 = vmul.f32 %v15492_v10, %v18797_v25  ;;  %15513 = vpow2.f32 %v12841_v13  ;;  %v18988_v25 = vadd.f32 %v18754_v39, %v18711_v62  ;;  %v18990_v13 = vpop.f32.mrb[112].mxu0  ;;  %v14582_v10 = vld [vmem:[#allocation4 + $0x214] ss:$8 sps:$4 sm:$0xff]  }
 0x338   : > { %v15496_v35 = vpop.eup %15495  ;;  %v3191_v12 = vpack.c.bf16 %v3071_v26, %v3063_v17  ;;  %15515 = vpow2.f32 %v12842_v43  ;;  %v3079_v43 = vmul.f32 %v15494_v16, %v18801_v22  ;;  %v19004_v22 = vadd.f32 %v18769_v60, %v18711_v62 }
 0x339   : > { %v15498_v42 = vpop.eup %15497  ;;  %15517 = vpow2.f32 %v12849_v28  ;;  %v3192_v45 = vpack.c.bf16 %v3072_v33, %v3064_v50  ;;  %v18996_v28 = vadd.f32 %v18761_v14, %v18779_v20  ;;  %v18998_v33 = vpop.f32.mrb[113].mxu0  ;;  %v3080_v50 = vmul.f32 %v15496_v35, %v18807_v32  ;;  %v14580_v32 = vld [vmem:[#allocation4 + $0x210] ss:$8 sps:$4 sm:$0xff]  }
 0x33a   : > { %v15500_v26 = vpop.eup %15499  ;;  %v3087_v58 = vmul.f32 %v15498_v42, %v18811_v8  ;;  %15519 = vpow2.f32 %v12850_v7  ;;  %v19006_v8 = vpop.f32.mrb[114].mxu0  ;;  %v12874_v14 = vmul.f32 -1.442695, %v18983_v23  ;;  %v12881_v35 = vmul.f32 -1.442695, %v18988_v25 }
 0x33b   : > { %v15502_v17 = vpop.eup %15501  ;;  %v3088_v39 = vmul.f32 %v15500_v26, %v18815_v57  ;;  %15521 = vpow2.f32 %v12857_v6  ;;  %4179 = vmatprep.mubr.bf16.mxu1 %v3192_v45  ;;  %v19009_v37 = vpop.f32.mrb[115].mxu0 }
 0x33c   : > { %v15504_v16 = vpop.eup %15503  ;;  %15523 = vpow2.f32 %v12858_v48  ;;  %4180 = vmatmul.mubr.bf16.vlgmr.msra.gmra.mrb[32].mxu1 %v3191_v12  ;;  %v3199_v7 = vpack.c.bf16 %v3087_v58, %v3079_v43  ;;  %v19013_v60 = vmul.f32 %v15502_v17, %v18828_v0  ;;  %v14585_v48 = vld [vmem:[#allocation4 + $0x224] ss:$8 sps:$4 sm:$0xff]   ;;  %v12882_v12 = vmul.f32 -1.442695, %v18996_v28  ;;  %v14583_v58 = vld [vmem:[#allocation4 + $0x220] ss:$8 sps:$4 sm:$0xff]  }
 0x33d   : > { %v15506_v42 = vpop.eup %15505  ;;  %4261 = vmatpush1.bf16.msra.mxu1 %v14577_v54  ;;  %15525 = vpow2.f32 %v12865_v47  ;;  %v3200_v57 = vpack.c.bf16 %v3088_v39, %v3080_v50  ;;  %v3096_v47 = vmul.f32 %v15504_v16, %v18837_v24  ;;  %v12889_v43 = vmul.f32 -1.442695, %v19004_v22  ;;  %v19028_v17 = vpop.f32.mrb[116].mxu0 }
 0x33e   : > { %v15508_v6 = vpop.eup %15507  ;;  %v19016_v45 = vmul.f32 %v15506_v42, %v18850_v4  ;;  %4262 = vmatprep.subr.bf16.mxu1 %v14582_v10  ;;  %15527 = vpow2.f32 %v12866_v55  ;;  %v14594_v4 = vld [vmem:[#allocation4 + $0x254] ss:$8 sps:$4 sm:$0xff]  }
 0x33f   : > { %v19019_v26 = vpop.eup %15509  ;;  %v3104_v54 = vmul.f32 %v15508_v6, %v18866_v49  ;;  %15529 = vpow2.f32 %v12873_v21  ;;  %4189 = vmatprep.mubr.bf16.mxu1 %v3200_v57  ;;  %v14588_v49 = vld [vmem:[#allocation4 + $0x234] ss:$8 sps:$4 sm:$0xff]   ;;  %v19030_v21 = vpop.f32.mrb[117].mxu0  ;;  %v19035_v57 = vsub.s32 6, %v22424_v27 }
 0x340   : > { %v19024_v0 = vpop.eup %15511  ;;  %15531 = vpow2.f32 %v12874_v14  ;;  %22473 = vst [vmem:[#allocation67_spill] sm:$0xff] %v19030_v21  ;;  %v19032_v14 = vpop.f32.mrb[118].mxu0 }
 0x341   : > { %v15514_v55 = vpop.eup %15513  ;;  %4263 = vmatpush1.bf16.msra.mxu1 %v14580_v32  ;;  %15533 = vpow2.f32 %v12881_v35  ;;  %v3208_v10 = vpack.c.bf16 %v3104_v54, %v3096_v47  ;;  %22474 = vst [vmem:[#allocation64_spill] sm:$0xff] %v19032_v14  ;;  %22475 = vst [vmem:[#allocation66_spill] sm:$0xff] %v19035_v57  ;;  %v19037_v35 = vpop.f32.mrb[119].mxu0  ;;  %v19040_v47 = vsub.s32 7, %v22424_v27  ;;  %v22479_v27 = vld [vmem:[#allocation16_spill] sm:$0xff] }
 0x342   : > { %v15516_v24 = vpop.eup %15515  ;;  %v2735_v50 = vadd.f32 1.0, %v15514_v55  ;;  %4264 = vmatprep.subr.bf16.mxu1 %v14585_v48  ;;  %15535 = vpow2.f32 %v12882_v12  ;;  %22476 = vst [vmem:[#allocation70_spill] sm:$0xff] %v19037_v35  ;;  %v14586_v12 = vld [vmem:[#allocation4 + $0x230] ss:$8 sps:$4 sm:$0xff]   ;;  %v14591_v55 = vld [vmem:[#allocation4 + $0x244] ss:$8 sps:$4 sm:$0xff]  }
 0x343   : > { %v15518_v39 = vpop.eup %15517  ;;  %v2736_v16 = vadd.f32 1.0, %v15516_v24  ;;  %15537 = vpow2.f32 %v12889_v43  ;;  %22477 = vst [vmem:[#allocation71_spill] sm:$0xff] %v19040_v47 }
 0x344   : > { %v15520_v42 = vpop.eup %15519  ;;  %15539 = vrcp.f32 %v2735_v50  ;;  %v2743_v32 = vadd.f32 1.0, %v15518_v39  ;;  %4190 = vmatmul.mubr.bf16.gmra.mrb[36].mxu1 %v3199_v7  ;;  %v19044_v50 = vadd.f32 %v18775_v19, %v18779_v20 }
 0x345   : > { %v15522_v6 = vpop.eup %15521  ;;  %15541 = vrcp.f32 %v2736_v16  ;;  %v2744_v48 = vadd.f32 1.0, %v15520_v42  ;;  %4265 = vmatpush1.bf16.msra.mxu1 %v14583_v58  ;;  %4199 = vmatprep.mubr.bf16.mxu1 %v3208_v10  ;;  %v22478_v10 = vld [vmem:[#allocation76_spill] sm:$0xff]  ;;  %v19052_v42 = vrot.slane %v22479_v27, %v19035_v57 }
 0x346   : > { %v15524_v54 = vpop.eup %15523  ;;  %15543 = vrcp.f32 %v2743_v32  ;;  %v2751_v43 = vadd.f32 1.0, %v15522_v6  ;;  %4266 = vmatprep.subr.bf16.mxu1 %v14588_v49  ;;  %v19048_v16 = vadd.f32 %v22478_v10, %v18711_v62  ;;  %v14589_v6 = vld [vmem:[#allocation4 + $0x240] ss:$8 sps:$4 sm:$0xff]   ;;  %v12890_v35 = vmul.f32 -1.442695, %v19044_v50 }
 0x347   : > { %v15526_v7 = vpop.eup %15525  ;;  %15545 = vrcp.f32 %v2744_v48  ;;  %v2752_v24 = vadd.f32 1.0, %v15524_v54  ;;  %v22480_v48 = vld [vmem:[#allocation77_spill] sm:$0xff]  ;;  %v19060_v54 = vrot.slane %v22479_v27, %v19040_v47 }
 0x348   : > { %v15528_v39 = vpop.eup %15527  ;;  %15547 = vrcp.f32 %v2751_v43  ;;  %v2759_v58 = vadd.f32 1.0, %v15526_v7  ;;  %v19056_v19 = vadd.f32 %v22480_v48, %v18779_v20  ;;  %v19062_v43 = vpop.f32.mrb[120].mxu0  ;;  %v22484_v27 = vld [vmem:[#allocation81_spill] sm:$0xff] }
 0x349   : > { %v15530_v49 = vpop.eup %15529  ;;  %15549 = vrcp.f32 %v2752_v24  ;;  %v2760_v32 = vadd.f32 1.0, %v15528_v39  ;;  %4267 = vmatpush1.bf16.msra.mxu1 %v14586_v12  ;;  %22481 = vst [vmem:[#allocation76_spill] sm:$0xff] %v19062_v43  ;;  %v22482_v24 = vld [vmem:[#allocation91_spill] sm:$0xff]  ;;  %v19068_v12 = vpop.f32.mrb[121].mxu0  ;;  %v19073_v47 = vadd.f32 %v22484_v27, %v18779_v20 }
 0x34a   : > { %v15532_v7 = vpop.eup %15531  ;;  %15551 = vrcp.f32 %v2759_v58  ;;  %v2767_v10 = vadd.f32 1.0, %v15530_v49  ;;  %4268 = vmatprep.subr.bf16.mxu1 %v14591_v55  ;;  %v19066_v39 = vadd.f32 %v22482_v24, %v18711_v62  ;;  %22483 = vst [vmem:[#allocation16_spill] sm:$0xff] %v19068_v12  ;;  %v19075_v43 = vpop.f32.mrb[122].mxu0  ;;  %v22486_v62 = vpack.c.bf16 %v19016_v45, %v19013_v60  ;;  %v14592_v27 = vld [vmem:[#allocation4 + $0x250] ss:$8 sps:$4 sm:$0xff]  }
 0x34b   : > { %v15534_v57 = vpop.eup %15533  ;;  %15553 = vrcp.f32 %v2760_v32  ;;  %v2768_v48 = vadd.f32 1.0, %v15532_v7  ;;  %22485 = vst [vmem:[#allocation77_spill] sm:$0xff] %v19075_v43  ;;  %v12897_v49 = vmul.f32 -1.442695, %v19048_v16  ;;  %v22487_v32 = vld [vmem:[#allocation83_spill] sm:$0xff]  ;;  %v19085_v24 = vpop.f32.mrb[123].mxu0 }
 0x34c   : > { %v15536_v58 = vpop.eup %15535  ;;  %15555 = vrcp.f32 %v2767_v10  ;;  %v2775_v55 = vadd.f32 1.0, %v15534_v57  ;;  %4200 = vmatmul.mubr.bf16.gmra.mrb[40].mxu1 %v22486_v62  ;;  %v19083_v7 = vadd.f32 %v22487_v32, %v19052_v42  ;;  %22488 = vst [vmem:[#allocation91_spill] sm:$0xff] %v19085_v24  ;;  %v12898_v10 = vmul.f32 -1.442695, %v19056_v19  ;;  %v22489_v57 = vld [vmem:[#allocation84_spill] sm:$0xff] }
 0x34d   : > { %v15538_v12 = vpop.eup %15537  ;;  %15557 = vrcp.f32 %v2768_v48  ;;  %v2776_v20 = vadd.f32 1.0, %v15536_v58  ;;  %4269 = vmatpush1.bf16.msra.mxu1 %v14589_v6  ;;  %v19090_v43 = vadd.f32 %v22489_v57, %v19060_v54  ;;  %v12905_v62 = vmul.f32 -1.442695, %v19066_v39  ;;  %v14597_v32 = vld [vmem:[#allocation4 + $0x264] ss:$8 sps:$4 sm:$0xff]  }
 0x34e   : > { %v15540_v60 = vpop.eup %15539  ;;  %15559 = vrcp.f32 %v2775_v55  ;;  %v2783_v45 = vadd.f32 1.0, %v15538_v12  ;;  %4270 = vmatprep.subr.bf16.mxu1 %v14594_v4  ;;  %v19095_v24 = vadd.f32 %v18839_v61, %v19052_v42  ;;  %v3111_v6 = vmul.f32 %v19019_v26, %v18870_v15  ;;  %v19110_v26 = vpop.f32.mrb[124].mxu0 }
 0x34f   : > { %v15542_v48 = vpop.eup %15541  ;;  %v3119_v58 = vmul.f32 %v15540_v60, %v18926_v40  ;;  %15561 = vrcp.f32 %v2776_v20  ;;  %v12906_v57 = vmul.f32 -1.442695, %v19073_v47  ;;  %v3112_v4 = vmul.f32 %v19024_v0, %v18877_v63  ;;  %v14595_v0 = vld [vmem:[#allocation4 + $0x260] ss:$8 sps:$4 sm:$0xff]  }
 0x350   : > { %v15544_v14 = vpop.eup %15543  ;;  %v3120_v12 = vmul.f32 %v15542_v48, %v18930_v53  ;;  %15563 = vrcp.f32 %v2783_v45  ;;  %v12789_v55 = vmul.f32 -1.442695, %v19083_v7  ;;  %v12790_v15 = vmul.f32 -1.442695, %v19090_v43  ;;  %v14600_v48 = vld [vmem:[#allocation4 + $0x274] ss:$8 sps:$4 sm:$0xff]  }
 0x351   : > { %v15546_v61 = vpop.eup %15545  ;;  %15565 = vpow2.f32 %v12890_v35  ;;  %4271 = vmatpush1.bf16.msra.mxu1 %v14592_v27  ;;  %v3215_v21 = vpack.c.bf16 %v3119_v58, %v3111_v6  ;;  %v19108_v40 = vadd.f32 %v18852_v38, %v19060_v54  ;;  %v12797_v53 = vmul.f32 -1.442695, %v19095_v24  ;;  %v19117_v27 = vpop.f32.mrb[125].mxu0 }
 0x352   : > { %v15548_v20 = vpop.eup %15547  ;;  %15567 = vpow2.f32 %v12897_v49  ;;  %v3216_v63 = vpack.c.bf16 %v3120_v12, %v3112_v4  ;;  %4272 = vmatprep.subr.bf16.mxu1 %v14597_v32  ;;  %v19115_v35 = vadd.f32 %v18882_v59, %v19052_v42  ;;  %v3127_v45 = vmul.f32 %v15544_v14, %v18934_v18  ;;  %v19125_v32 = vpop.f32.mrb[126].mxu0 }
 0x353   : > { %v15550_v60 = vpop.eup %15549  ;;  %v3135_v38 = vmul.f32 %v15548_v20, %v18942_v31  ;;  %15569 = vpow2.f32 %v12898_v10  ;;  %v19123_v49 = vadd.f32 %v18886_v29, %v19060_v54  ;;  %v3128_v58 = vmul.f32 %v15546_v61, %v18938_v56  ;;  %v19133_v31 = vpop.f32.mrb[127].mxu0 }
 0x354   : > { %v15552_v6 = vpop.eup %15551  ;;  %v3136_v59 = vmul.f32 %v15550_v60, %v18949_v30  ;;  %15571 = vpow2.f32 %v12905_v62  ;;  %4209 = vmatprep.mubr.bf16.mxu1 %v3216_v63  ;;  %v19131_v18 = vadd.f32 %v18891_v3, %v19052_v42  ;;  %v12798_v29 = vmul.f32 -1.442695, %v19108_v40  ;;  %v14598_v30 = vld [vmem:[#allocation4 + $0x270] ss:$8 sps:$4 sm:$0xff]  }
 0x355   : > { %v15554_v14 = vpop.eup %15553  ;;  %15573 = vpow2.f32 %v12906_v57  ;;  %4210 = vmatmul.mubr.bf16.gmra.mrb[44].mxu1 %v3215_v21  ;;  %v3223_v10 = vpack.c.bf16 %v3135_v38, %v3127_v45  ;;  %v19138_v4 = vadd.f32 %v18900_v9, %v19060_v54  ;;  %v12805_v3 = vmul.f32 -1.442695, %v19115_v35  ;;  %v14603_v57 = vld [vmem:[#allocation4 + $0x284] ss:$8 sps:$4 sm:$0xff]   ;;  %v14601_v45 = vld [vmem:[#allocation4 + $0x280] ss:$8 sps:$4 sm:$0xff]  }
 0x356   : > { %v15556_v56 = vpop.eup %15555  ;;  %4273 = vmatpush1.bf16.msra.mxu1 %v14595_v0  ;;  %15575 = vpow2.f32 %v12789_v55  ;;  %v3224_v62 = vpack.c.bf16 %v3136_v59, %v3128_v58  ;;  %v19142_v61 = vmul.f32 %v15552_v6, %v18956_v36  ;;  %v12806_v9 = vmul.f32 -1.442695, %v19123_v49 }
 0x357   : > { %v15558_v12 = vpop.eup %15557  ;;  %v19145_v21 = vmul.f32 %v15556_v56, %v18971_v44  ;;  %4274 = vmatprep.subr.bf16.mxu1 %v14600_v48  ;;  %15577 = vpow2.f32 %v12790_v15  ;;  %v3144_v63 = vmul.f32 %v15554_v14, %v18963_v34  ;;  %v12813_v0 = vmul.f32 -1.442695, %v19131_v18  ;;  %v14606_v48 = vld [vmem:[#allocation4 + $0x294] ss:$8 sps:$4 sm:$0xff]  }
 0x358   : > { %v15560_v20 = vpop.eup %15559  ;;  %v3152_v55 = vmul.f32 %v15558_v12, %v18983_v23  ;;  %15579 = vpow2.f32 %v12797_v53  ;;  %4219 = vmatprep.mubr.bf16.mxu1 %v3224_v62  ;;  %v12814_v44 = vmul.f32 -1.442695, %v19138_v4 }
 0x359   : > { %v19151_v60 = vpop.eup %15561  ;;  %15581 = vpow2.f32 %v12798_v29  ;;  %v3231_v36 = vpack.c.bf16 %v19145_v21, %v19142_v61  ;;  %v19157_v23 = vmul.f32 %v15560_v20, %v18988_v25  ;;  %v14607_v20 = vld [vmem:[#allocation4 + $0x2a0] ss:$8 sps:$4 sm:$0xff]  }
 0x35a   : > { %v15564_v15 = vpop.eup %15563  ;;  %4275 = vmatpush1.bf16.msra.mxu1 %v14598_v30  ;;  %15583 = vpow2.f32 %v12805_v3  ;;  %v3232_v38 = vpack.c.bf16 %v3152_v55, %v3144_v63  ;;  %v14604_v30 = vld [vmem:[#allocation4 + $0x290] ss:$8 sps:$4 sm:$0xff]   ;;  %v14609_v3 = vld [vmem:[#allocation4 + $0x2a4] ss:$8 sps:$4 sm:$0xff]  }
 0x35b   : > { %v15566_v34 = vpop.eup %15565  ;;  %v19160_v53 = vmul.f32 %v15564_v15, %v19004_v22  ;;  %4276 = vmatprep.subr.bf16.mxu1 %v14603_v57  ;;  %15585 = vpow2.f32 %v12806_v9 }
 0x35c   : > { %v15568_v6 = vpop.eup %15567  ;;  %v2784_v58 = vadd.f32 1.0, %v15566_v34  ;;  %15587 = vpow2.f32 %v12813_v0  ;;  %v19166_v0 = vadd.f32 %v18916_v11, %v19052_v42  ;;  %v19174_v34 = vadd.f32 %v18920_v51, %v19052_v42 }
 0x35d   : > { %v15570_v59 = vpop.eup %15569  ;;  %v2791_v14 = vadd.f32 1.0, %v15568_v6  ;;  %4220 = vmatmul.mubr.bf16.gmra.mrb[48].mxu1 %v3223_v10  ;;  %15589 = vpow2.f32 %v12814_v44  ;;  %v3239_v29 = vpack.c.bf16 %v19160_v53, %v19157_v23  ;;  %v14612_v44 = vld [vmem:[#allocation4 + $0x2b4] ss:$8 sps:$4 sm:$0xff]   ;;  %v19178_v11 = vadd.f32 %v18922_v2, %v19060_v54  ;;  %v14615_v2 = vld [vmem:[#allocation4 + $0x2c4] ss:$8 sps:$4 sm:$0xff]  }
 0x35e   : > { %v15572_v56 = vpop.eup %15571  ;;  %15591 = vrcp.f32 %v2784_v58  ;;  %v2792_v25 = vadd.f32 1.0, %v15570_v59  ;;  %4277 = vmatpush1.bf16.msra.mxu1 %v14601_v45  ;;  %4229 = vmatprep.mubr.bf16.mxu1 %v3232_v38  ;;  %v19170_v38 = vadd.f32 %v18918_v1, %v19060_v54  ;;  %v19182_v1 = vadd.f32 %v18944_v5, %v19052_v42 }
 0x35f   : > { %v15574_v22 = vpop.eup %15573  ;;  %15593 = vrcp.f32 %v2791_v14  ;;  %v2799_v62 = vadd.f32 1.0, %v15572_v56  ;;  %4278 = vmatprep.subr.bf16.mxu1 %v14606_v48  ;;  %v14610_v14 = vld [vmem:[#allocation4 + $0x2b0] ss:$8 sps:$4 sm:$0xff]   ;;  %v19186_v51 = vadd.f32 %v18951_v46, %v19060_v54 }
 0x360   : > { %v15576_v12 = vpop.eup %15575  ;;  %15595 = vrcp.f32 %v2792_v25  ;;  %v2800_v61 = vadd.f32 1.0, %v15574_v22  ;;  %v12821_v25 = vmul.f32 -1.442695, %v19166_v0  ;;  %v12822_v5 = vmul.f32 -1.442695, %v19170_v38 }
 0x361   : > { %v15578_v21 = vpop.eup %15577  ;;  %15597 = vrcp.f32 %v2799_v62  ;;  %v2683_v10 = vadd.f32 1.0, %v15576_v12  ;;  %v3160_v12 = vmul.f32 %v19151_v60, %v18996_v28  ;;  %v14613_v28 = vld [vmem:[#allocation4 + $0x2c0] ss:$8 sps:$4 sm:$0xff]   ;;  %v19208_v60 = vadd.f32 %v18990_v13, %v19052_v42 }
 0x362   : > { %v15580_v57 = vpop.eup %15579  ;;  %15599 = vrcp.f32 %v2800_v61  ;;  %v2684_v9 = vadd.f32 1.0, %v15578_v21  ;;  %4279 = vmatpush1.bf16.msra.mxu1 %v14604_v30  ;;  %v19191_v30 = vadd.f32 %v18958_v41, %v19052_v42  ;;  %v12830_v21 = vmul.f32 -1.442695, %v19178_v11 }
 0x363   : > { %v15582_v63 = vpop.eup %15581  ;;  %15601 = vrcp.f32 %v2683_v10  ;;  %v2691_v55 = vadd.f32 1.0, %v15580_v57  ;;  %4280 = vmatprep.subr.bf16.mxu1 %v14609_v3  ;;  %v12829_v3 = vmul.f32 -1.442695, %v19174_v34  ;;  %v12837_v41 = vmul.f32 -1.442695, %v19182_v1 }
 0x364   : > { %v15584_v15 = vpop.eup %15583  ;;  %15603 = vrcp.f32 %v2684_v9  ;;  %v2692_v45 = vadd.f32 1.0, %v15582_v63  ;;  %v12838_v57 = vmul.f32 -1.442695, %v19186_v51  ;;  %v19203_v9 = vadd.f32 %v18965_v52, %v19060_v54 }
 0x365   : > { %v15586_v48 = vpop.eup %15585  ;;  %15605 = vrcp.f32 %v2691_v55  ;;  %v2699_v6 = vadd.f32 1.0, %v15584_v15  ;;  %4230 = vmatmul.mubr.bf16.gmra.mrb[52].mxu1 %v3231_v36  ;;  %v19214_v52 = vadd.f32 %v18998_v33, %v19060_v54  ;;  %v19220_v13 = vadd.f32 %v19006_v8, %v19052_v42 }
 0x366   : > { %v15588_v58 = vpop.eup %15587  ;;  %15607 = vrcp.f32 %v2692_v45  ;;  %v2700_v59 = vadd.f32 1.0, %v15586_v48  ;;  %4281 = vmatpush1.bf16.msra.mxu1 %v14607_v20  ;;  %v14618_v45 = vld [vmem:[#allocation4 + $0x2d4] ss:$8 sps:$4 sm:$0xff]   ;;  %v12846_v33 = vmul.f32 -1.442695, %v19203_v9 }
 0x367   : > { %v15590_v56 = vpop.eup %15589  ;;  %15609 = vrcp.f32 %v2699_v6  ;;  %v2707_v36 = vadd.f32 1.0, %v15588_v58  ;;  %4282 = vmatprep.subr.bf16.mxu1 %v14612_v44  ;;  %v12853_v8 = vmul.f32 -1.442695, %v19208_v60 }
 0x368   : > { %v15592_v22 = vpop.eup %15591  ;;  %15611 = vrcp.f32 %v2700_v59  ;;  %v2708_v62 = vadd.f32 1.0, %v15590_v56  ;;  %v14616_v59 = vld [vmem:[#allocation4 + $0x2d0] ss:$8 sps:$4 sm:$0xff]   ;;  %v19233_v56 = vadd.f32 %v19028_v17, %v19052_v42  ;;  %v12861_v17 = vmul.f32 -1.442695, %v19220_v13 }
 0x369   : > { %v15594_v46 = vpop.eup %15593  ;;  %v3168_v61 = vmul.f32 %v15592_v22, %v19044_v50  ;;  %15613 = vrcp.f32 %v2707_v36  ;;  %v12845_v50 = vmul.f32 -1.442695, %v19191_v30  ;;  %v12854_v36 = vmul.f32 -1.442695, %v19214_v52 }
 0x36a   : > { %v15596_v10 = vpop.eup %15595  ;;  %15615 = vrcp.f32 %v2708_v62  ;;  %4283 = vmatpush1.bf16.msra.mxu1 %v14610_v14  ;;  %v3175_v44 = vmul.f32 %v15594_v46, %v19048_v16 }
 0x36b   : > { %v15598_v20 = vpop.eup %15597  ;;  %15617 = vpow2.f32 %v12821_v25  ;;  %v3240_v63 = vpack.c.bf16 %v3168_v61, %v3160_v12  ;;  %4284 = vmatprep.subr.bf16.mxu1 %v14615_v2  ;;  %v3176_v6 = vmul.f32 %v15596_v10, %v19056_v19  ;;  %v19228_v19 = vadd.f32 %v19009_v37, %v19060_v54  ;;  %v14621_v37 = vld [vmem:[#allocation4 + $0x2e4] ss:$8 sps:$4 sm:$0xff]  }
 0x36c   : > { %v15600_v55 = vpop.eup %15599  ;;  %v3183_v15 = vmul.f32 %v15598_v20, %v19066_v39  ;;  %15619 = vpow2.f32 %v12822_v5 }
 0x36d   : > { %v15602_v48 = vpop.eup %15601  ;;  %v3184_v58 = vmul.f32 %v15600_v55, %v19073_v47  ;;  %15621 = vpow2.f32 %v12829_v3  ;;  %4239 = vmatprep.mubr.bf16.mxu1 %v3240_v63  ;;  %v12862_v62 = vmul.f32 -1.442695, %v19228_v19  ;;  %v14619_v3 = vld [vmem:[#allocation4 + $0x2e0] ss:$8 sps:$4 sm:$0xff]  }
 0x36e   : > { %v15604_v16 = vpop.eup %15603  ;;  %15623 = vpow2.f32 %v12830_v21  ;;  %4240 = vmatmul.mubr.bf16.gmra.mrb[56].mxu1 %v3239_v29  ;;  %v3247_v39 = vpack.c.bf16 %v3183_v15, %v3175_v44  ;;  %v19236_v53 = vmul.f32 %v15602_v48, %v19083_v7  ;;  %v14624_v21 = vld [vmem:[#allocation4 + $0x2f4] ss:$8 sps:$4 sm:$0xff]  }
 0x36f   : > { %v15606_v47 = vpop.eup %15605  ;;  %4285 = vmatpush1.bf16.msra.mxu1 %v14613_v28  ;;  %15625 = vpow2.f32 %v12837_v41  ;;  %v3248_v14 = vpack.c.bf16 %v3184_v58, %v3176_v6  ;;  %v19243_v2 = vmul.f32 %v15604_v16, %v19090_v43  ;;  %v12869_v43 = vmul.f32 -1.442695, %v19233_v56  ;;  %v4762_v28 = vld [vmem:[#allocation6 + $0x20] sm:$0xff]  ;;  %v22491_v15 = vld [vmem:[#allocation78_spill] sm:$0xff] }
 0x370   : > { %v15608_v23 = vpop.eup %15607  ;;  %v19239_v29 = vmul.f32 %v15606_v47, %v19095_v24  ;;  %4286 = vmatprep.subr.bf16.mxu1 %v14618_v45  ;;  %15627 = vpow2.f32 %v12838_v57  ;;  %v4770_v58 = vld [vmem:[#allocation6 + $0x60] sm:$0xff] }
 0x371   : > { %v15610_v25 = vpop.eup %15609  ;;  %v19246_v22 = vmul.f32 %v15608_v23, %v19108_v40  ;;  %15629 = vpow2.f32 %v12845_v50  ;;  %4249 = vmatprep.mubr.bf16.mxu1 %v3248_v14  ;;  %v19269_v50 = vld [vmem:[#allocation6 + $0x40] sm:$0xff] }
 0x372   : > { %v15612_v7 = vpop.eup %15611  ;;  %v3195_v24 = vpack.c.bf16 %v19239_v29, %v19236_v53  ;;  %15631 = vpow2.f32 %v12846_v33  ;;  %v19256_v12 = vmul.f32 %v15610_v25, %v19115_v35  ;;  %v19279_v25 = vld [vmem:[#allocation6 + $0xa0] sm:$0xff] }
 0x373   : > { %v15614_v5 = vpop.eup %15613  ;;  %4287 = vmatpush1.bf16.msra.mxu1 %v14616_v59  ;;  %15633 = vpow2.f32 %v12853_v8  ;;  %v3196_v40 = vpack.c.bf16 %v19246_v22, %v19243_v2  ;;  %v19262_v41 = vmul.f32 %v15612_v7, %v19123_v49  ;;  %v22490_v49 = vld [vmem:[#allocation79_spill] sm:$0xff]  ;;  %v13082_v8 = vcombine.high %v19269_v50, %v4770_v58  ;;  %v4814_v53 = vld [vmem:[#allocation6 + $0x1c0] sm:$0xff] }
 0x374   : > { %v15616_v46 = vpop.eup %15615  ;;  %v19259_v61 = vmul.f32 %v15614_v5, %v19131_v18  ;;  %4288 = vmatprep.subr.bf16.mxu1 %v14621_v37  ;;  %15635 = vpow2.f32 %v12854_v36  ;;  %v4758_v18 = vld [vmem:[#allocation6] sm:$0xff]  ;;  %v22492_v45 = vpack.c.bf16 %v22490_v49, %v22491_v15  ;;  %v22495_v15 = vld [vmem:[#allocation57_spill] sm:$0xff] }
 0x375   : > { %v15618_v10 = vpop.eup %15617  ;;  %v19265_v57 = vmul.f32 %v15616_v46, %v19138_v4  ;;  %15637 = vpow2.f32 %v12861_v17  ;;  %v14622_v4 = vld [vmem:[#allocation4 + $0x2f0] ss:$8 sps:$4 sm:$0xff]   ;;  %v13073_v6 = vcombine.low %v4758_v18, %v4762_v28  ;;  %v13074_v47 = vcombine.high %v4758_v18, %v4762_v28  ;;  %v19277_v36 = vld [vmem:[#allocation6 + $0x80] sm:$0xff] }
 0x376   : > { %v15620_v20 = vpop.eup %15619  ;;  %v2715_v63 = vadd.f32 1.0, %v15618_v10  ;;  %4250 = vmatmul.mubr.bf16.gmra.mrb[60].mxu1 %v3247_v39  ;;  %15639 = vpow2.f32 %v12862_v62  ;;  %v3203_v35 = vpack.c.bf16 %v19259_v61, %v19256_v12  ;;  %v14627_v39 = vld [vmem:[#allocation4 + $0x304] ss:$8 sps:$4 sm:$0xff]   ;;  %v14625_v62 = vld [vmem:[#allocation4 + $0x300] ss:$8 sps:$4 sm:$0xff]   ;;  %v22493_v46 = vld [vmem:[#allocation67_spill] sm:$0xff]  ;;  %v13081_v10 = vcombine.low %v19269_v50, %v4770_v58 }
 0x377   : > { %v15622_v55 = vpop.eup %15621  ;;  %v2716_v44 = vadd.f32 1.0, %v15620_v20  ;;  %4289 = vmatpush1.bf16.msra.mxu1 %v14619_v3  ;;  %4292 = vmatprep.mubr.bf16.mxu1 %v22492_v45  ;;  %15641 = vpow2.f32 %v12869_v43  ;;  %v3204_v48 = vpack.c.bf16 %v19265_v57, %v19262_v41  ;;  %v14630_v43 = vld [vmem:[#allocation4 + $0x314] ss:$8 sps:$4 sm:$0xff]   ;;  %v22494_v18 = vld [vmem:[#allocation64_spill] sm:$0xff] }
 0x378   : > { %v15624_v16 = vpop.eup %15623  ;;  %15643 = vrcp.f32 %v2715_v63  ;;  %v2723_v33 = vadd.f32 1.0, %v15622_v55  ;;  %4290 = vmatprep.subr.bf16.mxu1 %v14624_v21  ;;  %5569 = vmatprep.subr.bf16.mxu0 %v13074_v47  ;;  %v19283_v21 = vadd.f32 %v22493_v46, %v19060_v54  ;;  %v19288_v28 = vadd.f32 %v22494_v18, %v19052_v42  ;;  %v22496_v45 = vld [vmem:[#allocation56_spill] sm:$0xff]  ;;  %v22498_v50 = vld [vmem:[#allocation70_spill] sm:$0xff] }
 0x379   : > { %v15626_v59 = vpop.eup %15625  ;;  %15645 = vrcp.f32 %v2716_v44  ;;  %v2724_v14 = vadd.f32 1.0, %v15624_v16  ;;  %5570 = vmatpush1.bf16.msra.mxu0 %v13073_v6  ;;  %v13090_v55 = vcombine.high %v19277_v36, %v19279_v25  ;;  %v19297_v6 = vadd.f32 %v22498_v50, %v19060_v54  ;;  %v22499_v58 = vld [vmem:[#allocation76_spill] sm:$0xff] }
 0x37a   : > { %v15628_v23 = vpop.eup %15627  ;;  %15647 = vrcp.f32 %v2723_v33  ;;  %v2731_v37 = vadd.f32 1.0, %v15626_v59  ;;  %5571 = vmatprep.subr.bf16.mxu0 %v13082_v8  ;;  %v19301_v16 = vadd.f32 %v22499_v58, %v19052_v42  ;;  %v19303_v33 = vld [vmem:[#allocation6 + $0xc0] sm:$0xff]  ;;  %v22501_v8 = vld [vmem:[#allocation82_spill] sm:$0xff]  ;;  %v12877_v50 = vmul.f32 -1.442695, %v19288_v28 }
 0x37b   : > { %v15630_v17 = vpop.eup %15629  ;;  %15649 = vrcp.f32 %v2724_v14  ;;  %v2732_v7 = vadd.f32 1.0, %v15628_v23  ;;  %4291 = vmatpush1.bf16.msra.mxu1 %v14622_v4  ;;  %v22497_v4 = vpack.c.bf16 %v22495_v15, %v22496_v45  ;;  %v22500_v14 = vld [vmem:[#allocation87_spill] sm:$0xff]  ;;  %v12878_v58 = vmul.f32 -1.442695, %v19297_v6  ;;  %v4818_v29 = vld [vmem:[#allocation6 + $0x1e0] sm:$0xff] }
 0x37c   : > { %v15632_v5 = vpop.eup %15631  ;;  %15651 = vrcp.f32 %v2731_v37  ;;  %v2739_v3 = vadd.f32 1.0, %v15630_v17  ;;  %4373 = vmatprep.subr.bf16.mxu1 %v14627_v39  ;;  %v19305_v39 = vld [vmem:[#allocation6 + $0xe0] sm:$0xff]  ;;  %v22502_v23 = vpack.c.bf16 %v22500_v14, %v22501_v8  ;;  %v14628_v37 = vld [vmem:[#allocation4 + $0x310] ss:$8 sps:$4 sm:$0xff]   ;;  %v19339_v14 = vadd.f32 %v19110_v26, %v19052_v42 }
 0x37d   : > { %v15634_v20 = vpop.eup %15633  ;;  %15653 = vrcp.f32 %v2732_v7  ;;  %v2740_v63 = vadd.f32 1.0, %v15632_v5  ;;  %v22503_v17 = vld [vmem:[#allocation16_spill] sm:$0xff]  ;;  %v22504_v5 = vld [vmem:[#allocation77_spill] sm:$0xff]  ;;  %5572 = vmatpush1.bf16.msra.mxu0 %v13081_v10  ;;  %v13130_v2 = vcombine.high %v4814_v53, %v4818_v29  ;;  %v13129_v22 = vcombine.low %v4814_v53, %v4818_v29 }
 0x37e   : > { %v15636_v44 = vpop.eup %15635  ;;  %15655 = vrcp.f32 %v2739_v3  ;;  %v2747_v49 = vadd.f32 1.0, %v15634_v20  ;;  %4293 = vmatmul.mubr.bf16.vlgmr.msra.gmra.mrb[32].mxu1 %v22497_v4  ;;  %v19312_v7 = vadd.f32 %v22503_v17, %v19060_v54  ;;  %v19316_v3 = vadd.f32 %v22504_v5, %v19052_v42  ;;  %5573 = vmatprep.subr.bf16.mxu0 %v13090_v55  ;;  %v19331_v10 = vld [vmem:[#allocation6 + $0x100] sm:$0xff] }
 0x37f   : > { %v15638_v47 = vpop.eup %15637  ;;  %15657 = vrcp.f32 %v2740_v63  ;;  %v2748_v59 = vadd.f32 1.0, %v15636_v44  ;;  %4374 = vmatpush1.bf16.msra.mxu1 %v14625_v62  ;;  %4302 = vmatprep.mubr.bf16.mxu1 %v22502_v23  ;;  %v14633_v63 = vld [vmem:[#allocation4 + $0x324] ss:$8 sps:$4 sm:$0xff]   ;;  %v22505_v62 = vld [vmem:[#allocation91_spill] sm:$0xff]  ;;  %v13089_v44 = vcombine.low %v19277_v36, %v19279_v25  ;;  %v12870_v4 = vmul.f32 -1.442695, %v19283_v21 }
 0x380   : > { %v15640_v46 = vpop.eup %15639  ;;  %15659 = vrcp.f32 %v2747_v49  ;;  %v2755_v20 = vadd.f32 1.0, %v15638_v47  ;;  %4375 = vmatprep.subr.bf16.mxu1 %v14630_v43  ;;  %v19320_v18 = vadd.f32 %v22505_v62, %v19060_v54  ;;  %v13098_v49 = vcombine.high %v19303_v33, %v19305_v39  ;;  %v19333_v47 = vld [vmem:[#allocation6 + $0x120] sm:$0xff]  ;;  %v14636_v23 = vld [vmem:[#allocation4 + $0x334] ss:$8 sps:$4 sm:$0xff]  }
 0x381   : > { %v19324_v15 = vpop.eup %15641  ;;  %15661 = vrcp.f32 %v2748_v59  ;;  %v2756_v45 = vadd.f32 1.0, %v15640_v46  ;;  %v14631_v25 = vld [vmem:[#allocation4 + $0x320] ss:$8 sps:$4 sm:$0xff]   ;;  %v12885_v59 = vmul.f32 -1.442695, %v19301_v16  ;;  %v19345_v46 = vadd.f32 %v19117_v27, %v19060_v54  ;;  %5574 = vmatpush1.bf16.msra.mxu0 %v13089_v44 }
 0x382   : > { %v15644_v43 = vpop.eup %15643  ;;  %15663 = vrcp.f32 %v2755_v20  ;;  %v12886_v55 = vmul.f32 -1.442695, %v19312_v7  ;;  %v12893_v17 = vmul.f32 -1.442695, %v19316_v3  ;;  %v12894_v5 = vmul.f32 -1.442695, %v19320_v18  ;;  %5575 = vmatprep.subr.bf16.mxu0 %v13098_v49 }
 0x383   : > { %v15646_v36 = vpop.eup %15645  ;;  %15665 = vrcp.f32 %v2756_v45  ;;  %4376 = vmatpush1.bf16.msra.mxu1 %v14628_v37  ;;  %v13097_v37 = vcombine.low %v19303_v33, %v19305_v39  ;;  %v19350_v62 = vmul.f32 %v15644_v43, %v19166_v0  ;;  %v22506_v33 = vld [vmem:[#allocation86_spill] sm:$0xff]  ;;  %v22507_v39 = vld [vmem:[#allocation80_spill] sm:$0xff] }
 0x384   : > { %v15648_v8 = vpop.eup %15647  ;;  %4377 = vmatprep.subr.bf16.mxu1 %v14633_v63  ;;  %15667 = vpow2.f32 %v12870_v4  ;;  %v13106_v63 = vcombine.high %v19331_v10, %v19333_v47  ;;  %v19358_v27 = vmul.f32 %v15646_v36, %v19170_v38  ;;  %v22508_v0 = vpack.c.bf16 %v22506_v33, %v22507_v39  ;;  %v19370_v4 = vld [vmem:[#allocation6 + $0x140] sm:$0xff]  ;;  %v22509_v38 = vld [vmem:[#allocation55_spill] sm:$0xff]  ;;  %v22510_v36 = vld [vmem:[#allocation54_spill] sm:$0xff] }
 0x385   : > { %v15650_v20 = vpop.eup %15649  ;;  %v19353_v26 = vmul.f32 %v15648_v8, %v19174_v34  ;;  %15669 = vpow2.f32 %v12877_v50  ;;  %v19368_v34 = vadd.f32 %v19125_v32, %v19052_v42  ;;  %v19372_v49 = vld [vmem:[#allocation6 + $0x160] sm:$0xff]  ;;  %v14634_v50 = vld [vmem:[#allocation4 + $0x330] ss:$8 sps:$4 sm:$0xff]   ;;  %v12901_v8 = vmul.f32 -1.442695, %v19339_v14  ;;  %5576 = vmatpush1.bf16.msra.mxu0 %v13097_v37 }
 0x386   : > { %v15652_v45 = vpop.eup %15651  ;;  %v19361_v44 = vmul.f32 %v15650_v20, %v19178_v11  ;;  %4303 = vmatmul.mubr.bf16.gmra.mrb[36].mxu1 %v22508_v0  ;;  %15671 = vpow2.f32 %v12878_v58  ;;  %v22511_v11 = vpack.c.bf16 %v22509_v38, %v22510_v36  ;;  %v19380_v20 = vadd.f32 %v19133_v31, %v19060_v54  ;;  %v14639_v33 = vld [vmem:[#allocation4 + $0x344] ss:$8 sps:$4 sm:$0xff]   ;;  %5577 = vmatprep.subr.bf16.mxu0 %v13106_v63 }
 0x387   : > { %v15654_v43 = vpop.eup %15653  ;;  %4378 = vmatpush1.bf16.msra.mxu1 %v14631_v25  ;;  %v3211_v42 = vpack.c.bf16 %v19353_v26, %v19350_v62  ;;  %15673 = vpow2.f32 %v12885_v59  ;;  %v12902_v58 = vmul.f32 -1.442695, %v19345_v46  ;;  %v13105_v39 = vcombine.low %v19331_v10, %v19333_v47  ;;  %v4810_v38 = vld [vmem:[#allocation6 + $0x1a0] sm:$0xff] }
 0x388   : > { %4312 = vmatprep.mubr.bf16.mxu1 %v22511_v11  ;;  %v15656_v32 = vpop.eup %15655  ;;  %4379 = vmatprep.subr.bf16.mxu1 %v14636_v23  ;;  %v3212_v25 = vpack.c.bf16 %v19361_v44, %v19358_v27  ;;  %v19390_v54 = vmul.f32 %v15652_v45, %v19182_v1  ;;  %15675 = vpow2.f32 %v12886_v55  ;;  %v13114_v59 = vcombine.high %v19370_v4, %v19372_v49  ;;  %v4806_v23 = vld [vmem:[#allocation6 + $0x180] sm:$0xff] }
 0x389   : > { %v15658_v0 = vpop.eup %15657  ;;  %v19393_v31 = vmul.f32 %v15656_v32, %v19191_v30  ;;  %v19398_v37 = vmul.f32 %v15654_v43, %v19186_v51  ;;  %15677 = vpow2.f32 %v12893_v17  ;;  %v12909_v1 = vmul.f32 -1.442695, %v19368_v34  ;;  %v14637_v30 = vld [vmem:[#allocation4 + $0x340] ss:$8 sps:$4 sm:$0xff]   ;;  %v14642_v51 = vld [vmem:[#allocation4 + $0x354] ss:$8 sps:$4 sm:$0xff]   ;;  %5578 = vmatpush1.bf16.msra.mxu0 %v13105_v39 }
 0x38a   : > { %v15660_v36 = vpop.eup %15659  ;;  %v19401_v10 = vmul.f32 %v15658_v0, %v19203_v9  ;;  %15679 = vpow2.f32 %v12894_v5  ;;  %v12910_v55 = vmul.f32 -1.442695, %v19380_v20  ;;  %v13113_v17 = vcombine.low %v19370_v4, %v19372_v49  ;;  %5579 = vmatprep.subr.bf16.mxu0 %v13114_v59  ;;  %v22512_v39 = vld [vmem:[#allocation89_spill] sm:$0xff]  ;;  %v22515_v0 = vld [vmem:[#allocation90_spill] sm:$0xff]  ;;  %v4830_v41 = vld [vmem:[#allocation6 + $0x240] sm:$0xff] }
 0x38b   : > { %v15662_v47 = vpop.eup %15661  ;;  %4380 = vmatpush1.bf16.msra.mxu1 %v14634_v50  ;;  %v3219_v63 = vpack.c.bf16 %v19393_v31, %v19390_v54  ;;  %15681 = vpow2.f32 %v12901_v8  ;;  %v13122_v43 = vcombine.high %v4806_v23, %v4810_v38  ;;  %v19412_v5 = vmul.f32 %v15660_v36, %v19208_v60  ;;  %v22513_v4 = vld [vmem:[#allocation53_spill] sm:$0xff]  ;;  %v4834_v57 = vld [vmem:[#allocation6 + $0x260] sm:$0xff] }
 0x38c   : > { %v15664_v45 = vpop.eup %15663  ;;  %4381 = vmatprep.subr.bf16.mxu1 %v14639_v33  ;;  %v3220_v9 = vpack.c.bf16 %v19401_v10, %v19398_v37  ;;  %v2763_v32 = vadd.f32 1.0, %v19324_v15  ;;  %15683 = vpow2.f32 %v12902_v58  ;;  %v19419_v8 = vmul.f32 %v15662_v47, %v19214_v52  ;;  %v14640_v15 = vld [vmem:[#allocation4 + $0x350] ss:$8 sps:$4 sm:$0xff]   ;;  %v4838_v62 = vld [vmem:[#allocation6 + $0x280] sm:$0xff] }
 0x38d   : > { %v15666_v11 = vpop.eup %15665  ;;  %v19415_v50 = vmul.f32 %v15664_v45, %v19220_v13  ;;  %v22514_v49 = vpack.c.bf16 %v22512_v39, %v22513_v4  ;;  %15685 = vpow2.f32 %v12909_v1  ;;  %v22516_v13 = vld [vmem:[#allocation59_spill] sm:$0xff]  ;;  %5580 = vmatpush1.bf16.msra.mxu0 %v13113_v17  ;;  %v13121_v1 = vcombine.low %v4806_v23, %v4810_v38  ;;  %v4842_v26 = vld [vmem:[#allocation6 + $0x2a0] sm:$0xff] }
 0x38e   : > { %v19422_v33 = vmul.f32 %v15666_v11, %v19228_v19  ;;  %v15668_v60 = vpop.eup %15667  ;;  %v22517_v36 = vpack.c.bf16 %v22515_v0, %v22516_v13  ;;  %15687 = vpow2.f32 %v12910_v55  ;;  %v14645_v19 = vld [vmem:[#allocation4 + $0x364] ss:$8 sps:$4 sm:$0xff]   ;;  %5581 = vmatprep.subr.bf16.mxu0 %v13122_v43  ;;  %v14648_v0 = vld [vmem:[#allocation4 + $0x374] ss:$8 sps:$4 sm:$0xff]   ;;  %v13154_v27 = vcombine.high %v4838_v62, %v4842_v26 }
 0x38f   : > { %4313 = vmatmul.mubr.bf16.gmra.mrb[40].mxu1 %v22514_v49  ;;  %v3227_v52 = vpack.c.bf16 %v19415_v50, %v19412_v5  ;;  %v15670_v58 = vpop.eup %15669  ;;  %v2764_v59 = vadd.f32 1.0, %v15668_v60  ;;  %15689 = vrcp.f32 %v2763_v32  ;;  %v14643_v49 = vld [vmem:[#allocation4 + $0x360] ss:$8 sps:$4 sm:$0xff]   ;;  %v22518_v32 = vld [vmem:[#allocation58_spill] sm:$0xff]  ;;  %v13153_v44 = vcombine.low %v4838_v62, %v4842_v26 }
 0x390   : > { %4382 = vmatpush1.bf16.msra.mxu1 %v14637_v30  ;;  %4322 = vmatprep.mubr.bf16.mxu1 %v22517_v36  ;;  %v3228_v47 = vpack.c.bf16 %v19422_v33, %v19419_v8  ;;  %v15672_v45 = vpop.eup %15671  ;;  %v2771_v30 = vadd.f32 1.0, %v15670_v58  ;;  %v22519_v13 = vld [vmem:[#allocation61_spill] sm:$0xff]  ;;  %v4854_v37 = vld [vmem:[#allocation6 + $0x300] sm:$0xff] }
 0x391   : > { %4383 = vmatprep.subr.bf16.mxu1 %v14642_v51  ;;  %v15674_v11 = vpop.eup %15673  ;;  %15691 = vrcp.f32 %v2764_v59  ;;  %v2772_v39 = vadd.f32 1.0, %v15672_v45  ;;  %5582 = vmatpush1.bf16.msra.mxu0 %v13121_v1  ;;  %v22520_v36 = vpack.c.bf16 %v22518_v32, %v22519_v13  ;;  %v22521_v59 = vld [vmem:[#allocation63_spill] sm:$0xff]  ;;  %v22522_v45 = vld [vmem:[#allocation62_spill] sm:$0xff]  ;;  %v22524_v13 = vld [vmem:[#allocation60_spill] sm:$0xff] }
 0x392   : > { %v15676_v55 = vpop.eup %15675  ;;  %15693 = vrcp.f32 %v2771_v30  ;;  %v2779_v4 = vadd.f32 1.0, %v15674_v11  ;;  %v22523_v30 = vpack.c.bf16 %v22521_v59, %v22522_v45  ;;  %5583 = vmatprep.subr.bf16.mxu0 %v13130_v2  ;;  %v4858_v10 = vld [vmem:[#allocation6 + $0x320] sm:$0xff] }
 0x393   : > { %v15678_v60 = vpop.eup %15677  ;;  %15695 = vrcp.f32 %v2772_v39  ;;  %v2780_v51 = vadd.f32 1.0, %v15676_v55  ;;  %v14651_v39 = vld [vmem:[#allocation4 + $0x384] ss:$8 sps:$4 sm:$0xff]  }
 0x394   : > { %4384 = vmatpush1.bf16.msra.mxu1 %v14640_v15  ;;  %v15680_v17 = vpop.eup %15679  ;;  %15697 = vrcp.f32 %v2779_v4  ;;  %v2787_v23 = vadd.f32 1.0, %v15678_v60  ;;  %v4862_v5 = vld [vmem:[#allocation6 + $0x340] sm:$0xff] }
 0x395   : > { %4385 = vmatprep.subr.bf16.mxu1 %v14645_v19  ;;  %v15682_v38 = vpop.eup %15681  ;;  %15699 = vrcp.f32 %v2780_v51  ;;  %v2788_v43 = vadd.f32 1.0, %v15680_v17  ;;  %v14646_v19 = vld [vmem:[#allocation4 + $0x370] ss:$8 sps:$4 sm:$0xff]   ;;  %v14649_v17 = vld [vmem:[#allocation4 + $0x380] ss:$8 sps:$4 sm:$0xff]   ;;  %5584 = vmatpush1.bf16.msra.mxu0 %v13129_v22 }
 0x396   : > { %v15684_v58 = vpop.eup %15683  ;;  %15701 = vrcp.f32 %v2787_v23  ;;  %v2795_v15 = vadd.f32 1.0, %v15682_v38  ;;  %v14654_v23 = vld [vmem:[#allocation4 + $0x394] ss:$8 sps:$4 sm:$0xff]   ;;  %v4866_v50 = vld [vmem:[#allocation6 + $0x360] sm:$0xff] }
 0x397   : > { %4323 = vmatmul.mubr.bf16.gmra.mrb[44].mxu1 %v22520_v36  ;;  %v15686_v1 = vpop.eup %15685  ;;  %15703 = vrcp.f32 %v2788_v43  ;;  %v2796_v11 = vadd.f32 1.0, %v15684_v58  ;;  %v22525_v36 = vld [vmem:[#allocation65_spill] sm:$0xff]  ;;  %v13178_v8 = vcombine.high %v4862_v5, %v4866_v50  ;;  %v13177_v33 = vcombine.low %v4862_v5, %v4866_v50 }
 0x398   : > { %4386 = vmatpush1.bf16.msra.mxu1 %v14643_v49  ;;  %4332 = vmatprep.mubr.bf16.mxu1 %v22523_v30  ;;  %v15688_v55 = vpop.eup %15687  ;;  %15705 = vrcp.f32 %v2795_v15  ;;  %v2803_v4 = vadd.f32 1.0, %v15686_v1  ;;  %v22526_v58 = vpack.c.bf16 %v22524_v13, %v22525_v36  ;;  %v22527_v30 = vld [vmem:[#allocation75_spill] sm:$0xff] }
 0x399   : > { %4387 = vmatprep.subr.bf16.mxu1 %v14648_v0  ;;  %15707 = vrcp.f32 %v2796_v11  ;;  %v2804_v60 = vadd.f32 1.0, %v15688_v55  ;;  %v15690_v51 = vpop.eup %15689 }
 0x39a   : > { %15709 = vrcp.f32 %v2803_v4  ;;  %v19441_v43 = vmul.f32 %v15690_v51, %v19233_v56  ;;  %v14652_v56 = vld [vmem:[#allocation4 + $0x390] ss:$8 sps:$4 sm:$0xff]  }
 0x39b   : > { %v15692_v49 = vpop.eup %15691  ;;  %15711 = vrcp.f32 %v2804_v60 }
 0x39c   : > { %4388 = vmatpush1.bf16.msra.mxu1 %v14646_v19  ;;  %v15694_v38 = vpop.eup %15693  ;;  %v19450_v59 = vmul.f32 %v15692_v49, %v19283_v21  ;;  %v22528_v19 = vld [vmem:[#allocation74_spill] sm:$0xff] }
 0x39d   : > { %4389 = vmatprep.subr.bf16.mxu1 %v14651_v39  ;;  %v15696_v32 = vpop.eup %15695  ;;  %v19444_v0 = vmul.f32 %v15694_v38, %v19288_v28  ;;  %v22529_v1 = vpack.c.bf16 %v22527_v30, %v22528_v19  ;;  %v14657_v28 = vld [vmem:[#allocation4 + $0x3a4] ss:$8 sps:$4 sm:$0xff]  }
 0x39e   : > { %v15698_v15 = vpop.eup %15697  ;;  %v19453_v45 = vmul.f32 %v15696_v32, %v19297_v6  ;;  %v14660_v32 = vld [vmem:[#allocation4 + $0x3b4] ss:$8 sps:$4 sm:$0xff]   ;;  %v22534_v30 = vld [vmem:[#allocation92_spill] sm:$0xff] }
 0x39f   : > { %4333 = vmatmul.mubr.bf16.gmra.mrb[48].mxu1 %v22526_v58  ;;  %v15700_v11 = vpop.eup %15699  ;;  %v3235_v39 = vpack.c.bf16 %v19444_v0, %v19441_v43  ;;  %v3163_v6 = vmul.f32 %v15698_v15, %v19301_v16  ;;  %v22530_v15 = vld [vmem:[#allocation73_spill] sm:$0xff] }
 0x3a0   : > { %4390 = vmatpush1.bf16.msra.mxu1 %v14649_v17  ;;  %4342 = vmatprep.mubr.bf16.mxu1 %v22529_v1  ;;  %v15702_v55 = vpop.eup %15701  ;;  %v3236_v21 = vpack.c.bf16 %v19453_v45, %v19450_v59  ;;  %v3164_v17 = vmul.f32 %v15700_v11, %v19312_v7  ;;  %v22533_v45 = vld [vmem:[#allocation93_spill] sm:$0xff]  ;;  %v14658_v1 = vld [vmem:[#allocation4 + $0x3b0] ss:$8 sps:$4 sm:$0xff]  }
 0x3a1   : > { %4391 = vmatprep.subr.bf16.mxu1 %v14654_v23  ;;  %v15704_v4 = vpop.eup %15703  ;;  %v3171_v60 = vmul.f32 %v15702_v55, %v19316_v3  ;;  %v14655_v23 = vld [vmem:[#allocation4 + $0x3a0] ss:$8 sps:$4 sm:$0xff]   ;;  %v22535_v19 = vpack.c.bf16 %v22533_v45, %v22534_v30 }
 0x3a2   : > { %v15706_v51 = vpop.eup %15705  ;;  %v3172_v49 = vmul.f32 %v15704_v4, %v19320_v18  ;;  %v22531_v3 = vld [vmem:[#allocation72_spill] sm:$0xff]  ;;  %v22537_v4 = vld [vmem:[#allocation85_spill] sm:$0xff] }
 0x3a3   : > { %v15708_v38 = vpop.eup %15707  ;;  %v3243_v43 = vpack.c.bf16 %v3171_v60, %v3163_v6  ;;  %v3179_v58 = vmul.f32 %v15706_v51, %v19339_v14  ;;  %v22532_v59 = vpack.c.bf16 %v22530_v15, %v22531_v3  ;;  %v22536_v55 = vld [vmem:[#allocation88_spill] sm:$0xff]  ;;  %v14664_v51 = vld [vmem:[#allocation4 + $0x3d0] ss:$8 sps:$4 sm:$0xff]   ;;  %v19515_v15 = vld [vmem:[#allocation6 + $0x8] sm:$0xff] }
 0x3a4   : > { %4392 = vmatpush1.bf16.msra.mxu1 %v14652_v56  ;;  %v15710_v0 = vpop.eup %15709  ;;  %v3244_v13 = vpack.c.bf16 %v3172_v49, %v3164_v17  ;;  %v3180_v7 = vmul.f32 %v15708_v38, %v19345_v46  ;;  %v14663_v56 = vld [vmem:[#allocation4 + $0x3c4] ss:$8 sps:$4 sm:$0xff]   ;;  %v22538_v6 = vpack.c.bf16 %v22536_v55, %v22537_v4  ;;  %v14667_v49 = vld [vmem:[#allocation4 + $0x3e0] ss:$8 sps:$4 sm:$0xff]   ;;  %v22542_v38 = vld [vmem:[#allocation95_spill] sm:$0xff] }
 0x3a5   : > { %4393 = vmatprep.subr.bf16.mxu1 %v14657_v28  ;;  %v15712_v36 = vpop.eup %15711  ;;  %v3187_v16 = vmul.f32 %v15710_v0, %v19368_v34  ;;  %v14661_v34 = vld [vmem:[#allocation4 + $0x3c0] ss:$8 sps:$4 sm:$0xff]   ;;  %v14666_v28 = vld [vmem:[#allocation4 + $0x3d4] ss:$8 sps:$4 sm:$0xff]   ;;  %v14669_v17 = vld [vmem:[#allocation4 + $0x3e4] ss:$8 sps:$4 sm:$0xff]  }
 0x3a6   : > { %v3188_v18 = vmul.f32 %v15712_v36, %v19380_v20  ;;  %v22539_v46 = vld [vmem:[#allocation97_spill] sm:$0xff]  ;;  %v22540_v20 = vld [vmem:[#allocation96_spill] sm:$0xff]  ;;  %v14670_v36 = vld [vmem:[#allocation4 + $0x3f0] ss:$8 sps:$4 sm:$0xff]  }
 0x3a7   : > { %4343 = vmatmul.mubr.bf16.gmra.mrb[52].mxu1 %v22532_v59  ;;  %v3251_v11 = vpack.c.bf16 %v3187_v16, %v3179_v58  ;;  %v22541_v60 = vpack.c.bf16 %v22539_v46, %v22540_v20  ;;  %v19517_v3 = vld [vmem:[#allocation6 + $0x28] sm:$0xff] }
 0x3a8   : > { %4394 = vmatpush1.bf16.msra.mxu1 %v14655_v23  ;;  %4352 = vmatprep.mubr.bf16.mxu1 %v22535_v19  ;;  %v3252_v14 = vpack.c.bf16 %v3188_v18, %v3180_v7  ;;  %v14672_v23 = vld [vmem:[#allocation4 + $0x3f4] ss:$8 sps:$4 sm:$0xff]   ;;  %v13076_v59 = vcombine.high %v19515_v15, %v19517_v3  ;;  %v13075_v7 = vcombine.low %v19515_v15, %v19517_v3  ;;  %v12911_v18 = vld [vmem:[%s22180_s9 + $0x1] ss:$4 sm:$0x3]  ;;  %v22545_v45 = vld [vmem:[#allocation17_spill] sm:$0xff] }
 0x3a9   : > { %4395 = vmatprep.subr.bf16.mxu1 %v14660_v32  ;;  %v22543_v32 = vld [vmem:[#allocation94_spill] sm:$0xff]  ;;  %v19527_v30 = vrot.slane %v12911_v18, %v22545_v45 }
 0x3aa   : > { %v22544_v0 = vpack.c.bf16 %v22542_v38, %v22543_v32  ;;  %v22546_v19 = vld [vmem:[#allocation18_spill] sm:$0xff] }
 0x3ac   : > { %4396 = vmatpush1.bf16.msra.mxu1 %v14658_v1  ;;  %v19530_v1 = vrot.slane %v12911_v18, %v22546_v19 }
 0x3ad   : > { %4397 = vmatprep.subr.bf16.mxu1 %v14663_v56 }
 0x3af   : > { %4353 = vmatmul.mubr.bf16.gmra.mrb[56].mxu1 %v22538_v6 }
 0x3b0   : > { %4398 = vmatpush1.bf16.msra.mxu1 %v14661_v34  ;;  %4362 = vmatprep.mubr.bf16.mxu1 %v22541_v60 }
 0x3b1   : > { %4399 = vmatprep.subr.bf16.mxu1 %v14666_v28 }
 0x3b4   : > { %4400 = vmatpush1.bf16.msra.mxu1 %v14664_v51 }
 0x3b5   : > { %4401 = vmatprep.subr.bf16.mxu1 %v14669_v17 }
 0x3b7   : > { %4363 = vmatmul.mubr.bf16.gmra.mrb[60].mxu1 %v22544_v0 }
 0x3b8   : > { %4402 = vmatpush1.bf16.msra.mxu1 %v14667_v49  ;;  %4405 = vmatprep.mubr.bf16.mxu1 %v3196_v40  ;;  %v4826_v40 = vld [vmem:[#allocation6 + $0x220] sm:$0xff] }
 0x3b9   : > { %4403 = vmatprep.subr.bf16.mxu1 %v14672_v23 }
 0x3bc   : > { %4404 = vmatpush1.bf16.msra.mxu1 %v14670_v36 }
 0x3bf   : > { %4406 = vmatmul.mubr.bf16.vlgmr.msra.gmra.mrb[32].mxu1 %v3195_v24  ;;  %v4822_v24 = vld [vmem:[#allocation6 + $0x200] sm:$0xff] }
 0x3c0   : > { %4415 = vmatprep.mubr.bf16.mxu1 %v3204_v48  ;;  %v13138_v12 = vcombine.high %v4822_v24, %v4826_v40  ;;  %v13137_v61 = vcombine.low %v4822_v24, %v4826_v40  ;;  %v13145_v48 = vcombine.low %v4830_v41, %v4834_v57 }
 0x3c2   : > { %5585 = vmatprep.subr.bf16.mxu0 %v13138_v12 }
 0x3c3   : > { %5586 = vmatpush1.bf16.msra.mxu0 %v13137_v61 }
 0x3c7   : > { %4416 = vmatmul.mubr.bf16.gmra.mrb[36].mxu1 %v3203_v35  ;;  %v13146_v35 = vcombine.high %v4830_v41, %v4834_v57 }
 0x3c8   : > { %4425 = vmatprep.mubr.bf16.mxu1 %v3212_v25  ;;  %v4850_v25 = vld [vmem:[#allocation6 + $0x2e0] sm:$0xff] }
 0x3c9   : > { %5587 = vmatprep.subr.bf16.mxu0 %v13146_v35 }
 0x3ca   : > { %5588 = vmatpush1.bf16.msra.mxu0 %v13145_v48 }
 0x3cb   : > { %5589 = vmatprep.subr.bf16.mxu0 %v13154_v27 }
 0x3ce   : > { %5590 = vmatpush1.bf16.msra.mxu0 %v13153_v44 }
 0x3cf   : > { %4426 = vmatmul.mubr.bf16.gmra.mrb[40].mxu1 %v3211_v42  ;;  %v4846_v42 = vld [vmem:[#allocation6 + $0x2c0] sm:$0xff] }
 0x3d0   : > { %4435 = vmatprep.mubr.bf16.mxu1 %v3220_v9  ;;  %v13162_v54 = vcombine.high %v4846_v42, %v4850_v25  ;;  %v13161_v31 = vcombine.low %v4846_v42, %v4850_v25  ;;  %v13169_v9 = vcombine.low %v4854_v37, %v4858_v10 }
 0x3d2   : > { %5591 = vmatprep.subr.bf16.mxu0 %v13162_v54 }
 0x3d3   : > { %5592 = vmatpush1.bf16.msra.mxu0 %v13161_v31 }
 0x3d7   : > { %4436 = vmatmul.mubr.bf16.gmra.mrb[44].mxu1 %v3219_v63  ;;  %v13170_v63 = vcombine.high %v4854_v37, %v4858_v10 }
 0x3d8   : > { %4445 = vmatprep.mubr.bf16.mxu1 %v3228_v47  ;;  %v4874_v47 = vld [vmem:[#allocation6 + $0x3a0] sm:$0xff] }
 0x3d9   : > { %5593 = vmatprep.subr.bf16.mxu0 %v13170_v63 }
 0x3da   : > { %5594 = vmatpush1.bf16.msra.mxu0 %v13169_v9 }
 0x3db   : > { %5595 = vmatprep.subr.bf16.mxu0 %v13178_v8 }
 0x3de   : > { %5596 = vmatpush1.bf16.msra.mxu0 %v13177_v33 }
 0x3df   : > { %4446 = vmatmul.mubr.bf16.gmra.mrb[48].mxu1 %v3227_v52  ;;  %v4870_v52 = vld [vmem:[#allocation6 + $0x380] sm:$0xff] }
 0x3e0   : > { %4455 = vmatprep.mubr.bf16.mxu1 %v3236_v21  ;;  %v13185_v21 = vcombine.low %v4870_v52, %v4874_v47 }
 0x3e7   : > { %4456 = vmatmul.mubr.bf16.gmra.mrb[52].mxu1 %v3235_v39  ;;  %v13186_v39 = vcombine.high %v4870_v52, %v4874_v47 }
 0x3e8   : > { %4465 = vmatprep.mubr.bf16.mxu1 %v3244_v13  ;;  %v4882_v13 = vld [vmem:[#allocation6 + $0x3e0] sm:$0xff] }
 0x3e9   : > { %5597 = vmatprep.subr.bf16.mxu0 %v13186_v39 }
 0x3ea   : > { %5598 = vmatpush1.bf16.msra.mxu0 %v13185_v21 }
 0x3ef   : > { %4466 = vmatmul.mubr.bf16.gmra.mrb[56].mxu1 %v3243_v43  ;;  %v4878_v43 = vld [vmem:[#allocation6 + $0x3c0] sm:$0xff] }
 0x3f0   : > { %4475 = vmatprep.mubr.bf16.mxu1 %v3252_v14  ;;  %v13194_v58 = vcombine.high %v4878_v43, %v4882_v13  ;;  %v13193_v16 = vcombine.low %v4878_v43, %v4882_v13 }
 0x3f2   : > { %5599 = vmatprep.subr.bf16.mxu0 %v13194_v58 }
 0x3f3   : > { %5600 = vmatpush1.bf16.msra.mxu0 %v13193_v16 }
 0x3f4   : > { %5682 = vmatprep.subr.bf16.mxu0 %v13076_v59 }
 0x3f7   : > { %4476 = vmatmul.mubr.bf16.gmra.mrb[60].mxu1 %v3251_v11 }
 0x492   : > { %v4407_v56 = vpop.f32.mrb[32].mxu1 }
 0x493   : > { %v19533_v11 = vadd.f32 %v4407_v56, %v19527_v30  ;;  %v4409_v14 = vpop.f32.mrb[33].mxu1 }
 0x494   : > { %v19536_v34 = vadd.f32 %v4409_v14, %v19530_v1  ;;  %v4411_v28 = vpop.f32.mrb[34].mxu1 }
 0x495   : > { %v13040_v55 = vmul.f32 -1.442695, %v19533_v11  ;;  %v19540_v4 = vadd.f32 %v4411_v28, %v19527_v30  ;;  %v4413_v6 = vpop.f32.mrb[35].mxu1 }
 0x496   : > { %v13041_v46 = vmul.f32 -1.442695, %v19536_v34  ;;  %v19544_v20 = vadd.f32 %v4413_v6, %v19530_v1 }
 0x497   : > { %15713 = vpow2.f32 %v13040_v55  ;;  %v13042_v60 = vmul.f32 -1.442695, %v19540_v4 }
 0x498   : > { %15715 = vpow2.f32 %v13041_v46  ;;  %v13043_v51 = vmul.f32 -1.442695, %v19544_v20 }
 0x499   : > { %15717 = vpow2.f32 %v13042_v60  ;;  %v19594_v60 = vld [vmem:[#allocation6 + $0x48] sm:$0xff] }
 0x49a   : > { %15719 = vpow2.f32 %v13043_v51  ;;  %v4417_v17 = vpop.f32.mrb[36].mxu1  ;;  %v19596_v51 = vld [vmem:[#allocation6 + $0x68] sm:$0xff] }
 0x49b   : > { %v19549_v49 = vadd.f32 %v4417_v17, %v19527_v30  ;;  %v4419_v23 = vpop.f32.mrb[37].mxu1 }
 0x49c   : > { %v19552_v38 = vadd.f32 %v4419_v23, %v19530_v1  ;;  %v4421_v32 = vpop.f32.mrb[38].mxu1 }
 0x49d   : > { %v13044_v0 = vmul.f32 -1.442695, %v19549_v49  ;;  %v19556_v36 = vadd.f32 %v4421_v32, %v19527_v30  ;;  %v4423_v53 = vpop.f32.mrb[39].mxu1  ;;  %v19599_v32 = vld [vmem:[#allocation6 + $0x88] sm:$0xff] }
 0x49e   : > { %v13045_v29 = vmul.f32 -1.442695, %v19552_v38  ;;  %v19560_v2 = vadd.f32 %v4423_v53, %v19530_v1 }
 0x49f   : > { %15721 = vpow2.f32 %v13044_v0  ;;  %v13046_v22 = vmul.f32 -1.442695, %v19556_v36  ;;  %v19601_v0 = vld [vmem:[#allocation6 + $0xa8] sm:$0xff] }
 0x4a0   : > { %15723 = vpow2.f32 %v13045_v29  ;;  %v13047_v24 = vmul.f32 -1.442695, %v19560_v2 }
 0x4a1   : > { %v15714_v40 = vpop.eup %15713  ;;  %15725 = vpow2.f32 %v13046_v22 }
 0x4a2   : > { %v15716_v12 = vpop.eup %15715  ;;  %v4582_v61 = vadd.f32 1.0, %v15714_v40  ;;  %15727 = vpow2.f32 %v13047_v24  ;;  %v4427_v41 = vpop.f32.mrb[40].mxu1 }
 0x4a3   : > { %v15718_v57 = vpop.eup %15717  ;;  %v4583_v35 = vadd.f32 1.0, %v15716_v12  ;;  %v19565_v48 = vadd.f32 %v4427_v41, %v19527_v30  ;;  %v4429_v62 = vpop.f32.mrb[41].mxu1 }
 0x4a4   : > { %v15720_v26 = vpop.eup %15719  ;;  %15729 = vrcp.f32 %v4582_v61  ;;  %v4584_v27 = vadd.f32 1.0, %v15718_v57  ;;  %v19568_v44 = vadd.f32 %v4429_v62, %v19530_v1  ;;  %v4431_v42 = vpop.f32.mrb[42].mxu1  ;;  %v13084_v61 = vcombine.high %v19594_v60, %v19596_v51 }
 0x4a5   : > { %15731 = vrcp.f32 %v4583_v35  ;;  %v4585_v25 = vadd.f32 1.0, %v15720_v26  ;;  %v13048_v54 = vmul.f32 -1.442695, %v19565_v48  ;;  %v19572_v31 = vadd.f32 %v4431_v42, %v19527_v30  ;;  %v4433_v37 = vpop.f32.mrb[43].mxu1 }
 0x4a6   : > { %15733 = vrcp.f32 %v4584_v27  ;;  %v13049_v10 = vmul.f32 -1.442695, %v19568_v44  ;;  %v19576_v63 = vadd.f32 %v4433_v37, %v19530_v1  ;;  %v13092_v62 = vcombine.high %v19599_v32, %v19601_v0  ;;  %v22547_v27 = vld [vmem:[#allocation19_spill] sm:$0xff] }
 0x4a7   : > { %15735 = vrcp.f32 %v4585_v25  ;;  %v13050_v9 = vmul.f32 -1.442695, %v19572_v31 }
 0x4a8   : > { %15737 = vpow2.f32 %v13048_v54  ;;  %v13051_v5 = vmul.f32 -1.442695, %v19576_v63 }
 0x4a9   : > { %v15722_v50 = vpop.eup %15721  ;;  %15739 = vpow2.f32 %v13049_v10  ;;  %v22549_v10 = vld [vmem:[#allocation22_spill] sm:$0xff] }
 0x4aa   : > { %v15724_v8 = vpop.eup %15723  ;;  %v4586_v33 = vadd.f32 1.0, %v15722_v50  ;;  %15741 = vpow2.f32 %v13050_v9  ;;  %v4437_v52 = vpop.f32.mrb[44].mxu1 }
 0x4ab   : > { %v15726_v47 = vpop.eup %15725  ;;  %v4587_v39 = vadd.f32 1.0, %v15724_v8  ;;  %15743 = vpow2.f32 %v13051_v5  ;;  %v19581_v21 = vadd.f32 %v4437_v52, %v19527_v30  ;;  %v4439_v43 = vpop.f32.mrb[45].mxu1  ;;  %v22550_v52 = vld [vmem:[#allocation20_spill] sm:$0xff] }
 0x4ac   : > { %v15728_v13 = vpop.eup %15727  ;;  %15745 = vrcp.f32 %v4586_v33  ;;  %v4588_v58 = vadd.f32 1.0, %v15726_v47  ;;  %v19584_v16 = vadd.f32 %v4439_v43, %v19530_v1  ;;  %v4441_v59 = vpop.f32.mrb[46].mxu1 }
 0x4ad   : > { %15747 = vrcp.f32 %v4587_v39  ;;  %v4589_v18 = vadd.f32 1.0, %v15728_v13  ;;  %v13052_v56 = vmul.f32 -1.442695, %v19581_v21  ;;  %v19588_v14 = vadd.f32 %v4441_v59, %v19527_v30  ;;  %v4443_v28 = vpop.f32.mrb[47].mxu1  ;;  %v19635_v59 = vld [vmem:[#allocation6 + $0xe8] sm:$0xff] }
 0x4ae   : > { %v15730_v55 = vpop.eup %15729  ;;  %15749 = vrcp.f32 %v4588_v58  ;;  %v13053_v6 = vmul.f32 -1.442695, %v19584_v16  ;;  %v19592_v46 = vadd.f32 %v4443_v28, %v19530_v1  ;;  %v19633_v58 = vld [vmem:[#allocation6 + $0xc8] sm:$0xff] }
 0x4af   : > { %v15732_v17 = vpop.eup %15731  ;;  %15751 = vrcp.f32 %v4589_v18  ;;  %v13054_v23 = vmul.f32 -1.442695, %v19588_v14  ;;  %v4678_v40 = vmul.f32 %v15730_v55, %v19533_v11 }
 0x4b0   : > { %v15734_v53 = vpop.eup %15733  ;;  %v4679_v29 = vmul.f32 %v15732_v17, %v19536_v34  ;;  %15753 = vpow2.f32 %v13052_v56  ;;  %v13055_v22 = vmul.f32 -1.442695, %v19592_v46  ;;  %v13083_v34 = vcombine.low %v19594_v60, %v19596_v51  ;;  %v19713_v60 = vld [vmem:[#allocation6 + $0x168] sm:$0xff] }
 0x4b1   : > { %v15736_v24 = vpop.eup %15735  ;;  %v4680_v12 = vmul.f32 %v15734_v53, %v19540_v4  ;;  %15755 = vpow2.f32 %v13053_v6  ;;  %v19630_v47 = vadd.f32 %v4678_v40, %v22550_v52  ;;  %v13100_v40 = vcombine.high %v19633_v58, %v19635_v59 }
 0x4b2   : > { %v15738_v41 = vpop.eup %15737  ;;  %v4681_v57 = vmul.f32 %v15736_v24, %v19544_v20  ;;  %15757 = vpow2.f32 %v13054_v23  ;;  %v4447_v35 = vpop.f32.mrb[48].mxu1  ;;  %v22548_v20 = vld [vmem:[#allocation21_spill] sm:$0xff]  ;;  %v13091_v24 = vcombine.low %v19599_v32, %v19601_v0  ;;  %v22556_v0 = vld [vmem:[#allocation28_spill] sm:$0xff] }
 0x4b3   : > { %v15740_v26 = vpop.eup %15739  ;;  %v19615_v11 = vadd.f32 %v4680_v12, %v22547_v27  ;;  %v4590_v4 = vadd.f32 1.0, %v15738_v41  ;;  %15759 = vpow2.f32 %v13055_v22  ;;  %v19618_v42 = vadd.f32 %v4447_v35, %v19527_v30  ;;  %v4449_v25 = vpop.f32.mrb[49].mxu1 }
 0x4b4   : > { %v15742_v54 = vpop.eup %15741  ;;  %v19621_v37 = vadd.f32 %v4679_v29, %v22548_v20  ;;  %v19624_v9 = vadd.f32 %v4681_v57, %v22549_v10  ;;  %v4591_v5 = vadd.f32 1.0, %v15740_v26  ;;  %v19627_v50 = vadd.f32 %v4449_v25, %v19530_v1  ;;  %v4451_v8 = vpop.f32.mrb[50].mxu1  ;;  %v22551_v26 = vld [vmem:[#allocation25_spill] sm:$0xff] }
 0x4b5   : > { %v15744_v33 = vpop.eup %15743  ;;  %15761 = vrcp.f32 %v4590_v4  ;;  %v4592_v39 = vadd.f32 1.0, %v15742_v54  ;;  %v13056_v43 = vmul.f32 -1.442695, %v19618_v42  ;;  %v4453_v13 = vpop.f32.mrb[51].mxu1  ;;  %v19644_v17 = vpack.c.bf16 %v19615_v11, %v19630_v47  ;;  %v22552_v54 = vld [vmem:[#allocation24_spill] sm:$0xff] }
 0x4b6   : > { %v15746_v18 = vpop.eup %15745  ;;  %v19639_v56 = vpack.c.bf16 %v19624_v9, %v19621_v37  ;;  %15763 = vrcp.f32 %v4591_v5  ;;  %v4593_v28 = vadd.f32 1.0, %v15744_v33  ;;  %v13057_v55 = vmul.f32 -1.442695, %v19627_v50  ;;  %v22553_v33 = vld [vmem:[#allocation26_spill] sm:$0xff] }
 0x4b7   : > { %v15748_v6 = vpop.eup %15747  ;;  %15765 = vrcp.f32 %v4592_v39  ;;  %v19647_v23 = vadd.f32 %v4451_v8, %v19527_v30  ;;  %v19650_v53 = vadd.f32 %v4453_v13, %v19530_v1  ;;  %v4682_v41 = vmul.f32 %v15746_v18, %v19549_v49 }
 0x4b8   : > { %v15750_v29 = vpop.eup %15749  ;;  %v4683_v22 = vmul.f32 %v15748_v6, %v19552_v38  ;;  %15767 = vrcp.f32 %v4593_v28  ;;  %5601 = vmatprep.mubr.bf16.mxu0 %v19639_v56  ;;  %v19688_v6 = vld [vmem:[#allocation6 + $0x128] sm:$0xff] }
 0x4b9   : > { %v15752_v12 = vpop.eup %15751  ;;  %v4684_v57 = vmul.f32 %v15750_v29, %v19556_v36  ;;  %15769 = vpow2.f32 %v13056_v43  ;;  %v13058_v35 = vmul.f32 -1.442695, %v19647_v23  ;;  %5602 = vmatmul.mubr.bf16.vlgmr.msra.gmra.mrb[128].mxu0 %v19644_v17  ;;  %v13059_v25 = vmul.f32 -1.442695, %v19650_v53  ;;  %v22554_v43 = vld [vmem:[#allocation23_spill] sm:$0xff] }
 0x4ba   : > { %v15754_v38 = vpop.eup %15753  ;;  %v19663_v27 = vadd.f32 %v4683_v22, %v22551_v26  ;;  %v4685_v4 = vmul.f32 %v15752_v12, %v19560_v2  ;;  %15771 = vpow2.f32 %v13057_v55  ;;  %5683 = vmatpush1.bf16.msra.mxu0 %v13075_v7  ;;  %v4457_v49 = vpop.f32.mrb[52].mxu1  ;;  %v19683_v13 = vadd.f32 %v4682_v41, %v22554_v43  ;;  %v19711_v26 = vld [vmem:[#allocation6 + $0x148] sm:$0xff] }
 0x4bb   : > { %v15756_v36 = vpop.eup %15755  ;;  %v19671_v20 = vadd.f32 %v4684_v57, %v22552_v54  ;;  %v4594_v10 = vadd.f32 1.0, %v15754_v38  ;;  %15773 = vpow2.f32 %v13058_v35  ;;  %v19674_v5 = vadd.f32 %v4457_v49, %v19527_v30  ;;  %v4459_v8 = vpop.f32.mrb[53].mxu1  ;;  %5684 = vmatprep.subr.bf16.mxu0 %v13084_v61  ;;  %v19686_v61 = vld [vmem:[#allocation6 + $0x108] sm:$0xff] }
 0x4bc   : > { %v15758_v2 = vpop.eup %15757  ;;  %v19677_v52 = vadd.f32 %v4685_v4, %v22553_v33  ;;  %v4595_v39 = vadd.f32 1.0, %v15756_v36  ;;  %15775 = vpow2.f32 %v13059_v25  ;;  %v19680_v15 = vadd.f32 %v4459_v8, %v19530_v1  ;;  %v4461_v3 = vpop.f32.mrb[54].mxu1 }
 0x4bd   : > { %v15760_v7 = vpop.eup %15759  ;;  %15777 = vrcp.f32 %v4594_v10  ;;  %v4596_v18 = vadd.f32 1.0, %v15758_v2  ;;  %v13060_v28 = vmul.f32 -1.442695, %v19674_v5  ;;  %v4463_v55 = vpop.f32.mrb[55].mxu1  ;;  %v19700_v57 = vpack.c.bf16 %v19671_v20, %v19683_v13 }
 0x4be   : > { %v19692_v29 = vpack.c.bf16 %v19677_v52, %v19663_v27  ;;  %15779 = vrcp.f32 %v4595_v39  ;;  %v4597_v22 = vadd.f32 1.0, %v15760_v7  ;;  %v13061_v12 = vmul.f32 -1.442695, %v19680_v15  ;;  %5685 = vmatpush1.bf16.msra.mxu0 %v13083_v34  ;;  %v22555_v39 = vld [vmem:[#allocation27_spill] sm:$0xff] }
 0x4bf   : > { %v15762_v41 = vpop.eup %15761  ;;  %15781 = vrcp.f32 %v4596_v18  ;;  %v19703_v35 = vadd.f32 %v4461_v3, %v19527_v30  ;;  %v19706_v38 = vadd.f32 %v4463_v55, %v19530_v1  ;;  %5686 = vmatprep.subr.bf16.mxu0 %v13092_v62  ;;  %v13099_v4 = vcombine.low %v19633_v58, %v19635_v59 }
 0x4c0   : > { %v15764_v51 = vpop.eup %15763  ;;  %v4686_v34 = vmul.f32 %v15762_v41, %v19565_v48  ;;  %15783 = vrcp.f32 %v4597_v22  ;;  %5611 = vmatprep.mubr.bf16.mxu0 %v19692_v29  ;;  %v13108_v25 = vcombine.high %v19686_v61, %v19688_v6  ;;  %v13107_v2 = vcombine.low %v19686_v61, %v19688_v6  ;;  %v22557_v61 = vld [vmem:[#allocation29_spill] sm:$0xff]  ;;  %v22558_v22 = vld [vmem:[#allocation30_spill] sm:$0xff] }
 0x4c1   : > { %v15766_v49 = vpop.eup %15765  ;;  %v4687_v36 = vmul.f32 %v15764_v51, %v19568_v44  ;;  %15785 = vpow2.f32 %v13060_v28  ;;  %v13062_v62 = vmul.f32 -1.442695, %v19703_v35  ;;  %v13063_v54 = vmul.f32 -1.442695, %v19706_v38  ;;  %5612 = vmatmul.mubr.bf16.gmra.mrb[132].mxu0 %v19700_v57 }
 0x4c2   : > { %v15768_v48 = vpop.eup %15767  ;;  %v4688_v10 = vmul.f32 %v15766_v49, %v19572_v31  ;;  %15787 = vpow2.f32 %v13061_v12  ;;  %5687 = vmatpush1.bf16.msra.mxu0 %v13091_v24  ;;  %v4467_v8 = vpop.f32.mrb[56].mxu1  ;;  %v13116_v44 = vcombine.high %v19711_v26, %v19713_v60  ;;  %v19734_v3 = vadd.f32 %v4686_v34, %v22555_v39 }
 0x4c3   : > { %v15770_v33 = vpop.eup %15769  ;;  %v4689_v7 = vmul.f32 %v15768_v48, %v19576_v63  ;;  %15789 = vpow2.f32 %v13062_v62  ;;  %v19738_v31 = vadd.f32 %v4467_v8, %v19527_v30  ;;  %v4469_v43 = vpop.f32.mrb[57].mxu1  ;;  %5688 = vmatprep.subr.bf16.mxu0 %v13100_v40  ;;  %v19750_v6 = vadd.f32 %v4687_v36, %v22557_v61  ;;  %v19763_v36 = vld [vmem:[#allocation6 + $0x188] sm:$0xff] }
 0x4c4   : > { %v15772_v32 = vpop.eup %15771  ;;  %v19744_v24 = vadd.f32 %v4688_v10, %v22556_v0  ;;  %v4598_v18 = vadd.f32 1.0, %v15770_v33  ;;  %15791 = vpow2.f32 %v13063_v54  ;;  %v19747_v28 = vadd.f32 %v4469_v43, %v19530_v1  ;;  %v4471_v55 = vpop.f32.mrb[58].mxu1  ;;  %v19765_v62 = vld [vmem:[#allocation6 + $0x1a8] sm:$0xff] }
 0x4c5   : > { %v15774_v63 = vpop.eup %15773  ;;  %v19753_v12 = vadd.f32 %v4689_v7, %v22558_v22  ;;  %v4599_v41 = vadd.f32 1.0, %v15772_v32  ;;  %v19756_v58 = vadd.f32 %v4471_v55, %v19527_v30  ;;  %v4473_v59 = vpop.f32.mrb[59].mxu1  ;;  %v13064_v49 = vmul.f32 -1.442695, %v19738_v31  ;;  %v22559_v22 = vld [vmem:[#allocation31_spill] sm:$0xff] }
 0x4c6   : > { %v15776_v40 = vpop.eup %15775  ;;  %v19760_v51 = vpack.c.bf16 %v19744_v24, %v19734_v3  ;;  %15793 = vrcp.f32 %v4598_v18  ;;  %v4600_v34 = vadd.f32 1.0, %v15774_v63  ;;  %5689 = vmatpush1.bf16.msra.mxu0 %v13099_v4  ;;  %v13065_v8 = vmul.f32 -1.442695, %v19747_v28 }
 0x4c7   : > { %v15778_v54 = vpop.eup %15777  ;;  %v19769_v48 = vpack.c.bf16 %v19753_v12, %v19750_v6  ;;  %15795 = vrcp.f32 %v4599_v41  ;;  %v4601_v10 = vadd.f32 1.0, %v15776_v40  ;;  %5690 = vmatprep.subr.bf16.mxu0 %v13108_v25  ;;  %v13066_v4 = vmul.f32 -1.442695, %v19756_v58 }
 0x4c8   : > { %v15780_v33 = vpop.eup %15779  ;;  %v4690_v39 = vmul.f32 %v15778_v54, %v19581_v21  ;;  %15797 = vrcp.f32 %v4600_v34  ;;  %v19775_v7 = vadd.f32 %v4473_v59, %v19530_v1  ;;  %v13115_v0 = vcombine.low %v19711_v26, %v19713_v60 }
 0x4c9   : > { %v15782_v43 = vpop.eup %15781  ;;  %v4691_v32 = vmul.f32 %v15780_v33, %v19584_v16  ;;  %15799 = vrcp.f32 %v4601_v10  ;;  %5621 = vmatprep.mubr.bf16.mxu0 %v19769_v48  ;;  %v13124_v25 = vcombine.high %v19763_v36, %v19765_v62  ;;  %v13123_v16 = vcombine.low %v19763_v36, %v19765_v62  ;;  %v22563_v33 = vld [vmem:[#allocation32_spill] sm:$0xff] }
 0x4ca   : > { %v15784_v18 = vpop.eup %15783  ;;  %v4692_v21 = vmul.f32 %v15782_v43, %v19588_v14  ;;  %15801 = vpow2.f32 %v13064_v49  ;;  %v13067_v55 = vmul.f32 -1.442695, %v19775_v7  ;;  %5622 = vmatmul.mubr.bf16.gmra.mrb[136].mxu0 %v19760_v51  ;;  %v4477_v63 = vpop.f32.mrb[60].mxu1  ;;  %v19789_v41 = vadd.f32 %v4690_v39, %v22559_v22  ;;  %v22560_v49 = vld [vmem:[#allocation33_spill] sm:$0xff] }
 0x4cb   : > { %v15786_v61 = vpop.eup %15785  ;;  %v4693_v59 = vmul.f32 %v15784_v18, %v19592_v46  ;;  %15803 = vpow2.f32 %v13065_v8  ;;  %5691 = vmatpush1.bf16.msra.mxu0 %v13107_v2  ;;  %v19793_v40 = vadd.f32 %v4477_v63, %v19527_v30  ;;  %v4479_v14 = vpop.f32.mrb[61].mxu1  ;;  %v22561_v2 = vld [vmem:[#allocation34_spill] sm:$0xff] }
 0x4cc   : > { %v15788_v34 = vpop.eup %15787  ;;  %v19796_v54 = vadd.f32 %v4692_v21, %v22560_v49  ;;  %v4602_v10 = vadd.f32 1.0, %v15786_v61  ;;  %15805 = vpow2.f32 %v13066_v4  ;;  %v19799_v36 = vadd.f32 %v4479_v14, %v19530_v1  ;;  %v4481_v62 = vpop.f32.mrb[62].mxu1  ;;  %5692 = vmatprep.subr.bf16.mxu0 %v13116_v44  ;;  %v4815_v21 = vld [vmem:[#allocation6 + $0x1c8] sm:$0xff] }
 0x4cd   : > { %v15790_v46 = vpop.eup %15789  ;;  %v19805_v8 = vadd.f32 %v4691_v32, %v22561_v2  ;;  %v19808_v39 = vadd.f32 %v4693_v59, %v22563_v33  ;;  %v4603_v43 = vadd.f32 1.0, %v15788_v34  ;;  %15807 = vpow2.f32 %v13067_v55  ;;  %v4483_v18 = vpop.f32.mrb[63].mxu1  ;;  %v4819_v4 = vld [vmem:[#allocation6 + $0x1e8] sm:$0xff] }
 0x4ce   : > { %v15792_v63 = vpop.eup %15791  ;;  %15809 = vrcp.f32 %v4602_v10  ;;  %v4604_v61 = vadd.f32 1.0, %v15790_v46  ;;  %v13068_v22 = vmul.f32 -1.442695, %v19793_v40  ;;  %v13069_v26 = vmul.f32 -1.442695, %v19799_v36 }
 0x4cf   : > { %22562 = vst [vmem:[#allocation81_spill] sm:$0xff] %v19805_v8  ;;  %22564 = vst [vmem:[#allocation83_spill] sm:$0xff] %v19808_v39  ;;  %v19814_v60 = vpack.c.bf16 %v19808_v39, %v19805_v8  ;;  %15811 = vrcp.f32 %v4603_v43  ;;  %v4605_v44 = vadd.f32 1.0, %v15792_v63  ;;  %v19817_v32 = vadd.f32 %v4481_v62, %v19527_v30  ;;  %5693 = vmatpush1.bf16.msra.mxu0 %v13115_v0  ;;  %v4823_v30 = vld [vmem:[#allocation6 + $0x208] sm:$0xff]  ;;  %v22567_v8 = vld [vmem:[#allocation35_spill] sm:$0xff] }
 0x4d0   : > { %v15794_v55 = vpop.eup %15793  ;;  %v19821_v59 = vpack.c.bf16 %v19796_v54, %v19789_v41  ;;  %15813 = vrcp.f32 %v4604_v61  ;;  %v19824_v14 = vadd.f32 %v4483_v18, %v19530_v1  ;;  %5694 = vmatprep.subr.bf16.mxu0 %v13124_v25  ;;  %v13132_v34 = vcombine.high %v4815_v21, %v4819_v4  ;;  %v4827_v62 = vld [vmem:[#allocation6 + $0x228] sm:$0xff] }
 0x4d1   : > { %v15796_v49 = vpop.eup %15795  ;;  %15815 = vrcp.f32 %v4605_v44  ;;  %v13070_v10 = vmul.f32 -1.442695, %v19817_v32  ;;  %5631 = vmatprep.mubr.bf16.mxu0 %v19814_v60  ;;  %v4694_v25 = vmul.f32 %v15794_v55, %v19618_v42  ;;  %v13131_v43 = vcombine.low %v4815_v21, %v4819_v4  ;;  %v4831_v21 = vld [vmem:[#allocation6 + $0x248] sm:$0xff]  ;;  %v22571_v55 = vld [vmem:[#allocation38_spill] sm:$0xff] }
 0x4d2   : > { %v15798_v0 = vpop.eup %15797  ;;  %v4695_v46 = vmul.f32 %v15796_v49, %v19627_v50  ;;  %15817 = vpow2.f32 %v13068_v22  ;;  %v13071_v2 = vmul.f32 -1.442695, %v19824_v14  ;;  %5632 = vmatmul.mubr.bf16.gmra.mrb[140].mxu0 %v19821_v59  ;;  %v13140_v61 = vcombine.high %v4823_v30, %v4827_v62  ;;  %v22565_v22 = vld [vmem:[#allocation36_spill] sm:$0xff]  ;;  %v4835_v4 = vld [vmem:[#allocation6 + $0x268] sm:$0xff] }
 0x4d3   : > { %v15800_v1 = vpop.eup %15799  ;;  %v4696_v33 = vmul.f32 %v15798_v0, %v19647_v23  ;;  %15819 = vpow2.f32 %v13069_v26  ;;  %5695 = vmatpush1.bf16.msra.mxu0 %v13123_v16  ;;  %v22569_v23 = vld [vmem:[#allocation37_spill] sm:$0xff] }
 0x4d4   : > { %v15802_v18 = vpop.eup %15801  ;;  %v4697_v63 = vmul.f32 %v15800_v1, %v19650_v53  ;;  %15821 = vpow2.f32 %v13070_v10  ;;  %5696 = vmatprep.subr.bf16.mxu0 %v13132_v34  ;;  %v19838_v42 = vadd.f32 %v4695_v46, %v22567_v8  ;;  %v19844_v34 = vadd.f32 %v4694_v25, %v22571_v55 }
 0x4d5   : > { %v15804_v50 = vpop.eup %15803  ;;  %v19835_v44 = vadd.f32 %v4696_v33, %v22565_v22  ;;  %v4606_v49 = vadd.f32 1.0, %v15802_v18  ;;  %15823 = vpow2.f32 %v13071_v2  ;;  %v13139_v46 = vcombine.low %v4823_v30, %v4827_v62 }
 0x4d6   : > { %v15806_v39 = vpop.eup %15805  ;;  %22568 = vst [vmem:[#allocation79_spill] sm:$0xff] %v19838_v42  ;;  %v19841_v26 = vadd.f32 %v4697_v63, %v22569_v23  ;;  %v4607_v16 = vadd.f32 1.0, %v15804_v50  ;;  %22572 = vst [vmem:[#allocation67_spill] sm:$0xff] %v19844_v34  ;;  %v13148_v25 = vcombine.high %v4831_v21, %v4835_v4  ;;  %v4843_v63 = vld [vmem:[#allocation6 + $0x2a8] sm:$0xff] }
 0x4d7   : > { %22566 = vst [vmem:[#allocation84_spill] sm:$0xff] %v19835_v44  ;;  %v15808_v53 = vpop.eup %15807  ;;  %15825 = vrcp.f32 %v4606_v49  ;;  %v4608_v10 = vadd.f32 1.0, %v15806_v39  ;;  %5697 = vmatpush1.bf16.msra.mxu0 %v13131_v43  ;;  %v19852_v33 = vpack.c.bf16 %v19835_v44, %v19844_v34  ;;  %v4839_v43 = vld [vmem:[#allocation6 + $0x288] sm:$0xff]  ;;  %v13147_v49 = vcombine.low %v4831_v21, %v4835_v4 }
 0x4d8   : > { %22570 = vst [vmem:[#allocation78_spill] sm:$0xff] %v19841_v26  ;;  %v15810_v0 = vpop.eup %15809  ;;  %v19848_v2 = vpack.c.bf16 %v19841_v26, %v19838_v42  ;;  %15827 = vrcp.f32 %v4607_v16  ;;  %v4609_v8 = vadd.f32 1.0, %v15808_v53  ;;  %5698 = vmatprep.subr.bf16.mxu0 %v13140_v61  ;;  %v22573_v16 = vld [vmem:[#allocation40_spill] sm:$0xff]  ;;  %v13156_v55 = vcombine.high %v4839_v43, %v4843_v63  ;;  %v4851_v34 = vld [vmem:[#allocation6 + $0x2e8] sm:$0xff] }
 0x4d9   : > { %v15812_v1 = vpop.eup %15811  ;;  %15829 = vrcp.f32 %v4608_v10  ;;  %v4698_v22 = vmul.f32 %v15810_v0, %v19674_v5  ;;  %v22577_v5 = vld [vmem:[#allocation41_spill] sm:$0xff] }
 0x4da   : > { %v15814_v18 = vpop.eup %15813  ;;  %v4699_v39 = vmul.f32 %v15812_v1, %v19680_v15  ;;  %15831 = vrcp.f32 %v4609_v8  ;;  %5641 = vmatprep.mubr.bf16.mxu0 %v19848_v2  ;;  %v22575_v8 = vld [vmem:[#allocation39_spill] sm:$0xff]  ;;  %v14823_v44 = vld [vmem:[#allocation7 + $0x320] ss:$8 sps:$4 sm:$0xff]  }
 0x4db   : > { %v15816_v50 = vpop.eup %15815  ;;  %v4700_v30 = vmul.f32 %v15814_v18, %v19703_v35  ;;  %5642 = vmatmul.mubr.bf16.gmra.mrb[144].mxu0 %v19852_v33  ;;  %v4847_v18 = vld [vmem:[#allocation6 + $0x2c8] sm:$0xff] }
 0x4dc   : > { %v15818_v62 = vpop.eup %15817  ;;  %v4701_v61 = vmul.f32 %v15816_v50, %v19706_v38  ;;  %5699 = vmatpush1.bf16.msra.mxu0 %v13139_v46  ;;  %v19864_v1 = vadd.f32 %v4699_v39, %v22575_v8  ;;  %v22579_v46 = vld [vmem:[#allocation42_spill] sm:$0xff]  ;;  %v13155_v39 = vcombine.low %v4839_v43, %v4843_v63  ;;  %v13163_v8 = vcombine.low %v4847_v18, %v4851_v34 }
 0x4dd   : > { %v15820_v23 = vpop.eup %15819  ;;  %v19861_v15 = vadd.f32 %v4700_v30, %v22573_v16  ;;  %v4610_v53 = vadd.f32 1.0, %v15818_v62  ;;  %5700 = vmatprep.subr.bf16.mxu0 %v13148_v25  ;;  %v19870_v21 = vadd.f32 %v4698_v22, %v22579_v46  ;;  %v4859_v16 = vld [vmem:[#allocation6 + $0x328] sm:$0xff]  ;;  %v22583_v46 = vld [vmem:[#allocation44_spill] sm:$0xff] }
 0x4de   : > { %v15822_v10 = vpop.eup %15821  ;;  %22576 = vst [vmem:[#allocation57_spill] sm:$0xff] %v19864_v1  ;;  %v19867_v35 = vadd.f32 %v4701_v61, %v22577_v5  ;;  %v4611_v0 = vadd.f32 1.0, %v15820_v23  ;;  %v13164_v61 = vcombine.high %v4847_v18, %v4851_v34  ;;  %v4855_v23 = vld [vmem:[#allocation6 + $0x308] sm:$0xff] }
 0x4df   : > { %22574 = vst [vmem:[#allocation64_spill] sm:$0xff] %v19861_v15  ;;  %v15824_v38 = vpop.eup %15823  ;;  %22580 = vst [vmem:[#allocation70_spill] sm:$0xff] %v19870_v21  ;;  %15833 = vrcp.f32 %v4610_v53  ;;  %v4612_v4 = vadd.f32 1.0, %v15822_v10  ;;  %v19878_v62 = vpack.c.bf16 %v19861_v15, %v19870_v21  ;;  %v13172_v5 = vcombine.high %v4855_v23, %v4859_v16  ;;  %v4867_v21 = vld [vmem:[#allocation6 + $0x368] sm:$0xff] }
 0x4e0   : > { %22578 = vst [vmem:[#allocation56_spill] sm:$0xff] %v19867_v35  ;;  %v19874_v25 = vpack.c.bf16 %v19867_v35, %v19864_v1  ;;  %15835 = vrcp.f32 %v4611_v0  ;;  %v4613_v50 = vadd.f32 1.0, %v15824_v38  ;;  %5701 = vmatpush1.bf16.msra.mxu0 %v13147_v49  ;;  %v22581_v0 = vld [vmem:[#allocation43_spill] sm:$0xff]  ;;  %v13171_v34 = vcombine.low %v4855_v23, %v4859_v16  ;;  %v14787_v35 = vld [vmem:[#allocation7 + $0x260] ss:$8 sps:$4 sm:$0xff]  }
 0x4e1   : > { %v15826_v30 = vpop.eup %15825  ;;  %15837 = vrcp.f32 %v4612_v4  ;;  %5702 = vmatprep.subr.bf16.mxu0 %v13156_v55 }
 0x4e2   : > { %v15828_v22 = vpop.eup %15827  ;;  %15839 = vrcp.f32 %v4613_v50  ;;  %5651 = vmatprep.mubr.bf16.mxu0 %v19874_v25  ;;  %v4702_v63 = vmul.f32 %v15826_v30, %v19738_v31  ;;  %v22587_v31 = vld [vmem:[#allocation46_spill] sm:$0xff] }
 0x4e3   : > { %v15830_v53 = vpop.eup %15829  ;;  %v4703_v10 = vmul.f32 %v15828_v22, %v19747_v28  ;;  %5652 = vmatmul.mubr.bf16.gmra.mrb[148].mxu0 %v19878_v62  ;;  %v22585_v28 = vld [vmem:[#allocation45_spill] sm:$0xff] }
 0x4e4   : > { %v15832_v43 = vpop.eup %15831  ;;  %v4704_v49 = vmul.f32 %v15830_v53, %v19756_v58  ;;  %5703 = vmatpush1.bf16.msra.mxu0 %v13155_v39  ;;  %v4863_v22 = vld [vmem:[#allocation6 + $0x348] sm:$0xff]  ;;  %v19896_v30 = vadd.f32 %v4702_v63, %v22587_v31 }
 0x4e5   : > { %v4705_v55 = vmul.f32 %v15832_v43, %v19775_v7  ;;  %5704 = vmatprep.subr.bf16.mxu0 %v13164_v61  ;;  %v19890_v4 = vadd.f32 %v4703_v10, %v22583_v46  ;;  %v13180_v61 = vcombine.high %v4863_v22, %v4867_v21  ;;  %v4871_v43 = vld [vmem:[#allocation6 + $0x388] sm:$0xff]  ;;  %v13179_v16 = vcombine.low %v4863_v22, %v4867_v21  ;;  %v22591_v46 = vld [vmem:[#allocation48_spill] sm:$0xff] }
 0x4e6   : > { %v19887_v38 = vadd.f32 %v4704_v49, %v22581_v0  ;;  %22588 = vst [vmem:[#allocation16_spill] sm:$0xff] %v19896_v30  ;;  %v4875_v63 = vld [vmem:[#allocation6 + $0x3a8] sm:$0xff] }
 0x4e7   : > { %22584 = vst [vmem:[#allocation87_spill] sm:$0xff] %v19890_v4  ;;  %v19893_v50 = vadd.f32 %v4705_v55, %v22585_v28  ;;  %v22593_v31 = vld [vmem:[#allocation49_spill] sm:$0xff]  ;;  %v13187_v21 = vcombine.low %v4871_v43, %v4875_v63 }
 0x4e8   : > { %22582 = vst [vmem:[#allocation76_spill] sm:$0xff] %v19887_v38  ;;  %5705 = vmatpush1.bf16.msra.mxu0 %v13163_v8  ;;  %v19904_v39 = vpack.c.bf16 %v19887_v38, %v19896_v30 }
 0x4e9   : > { %22586 = vst [vmem:[#allocation82_spill] sm:$0xff] %v19893_v50  ;;  %v15834_v58 = vpop.eup %15833  ;;  %v19900_v7 = vpack.c.bf16 %v19893_v50, %v19890_v4  ;;  %5706 = vmatprep.subr.bf16.mxu0 %v13172_v5  ;;  %v22589_v5 = vld [vmem:[#allocation47_spill] sm:$0xff] }
 0x4ea   : > { %v15836_v18 = vpop.eup %15835  ;;  %v4706_v8 = vmul.f32 %v15834_v58, %v19793_v40  ;;  %v4879_v40 = vld [vmem:[#allocation6 + $0x3c8] sm:$0xff] }
 0x4eb   : > { %v15838_v53 = vpop.eup %15837  ;;  %v4707_v10 = vmul.f32 %v15836_v18, %v19799_v36  ;;  %5661 = vmatprep.mubr.bf16.mxu0 %v19900_v7  ;;  %v13188_v36 = vcombine.high %v4871_v43, %v4875_v63  ;;  %v4883_v58 = vld [vmem:[#allocation6 + $0x3e8] sm:$0xff]  ;;  %v14676_v63 = vld [vmem:[#allocation7 + $0x10] ss:$8 sps:$4 sm:$0xff]  }
 0x4ec   : > { %v15840_v49 = vpop.eup %15839  ;;  %v4708_v55 = vmul.f32 %v15838_v53, %v19817_v32  ;;  %5662 = vmatmul.mubr.bf16.gmra.mrb[152].mxu0 %v19904_v39  ;;  %v22595_v32 = vld [vmem:[#allocation50_spill] sm:$0xff] }
 0x4ed   : > { %v4709_v23 = vmul.f32 %v15840_v49, %v19824_v14  ;;  %5707 = vmatpush1.bf16.msra.mxu0 %v13171_v34  ;;  %v19916_v28 = vadd.f32 %v4707_v10, %v22591_v46  ;;  %v19922_v53 = vadd.f32 %v4706_v8, %v22595_v32  ;;  %v13196_v34 = vcombine.high %v4879_v40, %v4883_v58  ;;  %v14675_v10 = vld [vmem:[#allocation7 + $0x4] ss:$8 sps:$4 sm:$0xff]   ;;  %v4760_v49 = vld [vmem:[#allocation6 + $0x10] sm:$0xff]  ;;  %v14679_v32 = vld [vmem:[#allocation7 + $0x20] ss:$8 sps:$4 sm:$0xff]  }
 0x4ee   : > { %v19913_v0 = vadd.f32 %v4708_v55, %v22589_v5  ;;  %5708 = vmatprep.subr.bf16.mxu0 %v13180_v61  ;;  %v14673_v61 = vld [vmem:[#allocation7] ss:$8 sps:$4 sm:$0xff]   ;;  %v4764_v55 = vld [vmem:[#allocation6 + $0x30] sm:$0xff]  ;;  %7762 = vmatprep.subr.bf16.mxu1 %v14675_v10  ;;  %v13195_v8 = vcombine.low %v4879_v40, %v4883_v58  ;;  %v14681_v46 = vld [vmem:[#allocation7 + $0x24] ss:$8 sps:$4 sm:$0xff]  }
 0x4ef   : > { %22592 = vst [vmem:[#allocation91_spill] sm:$0xff] %v19916_v28  ;;  %v19919_v18 = vadd.f32 %v4709_v23, %v22593_v31  ;;  %22596 = vst [vmem:[#allocation80_spill] sm:$0xff] %v19922_v53  ;;  %v13078_v43 = vcombine.high %v4760_v49, %v4764_v55  ;;  %7763 = vmatpush1.bf16.msra.mxu1 %v14673_v61  ;;  %v14678_v23 = vld [vmem:[#allocation7 + $0x14] ss:$8 sps:$4 sm:$0xff]   ;;  %v14682_v61 = vld [vmem:[#allocation7 + $0x30] ss:$8 sps:$4 sm:$0xff]  }
 0x4f0   : > { %22590 = vst [vmem:[#allocation77_spill] sm:$0xff] %v19913_v0  ;;  %v19930_v22 = vpack.c.bf16 %v19913_v0, %v19922_v53  ;;  %v4772_v5 = vld [vmem:[#allocation6 + $0x70] sm:$0xff]  ;;  %7764 = vmatprep.subr.bf16.mxu1 %v14678_v23  ;;  %v14685_v23 = vld [vmem:[#allocation7 + $0x40] ss:$8 sps:$4 sm:$0xff]  }
 0x4f1   : > { %22594 = vst [vmem:[#allocation86_spill] sm:$0xff] %v19919_v18  ;;  %v19926_v14 = vpack.c.bf16 %v19919_v18, %v19916_v28  ;;  %5709 = vmatpush1.bf16.msra.mxu0 %v13179_v16  ;;  %v4768_v16 = vld [vmem:[#allocation6 + $0x50] sm:$0xff] }
 0x4f2   : > { %5710 = vmatprep.subr.bf16.mxu0 %v13188_v36  ;;  %v13077_v36 = vcombine.low %v4760_v49, %v4764_v55  ;;  %v13086_v31 = vcombine.high %v4768_v16, %v4772_v5  ;;  %v4776_v10 = vld [vmem:[#allocation6 + $0x90] sm:$0xff]  ;;  %v13085_v40 = vcombine.low %v4768_v16, %v4772_v5 }
 0x4f3   : > { %5671 = vmatprep.mubr.bf16.mxu0 %v19926_v14  ;;  %7765 = vmatpush1.bf16.msra.mxu1 %v14676_v63  ;;  %v14684_v58 = vld [vmem:[#allocation7 + $0x34] ss:$8 sps:$4 sm:$0xff]  }
 0x4f4   : > { %5672 = vmatmul.mubr.bf16.gmra.mrb[156].mxu0 %v19930_v22  ;;  %7766 = vmatprep.subr.bf16.mxu1 %v14681_v46  ;;  %v4784_v49 = vld [vmem:[#allocation6 + $0xd0] sm:$0xff] }
 0x4f5   : > { %5711 = vmatpush1.bf16.msra.mxu0 %v13187_v21  ;;  %5714 = vmatprep.mubr.bf16.mxu0 %v19639_v56  ;;  %v4780_v21 = vld [vmem:[#allocation6 + $0xb0] sm:$0xff] }
 0x4f6   : > { %5712 = vmatprep.subr.bf16.mxu0 %v13196_v34  ;;  %v13094_v34 = vcombine.high %v4776_v10, %v4780_v21  ;;  %v4788_v55 = vld [vmem:[#allocation6 + $0xf0] sm:$0xff] }
 0x4f7   : > { %7767 = vmatpush1.bf16.msra.mxu1 %v14679_v32  ;;  %v13102_v63 = vcombine.high %v4784_v49, %v4788_v55  ;;  %v4792_v46 = vld [vmem:[#allocation6 + $0x110] sm:$0xff]  ;;  %v13101_v16 = vcombine.low %v4784_v49, %v4788_v55 }
 0x4f8   : > { %7768 = vmatprep.subr.bf16.mxu1 %v14684_v58  ;;  %v14690_v5 = vld [vmem:[#allocation7 + $0x54] ss:$8 sps:$4 sm:$0xff]   ;;  %v14688_v32 = vld [vmem:[#allocation7 + $0x50] ss:$8 sps:$4 sm:$0xff]  }
 0x4f9   : > { %5713 = vmatpush1.bf16.msra.mxu0 %v13195_v8  ;;  %v14687_v8 = vld [vmem:[#allocation7 + $0x44] ss:$8 sps:$4 sm:$0xff]  }
 0x4fa   : > { %5795 = vmatprep.subr.bf16.mxu0 %v13078_v43  ;;  %v13093_v43 = vcombine.low %v4776_v10, %v4780_v21  ;;  %v4804_v10 = vld [vmem:[#allocation6 + $0x170] sm:$0xff]  ;;  %v14693_v21 = vld [vmem:[#allocation7 + $0x64] ss:$8 sps:$4 sm:$0xff]  }
 0x4fb   : > { %7769 = vmatpush1.bf16.msra.mxu1 %v14682_v61  ;;  %v14691_v61 = vld [vmem:[#allocation7 + $0x60] ss:$8 sps:$4 sm:$0xff]  }
 0x4fc   : > { %5715 = vmatmul.mubr.bf16.vlgmr.msra.gmra.mrb[160].mxu0 %v19644_v17  ;;  %7770 = vmatprep.subr.bf16.mxu1 %v14687_v8  ;;  %v4808_v8 = vld [vmem:[#allocation6 + $0x190] sm:$0xff] }
 0x4fd   : > { %5796 = vmatpush1.bf16.msra.mxu0 %v13077_v36  ;;  %5724 = vmatprep.mubr.bf16.mxu0 %v19692_v29  ;;  %v4796_v36 = vld [vmem:[#allocation6 + $0x130] sm:$0xff] }
 0x4fe   : > { %5797 = vmatprep.subr.bf16.mxu0 %v13086_v31  ;;  %v13110_v31 = vcombine.high %v4792_v46, %v4796_v36  ;;  %v13109_v58 = vcombine.low %v4792_v46, %v4796_v36  ;;  %v14694_v46 = vld [vmem:[#allocation7 + $0x70] ss:$8 sps:$4 sm:$0xff]  }
 0x4ff   : > { %7771 = vmatpush1.bf16.msra.mxu1 %v14685_v23  ;;  %v4816_v23 = vld [vmem:[#allocation6 + $0x1d0] sm:$0xff] }
 0x500   : > { %7772 = vmatprep.subr.bf16.mxu1 %v14690_v5 }
 0x501   : > { %5798 = vmatpush1.bf16.msra.mxu0 %v13085_v40  ;;  %v4800_v40 = vld [vmem:[#allocation6 + $0x150] sm:$0xff] }
 0x502   : > { %5799 = vmatprep.subr.bf16.mxu0 %v13094_v34  ;;  %v13118_v34 = vcombine.high %v4800_v40, %v4804_v10  ;;  %v13117_v49 = vcombine.low %v4800_v40, %v4804_v10 }
 0x503   : > { %7773 = vmatpush1.bf16.msra.mxu1 %v14688_v32  ;;  %v4824_v32 = vld [vmem:[#allocation6 + $0x210] sm:$0xff] }
 0x504   : > { %5725 = vmatmul.mubr.bf16.gmra.mrb[164].mxu0 %v19700_v57  ;;  %7774 = vmatprep.subr.bf16.mxu1 %v14693_v21  ;;  %v4828_v21 = vld [vmem:[#allocation6 + $0x230] sm:$0xff] }
 0x505   : > { %5800 = vmatpush1.bf16.msra.mxu0 %v13093_v43  ;;  %5734 = vmatprep.mubr.bf16.mxu0 %v19769_v48  ;;  %v4812_v43 = vld [vmem:[#allocation6 + $0x1b0] sm:$0xff]  ;;  %v13142_v10 = vcombine.high %v4824_v32, %v4828_v21 }
 0x506   : > { %5801 = vmatprep.subr.bf16.mxu0 %v13102_v63  ;;  %v13126_v55 = vcombine.high %v4808_v8, %v4812_v43  ;;  %v14696_v63 = vld [vmem:[#allocation7 + $0x74] ss:$8 sps:$4 sm:$0xff]   ;;  %v13125_v36 = vcombine.low %v4808_v8, %v4812_v43  ;;  %v14700_v43 = vld [vmem:[#allocation7 + $0x90] ss:$8 sps:$4 sm:$0xff]  }
 0x507   : > { %7775 = vmatpush1.bf16.msra.mxu1 %v14691_v61  ;;  %v4832_v61 = vld [vmem:[#allocation6 + $0x250] sm:$0xff] }
 0x508   : > { %7776 = vmatprep.subr.bf16.mxu1 %v14696_v63  ;;  %v4836_v8 = vld [vmem:[#allocation6 + $0x270] sm:$0xff]  ;;  %v14705_v63 = vld [vmem:[#allocation7 + $0xa4] ss:$8 sps:$4 sm:$0xff]  }
 0x509   : > { %5802 = vmatpush1.bf16.msra.mxu0 %v13101_v16  ;;  %v4820_v16 = vld [vmem:[#allocation6 + $0x1f0] sm:$0xff] }
 0x50a   : > { %5803 = vmatprep.subr.bf16.mxu0 %v13110_v31  ;;  %v13134_v5 = vcombine.high %v4816_v23, %v4820_v16  ;;  %v14699_v31 = vld [vmem:[#allocation7 + $0x84] ss:$8 sps:$4 sm:$0xff]   ;;  %v13133_v40 = vcombine.low %v4816_v23, %v4820_v16  ;;  %v13149_v23 = vcombine.low %v4832_v61, %v4836_v8 }
 0x50b   : > { %7777 = vmatpush1.bf16.msra.mxu1 %v14694_v46  ;;  %v4840_v46 = vld [vmem:[#allocation6 + $0x290] sm:$0xff] }
 0x50c   : > { %5735 = vmatmul.mubr.bf16.gmra.mrb[168].mxu0 %v19760_v51  ;;  %7778 = vmatprep.subr.bf16.mxu1 %v14699_v31  ;;  %v4844_v31 = vld [vmem:[#allocation6 + $0x2b0] sm:$0xff] }
 0x50d   : > { %5804 = vmatpush1.bf16.msra.mxu0 %v13109_v58  ;;  %5744 = vmatprep.mubr.bf16.mxu0 %v19814_v60  ;;  %v14697_v58 = vld [vmem:[#allocation7 + $0x80] ss:$8 sps:$4 sm:$0xff]   ;;  %v13158_v16 = vcombine.high %v4840_v46, %v4844_v31 }
 0x50e   : > { %5805 = vmatprep.subr.bf16.mxu0 %v13118_v34  ;;  %v14702_v34 = vld [vmem:[#allocation7 + $0x94] ss:$8 sps:$4 sm:$0xff]  }
 0x50f   : > { %7779 = vmatpush1.bf16.msra.mxu1 %v14697_v58  ;;  %v4848_v58 = vld [vmem:[#allocation6 + $0x2d0] sm:$0xff] }
 0x510   : > { %7780 = vmatprep.subr.bf16.mxu1 %v14702_v34  ;;  %v14711_v34 = vld [vmem:[#allocation7 + $0xc4] ss:$8 sps:$4 sm:$0xff]  }
 0x511   : > { %5806 = vmatpush1.bf16.msra.mxu0 %v13117_v49  ;;  %v13141_v49 = vcombine.low %v4824_v32, %v4828_v21  ;;  %v4852_v32 = vld [vmem:[#allocation6 + $0x2f0] sm:$0xff] }
 0x512   : > { %5807 = vmatprep.subr.bf16.mxu0 %v13126_v55  ;;  %v13150_v55 = vcombine.high %v4832_v61, %v4836_v8  ;;  %v14706_v21 = vld [vmem:[#allocation7 + $0xb0] ss:$8 sps:$4 sm:$0xff]   ;;  %v13165_v61 = vcombine.low %v4848_v58, %v4852_v32 }
 0x513   : > { %7781 = vmatpush1.bf16.msra.mxu1 %v14700_v43  ;;  %v4856_v43 = vld [vmem:[#allocation6 + $0x310] sm:$0xff] }
 0x514   : > { %5745 = vmatmul.mubr.bf16.gmra.mrb[172].mxu0 %v19821_v59  ;;  %7782 = vmatprep.subr.bf16.mxu1 %v14705_v63  ;;  %v4860_v63 = vld [vmem:[#allocation6 + $0x330] sm:$0xff] }
 0x515   : > { %5808 = vmatpush1.bf16.msra.mxu0 %v13125_v36  ;;  %5754 = vmatprep.mubr.bf16.mxu0 %v19848_v2  ;;  %v14703_v36 = vld [vmem:[#allocation7 + $0xa0] ss:$8 sps:$4 sm:$0xff]   ;;  %v13174_v8 = vcombine.high %v4856_v43, %v4860_v63 }
 0x516   : > { %5809 = vmatprep.subr.bf16.mxu0 %v13134_v5  ;;  %v14708_v5 = vld [vmem:[#allocation7 + $0xb4] ss:$8 sps:$4 sm:$0xff]  }
 0x517   : > { %7783 = vmatpush1.bf16.msra.mxu1 %v14703_v36  ;;  %v4864_v36 = vld [vmem:[#allocation6 + $0x350] sm:$0xff] }
 0x518   : > { %7784 = vmatprep.subr.bf16.mxu1 %v14708_v5  ;;  %v14717_v5 = vld [vmem:[#allocation7 + $0xe4] ss:$8 sps:$4 sm:$0xff]  }
 0x519   : > { %5810 = vmatpush1.bf16.msra.mxu0 %v13133_v40  ;;  %v13157_v40 = vcombine.low %v4840_v46, %v4844_v31  ;;  %v4868_v46 = vld [vmem:[#allocation6 + $0x370] sm:$0xff] }
 0x51a   : > { %5811 = vmatprep.subr.bf16.mxu0 %v13142_v10  ;;  %v13166_v10 = vcombine.high %v4848_v58, %v4852_v32  ;;  %v14712_v31 = vld [vmem:[#allocation7 + $0xd0] ss:$8 sps:$4 sm:$0xff]   ;;  %v13181_v58 = vcombine.low %v4864_v36, %v4868_v46 }
 0x51b   : > { %7785 = vmatpush1.bf16.msra.mxu1 %v14706_v21  ;;  %v4872_v21 = vld [vmem:[#allocation6 + $0x390] sm:$0xff] }
 0x51c   : > { %5755 = vmatmul.mubr.bf16.gmra.mrb[176].mxu0 %v19852_v33  ;;  %7786 = vmatprep.subr.bf16.mxu1 %v14711_v34  ;;  %v4876_v34 = vld [vmem:[#allocation6 + $0x3b0] sm:$0xff] }
 0x51d   : > { %5812 = vmatpush1.bf16.msra.mxu0 %v13141_v49  ;;  %5764 = vmatprep.mubr.bf16.mxu0 %v19874_v25  ;;  %v14709_v49 = vld [vmem:[#allocation7 + $0xc0] ss:$8 sps:$4 sm:$0xff]   ;;  %v13190_v32 = vcombine.high %v4872_v21, %v4876_v34 }
 0x51e   : > { %5813 = vmatprep.subr.bf16.mxu0 %v13150_v55  ;;  %v14714_v55 = vld [vmem:[#allocation7 + $0xd4] ss:$8 sps:$4 sm:$0xff]  }
 0x51f   : > { %7787 = vmatpush1.bf16.msra.mxu1 %v14709_v49  ;;  %v4880_v49 = vld [vmem:[#allocation6 + $0x3d0] sm:$0xff] }
 0x520   : > { %7788 = vmatprep.subr.bf16.mxu1 %v14714_v55  ;;  %v14723_v55 = vld [vmem:[#allocation7 + $0x104] ss:$8 sps:$4 sm:$0xff]  }
 0x521   : > { %5814 = vmatpush1.bf16.msra.mxu0 %v13149_v23  ;;  %v13173_v23 = vcombine.low %v4856_v43, %v4860_v63  ;;  %v4884_v43 = vld [vmem:[#allocation6 + $0x3f0] sm:$0xff] }
 0x522   : > { %5815 = vmatprep.subr.bf16.mxu0 %v13158_v16  ;;  %v13182_v16 = vcombine.high %v4864_v36, %v4868_v46  ;;  %v14718_v63 = vld [vmem:[#allocation7 + $0xf0] ss:$8 sps:$4 sm:$0xff]   ;;  %v13197_v36 = vcombine.low %v4880_v49, %v4884_v43 }
 0x523   : > { %7789 = vmatpush1.bf16.msra.mxu1 %v14712_v31  ;;  %v4761_v31 = vld [vmem:[#allocation6 + $0x18] sm:$0xff] }
 0x524   : > { %5765 = vmatmul.mubr.bf16.gmra.mrb[180].mxu0 %v19878_v62  ;;  %7790 = vmatprep.subr.bf16.mxu1 %v14717_v5  ;;  %v4765_v5 = vld [vmem:[#allocation6 + $0x38] sm:$0xff] }
 0x525   : > { %5816 = vmatpush1.bf16.msra.mxu0 %v13157_v40  ;;  %5774 = vmatprep.mubr.bf16.mxu0 %v19900_v7  ;;  %v14715_v40 = vld [vmem:[#allocation7 + $0xe0] ss:$8 sps:$4 sm:$0xff]   ;;  %v13080_v46 = vcombine.high %v4761_v31, %v4765_v5 }
 0x526   : > { %5817 = vmatprep.subr.bf16.mxu0 %v13166_v10  ;;  %v14720_v10 = vld [vmem:[#allocation7 + $0xf4] ss:$8 sps:$4 sm:$0xff]  }
 0x527   : > { %7791 = vmatpush1.bf16.msra.mxu1 %v14715_v40  ;;  %v13079_v40 = vcombine.low %v4761_v31, %v4765_v5 }
 0x528   : > { %7792 = vmatprep.subr.bf16.mxu1 %v14720_v10 }
 0x529   : > { %5818 = vmatpush1.bf16.msra.mxu0 %v13165_v61  ;;  %v13189_v61 = vcombine.low %v4872_v21, %v4876_v34  ;;  %v4777_v34 = vld [vmem:[#allocation6 + $0x98] sm:$0xff] }
 0x52a   : > { %5819 = vmatprep.subr.bf16.mxu0 %v13174_v8  ;;  %v13198_v8 = vcombine.high %v4880_v49, %v4884_v43  ;;  %v4789_v49 = vld [vmem:[#allocation6 + $0xf8] sm:$0xff] }
 0x52b   : > { %7793 = vmatpush1.bf16.msra.mxu1 %v14718_v63  ;;  %v4785_v63 = vld [vmem:[#allocation6 + $0xd8] sm:$0xff] }
 0x52c   : > { %5775 = vmatmul.mubr.bf16.gmra.mrb[184].mxu0 %v19904_v39  ;;  %7875 = vmatprep.subr.bf16.mxu1 %v14723_v55  ;;  %v4797_v55 = vld [vmem:[#allocation6 + $0x138] sm:$0xff]  ;;  %v13103_v31 = vcombine.low %v4785_v63, %v4789_v49 }
 0x52d   : > { %5820 = vmatpush1.bf16.msra.mxu0 %v13173_v23  ;;  %5784 = vmatprep.mubr.bf16.mxu0 %v19926_v14  ;;  %v4769_v23 = vld [vmem:[#allocation6 + $0x58] sm:$0xff] }
 0x52e   : > { %5821 = vmatprep.subr.bf16.mxu0 %v13182_v16  ;;  %v4773_v16 = vld [vmem:[#allocation6 + $0x78] sm:$0xff] }
 0x52f   : > { %v13088_v21 = vcombine.high %v4769_v23, %v4773_v16 }
 0x531   : > { %5822 = vmatpush1.bf16.msra.mxu0 %v13181_v58  ;;  %v4781_v58 = vld [vmem:[#allocation6 + $0xb8] sm:$0xff] }
 0x532   : > { %5823 = vmatprep.subr.bf16.mxu0 %v13190_v32  ;;  %v13087_v32 = vcombine.low %v4769_v23, %v4773_v16  ;;  %v13096_v10 = vcombine.high %v4777_v34, %v4781_v58  ;;  %v13095_v43 = vcombine.low %v4777_v34, %v4781_v58 }
 0x534   : > { %5785 = vmatmul.mubr.bf16.gmra.mrb[188].mxu0 %v19930_v22 }
 0x535   : > { %5824 = vmatpush1.bf16.msra.mxu0 %v13189_v61  ;;  %5827 = vmatprep.mubr.bf16.mxu0 %v19639_v56  ;;  %v13104_v61 = vcombine.high %v4785_v63, %v4789_v49 }
 0x536   : > { %5825 = vmatprep.subr.bf16.mxu0 %v13198_v8  ;;  %v4793_v8 = vld [vmem:[#allocation6 + $0x118] sm:$0xff] }
 0x537   : > { %v13112_v5 = vcombine.high %v4793_v8, %v4797_v55  ;;  %v13111_v23 = vcombine.low %v4793_v8, %v4797_v55 }
 0x539   : > { %5826 = vmatpush1.bf16.msra.mxu0 %v13197_v36  ;;  %v4801_v36 = vld [vmem:[#allocation6 + $0x158] sm:$0xff] }
 0x53a   : > { %5908 = vmatprep.subr.bf16.mxu0 %v13080_v46  ;;  %v4805_v46 = vld [vmem:[#allocation6 + $0x178] sm:$0xff] }
 0x53b   : > { %v13120_v16 = vcombine.high %v4801_v36, %v4805_v46  ;;  %v13119_v34 = vcombine.low %v4801_v36, %v4805_v46 }
 0x53c   : > { %5828 = vmatmul.mubr.bf16.vlgmr.msra.gmra.mrb[192].mxu0 %v19644_v17 }
 0x53d   : > { %5909 = vmatpush1.bf16.msra.mxu0 %v13079_v40  ;;  %5837 = vmatprep.mubr.bf16.mxu0 %v19692_v29  ;;  %v4809_v40 = vld [vmem:[#allocation6 + $0x198] sm:$0xff] }
 0x53e   : > { %5910 = vmatprep.subr.bf16.mxu0 %v13088_v21  ;;  %v4813_v21 = vld [vmem:[#allocation6 + $0x1b8] sm:$0xff] }
 0x53f   : > { %v13128_v58 = vcombine.high %v4809_v40, %v4813_v21  ;;  %v13127_v63 = vcombine.low %v4809_v40, %v4813_v21 }
 0x541   : > { %5911 = vmatpush1.bf16.msra.mxu0 %v13087_v32  ;;  %v4817_v32 = vld [vmem:[#allocation6 + $0x1d8] sm:$0xff] }
 0x542   : > { %5912 = vmatprep.subr.bf16.mxu0 %v13096_v10  ;;  %v4821_v10 = vld [vmem:[#allocation6 + $0x1f8] sm:$0xff] }
 0x543   : > { %v13136_v49 = vcombine.high %v4817_v32, %v4821_v10  ;;  %v13135_v8 = vcombine.low %v4817_v32, %v4821_v10 }
 0x544   : > { %5838 = vmatmul.mubr.bf16.gmra.mrb[196].mxu0 %v19700_v57 }
 0x545   : > { %5913 = vmatpush1.bf16.msra.mxu0 %v13095_v43  ;;  %5847 = vmatprep.mubr.bf16.mxu0 %v19769_v48  ;;  %v4825_v43 = vld [vmem:[#allocation6 + $0x218] sm:$0xff] }
 0x546   : > { %5914 = vmatprep.subr.bf16.mxu0 %v13104_v61  ;;  %v4829_v61 = vld [vmem:[#allocation6 + $0x238] sm:$0xff] }
 0x547   : > { %v13144_v55 = vcombine.high %v4825_v43, %v4829_v61  ;;  %v13143_v36 = vcombine.low %v4825_v43, %v4829_v61 }
 0x549   : > { %5915 = vmatpush1.bf16.msra.mxu0 %v13103_v31  ;;  %v4833_v31 = vld [vmem:[#allocation6 + $0x258] sm:$0xff] }
 0x54a   : > { %5916 = vmatprep.subr.bf16.mxu0 %v13112_v5  ;;  %v4837_v5 = vld [vmem:[#allocation6 + $0x278] sm:$0xff] }
 0x54b   : > { %v13152_v46 = vcombine.high %v4833_v31, %v4837_v5  ;;  %v13151_v40 = vcombine.low %v4833_v31, %v4837_v5 }
 0x54c   : > { %5848 = vmatmul.mubr.bf16.gmra.mrb[200].mxu0 %v19760_v51 }
 0x54d   : > { %5917 = vmatpush1.bf16.msra.mxu0 %v13111_v23  ;;  %5857 = vmatprep.mubr.bf16.mxu0 %v19814_v60  ;;  %v4841_v23 = vld [vmem:[#allocation6 + $0x298] sm:$0xff] }
 0x54e   : > { %5918 = vmatprep.subr.bf16.mxu0 %v13120_v16  ;;  %v4845_v16 = vld [vmem:[#allocation6 + $0x2b8] sm:$0xff] }
 0x54f   : > { %v13160_v21 = vcombine.high %v4841_v23, %v4845_v16  ;;  %v13159_v32 = vcombine.low %v4841_v23, %v4845_v16 }
 0x551   : > { %5919 = vmatpush1.bf16.msra.mxu0 %v13119_v34  ;;  %v4849_v34 = vld [vmem:[#allocation6 + $0x2d8] sm:$0xff] }
 0x552   : > { %5920 = vmatprep.subr.bf16.mxu0 %v13128_v58  ;;  %v4853_v58 = vld [vmem:[#allocation6 + $0x2f8] sm:$0xff] }
 0x553   : > { %v13168_v10 = vcombine.high %v4849_v34, %v4853_v58  ;;  %v13167_v43 = vcombine.low %v4849_v34, %v4853_v58 }
 0x554   : > { %5858 = vmatmul.mubr.bf16.gmra.mrb[204].mxu0 %v19821_v59 }
 0x555   : > { %5921 = vmatpush1.bf16.msra.mxu0 %v13127_v63  ;;  %5867 = vmatprep.mubr.bf16.mxu0 %v19848_v2  ;;  %v4857_v63 = vld [vmem:[#allocation6 + $0x318] sm:$0xff] }
 0x556   : > { %5922 = vmatprep.subr.bf16.mxu0 %v13136_v49  ;;  %v4861_v49 = vld [vmem:[#allocation6 + $0x338] sm:$0xff] }
 0x557   : > { %v13176_v61 = vcombine.high %v4857_v63, %v4861_v49  ;;  %v13175_v31 = vcombine.low %v4857_v63, %v4861_v49 }
 0x559   : > { %5923 = vmatpush1.bf16.msra.mxu0 %v13135_v8  ;;  %v4865_v8 = vld [vmem:[#allocation6 + $0x358] sm:$0xff] }
 0x55a   : > { %5924 = vmatprep.subr.bf16.mxu0 %v13144_v55  ;;  %v4869_v55 = vld [vmem:[#allocation6 + $0x378] sm:$0xff] }
 0x55b   : > { %v13184_v5 = vcombine.high %v4865_v8, %v4869_v55  ;;  %v13183_v23 = vcombine.low %v4865_v8, %v4869_v55 }
 0x55c   : > { %5868 = vmatmul.mubr.bf16.gmra.mrb[208].mxu0 %v19852_v33 }
 0x55d   : > { %5925 = vmatpush1.bf16.msra.mxu0 %v13143_v36  ;;  %5877 = vmatprep.mubr.bf16.mxu0 %v19874_v25  ;;  %v4873_v36 = vld [vmem:[#allocation6 + $0x398] sm:$0xff] }
 0x55e   : > { %5926 = vmatprep.subr.bf16.mxu0 %v13152_v46  ;;  %v4877_v46 = vld [vmem:[#allocation6 + $0x3b8] sm:$0xff] }
 0x55f   : > { %v13192_v16 = vcombine.high %v4873_v36, %v4877_v46  ;;  %v13191_v34 = vcombine.low %v4873_v36, %v4877_v46 }
 0x561   : > { %5927 = vmatpush1.bf16.msra.mxu0 %v13151_v40  ;;  %v4881_v40 = vld [vmem:[#allocation6 + $0x3d8] sm:$0xff] }
 0x562   : > { %5928 = vmatprep.subr.bf16.mxu0 %v13160_v21  ;;  %v4885_v21 = vld [vmem:[#allocation6 + $0x3f8] sm:$0xff] }
 0x563   : > { %v13200_v58 = vcombine.high %v4881_v40, %v4885_v21 }
 0x564   : > { %5878 = vmatmul.mubr.bf16.gmra.mrb[212].mxu0 %v19878_v62 }
 0x565   : > { %5929 = vmatpush1.bf16.msra.mxu0 %v13159_v32  ;;  %5887 = vmatprep.mubr.bf16.mxu0 %v19900_v7  ;;  %v13199_v32 = vcombine.low %v4881_v40, %v4885_v21 }
 0x566   : > { %5930 = vmatprep.subr.bf16.mxu0 %v13168_v10  ;;  %v19974_v10 = vld [vmem:[%s22181_s10 + $0x1] ss:$4 sm:$0xff] }
 0x567   : > { %v19978_v63 = vrot.slane %v19974_v10, %v22545_v45 }
 0x569   : > { %5931 = vmatpush1.bf16.msra.mxu0 %v13167_v43 }
 0x56a   : > { %5932 = vmatprep.subr.bf16.mxu0 %v13176_v61 }
 0x56c   : > { %5888 = vmatmul.mubr.bf16.gmra.mrb[216].mxu0 %v19904_v39 }
 0x56d   : > { %5933 = vmatpush1.bf16.msra.mxu0 %v13175_v31  ;;  %5897 = vmatprep.mubr.bf16.mxu0 %v19926_v14 }
 0x56e   : > { %5934 = vmatprep.subr.bf16.mxu0 %v13184_v5 }
 0x571   : > { %5935 = vmatpush1.bf16.msra.mxu0 %v13183_v23 }
 0x572   : > { %5936 = vmatprep.subr.bf16.mxu0 %v13192_v16 }
 0x574   : > { %5898 = vmatmul.mubr.bf16.gmra.mrb[220].mxu0 %v19930_v22 }
 0x575   : > { %5937 = vmatpush1.bf16.msra.mxu0 %v13191_v34  ;;  %5940 = vmatprep.mubr.bf16.mxu0 %v19639_v56  ;;  %v19982_v56 = vrot.slane %v19974_v10, %v22546_v19 }
 0x576   : > { %5938 = vmatprep.subr.bf16.mxu0 %v13200_v58 }
 0x579   : > { %5939 = vmatpush1.bf16.msra.mxu0 %v13199_v32 }
 0x57c   : > { %5941 = vmatmul.mubr.bf16.vlgmr.msra.gmra.mrb[224].mxu0 %v19644_v17 }
 0x57d   : > { %5950 = vmatprep.mubr.bf16.mxu0 %v19692_v29 }
 0x584   : > { %5951 = vmatmul.mubr.bf16.gmra.mrb[228].mxu0 %v19700_v57 }
 0x585   : > { %5960 = vmatprep.mubr.bf16.mxu0 %v19769_v48 }
 0x58c   : > { %5961 = vmatmul.mubr.bf16.gmra.mrb[232].mxu0 %v19760_v51  ;;  %v5603_v17 = vpop.f32.mrb[128].mxu0 }
 0x58d   : > { %5970 = vmatprep.mubr.bf16.mxu0 %v19814_v60  ;;  %v19987_v29 = vadd.f32 %v5603_v17, %v19978_v63  ;;  %v5605_v57 = vpop.f32.mrb[129].mxu0 }
 0x58e   : > { %v19990_v48 = vadd.f32 %v5605_v57, %v19982_v56  ;;  %v5607_v49 = vpop.f32.mrb[130].mxu0 }
 0x58f   : > { %v13201_v43 = vmul.f32 -1.442695, %v19987_v29  ;;  %v19994_v61 = vadd.f32 %v5607_v49, %v19978_v63  ;;  %v5609_v8 = vpop.f32.mrb[131].mxu0 }
 0x590   : > { %v13202_v55 = vmul.f32 -1.442695, %v19990_v48  ;;  %v19998_v51 = vadd.f32 %v5609_v8, %v19982_v56 }
 0x591   : > { %15841 = vpow2.f32 %v13201_v43  ;;  %v13209_v60 = vmul.f32 -1.442695, %v19994_v61 }
 0x592   : > { %15843 = vpow2.f32 %v13202_v55  ;;  %v13210_v31 = vmul.f32 -1.442695, %v19998_v51 }
 0x593   : > { %15845 = vpow2.f32 %v13209_v60 }
 0x594   : > { %15847 = vpow2.f32 %v13210_v31  ;;  %5971 = vmatmul.mubr.bf16.gmra.mrb[236].mxu0 %v19821_v59  ;;  %v5613_v5 = vpop.f32.mrb[132].mxu0 }
 0x595   : > { %5980 = vmatprep.mubr.bf16.mxu0 %v19848_v2  ;;  %v20005_v36 = vadd.f32 %v5613_v5, %v19978_v63  ;;  %v5615_v46 = vpop.f32.mrb[133].mxu0 }
 0x596   : > { %v20008_v23 = vadd.f32 %v5615_v46, %v19982_v56  ;;  %v5617_v16 = vpop.f32.mrb[134].mxu0 }
 0x597   : > { %v13217_v40 = vmul.f32 -1.442695, %v20005_v36  ;;  %v20012_v21 = vadd.f32 %v5617_v16, %v19978_v63  ;;  %v5619_v34 = vpop.f32.mrb[135].mxu0 }
 0x598   : > { %v13218_v58 = vmul.f32 -1.442695, %v20008_v23  ;;  %v20016_v59 = vadd.f32 %v5619_v34, %v19982_v56 }
 0x599   : > { %15849 = vpow2.f32 %v13217_v40  ;;  %v13225_v2 = vmul.f32 -1.442695, %v20012_v21 }
 0x59a   : > { %15851 = vpow2.f32 %v13218_v58  ;;  %v13226_v32 = vmul.f32 -1.442695, %v20016_v59 }
 0x59b   : > { %v15842_v17 = vpop.eup %15841  ;;  %15853 = vpow2.f32 %v13225_v2 }
 0x59c   : > { %v15844_v57 = vpop.eup %15843  ;;  %v6405_v49 = vadd.f32 1.0, %v15842_v17  ;;  %15855 = vpow2.f32 %v13226_v32  ;;  %5981 = vmatmul.mubr.bf16.gmra.mrb[240].mxu0 %v19852_v33 }
 0x59d   : > { %v15846_v43 = vpop.eup %15845  ;;  %v6406_v8 = vadd.f32 1.0, %v15844_v57  ;;  %5990 = vmatprep.mubr.bf16.mxu0 %v19874_v25  ;;  %v5623_v55 = vpop.f32.mrb[136].mxu0 }
 0x59e   : > { %v15848_v60 = vpop.eup %15847  ;;  %15857 = vrcp.f32 %v6405_v49  ;;  %v6413_v31 = vadd.f32 1.0, %v15846_v43  ;;  %v20023_v5 = vadd.f32 %v5623_v55, %v19978_v63  ;;  %v5625_v46 = vpop.f32.mrb[137].mxu0 }
 0x59f   : > { %15859 = vrcp.f32 %v6406_v8  ;;  %v6414_v16 = vadd.f32 1.0, %v15848_v60  ;;  %v20026_v40 = vadd.f32 %v5625_v46, %v19982_v56  ;;  %v5627_v34 = vpop.f32.mrb[138].mxu0 }
 0x5a0   : > { %15861 = vrcp.f32 %v6413_v31  ;;  %v13233_v33 = vmul.f32 -1.442695, %v20023_v5  ;;  %v20030_v58 = vadd.f32 %v5627_v34, %v19978_v63  ;;  %v5629_v25 = vpop.f32.mrb[139].mxu0 }
 0x5a1   : > { %15863 = vrcp.f32 %v6414_v16  ;;  %v13234_v2 = vmul.f32 -1.442695, %v20026_v40  ;;  %v20034_v32 = vadd.f32 %v5629_v25, %v19982_v56 }
 0x5a2   : > { %15865 = vpow2.f32 %v13233_v33  ;;  %v13241_v17 = vmul.f32 -1.442695, %v20030_v58 }
 0x5a3   : > { %v15850_v57 = vpop.eup %15849  ;;  %15867 = vpow2.f32 %v13234_v2  ;;  %v13242_v49 = vmul.f32 -1.442695, %v20034_v32 }
 0x5a4   : > { %v15852_v43 = vpop.eup %15851  ;;  %v6421_v8 = vadd.f32 1.0, %v15850_v57  ;;  %15869 = vpow2.f32 %v13241_v17  ;;  %5991 = vmatmul.mubr.bf16.gmra.mrb[244].mxu0 %v19878_v62 }
 0x5a5   : > { %v15854_v55 = vpop.eup %15853  ;;  %v6422_v60 = vadd.f32 1.0, %v15852_v43  ;;  %15871 = vpow2.f32 %v13242_v49  ;;  %6000 = vmatprep.mubr.bf16.mxu0 %v19900_v7  ;;  %v5633_v31 = vpop.f32.mrb[140].mxu0 }
 0x5a6   : > { %v15856_v46 = vpop.eup %15855  ;;  %15873 = vrcp.f32 %v6421_v8  ;;  %v6429_v16 = vadd.f32 1.0, %v15854_v55  ;;  %v20041_v34 = vadd.f32 %v5633_v31, %v19978_v63  ;;  %v5635_v33 = vpop.f32.mrb[141].mxu0 }
 0x5a7   : > { %15875 = vrcp.f32 %v6422_v60  ;;  %v6430_v25 = vadd.f32 1.0, %v15856_v46  ;;  %v20044_v2 = vadd.f32 %v5635_v33, %v19982_v56  ;;  %v5637_v17 = vpop.f32.mrb[142].mxu0 }
 0x5a8   : > { %v15858_v62 = vpop.eup %15857  ;;  %15877 = vrcp.f32 %v6429_v16  ;;  %v13249_v57 = vmul.f32 -1.442695, %v20041_v34  ;;  %v20048_v7 = vadd.f32 %v5637_v17, %v19978_v63  ;;  %v5639_v49 = vpop.f32.mrb[143].mxu0 }
 0x5a9   : > { %v15860_v43 = vpop.eup %15859  ;;  %15879 = vrcp.f32 %v6430_v25  ;;  %v13250_v8 = vmul.f32 -1.442695, %v20044_v2  ;;  %v20052_v55 = vadd.f32 %v5639_v49, %v19982_v56  ;;  %v6789_v16 = vmul.f32 %v15858_v62, %v19987_v29 }
 0x5aa   : > { %v15862_v60 = vpop.eup %15861  ;;  %15881 = vpow2.f32 %v13249_v57  ;;  %v13257_v31 = vmul.f32 -1.442695, %v20048_v7  ;;  %v6790_v25 = vmul.f32 %v15860_v43, %v19990_v48  ;;  %v14726_v43 = vld [vmem:[#allocation7 + $0x114] ss:$8 sps:$4 sm:$0xff]  }
 0x5ab   : > { %v15864_v46 = vpop.eup %15863  ;;  %v6797_v33 = vmul.f32 %v15862_v60, %v19994_v61  ;;  %15883 = vpow2.f32 %v13250_v8  ;;  %v13258_v17 = vmul.f32 -1.442695, %v20052_v55  ;;  %v14721_v60 = vld [vmem:[#allocation7 + $0x100] ss:$8 sps:$4 sm:$0xff]  }
 0x5ac   : > { %v15866_v53 = vpop.eup %15865  ;;  %v6798_v18 = vmul.f32 %v15864_v46, %v19998_v51  ;;  %15885 = vpow2.f32 %v13257_v31  ;;  %6001 = vmatmul.mubr.bf16.gmra.mrb[248].mxu0 %v19904_v39 }
 0x5ad   : > { %v15868_v49 = vpop.eup %15867  ;;  %v6917_v57 = vpack.c.bf16 %v6797_v33, %v6789_v16  ;;  %v6437_v28 = vadd.f32 1.0, %v15866_v53  ;;  %15887 = vpow2.f32 %v13258_v17  ;;  %6010 = vmatprep.mubr.bf16.mxu0 %v19926_v14 }
 0x5ae   : > { %v15870_v29 = vpop.eup %15869  ;;  %v6438_v62 = vadd.f32 1.0, %v15868_v49  ;;  %v5643_v61 = vpop.f32.mrb[144].mxu0  ;;  %v6918_v8 = vpack.c.bf16 %v6798_v18, %v6790_v25  ;;  %v14724_v25 = vld [vmem:[#allocation7 + $0x110] ss:$8 sps:$4 sm:$0xff]  }
 0x5af   : > { %v15872_v0 = vpop.eup %15871  ;;  %15889 = vrcp.f32 %v6437_v28  ;;  %v6445_v30 = vadd.f32 1.0, %v15870_v29  ;;  %v20063_v48 = vadd.f32 %v5643_v61, %v19978_v63  ;;  %v5645_v51 = vpop.f32.mrb[145].mxu0  ;;  %v14729_v61 = vld [vmem:[#allocation7 + $0x124] ss:$8 sps:$4 sm:$0xff]  }
 0x5b0   : > { %v15874_v39 = vpop.eup %15873  ;;  %15891 = vrcp.f32 %v6438_v62  ;;  %v6446_v31 = vadd.f32 1.0, %v15872_v0  ;;  %v20066_v53 = vadd.f32 %v5645_v51, %v19982_v56  ;;  %v5647_v14 = vpop.f32.mrb[146].mxu0  ;;  %7794 = vmatprep.mubr.bf16.mxu1 %v6918_v8 }
 0x5b1   : > { %v15876_v46 = vpop.eup %15875  ;;  %15893 = vrcp.f32 %v6445_v30  ;;  %v13265_v18 = vmul.f32 -1.442695, %v20063_v48  ;;  %v20070_v28 = vadd.f32 %v5647_v14, %v19978_v63  ;;  %v5649_v16 = vpop.f32.mrb[147].mxu0  ;;  %7795 = vmatmul.mubr.bf16.vlgmr.msra.gmra.mrb[64].mxu1 %v6917_v57  ;;  %v6805_v29 = vmul.f32 %v15874_v39, %v20005_v36 }
 0x5b2   : > { %v15878_v33 = vpop.eup %15877  ;;  %15895 = vrcp.f32 %v6446_v31  ;;  %v13266_v17 = vmul.f32 -1.442695, %v20066_v53  ;;  %v20074_v0 = vadd.f32 %v5649_v16, %v19982_v56  ;;  %7876 = vmatpush1.bf16.msra.mxu1 %v14721_v60  ;;  %v6806_v8 = vmul.f32 %v15876_v46, %v20008_v23  ;;  %v14727_v16 = vld [vmem:[#allocation7 + $0x120] ss:$8 sps:$4 sm:$0xff]  }
 0x5b3   : > { %v15880_v49 = vpop.eup %15879  ;;  %v6813_v30 = vmul.f32 %v15878_v33, %v20012_v21  ;;  %15897 = vpow2.f32 %v13265_v18  ;;  %v13273_v62 = vmul.f32 -1.442695, %v20070_v28  ;;  %7877 = vmatprep.subr.bf16.mxu1 %v14726_v43 }
 0x5b4   : > { %v15882_v57 = vpop.eup %15881  ;;  %v6814_v51 = vmul.f32 %v15880_v49, %v20016_v59  ;;  %15899 = vpow2.f32 %v13266_v17  ;;  %v13274_v31 = vmul.f32 -1.442695, %v20074_v0  ;;  %6011 = vmatmul.mubr.bf16.gmra.mrb[252].mxu0 %v19930_v22  ;;  %v14732_v22 = vld [vmem:[#allocation7 + $0x134] ss:$8 sps:$4 sm:$0xff]  }
 0x5b5   : > { %v15884_v60 = vpop.eup %15883  ;;  %v6453_v14 = vadd.f32 1.0, %v15882_v57  ;;  %15901 = vpow2.f32 %v13273_v62  ;;  %v6925_v36 = vpack.c.bf16 %v6813_v30, %v6805_v29 }
 0x5b6   : > { %v15886_v21 = vpop.eup %15885  ;;  %v6454_v39 = vadd.f32 1.0, %v15884_v60  ;;  %15903 = vpow2.f32 %v13274_v31  ;;  %v5653_v18 = vpop.f32.mrb[148].mxu0  ;;  %7878 = vmatpush1.bf16.msra.mxu1 %v14724_v25  ;;  %v6926_v43 = vpack.c.bf16 %v6814_v51, %v6806_v8  ;;  %v14730_v31 = vld [vmem:[#allocation7 + $0x130] ss:$8 sps:$4 sm:$0xff]  }
 0x5b7   : > { %v15888_v33 = vpop.eup %15887  ;;  %15905 = vrcp.f32 %v6453_v14  ;;  %v6461_v23 = vadd.f32 1.0, %v15886_v21  ;;  %v20084_v59 = vadd.f32 %v5653_v18, %v19978_v63  ;;  %v5655_v46 = vpop.f32.mrb[149].mxu0  ;;  %7879 = vmatprep.subr.bf16.mxu1 %v14729_v61  ;;  %v14735_v21 = vld [vmem:[#allocation7 + $0x144] ss:$8 sps:$4 sm:$0xff]  }
 0x5b8   : > { %15907 = vrcp.f32 %v6454_v39  ;;  %v6462_v17 = vadd.f32 1.0, %v15888_v33  ;;  %v20087_v49 = vadd.f32 %v5655_v46, %v19982_v56  ;;  %v5657_v29 = vpop.f32.mrb[150].mxu0  ;;  %7804 = vmatprep.mubr.bf16.mxu1 %v6926_v43 }
 0x5b9   : > { %v15890_v30 = vpop.eup %15889  ;;  %15909 = vrcp.f32 %v6461_v23  ;;  %v13281_v25 = vmul.f32 -1.442695, %v20084_v59  ;;  %v20091_v62 = vadd.f32 %v5657_v29, %v19978_v63  ;;  %v5659_v57 = vpop.f32.mrb[151].mxu0  ;;  %7805 = vmatmul.mubr.bf16.gmra.mrb[68].mxu1 %v6925_v36 }
 0x5ba   : > { %v15892_v8 = vpop.eup %15891  ;;  %15911 = vrcp.f32 %v6462_v17  ;;  %v13282_v61 = vmul.f32 -1.442695, %v20087_v49  ;;  %v20095_v51 = vadd.f32 %v5659_v57, %v19982_v56  ;;  %7880 = vmatpush1.bf16.msra.mxu1 %v14727_v16  ;;  %v6821_v18 = vmul.f32 %v15890_v30, %v20023_v5  ;;  %v14733_v30 = vld [vmem:[#allocation7 + $0x140] ss:$8 sps:$4 sm:$0xff]  }
 0x5bb   : > { %v15894_v60 = vpop.eup %15893  ;;  %15913 = vpow2.f32 %v13281_v25  ;;  %v13289_v14 = vmul.f32 -1.442695, %v20091_v62  ;;  %7881 = vmatprep.subr.bf16.mxu1 %v14732_v22  ;;  %v6822_v23 = vmul.f32 %v15892_v8, %v20026_v40 }
 0x5bc   : > { %v15896_v39 = vpop.eup %15895  ;;  %v6829_v36 = vmul.f32 %v15894_v60, %v20030_v58  ;;  %15915 = vpow2.f32 %v13282_v61  ;;  %v13290_v43 = vmul.f32 -1.442695, %v20095_v51 }
 0x5bd   : > { %v15898_v33 = vpop.eup %15897  ;;  %v6830_v16 = vmul.f32 %v15896_v39, %v20034_v32  ;;  %15917 = vpow2.f32 %v13289_v14  ;;  %v14738_v32 = vld [vmem:[#allocation7 + $0x154] ss:$8 sps:$4 sm:$0xff]  }
 0x5be   : > { %v15900_v46 = vpop.eup %15899  ;;  %v6469_v17 = vadd.f32 1.0, %v15898_v33  ;;  %15919 = vpow2.f32 %v13290_v43  ;;  %7882 = vmatpush1.bf16.msra.mxu1 %v14730_v31  ;;  %v6933_v22 = vpack.c.bf16 %v6829_v36, %v6821_v18 }
 0x5bf   : > { %v15902_v29 = vpop.eup %15901  ;;  %v6470_v25 = vadd.f32 1.0, %v15900_v46  ;;  %v5663_v57 = vpop.f32.mrb[152].mxu0  ;;  %v6934_v5 = vpack.c.bf16 %v6830_v16, %v6822_v23  ;;  %7883 = vmatprep.subr.bf16.mxu1 %v14735_v21  ;;  %v14736_v46 = vld [vmem:[#allocation7 + $0x150] ss:$8 sps:$4 sm:$0xff]  }
 0x5c0   : > { %v15904_v58 = vpop.eup %15903  ;;  %15921 = vrcp.f32 %v6469_v17  ;;  %v6477_v61 = vadd.f32 1.0, %v15902_v29  ;;  %v20104_v60 = vadd.f32 %v5663_v57, %v19978_v63  ;;  %v5665_v40 = vpop.f32.mrb[153].mxu0 }
 0x5c1   : > { %v15906_v8 = vpop.eup %15905  ;;  %15923 = vrcp.f32 %v6470_v25  ;;  %v6478_v14 = vadd.f32 1.0, %v15904_v58  ;;  %v20107_v31 = vadd.f32 %v5665_v40, %v19982_v56  ;;  %v5667_v39 = vpop.f32.mrb[154].mxu0  ;;  %7814 = vmatprep.mubr.bf16.mxu1 %v6934_v5  ;;  %v14741_v5 = vld [vmem:[#allocation7 + $0x164] ss:$8 sps:$4 sm:$0xff]  }
 0x5c2   : > { %v15908_v18 = vpop.eup %15907  ;;  %15925 = vrcp.f32 %v6477_v61  ;;  %v13297_v21 = vmul.f32 -1.442695, %v20104_v60  ;;  %v20111_v36 = vadd.f32 %v5667_v39, %v19978_v63  ;;  %v5669_v43 = vpop.f32.mrb[155].mxu0  ;;  %7815 = vmatmul.mubr.bf16.gmra.mrb[72].mxu1 %v6933_v22  ;;  %v6837_v29 = vmul.f32 %v15906_v8, %v20041_v34 }
 0x5c3   : > { %v15910_v33 = vpop.eup %15909  ;;  %15927 = vrcp.f32 %v6478_v14  ;;  %v13298_v23 = vmul.f32 -1.442695, %v20107_v31  ;;  %v20115_v16 = vadd.f32 %v5669_v43, %v19982_v56  ;;  %7884 = vmatpush1.bf16.msra.mxu1 %v14733_v30  ;;  %v6838_v58 = vmul.f32 %v15908_v18, %v20044_v2  ;;  %v14744_v18 = vld [vmem:[#allocation7 + $0x174] ss:$8 sps:$4 sm:$0xff]  }
 0x5c4   : > { %v15912_v17 = vpop.eup %15911  ;;  %v6845_v25 = vmul.f32 %v15910_v33, %v20048_v7  ;;  %15929 = vpow2.f32 %v13297_v21  ;;  %v13305_v57 = vmul.f32 -1.442695, %v20111_v36  ;;  %7885 = vmatprep.subr.bf16.mxu1 %v14738_v32  ;;  %v14739_v32 = vld [vmem:[#allocation7 + $0x160] ss:$8 sps:$4 sm:$0xff]  }
 0x5c5   : > { %v15914_v22 = vpop.eup %15913  ;;  %v6846_v61 = vmul.f32 %v15912_v17, %v20052_v55  ;;  %15931 = vpow2.f32 %v13298_v23  ;;  %v13306_v40 = vmul.f32 -1.442695, %v20115_v16 }
 0x5c6   : > { %v15916_v30 = vpop.eup %15915  ;;  %v6485_v14 = vadd.f32 1.0, %v15914_v22  ;;  %15933 = vpow2.f32 %v13305_v57  ;;  %v6941_v39 = vpack.c.bf16 %v6845_v25, %v6837_v29 }
 0x5c7   : > { %v15918_v34 = vpop.eup %15917  ;;  %v6486_v8 = vadd.f32 1.0, %v15916_v30  ;;  %15935 = vpow2.f32 %v13306_v40  ;;  %v5673_v7 = vpop.f32.mrb[156].mxu0  ;;  %7886 = vmatpush1.bf16.msra.mxu1 %v14736_v46  ;;  %v6942_v21 = vpack.c.bf16 %v6846_v61, %v6838_v58  ;;  %v14742_v40 = vld [vmem:[#allocation7 + $0x170] ss:$8 sps:$4 sm:$0xff]  }
 0x5c8   : > { %v15920_v43 = vpop.eup %15919  ;;  %15937 = vrcp.f32 %v6485_v14  ;;  %v6493_v33 = vadd.f32 1.0, %v15918_v34  ;;  %v20124_v2 = vadd.f32 %v5673_v7, %v19978_v63  ;;  %v5675_v55 = vpop.f32.mrb[157].mxu0  ;;  %7887 = vmatprep.subr.bf16.mxu1 %v14741_v5  ;;  %v22597_v34 = vld [vmem:[#allocation68_spill] sm:$0xff] }
 0x5c9   : > { %15939 = vrcp.f32 %v6486_v8  ;;  %v6494_v23 = vadd.f32 1.0, %v15920_v43  ;;  %v20127_v17 = vadd.f32 %v5675_v55, %v19982_v56  ;;  %v5677_v29 = vpop.f32.mrb[158].mxu0  ;;  %7824 = vmatprep.mubr.bf16.mxu1 %v6942_v21  ;;  %v20140_v8 = vrot.slane %v19974_v10, %v22597_v34  ;;  %v14747_v7 = vld [vmem:[#allocation7 + $0x184] ss:$8 sps:$4 sm:$0xff]  }
 0x5ca   : > { %v15922_v25 = vpop.eup %15921  ;;  %15941 = vrcp.f32 %v6493_v33  ;;  %v13313_v46 = vmul.f32 -1.442695, %v20124_v2  ;;  %v20131_v57 = vadd.f32 %v5677_v29, %v19978_v63  ;;  %v5679_v22 = vpop.f32.mrb[159].mxu0  ;;  %7825 = vmatmul.mubr.bf16.gmra.mrb[76].mxu1 %v6941_v39  ;;  %v22598_v63 = vld [vmem:[#allocation69_spill] sm:$0xff] }
 0x5cb   : > { %v15924_v58 = vpop.eup %15923  ;;  %15943 = vrcp.f32 %v6494_v23  ;;  %v13314_v5 = vmul.f32 -1.442695, %v20127_v17  ;;  %v20135_v61 = vadd.f32 %v5679_v22, %v19982_v56  ;;  %7888 = vmatpush1.bf16.msra.mxu1 %v14739_v32  ;;  %v20144_v39 = vrot.slane %v19974_v10, %v22598_v63 }
 0x5cc   : > { %v15926_v30 = vpop.eup %15925  ;;  %15945 = vpow2.f32 %v13313_v46  ;;  %v13321_v14 = vmul.f32 -1.442695, %v20131_v57  ;;  %7889 = vmatprep.subr.bf16.mxu1 %v14744_v18  ;;  %v6853_v56 = vmul.f32 %v15922_v25, %v20063_v48  ;;  %v6854_v55 = vmul.f32 %v15924_v58, %v20066_v53 }
 0x5cd   : > { %v15928_v21 = vpop.eup %15927  ;;  %v6861_v32 = vmul.f32 %v15926_v30, %v20070_v28  ;;  %15947 = vpow2.f32 %v13314_v5  ;;  %v13322_v43 = vmul.f32 -1.442695, %v20135_v61  ;;  %v14745_v5 = vld [vmem:[#allocation7 + $0x180] ss:$8 sps:$4 sm:$0xff]  }
 0x5ce   : > { %v15930_v33 = vpop.eup %15929  ;;  %v6862_v23 = vmul.f32 %v15928_v21, %v20074_v0  ;;  %15949 = vpow2.f32 %v13321_v14  ;;  %v14750_v14 = vld [vmem:[#allocation7 + $0x194] ss:$8 sps:$4 sm:$0xff]  }
 0x5cf   : > { %v15932_v18 = vpop.eup %15931  ;;  %v6501_v29 = vadd.f32 1.0, %v15930_v33  ;;  %15951 = vpow2.f32 %v13322_v43  ;;  %v5716_v10 = vpop.f32.mrb[160].mxu0  ;;  %7890 = vmatpush1.bf16.msra.mxu1 %v14742_v40  ;;  %v6949_v46 = vpack.c.bf16 %v6861_v32, %v6853_v56 }
 0x5d0   : > { %v15934_v22 = vpop.eup %15933  ;;  %v6502_v63 = vadd.f32 1.0, %v15932_v18  ;;  %v20152_v48 = vadd.f32 %v5716_v10, %v20140_v8  ;;  %v5718_v28 = vpop.f32.mrb[161].mxu0  ;;  %v6950_v25 = vpack.c.bf16 %v6862_v23, %v6854_v55  ;;  %7891 = vmatprep.subr.bf16.mxu1 %v14747_v7  ;;  %v14748_v18 = vld [vmem:[#allocation7 + $0x190] ss:$8 sps:$4 sm:$0xff]  }
 0x5d1   : > { %v15936_v30 = vpop.eup %15935  ;;  %15953 = vrcp.f32 %v6501_v29  ;;  %v6509_v53 = vadd.f32 1.0, %v15934_v22  ;;  %v20155_v0 = vadd.f32 %v5718_v28, %v20144_v39  ;;  %v5720_v58 = vpop.f32.mrb[162].mxu0 }
 0x5d2   : > { %v15938_v21 = vpop.eup %15937  ;;  %15955 = vrcp.f32 %v6502_v63  ;;  %v6510_v40 = vadd.f32 1.0, %v15936_v30  ;;  %v13203_v56 = vmul.f32 -1.442695, %v20152_v48  ;;  %v20159_v32 = vadd.f32 %v5720_v58, %v20140_v8  ;;  %v5722_v43 = vpop.f32.mrb[163].mxu0  ;;  %7834 = vmatprep.mubr.bf16.mxu1 %v6950_v25  ;;  %v14753_v25 = vld [vmem:[#allocation7 + $0x1a4] ss:$8 sps:$4 sm:$0xff]  }
 0x5d3   : > { %v15940_v33 = vpop.eup %15939  ;;  %15957 = vrcp.f32 %v6509_v53  ;;  %v13204_v7 = vmul.f32 -1.442695, %v20155_v0  ;;  %v20163_v55 = vadd.f32 %v5722_v43, %v20144_v39  ;;  %7835 = vmatmul.mubr.bf16.gmra.mrb[80].mxu1 %v6949_v46  ;;  %v6869_v10 = vmul.f32 %v15938_v21, %v20084_v59 }
 0x5d4   : > { %v15942_v23 = vpop.eup %15941  ;;  %15959 = vrcp.f32 %v6510_v40  ;;  %v13211_v63 = vmul.f32 -1.442695, %v20159_v32  ;;  %7892 = vmatpush1.bf16.msra.mxu1 %v14745_v5  ;;  %v6870_v53 = vmul.f32 %v15940_v33, %v20087_v49 }
 0x5d5   : > { %v15944_v29 = vpop.eup %15943  ;;  %v6877_v22 = vmul.f32 %v15942_v23, %v20091_v62  ;;  %15961 = vpow2.f32 %v13203_v56  ;;  %v13212_v28 = vmul.f32 -1.442695, %v20163_v55  ;;  %7893 = vmatprep.subr.bf16.mxu1 %v14750_v14  ;;  %v14751_v56 = vld [vmem:[#allocation7 + $0x1a0] ss:$8 sps:$4 sm:$0xff]  }
 0x5d6   : > { %v15946_v30 = vpop.eup %15945  ;;  %v6878_v46 = vmul.f32 %v15944_v29, %v20095_v51  ;;  %15963 = vpow2.f32 %v13204_v7  ;;  %v14756_v7 = vld [vmem:[#allocation7 + $0x1b4] ss:$8 sps:$4 sm:$0xff]  }
 0x5d7   : > { %v15948_v58 = vpop.eup %15947  ;;  %v6517_v40 = vadd.f32 1.0, %v15946_v30  ;;  %15965 = vpow2.f32 %v13211_v63  ;;  %v5726_v5 = vpop.f32.mrb[164].mxu0  ;;  %v6957_v43 = vpack.c.bf16 %v6877_v22, %v6869_v10 }
 0x5d8   : > { %v15950_v34 = vpop.eup %15949  ;;  %v6518_v59 = vadd.f32 1.0, %v15948_v58  ;;  %15967 = vpow2.f32 %v13212_v28  ;;  %v20172_v62 = vadd.f32 %v5726_v5, %v20140_v8  ;;  %v5728_v21 = vpop.f32.mrb[165].mxu0  ;;  %7894 = vmatpush1.bf16.msra.mxu1 %v14748_v18  ;;  %v6958_v14 = vpack.c.bf16 %v6878_v46, %v6870_v53  ;;  %v14754_v53 = vld [vmem:[#allocation7 + $0x1b0] ss:$8 sps:$4 sm:$0xff]  }
 0x5d9   : > { %v15952_v23 = vpop.eup %15951  ;;  %15969 = vrcp.f32 %v6517_v40  ;;  %v6525_v49 = vadd.f32 1.0, %v15950_v34  ;;  %v20175_v51 = vadd.f32 %v5728_v21, %v20144_v39  ;;  %v5730_v33 = vpop.f32.mrb[166].mxu0  ;;  %7895 = vmatprep.subr.bf16.mxu1 %v14753_v25  ;;  %v14759_v40 = vld [vmem:[#allocation7 + $0x1c4] ss:$8 sps:$4 sm:$0xff]  }
 0x5da   : > { %15971 = vrcp.f32 %v6518_v59  ;;  %v6526_v63 = vadd.f32 1.0, %v15952_v23  ;;  %v13219_v29 = vmul.f32 -1.442695, %v20172_v62  ;;  %v20179_v10 = vadd.f32 %v5730_v33, %v20140_v8  ;;  %v5732_v22 = vpop.f32.mrb[167].mxu0  ;;  %7844 = vmatprep.mubr.bf16.mxu1 %v6958_v14 }
 0x5db   : > { %v15954_v18 = vpop.eup %15953  ;;  %15973 = vrcp.f32 %v6525_v49  ;;  %v13220_v28 = vmul.f32 -1.442695, %v20175_v51  ;;  %v20183_v34 = vadd.f32 %v5732_v22, %v20144_v39  ;;  %7845 = vmatmul.mubr.bf16.gmra.mrb[84].mxu1 %v6957_v43 }
 0x5dc   : > { %v15956_v30 = vpop.eup %15955  ;;  %15975 = vrcp.f32 %v6526_v63  ;;  %v13227_v25 = vmul.f32 -1.442695, %v20179_v10  ;;  %7896 = vmatpush1.bf16.msra.mxu1 %v14751_v56  ;;  %v6885_v59 = vmul.f32 %v15954_v18, %v20104_v60 }
 0x5dd   : > { %v15958_v46 = vpop.eup %15957  ;;  %15977 = vpow2.f32 %v13219_v29  ;;  %v13228_v58 = vmul.f32 -1.442695, %v20183_v34  ;;  %7897 = vmatprep.subr.bf16.mxu1 %v14756_v7  ;;  %v6886_v43 = vmul.f32 %v15956_v30, %v20107_v31 }
 0x5de   : > { %v15960_v5 = vpop.eup %15959  ;;  %v6893_v21 = vmul.f32 %v15958_v46, %v20111_v36  ;;  %15979 = vpow2.f32 %v13220_v28  ;;  %v14757_v28 = vld [vmem:[#allocation7 + $0x1c0] ss:$8 sps:$4 sm:$0xff]  }
 0x5df   : > { %v15962_v14 = vpop.eup %15961  ;;  %v6894_v23 = vmul.f32 %v15960_v5, %v20115_v16  ;;  %15981 = vpow2.f32 %v13227_v25  ;;  %v5736_v56 = vpop.f32.mrb[168].mxu0 }
 0x5e0   : > { %v15964_v49 = vpop.eup %15963  ;;  %v6407_v33 = vadd.f32 1.0, %v15962_v14  ;;  %15983 = vpow2.f32 %v13228_v58  ;;  %v20192_v63 = vadd.f32 %v5736_v56, %v20140_v8  ;;  %v5738_v7 = vpop.f32.mrb[169].mxu0  ;;  %7898 = vmatpush1.bf16.msra.mxu1 %v14754_v53  ;;  %v6965_v29 = vpack.c.bf16 %v6893_v21, %v6885_v59  ;;  %v14762_v53 = vld [vmem:[#allocation7 + $0x1d4] ss:$8 sps:$4 sm:$0xff]  }
 0x5e1   : > { %v15966_v60 = vpop.eup %15965  ;;  %v6408_v22 = vadd.f32 1.0, %v15964_v49  ;;  %v20195_v36 = vadd.f32 %v5738_v7, %v20144_v39  ;;  %v5740_v18 = vpop.f32.mrb[170].mxu0  ;;  %v6966_v31 = vpack.c.bf16 %v6894_v23, %v6886_v43  ;;  %7899 = vmatprep.subr.bf16.mxu1 %v14759_v40  ;;  %v14760_v49 = vld [vmem:[#allocation7 + $0x1d0] ss:$8 sps:$4 sm:$0xff]  }
 0x5e2   : > { %v15968_v16 = vpop.eup %15967  ;;  %15985 = vrcp.f32 %v6407_v33  ;;  %v6415_v30 = vadd.f32 1.0, %v15966_v60  ;;  %v13235_v25 = vmul.f32 -1.442695, %v20192_v63  ;;  %v20199_v46 = vadd.f32 %v5740_v18, %v20140_v8  ;;  %v5742_v58 = vpop.f32.mrb[171].mxu0 }
 0x5e3   : > { %v15970_v5 = vpop.eup %15969  ;;  %15987 = vrcp.f32 %v6408_v22  ;;  %v6416_v59 = vadd.f32 1.0, %v15968_v16  ;;  %v13236_v21 = vmul.f32 -1.442695, %v20195_v36  ;;  %v20203_v14 = vadd.f32 %v5742_v58, %v20144_v39  ;;  %7854 = vmatprep.mubr.bf16.mxu1 %v6966_v31  ;;  %v14765_v22 = vld [vmem:[#allocation7 + $0x1e4] ss:$8 sps:$4 sm:$0xff]  }
 0x5e4   : > { %v15972_v40 = vpop.eup %15971  ;;  %15989 = vrcp.f32 %v6415_v30  ;;  %v13243_v43 = vmul.f32 -1.442695, %v20199_v46  ;;  %7855 = vmatmul.mubr.bf16.gmra.mrb[88].mxu1 %v6965_v29  ;;  %v6901_v7 = vmul.f32 %v15970_v5, %v20124_v2 }
 0x5e5   : > { %v15974_v23 = vpop.eup %15973  ;;  %15991 = vrcp.f32 %v6416_v59  ;;  %v13244_v56 = vmul.f32 -1.442695, %v20203_v14  ;;  %7900 = vmatpush1.bf16.msra.mxu1 %v14757_v28  ;;  %v6902_v31 = vmul.f32 %v15972_v40, %v20127_v17 }
 0x5e6   : > { %v15976_v33 = vpop.eup %15975  ;;  %v6909_v60 = vmul.f32 %v15974_v23, %v20131_v57  ;;  %15993 = vpow2.f32 %v13235_v25  ;;  %7901 = vmatprep.subr.bf16.mxu1 %v14762_v53 }
 0x5e7   : > { %v15978_v18 = vpop.eup %15977  ;;  %v6910_v16 = vmul.f32 %v15976_v33, %v20135_v61  ;;  %15995 = vpow2.f32 %v13236_v21  ;;  %v5746_v29 = vpop.f32.mrb[172].mxu0  ;;  %v14763_v61 = vld [vmem:[#allocation7 + $0x1e0] ss:$8 sps:$4 sm:$0xff]  }
 0x5e8   : > { %v15980_v30 = vpop.eup %15979  ;;  %v6423_v58 = vadd.f32 1.0, %v15978_v18  ;;  %15997 = vpow2.f32 %v13243_v43  ;;  %v20212_v28 = vadd.f32 %v5746_v29, %v20140_v8  ;;  %v5748_v59 = vpop.f32.mrb[173].mxu0  ;;  %v6973_v2 = vpack.c.bf16 %v6909_v60, %v6901_v7  ;;  %v14768_v7 = vld [vmem:[#allocation7 + $0x1f4] ss:$8 sps:$4 sm:$0xff]  }
 0x5e9   : > { %v15982_v5 = vpop.eup %15981  ;;  %v6424_v57 = vadd.f32 1.0, %v15980_v30  ;;  %15999 = vpow2.f32 %v13244_v56  ;;  %v20215_v25 = vadd.f32 %v5748_v59, %v20144_v39  ;;  %7902 = vmatpush1.bf16.msra.mxu1 %v14760_v49  ;;  %v5750_v17 = vpop.f32.mrb[174].mxu0  ;;  %v6974_v53 = vpack.c.bf16 %v6910_v16, %v6902_v31 }
 0x5ea   : > { %v15984_v21 = vpop.eup %15983  ;;  %16001 = vrcp.f32 %v6423_v58  ;;  %v6431_v40 = vadd.f32 1.0, %v15982_v5  ;;  %v13251_v43 = vmul.f32 -1.442695, %v20212_v28  ;;  %v20219_v23 = vadd.f32 %v5750_v17, %v20140_v8  ;;  %v5752_v33 = vpop.f32.mrb[175].mxu0  ;;  %7903 = vmatprep.subr.bf16.mxu1 %v14765_v22  ;;  %v14766_v22 = vld [vmem:[#allocation7 + $0x1f0] ss:$8 sps:$4 sm:$0xff]  }
 0x5eb   : > { %16003 = vrcp.f32 %v6424_v57  ;;  %v6432_v56 = vadd.f32 1.0, %v15984_v21  ;;  %v13252_v60 = vmul.f32 -1.442695, %v20215_v25  ;;  %v20223_v49 = vadd.f32 %v5752_v33, %v20144_v39  ;;  %7864 = vmatprep.mubr.bf16.mxu1 %v6974_v53  ;;  %v14771_v58 = vld [vmem:[#allocation7 + $0x204] ss:$8 sps:$4 sm:$0xff]  }
 0x5ec   : > { %v15986_v18 = vpop.eup %15985  ;;  %16005 = vrcp.f32 %v6431_v40  ;;  %v13259_v31 = vmul.f32 -1.442695, %v20219_v23  ;;  %7865 = vmatmul.mubr.bf16.gmra.mrb[92].mxu1 %v6973_v2 }
 0x5ed   : > { %v15988_v16 = vpop.eup %15987  ;;  %16007 = vrcp.f32 %v6432_v56  ;;  %v13260_v29 = vmul.f32 -1.442695, %v20223_v49  ;;  %7904 = vmatpush1.bf16.msra.mxu1 %v14763_v61  ;;  %v6791_v5 = vmul.f32 %v15986_v18, %v20152_v48 }
 0x5ee   : > { %v15990_v30 = vpop.eup %15989  ;;  %16009 = vpow2.f32 %v13251_v43  ;;  %7905 = vmatprep.subr.bf16.mxu1 %v14768_v7  ;;  %v6792_v2 = vmul.f32 %v15988_v16, %v20155_v0 }
 0x5ef   : > { %v15992_v59 = vpop.eup %15991  ;;  %v6799_v57 = vmul.f32 %v15990_v30, %v20159_v32  ;;  %16011 = vpow2.f32 %v13252_v60  ;;  %v5756_v17 = vpop.f32.mrb[176].mxu0 }
 0x5f0   : > { %v15994_v53 = vpop.eup %15993  ;;  %v6800_v21 = vmul.f32 %v15992_v59, %v20163_v55  ;;  %16013 = vpow2.f32 %v13259_v31  ;;  %v20232_v61 = vadd.f32 %v5756_v17, %v20140_v8  ;;  %v5758_v40 = vpop.f32.mrb[177].mxu0  ;;  %v14769_v31 = vld [vmem:[#allocation7 + $0x200] ss:$8 sps:$4 sm:$0xff]  }
 0x5f1   : > { %v15996_v43 = vpop.eup %15995  ;;  %v6919_v33 = vpack.c.bf16 %v6799_v57, %v6791_v5  ;;  %v6439_v7 = vadd.f32 1.0, %v15994_v53  ;;  %16015 = vpow2.f32 %v13260_v29  ;;  %v20235_v48 = vadd.f32 %v5758_v40, %v20144_v39  ;;  %7906 = vmatpush1.bf16.msra.mxu1 %v14766_v22  ;;  %v5760_v32 = vpop.f32.mrb[178].mxu0  ;;  %v14774_v5 = vld [vmem:[#allocation7 + $0x214] ss:$8 sps:$4 sm:$0xff]   ;;  %v14772_v40 = vld [vmem:[#allocation7 + $0x210] ss:$8 sps:$4 sm:$0xff]  }
 0x5f2   : > { %v15998_v56 = vpop.eup %15997  ;;  %v6440_v60 = vadd.f32 1.0, %v15996_v43  ;;  %v20238_v0 = vadd.f32 %v5760_v32, %v20140_v8  ;;  %v5762_v55 = vpop.f32.mrb[179].mxu0  ;;  %v6920_v18 = vpack.c.bf16 %v6800_v21, %v6792_v2  ;;  %7988 = vmatprep.subr.bf16.mxu1 %v14771_v58  ;;  %v13267_v59 = vmul.f32 -1.442695, %v20232_v61 }
 0x5f3   : > { %v16000_v16 = vpop.eup %15999  ;;  %16017 = vrcp.f32 %v6439_v7  ;;  %v6447_v30 = vadd.f32 1.0, %v15998_v56  ;;  %v20242_v29 = vadd.f32 %v5762_v55, %v20144_v39  ;;  %v13268_v17 = vmul.f32 -1.442695, %v20235_v48 }
 0x5f4   : > { %v16002_v22 = vpop.eup %16001  ;;  %16019 = vrcp.f32 %v6440_v60  ;;  %v6448_v57 = vadd.f32 1.0, %v16000_v16  ;;  %7907 = vmatprep.mubr.bf16.mxu1 %v6920_v18  ;;  %v13275_v2 = vmul.f32 -1.442695, %v20238_v0  ;;  %v14777_v60 = vld [vmem:[#allocation7 + $0x224] ss:$8 sps:$4 sm:$0xff]  }
 0x5f5   : > { %v16004_v53 = vpop.eup %16003  ;;  %16021 = vrcp.f32 %v6447_v30  ;;  %7908 = vmatmul.mubr.bf16.vlgmr.msra.gmra.mrb[64].mxu1 %v6919_v33  ;;  %v13276_v21 = vmul.f32 -1.442695, %v20242_v29  ;;  %v6807_v7 = vmul.f32 %v16002_v22, %v20172_v62 }
 0x5f6   : > { %v16006_v58 = vpop.eup %16005  ;;  %16023 = vrcp.f32 %v6448_v57  ;;  %7989 = vmatpush1.bf16.msra.mxu1 %v14769_v31 }
 0x5f7   : > { %v16008_v43 = vpop.eup %16007  ;;  %v6815_v32 = vmul.f32 %v16006_v58, %v20179_v10  ;;  %16025 = vpow2.f32 %v13267_v59  ;;  %v5766_v56 = vpop.f32.mrb[180].mxu0  ;;  %7990 = vmatprep.subr.bf16.mxu1 %v14774_v5  ;;  %v6808_v5 = vmul.f32 %v16004_v53, %v20175_v51  ;;  %v14775_v58 = vld [vmem:[#allocation7 + $0x220] ss:$8 sps:$4 sm:$0xff]  }
 0x5f8   : > { %v16010_v55 = vpop.eup %16009  ;;  %v6816_v18 = vmul.f32 %v16008_v43, %v20183_v34  ;;  %16027 = vpow2.f32 %v13268_v17  ;;  %v20251_v33 = vadd.f32 %v5766_v56, %v20140_v8  ;;  %v5768_v16 = vpop.f32.mrb[181].mxu0 }
 0x5f9   : > { %v16012_v30 = vpop.eup %16011  ;;  %v6455_v31 = vadd.f32 1.0, %v16010_v55  ;;  %16029 = vpow2.f32 %v13275_v2  ;;  %v20254_v57 = vadd.f32 %v5768_v16, %v20144_v39  ;;  %v5770_v62 = vpop.f32.mrb[182].mxu0  ;;  %v6927_v10 = vpack.c.bf16 %v6815_v32, %v6807_v7  ;;  %v14780_v7 = vld [vmem:[#allocation7 + $0x234] ss:$8 sps:$4 sm:$0xff]  }
 0x5fa   : > { %v16014_v59 = vpop.eup %16013  ;;  %v6456_v22 = vadd.f32 1.0, %v16012_v30  ;;  %16031 = vpow2.f32 %v13276_v21  ;;  %7991 = vmatpush1.bf16.msra.mxu1 %v14772_v40  ;;  %v20258_v34 = vadd.f32 %v5770_v62, %v20140_v8  ;;  %v5772_v17 = vpop.f32.mrb[183].mxu0  ;;  %v13283_v2 = vmul.f32 -1.442695, %v20251_v33 }
 0x5fb   : > { %v16016_v43 = vpop.eup %16015  ;;  %16033 = vrcp.f32 %v6455_v31  ;;  %v6463_v56 = vadd.f32 1.0, %v16014_v59  ;;  %v20262_v55 = vadd.f32 %v5772_v17, %v20144_v39  ;;  %7992 = vmatprep.subr.bf16.mxu1 %v14777_v60  ;;  %v13284_v53 = vmul.f32 -1.442695, %v20254_v57  ;;  %v14778_v31 = vld [vmem:[#allocation7 + $0x230] ss:$8 sps:$4 sm:$0xff]  }
 0x5fc   : > { %16035 = vrcp.f32 %v6456_v22  ;;  %v6464_v51 = vadd.f32 1.0, %v16016_v43  ;;  %v6928_v21 = vpack.c.bf16 %v6816_v18, %v6808_v5  ;;  %v13291_v32 = vmul.f32 -1.442695, %v20258_v34  ;;  %v14783_v59 = vld [vmem:[#allocation7 + $0x244] ss:$8 sps:$4 sm:$0xff]  }
 0x5fd   : > { %v16018_v40 = vpop.eup %16017  ;;  %16037 = vrcp.f32 %v6463_v56  ;;  %v13292_v30 = vmul.f32 -1.442695, %v20262_v55 }
 0x5fe   : > { %v16020_v16 = vpop.eup %16019  ;;  %16039 = vrcp.f32 %v6464_v51  ;;  %7917 = vmatprep.mubr.bf16.mxu1 %v6928_v21  ;;  %7993 = vmatpush1.bf16.msra.mxu1 %v14775_v58  ;;  %v6823_v51 = vmul.f32 %v16018_v40, %v20192_v63 }
 0x5ff   : > { %v16022_v62 = vpop.eup %16021  ;;  %16041 = vpow2.f32 %v13283_v2  ;;  %7918 = vmatmul.mubr.bf16.gmra.mrb[68].mxu1 %v6927_v10  ;;  %v5776_v60 = vpop.f32.mrb[184].mxu0  ;;  %7994 = vmatprep.subr.bf16.mxu1 %v14780_v7  ;;  %v6824_v56 = vmul.f32 %v16020_v16, %v20195_v36  ;;  %v14786_v16 = vld [vmem:[#allocation7 + $0x254] ss:$8 sps:$4 sm:$0xff]  }
 0x600   : > { %v16024_v22 = vpop.eup %16023  ;;  %v6831_v18 = vmul.f32 %v16022_v62, %v20199_v46  ;;  %16043 = vpow2.f32 %v13284_v53  ;;  %v20269_v5 = vadd.f32 %v5776_v60, %v20140_v8  ;;  %v5778_v17 = vpop.f32.mrb[185].mxu0  ;;  %v14781_v62 = vld [vmem:[#allocation7 + $0x240] ss:$8 sps:$4 sm:$0xff]  }
 0x601   : > { %v16026_v43 = vpop.eup %16025  ;;  %v6832_v58 = vmul.f32 %v16024_v22, %v20203_v14  ;;  %16045 = vpow2.f32 %v13291_v32  ;;  %v20274_v2 = vadd.f32 %v5778_v17, %v20144_v39  ;;  %v5780_v10 = vpop.f32.mrb[186].mxu0 }
 0x602   : > { %v16028_v7 = vpop.eup %16027  ;;  %v6471_v21 = vadd.f32 1.0, %v16026_v43  ;;  %16047 = vpow2.f32 %v13292_v30  ;;  %7995 = vmatpush1.bf16.msra.mxu1 %v14778_v31  ;;  %v20278_v46 = vadd.f32 %v5780_v10, %v20140_v8  ;;  %v5782_v53 = vpop.f32.mrb[187].mxu0  ;;  %v13299_v63 = vmul.f32 -1.442695, %v20269_v5 }
 0x603   : > { %v16030_v60 = vpop.eup %16029  ;;  %v6472_v36 = vadd.f32 1.0, %v16028_v7  ;;  %v20281_v14 = vadd.f32 %v5782_v53, %v20144_v39  ;;  %v6936_v32 = vpack.c.bf16 %v6832_v58, %v6824_v56  ;;  %7996 = vmatprep.subr.bf16.mxu1 %v14783_v59  ;;  %v6935_v40 = vpack.c.bf16 %v6831_v18, %v6823_v51  ;;  %v14784_v56 = vld [vmem:[#allocation7 + $0x250] ss:$8 sps:$4 sm:$0xff]   ;;  %v14789_v18 = vld [vmem:[#allocation7 + $0x264] ss:$8 sps:$4 sm:$0xff]  }
 0x604   : > { %v16032_v22 = vpop.eup %16031  ;;  %16049 = vrcp.f32 %v6471_v21  ;;  %v6479_v17 = vadd.f32 1.0, %v16030_v60  ;;  %v13300_v43 = vmul.f32 -1.442695, %v20274_v2  ;;  %v13307_v7 = vmul.f32 -1.442695, %v20278_v46 }
 0x605   : > { %v16034_v30 = vpop.eup %16033  ;;  %16051 = vrcp.f32 %v6472_v36  ;;  %v6480_v31 = vadd.f32 1.0, %v16032_v22  ;;  %7927 = vmatprep.mubr.bf16.mxu1 %v6936_v32  ;;  %v13308_v58 = vmul.f32 -1.442695, %v20281_v14  ;;  %v20293_v36 = vld [vmem:[%s22181_s10 + $0x1] ss:$4 sm:$0xff] }
 0x606   : > { %v16036_v10 = vpop.eup %16035  ;;  %16053 = vrcp.f32 %v6479_v17  ;;  %7997 = vmatpush1.bf16.msra.mxu1 %v14781_v62  ;;  %v22599_v62 = vld [vmem:[#allocation51_spill] sm:$0xff]  ;;  %v22600_v22 = vld [vmem:[#allocation52_spill] sm:$0xff] }
 0x607   : > { %v16038_v59 = vpop.eup %16037  ;;  %16055 = vrcp.f32 %v6480_v31  ;;  %7928 = vmatmul.mubr.bf16.gmra.mrb[72].mxu1 %v6935_v40  ;;  %v5786_v21 = vpop.f32.mrb[188].mxu0  ;;  %7998 = vmatprep.subr.bf16.mxu1 %v14786_v16  ;;  %v20297_v32 = vrot.slane %v20293_v36, %v22599_v62  ;;  %v20301_v17 = vrot.slane %v20293_v36, %v22600_v22  ;;  %v6840_v4 = vmul.f32 %v16036_v10, %v20215_v25 }
 0x608   : > { %v16040_v51 = vpop.eup %16039  ;;  %16057 = vpow2.f32 %v13299_v63  ;;  %v20288_v53 = vadd.f32 %v5786_v21, %v20140_v8  ;;  %v5788_v60 = vpop.f32.mrb[189].mxu0  ;;  %v6847_v63 = vmul.f32 %v16038_v59, %v20219_v23  ;;  %v6839_v23 = vmul.f32 %v16034_v30, %v20212_v28  ;;  %v14792_v59 = vld [vmem:[#allocation7 + $0x274] ss:$8 sps:$4 sm:$0xff]  }
 0x609   : > { %v16042_v16 = vpop.eup %16041  ;;  %v6848_v40 = vmul.f32 %v16040_v51, %v20223_v49  ;;  %16059 = vpow2.f32 %v13300_v43  ;;  %v20306_v31 = vadd.f32 %v5788_v60, %v20144_v39  ;;  %v5790_v21 = vpop.f32.mrb[190].mxu0 }
 0x60a   : > { %v16044_v50 = vpop.eup %16043  ;;  %v6487_v38 = vadd.f32 1.0, %v16042_v16  ;;  %16061 = vpow2.f32 %v13307_v7  ;;  %7999 = vmatpush1.bf16.msra.mxu1 %v14784_v56  ;;  %v20310_v62 = vadd.f32 %v5790_v21, %v20140_v8  ;;  %v5792_v22 = vpop.f32.mrb[191].mxu0  ;;  %v13315_v10 = vmul.f32 -1.442695, %v20288_v53 }
 0x60b   : > { %v16046_v1 = vpop.eup %16045  ;;  %v6488_v49 = vadd.f32 1.0, %v16044_v50  ;;  %16063 = vpow2.f32 %v13308_v58  ;;  %v20314_v43 = vadd.f32 %v5792_v22, %v20144_v39  ;;  %8000 = vmatprep.subr.bf16.mxu1 %v14789_v18  ;;  %v6944_v7 = vpack.c.bf16 %v6848_v40, %v6840_v4  ;;  %v14790_v39 = vld [vmem:[#allocation7 + $0x270] ss:$8 sps:$4 sm:$0xff]   ;;  %v14795_v4 = vld [vmem:[#allocation7 + $0x284] ss:$8 sps:$4 sm:$0xff]  }
 0x60c   : > { %v16048_v51 = vpop.eup %16047  ;;  %16065 = vrcp.f32 %v6487_v38  ;;  %v6495_v25 = vadd.f32 1.0, %v16046_v1  ;;  %v13316_v56 = vmul.f32 -1.442695, %v20306_v31  ;;  %v6943_v60 = vpack.c.bf16 %v6847_v63, %v6839_v23 }
 0x60d   : > { %16067 = vrcp.f32 %v6488_v49  ;;  %v6496_v8 = vadd.f32 1.0, %v16048_v51  ;;  %v13323_v50 = vmul.f32 -1.442695, %v20310_v62  ;;  %7937 = vmatprep.mubr.bf16.mxu1 %v6944_v7  ;;  %v13324_v38 = vmul.f32 -1.442695, %v20314_v43 }
 0x60e   : > { %v16050_v16 = vpop.eup %16049  ;;  %16069 = vrcp.f32 %v6495_v25  ;;  %8001 = vmatpush1.bf16.msra.mxu1 %v14787_v35 }
 0x60f   : > { %v16052_v28 = vpop.eup %16051  ;;  %16071 = vrcp.f32 %v6496_v8  ;;  %7938 = vmatmul.mubr.bf16.gmra.mrb[76].mxu1 %v6943_v60  ;;  %v5829_v1 = vpop.f32.mrb[192].mxu0  ;;  %8002 = vmatprep.subr.bf16.mxu1 %v14792_v59 }
 0x610   : > { %v16054_v30 = vpop.eup %16053  ;;  %16073 = vpow2.f32 %v13315_v10  ;;  %v20321_v58 = vadd.f32 %v5829_v1, %v20297_v32  ;;  %v5831_v18 = vpop.f32.mrb[193].mxu0  ;;  %v6856_v63 = vmul.f32 %v16052_v28, %v20235_v48  ;;  %v14793_v10 = vld [vmem:[#allocation7 + $0x280] ss:$8 sps:$4 sm:$0xff]  }
 0x611   : > { %v16056_v22 = vpop.eup %16055  ;;  %v6863_v35 = vmul.f32 %v16054_v30, %v20238_v0  ;;  %16075 = vpow2.f32 %v13316_v56  ;;  %v20326_v40 = vadd.f32 %v5831_v18, %v20301_v17  ;;  %v5833_v21 = vpop.f32.mrb[194].mxu0  ;;  %v6855_v0 = vmul.f32 %v16050_v16, %v20232_v61  ;;  %v14798_v56 = vld [vmem:[#allocation7 + $0x294] ss:$8 sps:$4 sm:$0xff]  }
 0x612   : > { %v16058_v23 = vpop.eup %16057  ;;  %v6864_v49 = vmul.f32 %v16056_v22, %v20242_v29  ;;  %16077 = vpow2.f32 %v13323_v50  ;;  %v13205_v59 = vmul.f32 -1.442695, %v20321_v58  ;;  %8003 = vmatpush1.bf16.msra.mxu1 %v14790_v39  ;;  %v20331_v51 = vadd.f32 %v5833_v21, %v20297_v32  ;;  %v5835_v25 = vpop.f32.mrb[195].mxu0  ;;  %v14801_v21 = vld [vmem:[#allocation7 + $0x2a4] ss:$8 sps:$4 sm:$0xff]  }
 0x613   : > { %v16060_v48 = vpop.eup %16059  ;;  %v6503_v7 = vadd.f32 1.0, %v16058_v23  ;;  %16079 = vpow2.f32 %v13324_v38  ;;  %v20335_v8 = vadd.f32 %v5835_v25, %v20301_v17  ;;  %8004 = vmatprep.subr.bf16.mxu1 %v14795_v4  ;;  %v13206_v1 = vmul.f32 -1.442695, %v20326_v40  ;;  %v14796_v38 = vld [vmem:[#allocation7 + $0x290] ss:$8 sps:$4 sm:$0xff]  }
 0x614   : > { %v16062_v29 = vpop.eup %16061  ;;  %v6504_v60 = vadd.f32 1.0, %v16060_v48  ;;  %16081 = vpow2.f32 %v13205_v59  ;;  %v6952_v50 = vpack.c.bf16 %v6864_v49, %v6856_v63  ;;  %v6951_v30 = vpack.c.bf16 %v6863_v35, %v6855_v0 }
 0x615   : > { %v16064_v39 = vpop.eup %16063  ;;  %16083 = vrcp.f32 %v6503_v7  ;;  %v6511_v28 = vadd.f32 1.0, %v16062_v29  ;;  %v13213_v16 = vmul.f32 -1.442695, %v20331_v51  ;;  %v13214_v22 = vmul.f32 -1.442695, %v20335_v8 }
 0x616   : > { %v16066_v18 = vpop.eup %16065  ;;  %16085 = vrcp.f32 %v6504_v60  ;;  %v6512_v61 = vadd.f32 1.0, %v16064_v39  ;;  %7947 = vmatprep.mubr.bf16.mxu1 %v6952_v50  ;;  %8005 = vmatpush1.bf16.msra.mxu1 %v14793_v10  ;;  %v14799_v50 = vld [vmem:[#allocation7 + $0x2a0] ss:$8 sps:$4 sm:$0xff]  }
 0x617   : > { %v16068_v4 = vpop.eup %16067  ;;  %16087 = vrcp.f32 %v6511_v28  ;;  %7948 = vmatmul.mubr.bf16.gmra.mrb[80].mxu1 %v6951_v30  ;;  %v5839_v63 = vpop.f32.mrb[196].mxu0  ;;  %8006 = vmatprep.subr.bf16.mxu1 %v14798_v56  ;;  %v6871_v28 = vmul.f32 %v16066_v18, %v20251_v33 }
 0x618   : > { %v16070_v23 = vpop.eup %16069  ;;  %16089 = vrcp.f32 %v6512_v61  ;;  %v20341_v35 = vadd.f32 %v5839_v63, %v20297_v32  ;;  %v5841_v49 = vpop.f32.mrb[197].mxu0  ;;  %v6872_v25 = vmul.f32 %v16068_v4, %v20254_v57 }
 0x619   : > { %v16072_v59 = vpop.eup %16071  ;;  %v6879_v10 = vmul.f32 %v16070_v23, %v20258_v34  ;;  %16091 = vpow2.f32 %v13206_v1  ;;  %v5843_v48 = vpop.f32.mrb[198].mxu0  ;;  %v20348_v29 = vadd.f32 %v5841_v49, %v20301_v17  ;;  %v14804_v1 = vld [vmem:[#allocation7 + $0x2b4] ss:$8 sps:$4 sm:$0xff]  }
 0x61a   : > { %v16074_v0 = vpop.eup %16073  ;;  %v6880_v7 = vmul.f32 %v16072_v59, %v20262_v55  ;;  %16093 = vpow2.f32 %v13213_v16  ;;  %v13221_v56 = vmul.f32 -1.442695, %v20341_v35  ;;  %8007 = vmatpush1.bf16.msra.mxu1 %v14796_v38  ;;  %v5845_v60 = vpop.f32.mrb[199].mxu0  ;;  %v20352_v34 = vadd.f32 %v5843_v48, %v20297_v32 }
 0x61b   : > { %v16076_v39 = vpop.eup %16075  ;;  %v6519_v57 = vadd.f32 1.0, %v16074_v0  ;;  %16095 = vpow2.f32 %v13214_v22  ;;  %8008 = vmatprep.subr.bf16.mxu1 %v14801_v21  ;;  %v20355_v61 = vadd.f32 %v5845_v60, %v20301_v17  ;;  %v6959_v63 = vpack.c.bf16 %v6879_v10, %v6871_v28  ;;  %v14802_v22 = vld [vmem:[#allocation7 + $0x2b0] ss:$8 sps:$4 sm:$0xff]  }
 0x61c   : > { %v16078_v55 = vpop.eup %16077  ;;  %v6520_v30 = vadd.f32 1.0, %v16076_v39  ;;  %16097 = vpow2.f32 %v13221_v56  ;;  %v6960_v16 = vpack.c.bf16 %v6880_v7, %v6872_v25  ;;  %v13222_v18 = vmul.f32 -1.442695, %v20348_v29  ;;  %v14807_v25 = vld [vmem:[#allocation7 + $0x2c4] ss:$8 sps:$4 sm:$0xff]  }
 0x61d   : > { %v16080_v38 = vpop.eup %16079  ;;  %16099 = vrcp.f32 %v6519_v57  ;;  %v6527_v4 = vadd.f32 1.0, %v16078_v55  ;;  %v13229_v59 = vmul.f32 -1.442695, %v20352_v34  ;;  %v13230_v10 = vmul.f32 -1.442695, %v20355_v61 }
 0x61e   : > { %v16082_v23 = vpop.eup %16081  ;;  %16101 = vrcp.f32 %v6520_v30  ;;  %v6528_v33 = vadd.f32 1.0, %v16080_v38  ;;  %7957 = vmatprep.mubr.bf16.mxu1 %v6960_v16  ;;  %8009 = vmatpush1.bf16.msra.mxu1 %v14799_v50  ;;  %v14805_v16 = vld [vmem:[#allocation7 + $0x2c0] ss:$8 sps:$4 sm:$0xff]  }
 0x61f   : > { %v16084_v21 = vpop.eup %16083  ;;  %16103 = vrcp.f32 %v6527_v4  ;;  %v6409_v49 = vadd.f32 1.0, %v16082_v23  ;;  %7958 = vmatmul.mubr.bf16.gmra.mrb[84].mxu1 %v6959_v63  ;;  %v5849_v48 = vpop.f32.mrb[200].mxu0  ;;  %8010 = vmatprep.subr.bf16.mxu1 %v14804_v1 }
 0x620   : > { %v16086_v0 = vpop.eup %16085  ;;  %16105 = vrcp.f32 %v6528_v33  ;;  %v20361_v7 = vadd.f32 %v5849_v48, %v20297_v32  ;;  %v5851_v56 = vpop.f32.mrb[201].mxu0  ;;  %v6887_v50 = vmul.f32 %v16084_v21, %v20269_v5 }
 0x621   : > { %v16088_v60 = vpop.eup %16087  ;;  %16107 = vrcp.f32 %v6409_v49  ;;  %v5853_v39 = vpop.f32.mrb[202].mxu0  ;;  %v20367_v55 = vadd.f32 %v5851_v56, %v20301_v17  ;;  %v6888_v4 = vmul.f32 %v16086_v0, %v20274_v2  ;;  %v14808_v0 = vld [vmem:[#allocation7 + $0x2d0] ss:$8 sps:$4 sm:$0xff]  }
 0x622   : > { %v16090_v28 = vpop.eup %16089  ;;  %v6895_v57 = vmul.f32 %v16088_v60, %v20278_v46  ;;  %16109 = vpow2.f32 %v13222_v18  ;;  %v13237_v1 = vmul.f32 -1.442695, %v20361_v7  ;;  %8011 = vmatpush1.bf16.msra.mxu1 %v14802_v22  ;;  %v5855_v30 = vpop.f32.mrb[203].mxu0  ;;  %v20372_v5 = vadd.f32 %v5853_v39, %v20297_v32  ;;  %v14810_v46 = vld [vmem:[#allocation7 + $0x2d4] ss:$8 sps:$4 sm:$0xff]  }
 0x623   : > { %v16092_v38 = vpop.eup %16091  ;;  %v6896_v63 = vmul.f32 %v16090_v28, %v20281_v14  ;;  %16111 = vpow2.f32 %v13229_v59  ;;  %8012 = vmatprep.subr.bf16.mxu1 %v14807_v25  ;;  %v20375_v18 = vadd.f32 %v5855_v30, %v20301_v17  ;;  %v13238_v59 = vmul.f32 -1.442695, %v20367_v55 }
 0x624   : > { %v16094_v23 = vpop.eup %16093  ;;  %v6410_v33 = vadd.f32 1.0, %v16092_v38  ;;  %16113 = vpow2.f32 %v13230_v10  ;;  %v6967_v22 = vpack.c.bf16 %v6895_v57, %v6887_v50  ;;  %v13245_v10 = vmul.f32 -1.442695, %v20372_v5  ;;  %v14813_v50 = vld [vmem:[#allocation7 + $0x2e4] ss:$8 sps:$4 sm:$0xff]  }
 0x625   : > { %v16096_v21 = vpop.eup %16095  ;;  %v6417_v49 = vadd.f32 1.0, %v16094_v23  ;;  %16115 = vpow2.f32 %v13237_v1  ;;  %v6968_v48 = vpack.c.bf16 %v6896_v63, %v6888_v4  ;;  %v13246_v28 = vmul.f32 -1.442695, %v20375_v18 }
 0x626   : > { %v16098_v2 = vpop.eup %16097  ;;  %16117 = vrcp.f32 %v6410_v33  ;;  %v6418_v14 = vadd.f32 1.0, %v16096_v21  ;;  %8013 = vmatpush1.bf16.msra.mxu1 %v14805_v16  ;;  %v14811_v21 = vld [vmem:[#allocation7 + $0x2e0] ss:$8 sps:$4 sm:$0xff]  }
 0x627   : > { %v16100_v25 = vpop.eup %16099  ;;  %16119 = vrcp.f32 %v6417_v49  ;;  %v6425_v56 = vadd.f32 1.0, %v16098_v2  ;;  %7967 = vmatprep.mubr.bf16.mxu1 %v6968_v48  ;;  %v5859_v60 = vpop.f32.mrb[204].mxu0  ;;  %8014 = vmatprep.subr.bf16.mxu1 %v14810_v46 }
 0x628   : > { %v16102_v39 = vpop.eup %16101  ;;  %16121 = vrcp.f32 %v6418_v14  ;;  %7968 = vmatmul.mubr.bf16.gmra.mrb[88].mxu1 %v6967_v22  ;;  %v20381_v57 = vadd.f32 %v5859_v60, %v20297_v32  ;;  %v5861_v1 = vpop.f32.mrb[205].mxu0  ;;  %v6903_v16 = vmul.f32 %v16100_v25, %v20288_v53  ;;  %v14816_v14 = vld [vmem:[#allocation7 + $0x2f4] ss:$8 sps:$4 sm:$0xff]  }
 0x629   : > { %v16104_v30 = vpop.eup %16103  ;;  %16123 = vrcp.f32 %v6425_v56  ;;  %v20385_v38 = vadd.f32 %v5861_v1, %v20301_v17  ;;  %v5863_v4 = vpop.f32.mrb[206].mxu0  ;;  %v6904_v46 = vmul.f32 %v16102_v39, %v20306_v31 }
 0x62a   : > { %v16106_v63 = vpop.eup %16105  ;;  %v6911_v23 = vmul.f32 %v16104_v30, %v20310_v62  ;;  %16125 = vpow2.f32 %v13238_v59  ;;  %v13253_v33 = vmul.f32 -1.442695, %v20381_v57  ;;  %8015 = vmatpush1.bf16.msra.mxu1 %v14808_v0  ;;  %v5865_v22 = vpop.f32.mrb[207].mxu0  ;;  %v20393_v2 = vadd.f32 %v5863_v4, %v20297_v32  ;;  %v14819_v30 = vld [vmem:[#allocation7 + $0x304] ss:$8 sps:$4 sm:$0xff]  }
 0x62b   : > { %v16108_v49 = vpop.eup %16107  ;;  %v6912_v48 = vmul.f32 %v16106_v63, %v20314_v43  ;;  %16127 = vpow2.f32 %v13245_v10  ;;  %v13254_v53 = vmul.f32 -1.442695, %v20385_v38  ;;  %8016 = vmatprep.subr.bf16.mxu1 %v14813_v50  ;;  %v20396_v62 = vadd.f32 %v5865_v22, %v20301_v17  ;;  %v14814_v10 = vld [vmem:[#allocation7 + $0x2f0] ss:$8 sps:$4 sm:$0xff]  }
 0x62c   : > { %v16110_v31 = vpop.eup %16109  ;;  %16129 = vpow2.f32 %v13246_v28  ;;  %v6975_v59 = vpack.c.bf16 %v6911_v23, %v6903_v16  ;;  %v13261_v50 = vmul.f32 -1.442695, %v20393_v2  ;;  %v6793_v22 = vmul.f32 %v16108_v49, %v20321_v58 }
 0x62d   : > { %v16112_v0 = vpop.eup %16111  ;;  %v6426_v25 = vadd.f32 1.0, %v16110_v31  ;;  %16131 = vpow2.f32 %v13253_v33  ;;  %v6976_v56 = vpack.c.bf16 %v6912_v48, %v6904_v46  ;;  %v13262_v63 = vmul.f32 -1.442695, %v20396_v62 }
 0x62e   : > { %v16114_v60 = vpop.eup %16113  ;;  %v6433_v43 = vadd.f32 1.0, %v16112_v0  ;;  %16133 = vpow2.f32 %v13254_v53  ;;  %8017 = vmatpush1.bf16.msra.mxu1 %v14811_v21 }
 0x62f   : > { %v16116_v39 = vpop.eup %16115  ;;  %16135 = vrcp.f32 %v6426_v25  ;;  %v6434_v1 = vadd.f32 1.0, %v16114_v60  ;;  %7977 = vmatprep.mubr.bf16.mxu1 %v6976_v56  ;;  %v5869_v28 = vpop.f32.mrb[208].mxu0  ;;  %8018 = vmatprep.subr.bf16.mxu1 %v14816_v14  ;;  %v8486_v60 = vld [vmem:[#allocation9] sm:$0xff] }
 0x630   : > { %v16118_v4 = vpop.eup %16117  ;;  %16137 = vrcp.f32 %v6433_v43  ;;  %v6441_v16 = vadd.f32 1.0, %v16116_v39  ;;  %7978 = vmatmul.mubr.bf16.gmra.mrb[92].mxu1 %v6975_v59  ;;  %v20401_v46 = vadd.f32 %v5869_v28, %v20297_v32  ;;  %v5871_v23 = vpop.f32.mrb[209].mxu0  ;;  %v8490_v43 = vld [vmem:[#allocation9 + $0x20] sm:$0xff] }
 0x631   : > { %v16120_v33 = vpop.eup %16119  ;;  %16139 = vrcp.f32 %v6434_v1  ;;  %v20405_v21 = vadd.f32 %v5871_v23, %v20301_v17  ;;  %v5873_v48 = vpop.f32.mrb[210].mxu0  ;;  %v6794_v14 = vmul.f32 %v16118_v4, %v20326_v40  ;;  %v20420_v1 = vld [vmem:[#allocation9 + $0x60] sm:$0xff] }
 0x632   : > { %v16122_v53 = vpop.eup %16121  ;;  %v6801_v31 = vmul.f32 %v16120_v33, %v20331_v51  ;;  %16141 = vrcp.f32 %v6441_v16  ;;  %v13269_v59 = vmul.f32 -1.442695, %v20401_v46  ;;  %8019 = vmatpush1.bf16.msra.mxu1 %v14814_v10  ;;  %v5875_v0 = vpop.f32.mrb[211].mxu0  ;;  %v20413_v49 = vadd.f32 %v5873_v48, %v20297_v32  ;;  %v20418_v10 = vld [vmem:[#allocation9 + $0x40] sm:$0xff] }
 0x633   : > { %v16124_v25 = vpop.eup %16123  ;;  %v6802_v56 = vmul.f32 %v16122_v53, %v20335_v8  ;;  %16143 = vpow2.f32 %v13261_v50  ;;  %v13270_v58 = vmul.f32 -1.442695, %v20405_v21  ;;  %8101 = vmatprep.subr.bf16.mxu1 %v14819_v30  ;;  %v20416_v51 = vadd.f32 %v5875_v0, %v20301_v17  ;;  %v14817_v4 = vld [vmem:[#allocation7 + $0x300] ss:$8 sps:$4 sm:$0xff]   ;;  %v14822_v30 = vld [vmem:[#allocation7 + $0x314] ss:$8 sps:$4 sm:$0xff]  }
 0x634   : > { %v16126_v40 = vpop.eup %16125  ;;  %v6921_v39 = vpack.c.bf16 %v6801_v31, %v6793_v22  ;;  %16145 = vpow2.f32 %v13262_v63  ;;  %v13491_v33 = vcombine.low %v8486_v60, %v8490_v43  ;;  %v13492_v48 = vcombine.high %v8486_v60, %v8490_v43 }
 0x635   : > { %v16128_v8 = vpop.eup %16127  ;;  %v6442_v50 = vadd.f32 1.0, %v16126_v40  ;;  %16147 = vpow2.f32 %v13269_v59  ;;  %v6922_v28 = vpack.c.bf16 %v6802_v56, %v6794_v14  ;;  %v13277_v53 = vmul.f32 -1.442695, %v20413_v49  ;;  %v20425_v40 = vld [vmem:[#allocation9 + $0x80] sm:$0xff] }
 0x636   : > { %v16130_v16 = vpop.eup %16129  ;;  %v6449_v23 = vadd.f32 1.0, %v16128_v8  ;;  %16149 = vpow2.f32 %v13270_v58  ;;  %v13500_v0 = vcombine.high %v20418_v10, %v20420_v1  ;;  %v20427_v14 = vld [vmem:[#allocation9 + $0xa0] sm:$0xff]  ;;  %v13278_v58 = vmul.f32 -1.442695, %v20416_v51  ;;  %9297 = vmatprep.subr.bf16.mxu0 %v13492_v48 }
 0x637   : > { %v16132_v22 = vpop.eup %16131  ;;  %16151 = vrcp.f32 %v6442_v50  ;;  %v6450_v63 = vadd.f32 1.0, %v16130_v16  ;;  %8020 = vmatprep.mubr.bf16.mxu1 %v6922_v28  ;;  %v5879_v31 = vpop.f32.mrb[212].mxu0  ;;  %v14820_v28 = vld [vmem:[#allocation7 + $0x310] ss:$8 sps:$4 sm:$0xff]   ;;  %9298 = vmatpush1.bf16.msra.mxu0 %v13491_v33 }
 0x638   : > { %v16134_v59 = vpop.eup %16133  ;;  %16153 = vrcp.f32 %v6449_v23  ;;  %v6457_v56 = vadd.f32 1.0, %v16132_v22  ;;  %8021 = vmatmul.mubr.bf16.vlgmr.msra.gmra.mrb[64].mxu1 %v6921_v39  ;;  %v20431_v60 = vadd.f32 %v5879_v31, %v20297_v32  ;;  %v5881_v43 = vpop.f32.mrb[213].mxu0  ;;  %v13499_v23 = vcombine.low %v20418_v10, %v20420_v1  ;;  %9299 = vmatprep.subr.bf16.mxu0 %v13500_v0 }
 0x639   : > { %v16136_v8 = vpop.eup %16135  ;;  %16155 = vrcp.f32 %v6450_v63  ;;  %v6458_v50 = vadd.f32 1.0, %v16134_v59  ;;  %8102 = vmatpush1.bf16.msra.mxu1 %v14817_v4  ;;  %v20434_v16 = vadd.f32 %v5881_v43, %v20301_v17  ;;  %v5883_v15 = vpop.f32.mrb[214].mxu0  ;;  %v6809_v39 = vmul.f32 %v16124_v25, %v20341_v35  ;;  %v14825_v63 = vld [vmem:[#allocation7 + $0x324] ss:$8 sps:$4 sm:$0xff]  }
 0x63a   : > { %v16138_v22 = vpop.eup %16137  ;;  %16157 = vrcp.f32 %v6457_v56  ;;  %v13285_v31 = vmul.f32 -1.442695, %v20431_v60  ;;  %8103 = vmatprep.subr.bf16.mxu1 %v14822_v30  ;;  %v5885_v48 = vpop.f32.mrb[215].mxu0  ;;  %v13508_v4 = vcombine.high %v20425_v40, %v20427_v14  ;;  %v20445_v10 = vadd.f32 %v5883_v15, %v20297_v32  ;;  %v20447_v35 = vld [vmem:[#allocation9 + $0xc0] sm:$0xff] }
 0x63b   : > { %v16140_v59 = vpop.eup %16139  ;;  %v6817_v43 = vmul.f32 %v16138_v22, %v20352_v34  ;;  %16159 = vrcp.f32 %v6458_v50  ;;  %v13286_v33 = vmul.f32 -1.442695, %v20434_v16  ;;  %v20449_v25 = vld [vmem:[#allocation9 + $0xe0] sm:$0xff]  ;;  %v6810_v30 = vmul.f32 %v16136_v8, %v20348_v29  ;;  %9300 = vmatpush1.bf16.msra.mxu0 %v13499_v23  ;;  %v14828_v29 = vld [vmem:[#allocation7 + $0x334] ss:$8 sps:$4 sm:$0xff]  }
 0x63c   : > { %v16142_v1 = vpop.eup %16141  ;;  %v6818_v0 = vmul.f32 %v16140_v59, %v20355_v61  ;;  %16161 = vpow2.f32 %v13277_v53  ;;  %v20454_v34 = vadd.f32 %v5885_v48, %v20301_v17  ;;  %v13507_v15 = vcombine.low %v20425_v40, %v20427_v14  ;;  %9301 = vmatprep.subr.bf16.mxu0 %v13508_v4  ;;  %v20463_v14 = vld [vmem:[#allocation9 + $0x100] sm:$0xff] }
 0x63d   : > { %v16144_v56 = vpop.eup %16143  ;;  %16163 = vpow2.f32 %v13278_v58  ;;  %8104 = vmatpush1.bf16.msra.mxu1 %v14820_v28  ;;  %v6929_v50 = vpack.c.bf16 %v6817_v43, %v6809_v39  ;;  %v13516_v61 = vcombine.high %v20447_v35, %v20449_v25  ;;  %v13293_v8 = vmul.f32 -1.442695, %v20445_v10  ;;  %v20465_v23 = vld [vmem:[#allocation9 + $0x120] sm:$0xff] }
 0x63e   : > { %v16146_v22 = vpop.eup %16145  ;;  %v6465_v26 = vadd.f32 1.0, %v16144_v56  ;;  %16165 = vpow2.f32 %v13285_v31  ;;  %v6930_v42 = vpack.c.bf16 %v6818_v0, %v6810_v30  ;;  %8105 = vmatprep.subr.bf16.mxu1 %v14825_v63  ;;  %v13515_v40 = vcombine.low %v20447_v35, %v20449_v25 }
 0x63f   : > { %v16148_v53 = vpop.eup %16147  ;;  %v6466_v58 = vadd.f32 1.0, %v16146_v22  ;;  %16167 = vpow2.f32 %v13286_v33  ;;  %v5889_v28 = vpop.f32.mrb[216].mxu0  ;;  %v20468_v31 = vmul.f32 %v16142_v1, %v20361_v7  ;;  %v13294_v33 = vmul.f32 -1.442695, %v20454_v34  ;;  %9302 = vmatpush1.bf16.msra.mxu0 %v13507_v15  ;;  %v14831_v15 = vld [vmem:[#allocation7 + $0x344] ss:$8 sps:$4 sm:$0xff]  }
 0x640   : > { %v16150_v39 = vpop.eup %16149  ;;  %16169 = vrcp.f32 %v6465_v26  ;;  %v6473_v48 = vadd.f32 1.0, %v16148_v53  ;;  %8030 = vmatprep.mubr.bf16.mxu1 %v6930_v42  ;;  %v20471_v63 = vadd.f32 %v5889_v28, %v20297_v32  ;;  %v5891_v4 = vpop.f32.mrb[217].mxu0  ;;  %v14826_v26 = vld [vmem:[#allocation7 + $0x330] ss:$8 sps:$4 sm:$0xff]   ;;  %9303 = vmatprep.subr.bf16.mxu0 %v13516_v61  ;;  %v13524_v0 = vcombine.high %v20463_v14, %v20465_v23  ;;  %v20486_v53 = vld [vmem:[#allocation9 + $0x140] sm:$0xff] }
 0x641   : > { %v16152_v59 = vpop.eup %16151  ;;  %16171 = vrcp.f32 %v6466_v58  ;;  %v6474_v43 = vadd.f32 1.0, %v16150_v39  ;;  %8031 = vmatmul.mubr.bf16.gmra.mrb[68].mxu1 %v6929_v50  ;;  %v20475_v35 = vadd.f32 %v5891_v4, %v20301_v17  ;;  %v5893_v25 = vpop.f32.mrb[218].mxu0  ;;  %v20488_v58 = vld [vmem:[#allocation9 + $0x160] sm:$0xff] }
 0x642   : > { %v16154_v7 = vpop.eup %16153  ;;  %16173 = vrcp.f32 %v6473_v48  ;;  %8106 = vmatpush1.bf16.msra.mxu1 %v14823_v44  ;;  %v13301_v42 = vmul.f32 -1.442695, %v20471_v63  ;;  %v20479_v1 = vadd.f32 %v5893_v25, %v20297_v32  ;;  %v5895_v30 = vpop.f32.mrb[219].mxu0  ;;  %v6826_v50 = vmul.f32 %v16152_v59, %v20367_v55  ;;  %v20502_v25 = vld [vmem:[#allocation9 + $0x1a0] sm:$0xff] }
 0x643   : > { %v16156_v56 = vpop.eup %16155  ;;  %v6833_v22 = vmul.f32 %v16154_v7, %v20372_v5  ;;  %16175 = vrcp.f32 %v6474_v43  ;;  %8107 = vmatprep.subr.bf16.mxu1 %v14828_v29  ;;  %v13302_v44 = vmul.f32 -1.442695, %v20475_v35  ;;  %v20493_v48 = vadd.f32 %v5895_v30, %v20301_v17  ;;  %9304 = vmatpush1.bf16.msra.mxu0 %v13515_v40  ;;  %v14829_v43 = vld [vmem:[#allocation7 + $0x340] ss:$8 sps:$4 sm:$0xff]  }
 0x644   : > { %v16158_v28 = vpop.eup %16157  ;;  %v6834_v61 = vmul.f32 %v16156_v56, %v20375_v18  ;;  %16177 = vpow2.f32 %v13293_v8  ;;  %v13309_v39 = vmul.f32 -1.442695, %v20479_v1  ;;  %v13523_v29 = vcombine.low %v20463_v14, %v20465_v23  ;;  %9305 = vmatprep.subr.bf16.mxu0 %v13524_v0  ;;  %v20500_v8 = vld [vmem:[#allocation9 + $0x180] sm:$0xff]  ;;  %v22601_v14 = vld [vmem:[#allocation66_spill] sm:$0xff] }
 0x645   : > { %v16160_v55 = vpop.eup %16159  ;;  %16179 = vpow2.f32 %v13294_v33  ;;  %v6937_v5 = vpack.c.bf16 %v6833_v22, %v20468_v31  ;;  %v13532_v18 = vcombine.high %v20486_v53, %v20488_v58  ;;  %v14834_v31 = vld [vmem:[#allocation7 + $0x354] ss:$8 sps:$4 sm:$0xff]   ;;  %v20506_v23 = vrot.slane %v20293_v36, %v22601_v14 }
 0x646   : > { %v16162_v4 = vpop.eup %16161  ;;  %16181 = vpow2.f32 %v13301_v42  ;;  %8108 = vmatpush1.bf16.msra.mxu1 %v14826_v26  ;;  %v6938_v59 = vpack.c.bf16 %v6834_v61, %v6826_v50  ;;  %v13531_v42 = vcombine.low %v20486_v53, %v20488_v58  ;;  %v13310_v0 = vmul.f32 -1.442695, %v20493_v48  ;;  %v22602_v14 = vld [vmem:[#allocation71_spill] sm:$0xff] }
 0x647   : > { %v16164_v33 = vpop.eup %16163  ;;  %v6481_v7 = vadd.f32 1.0, %v16162_v4  ;;  %16183 = vpow2.f32 %v13302_v44  ;;  %8109 = vmatprep.subr.bf16.mxu1 %v14831_v15  ;;  %v5899_v40 = vpop.f32.mrb[220].mxu0  ;;  %9306 = vmatpush1.bf16.msra.mxu0 %v13523_v29  ;;  %v13540_v53 = vcombine.high %v20500_v8, %v20502_v25 }
 0x648   : > { %v16166_v26 = vpop.eup %16165  ;;  %v6482_v30 = vadd.f32 1.0, %v16164_v33  ;;  %16185 = vpow2.f32 %v13309_v39  ;;  %8040 = vmatprep.mubr.bf16.mxu1 %v6938_v59  ;;  %v20512_v56 = vadd.f32 %v5899_v40, %v20297_v32  ;;  %v5901_v50 = vpop.f32.mrb[221].mxu0  ;;  %v14832_v59 = vld [vmem:[#allocation7 + $0x350] ss:$8 sps:$4 sm:$0xff]   ;;  %9307 = vmatprep.subr.bf16.mxu0 %v13532_v18  ;;  %v6841_v40 = vmul.f32 %v16158_v28, %v20381_v57 }
 0x649   : > { %v16168_v22 = vpop.eup %16167  ;;  %16187 = vrcp.f32 %v6481_v7  ;;  %v6489_v44 = vadd.f32 1.0, %v16166_v26  ;;  %8041 = vmatmul.mubr.bf16.gmra.mrb[72].mxu1 %v6937_v5  ;;  %v20515_v15 = vadd.f32 %v5901_v50, %v20301_v17  ;;  %v5903_v61 = vpop.f32.mrb[222].mxu0  ;;  %v20531_v57 = vrot.slane %v20293_v36, %v22602_v14  ;;  %v14840_v36 = vld [vmem:[#allocation7 + $0x374] ss:$8 sps:$4 sm:$0xff]  }
 0x64a   : > { %v16170_v58 = vpop.eup %16169  ;;  %16189 = vrcp.f32 %v6482_v30  ;;  %v6490_v39 = vadd.f32 1.0, %v16168_v22  ;;  %8110 = vmatpush1.bf16.msra.mxu1 %v14829_v43  ;;  %v13317_v4 = vmul.f32 -1.442695, %v20512_v56  ;;  %v20521_v33 = vadd.f32 %v5903_v61, %v20297_v32  ;;  %v5905_v7 = vpop.f32.mrb[223].mxu0  ;;  %v14837_v30 = vld [vmem:[#allocation7 + $0x364] ss:$8 sps:$4 sm:$0xff]  }
 0x64b   : > { %v16172_v5 = vpop.eup %16171  ;;  %v6849_v29 = vmul.f32 %v16170_v58, %v20393_v2  ;;  %16191 = vrcp.f32 %v6489_v44  ;;  %8111 = vmatprep.subr.bf16.mxu1 %v14834_v31  ;;  %v13318_v26 = vmul.f32 -1.442695, %v20515_v15  ;;  %v6842_v43 = vmul.f32 %v16160_v55, %v20385_v38  ;;  %9308 = vmatpush1.bf16.msra.mxu0 %v13531_v42  ;;  %v14835_v55 = vld [vmem:[#allocation7 + $0x360] ss:$8 sps:$4 sm:$0xff]  }
 0x64c   : > { %v16174_v50 = vpop.eup %16173  ;;  %v6850_v22 = vmul.f32 %v16172_v5, %v20396_v62  ;;  %16193 = vrcp.f32 %v6490_v39  ;;  %v13325_v32 = vmul.f32 -1.442695, %v20521_v33  ;;  %v13539_v2 = vcombine.low %v20500_v8, %v20502_v25  ;;  %9309 = vmatprep.subr.bf16.mxu0 %v13540_v53 }
 0x64d   : > { %v16176_v61 = vpop.eup %16175  ;;  %16195 = vpow2.f32 %v13310_v0  ;;  %v6945_v18 = vpack.c.bf16 %v6849_v29, %v6841_v40  ;;  %v20536_v38 = vadd.f32 %v5905_v7, %v20301_v17  ;;  %v14838_v40 = vld [vmem:[#allocation7 + $0x370] ss:$8 sps:$4 sm:$0xff]  }
 0x64e   : > { %v16178_v28 = vpop.eup %16177  ;;  %16197 = vpow2.f32 %v13317_v4  ;;  %8112 = vmatpush1.bf16.msra.mxu1 %v14832_v59  ;;  %v6946_v62 = vpack.c.bf16 %v6850_v22, %v6842_v43 }
 0x64f   : > { %v16180_v31 = vpop.eup %16179  ;;  %v6497_v0 = vadd.f32 1.0, %v16178_v28  ;;  %16199 = vpow2.f32 %v13318_v26  ;;  %8113 = vmatprep.subr.bf16.mxu1 %v14837_v30  ;;  %v5942_v44 = vpop.f32.mrb[224].mxu0  ;;  %9310 = vmatpush1.bf16.msra.mxu0 %v13539_v2  ;;  %v13326_v5 = vmul.f32 -1.442695, %v20536_v38  ;;  %v6857_v2 = vmul.f32 %v16174_v50, %v20401_v46 }
 0x650   : > { %v16182_v58 = vpop.eup %16181  ;;  %v6498_v42 = vadd.f32 1.0, %v16180_v31  ;;  %16201 = vpow2.f32 %v13325_v32  ;;  %8050 = vmatprep.mubr.bf16.mxu1 %v6946_v62  ;;  %v20539_v8 = vadd.f32 %v5942_v44, %v20506_v23  ;;  %v5944_v25 = vpop.f32.mrb[225].mxu0  ;;  %v14843_v32 = vld [vmem:[#allocation7 + $0x384] ss:$8 sps:$4 sm:$0xff]   ;;  %v6858_v31 = vmul.f32 %v16176_v61, %v20405_v21  ;;  %v14846_v61 = vld [vmem:[#allocation7 + $0x394] ss:$8 sps:$4 sm:$0xff]  }
 0x651   : > { %v16184_v39 = vpop.eup %16183  ;;  %16203 = vrcp.f32 %v6497_v0  ;;  %v6505_v17 = vadd.f32 1.0, %v16182_v58  ;;  %8051 = vmatmul.mubr.bf16.gmra.mrb[76].mxu1 %v6945_v18  ;;  %v20542_v53 = vadd.f32 %v5944_v25, %v20531_v57  ;;  %v5946_v4 = vpop.f32.mrb[226].mxu0 }
 0x652   : > { %v16186_v59 = vpop.eup %16185  ;;  %16205 = vrcp.f32 %v6498_v42  ;;  %v6506_v7 = vadd.f32 1.0, %v16184_v39  ;;  %8114 = vmatpush1.bf16.msra.mxu1 %v14835_v55  ;;  %v20546_v29 = vadd.f32 %v5946_v4, %v20506_v23  ;;  %v5948_v26 = vpop.f32.mrb[227].mxu0  ;;  %v13207_v22 = vmul.f32 -1.442695, %v20539_v8  ;;  %v14841_v42 = vld [vmem:[#allocation7 + $0x380] ss:$8 sps:$4 sm:$0xff]  }
 0x653   : > { %v16188_v30 = vpop.eup %16187  ;;  %16207 = vrcp.f32 %v6505_v17  ;;  %v6513_v43 = vadd.f32 1.0, %v16186_v59  ;;  %8115 = vmatprep.subr.bf16.mxu1 %v14840_v36  ;;  %v13208_v62 = vmul.f32 -1.442695, %v20542_v53  ;;  %v20556_v36 = vadd.f32 %v5948_v26, %v20531_v57 }
 0x654   : > { %v16190_v18 = vpop.eup %16189  ;;  %v6865_v28 = vmul.f32 %v16188_v30, %v20413_v49  ;;  %16209 = vrcp.f32 %v6506_v7  ;;  %v13215_v44 = vmul.f32 -1.442695, %v20546_v29 }
 0x655   : > { %v16192_v55 = vpop.eup %16191  ;;  %v6866_v0 = vmul.f32 %v16190_v18, %v20416_v51  ;;  %16211 = vrcp.f32 %v6513_v43  ;;  %v13216_v30 = vmul.f32 -1.442695, %v20556_v36 }
 0x656   : > { %v16194_v58 = vpop.eup %16193  ;;  %16213 = vpow2.f32 %v13326_v5  ;;  %8116 = vmatpush1.bf16.msra.mxu1 %v14838_v40  ;;  %v6953_v46 = vpack.c.bf16 %v6865_v28, %v6857_v2  ;;  %v14844_v28 = vld [vmem:[#allocation7 + $0x390] ss:$8 sps:$4 sm:$0xff]  }
 0x657   : > { %v16196_v50 = vpop.eup %16195  ;;  %16215 = vpow2.f32 %v13207_v22  ;;  %v6954_v49 = vpack.c.bf16 %v6866_v0, %v6858_v31  ;;  %8117 = vmatprep.subr.bf16.mxu1 %v14843_v32  ;;  %v5952_v25 = vpop.f32.mrb[228].mxu0  ;;  %v6873_v0 = vmul.f32 %v16192_v55, %v20431_v60 }
 0x658   : > { %v16198_v39 = vpop.eup %16197  ;;  %v6514_v21 = vadd.f32 1.0, %v16196_v50  ;;  %16217 = vpow2.f32 %v13208_v62  ;;  %v20559_v51 = vadd.f32 %v5952_v25, %v20506_v23  ;;  %v5954_v17 = vpop.f32.mrb[229].mxu0  ;;  %v14849_v50 = vld [vmem:[#allocation7 + $0x3a4] ss:$8 sps:$4 sm:$0xff]   ;;  %v6874_v25 = vmul.f32 %v16194_v58, %v20434_v16 }
 0x659   : > { %v16200_v4 = vpop.eup %16199  ;;  %v6521_v59 = vadd.f32 1.0, %v16198_v39  ;;  %16219 = vpow2.f32 %v13215_v44  ;;  %8060 = vmatprep.mubr.bf16.mxu1 %v6954_v49  ;;  %v20562_v7 = vadd.f32 %v5954_v17, %v20531_v57  ;;  %v5956_v5 = vpop.f32.mrb[230].mxu0 }
 0x65a   : > { %v16202_v40 = vpop.eup %16201  ;;  %16221 = vrcp.f32 %v6514_v21  ;;  %v6522_v26 = vadd.f32 1.0, %v16200_v4  ;;  %8061 = vmatmul.mubr.bf16.gmra.mrb[80].mxu1 %v6953_v46  ;;  %v20566_v43 = vadd.f32 %v5956_v5, %v20506_v23  ;;  %v5958_v22 = vpop.f32.mrb[231].mxu0  ;;  %v13223_v2 = vmul.f32 -1.442695, %v20559_v51 }
 0x65b   : > { %v16204_v32 = vpop.eup %16203  ;;  %16223 = vrcp.f32 %v6521_v59  ;;  %v6529_v18 = vadd.f32 1.0, %v16202_v40  ;;  %8118 = vmatpush1.bf16.msra.mxu1 %v14841_v42  ;;  %v20570_v62 = vadd.f32 %v5958_v22, %v20531_v57  ;;  %v13224_v46 = vmul.f32 -1.442695, %v20562_v7 }
 0x65c   : > { %v16206_v31 = vpop.eup %16205  ;;  %v6881_v44 = vmul.f32 %v16204_v32, %v20445_v10  ;;  %16225 = vrcp.f32 %v6522_v26  ;;  %8119 = vmatprep.subr.bf16.mxu1 %v14846_v61  ;;  %v13231_v39 = vmul.f32 -1.442695, %v20566_v43  ;;  %v14847_v61 = vld [vmem:[#allocation7 + $0x3a0] ss:$8 sps:$4 sm:$0xff]  }
 0x65d   : > { %v16208_v49 = vpop.eup %16207  ;;  %v6882_v42 = vmul.f32 %v16206_v31, %v20454_v34  ;;  %16227 = vrcp.f32 %v6529_v18  ;;  %v13232_v17 = vmul.f32 -1.442695, %v20570_v62  ;;  %v14852_v34 = vld [vmem:[#allocation7 + $0x3b4] ss:$8 sps:$4 sm:$0xff]  }
 0x65e   : > { %v16210_v21 = vpop.eup %16209  ;;  %16229 = vpow2.f32 %v13216_v30  ;;  %v6961_v60 = vpack.c.bf16 %v6881_v44, %v6873_v0  ;;  %v6889_v18 = vmul.f32 %v16208_v49, %v20471_v63 }
 0x65f   : > { %v16212_v55 = vpop.eup %16211  ;;  %16231 = vpow2.f32 %v13223_v2  ;;  %8120 = vmatpush1.bf16.msra.mxu1 %v14844_v28  ;;  %v6962_v10 = vpack.c.bf16 %v6882_v42, %v6874_v25  ;;  %v5962_v4 = vpop.f32.mrb[232].mxu0  ;;  %v14855_v42 = vld [vmem:[#allocation7 + $0x3c4] ss:$8 sps:$4 sm:$0xff]  }
 0x660   : > { %v16214_v59 = vpop.eup %16213  ;;  %v20580_v5 = vmul.f32 %v16212_v55, %v20479_v1  ;;  %16233 = vpow2.f32 %v13224_v46  ;;  %8121 = vmatprep.subr.bf16.mxu1 %v14849_v50  ;;  %v20583_v16 = vadd.f32 %v5962_v4, %v20506_v23  ;;  %v5964_v58 = vpop.f32.mrb[233].mxu0  ;;  %v14850_v46 = vld [vmem:[#allocation7 + $0x3b0] ss:$8 sps:$4 sm:$0xff]  }
 0x661   : > { %v16216_v40 = vpop.eup %16215  ;;  %v6530_v26 = vadd.f32 1.0, %v16214_v59  ;;  %16235 = vpow2.f32 %v13231_v39  ;;  %8070 = vmatprep.mubr.bf16.mxu1 %v6962_v10  ;;  %v20586_v30 = vadd.f32 %v5964_v58, %v20531_v57  ;;  %v5966_v22 = vpop.f32.mrb[234].mxu0  ;;  %v14853_v58 = vld [vmem:[#allocation7 + $0x3c0] ss:$8 sps:$4 sm:$0xff]  }
 0x662   : > { %v16218_v32 = vpop.eup %16217  ;;  %v6411_v1 = vadd.f32 1.0, %v16216_v40  ;;  %16237 = vpow2.f32 %v13232_v17  ;;  %8071 = vmatmul.mubr.bf16.gmra.mrb[84].mxu1 %v6961_v60  ;;  %v20590_v2 = vadd.f32 %v5966_v22, %v20506_v23  ;;  %v5968_v28 = vpop.f32.mrb[235].mxu0  ;;  %v13239_v44 = vmul.f32 -1.442695, %v20583_v16 }
 0x663   : > { %v16220_v31 = vpop.eup %16219  ;;  %16239 = vrcp.f32 %v6530_v26  ;;  %v6412_v0 = vadd.f32 1.0, %v16218_v32  ;;  %8122 = vmatpush1.bf16.msra.mxu1 %v14847_v61  ;;  %v20594_v50 = vadd.f32 %v5968_v28, %v20531_v57  ;;  %v13240_v49 = vmul.f32 -1.442695, %v20586_v30 }
 0x664   : > { %v16222_v25 = vpop.eup %16221  ;;  %16241 = vrcp.f32 %v6411_v1  ;;  %v6419_v63 = vadd.f32 1.0, %v16220_v31  ;;  %8123 = vmatprep.subr.bf16.mxu1 %v14852_v34  ;;  %v6969_v39 = vpack.c.bf16 %v20580_v5, %v6889_v18  ;;  %v6890_v60 = vmul.f32 %v16210_v21, %v20475_v35 }
 0x665   : > { %v16224_v17 = vpop.eup %16223  ;;  %v6898_v55 = vmul.f32 %v16222_v25, %v20493_v48  ;;  %16243 = vrcp.f32 %v6412_v0  ;;  %v13247_v10 = vmul.f32 -1.442695, %v20590_v2  ;;  %v13248_v4 = vmul.f32 -1.442695, %v20594_v50  ;;  %v14858_v48 = vld [vmem:[#allocation7 + $0x3d4] ss:$8 sps:$4 sm:$0xff]  }
 0x666   : > { %v16226_v61 = vpop.eup %16225  ;;  %16245 = vrcp.f32 %v6419_v63  ;;  %v6905_v31 = vmul.f32 %v16224_v17, %v20512_v56  ;;  %v14856_v63 = vld [vmem:[#allocation7 + $0x3d0] ss:$8 sps:$4 sm:$0xff]   ;;  %v14861_v17 = vld [vmem:[#allocation7 + $0x3e4] ss:$8 sps:$4 sm:$0xff]  }
 0x667   : > { %v16228_v59 = vpop.eup %16227  ;;  %16247 = vpow2.f32 %v13239_v44  ;;  %8124 = vmatpush1.bf16.msra.mxu1 %v14850_v46  ;;  %v6970_v34 = vpack.c.bf16 %v6898_v55, %v6890_v60  ;;  %v5972_v40 = vpop.f32.mrb[236].mxu0 }
 0x668   : > { %v16230_v26 = vpop.eup %16229  ;;  %v20603_v5 = vmul.f32 %v16228_v59, %v20521_v33  ;;  %16249 = vpow2.f32 %v13240_v49  ;;  %8125 = vmatprep.subr.bf16.mxu1 %v14855_v42  ;;  %v20606_v35 = vadd.f32 %v5972_v40, %v20506_v23  ;;  %v5974_v21 = vpop.f32.mrb[237].mxu0 }
 0x669   : > { %v16232_v22 = vpop.eup %16231  ;;  %v6420_v32 = vadd.f32 1.0, %v16230_v26  ;;  %16251 = vpow2.f32 %v13247_v10  ;;  %8080 = vmatprep.mubr.bf16.mxu1 %v6970_v34  ;;  %v20609_v18 = vadd.f32 %v5974_v21, %v20531_v57  ;;  %v5976_v1 = vpop.f32.mrb[238].mxu0  ;;  %v6906_v34 = vmul.f32 %v16226_v61, %v20515_v15 }
 0x66a   : > { %v16234_v28 = vpop.eup %16233  ;;  %v6427_v33 = vadd.f32 1.0, %v16232_v22  ;;  %16253 = vpow2.f32 %v13248_v4  ;;  %8081 = vmatmul.mubr.bf16.gmra.mrb[88].mxu1 %v6969_v39  ;;  %v20613_v0 = vadd.f32 %v5976_v1, %v20506_v23  ;;  %v5978_v44 = vpop.f32.mrb[239].mxu0  ;;  %v13255_v56 = vmul.f32 -1.442695, %v20606_v35 }
 0x66b   : > { %v16236_v46 = vpop.eup %16235  ;;  %16255 = vrcp.f32 %v6420_v32  ;;  %v6428_v25 = vadd.f32 1.0, %v16234_v28  ;;  %8126 = vmatpush1.bf16.msra.mxu1 %v14853_v58  ;;  %v20616_v49 = vadd.f32 %v5978_v44, %v20531_v57  ;;  %v6977_v39 = vpack.c.bf16 %v20603_v5, %v6905_v31  ;;  %v14859_v32 = vld [vmem:[#allocation7 + $0x3e0] ss:$8 sps:$4 sm:$0xff]   ;;  %v14864_v31 = vld [vmem:[#allocation7 + $0x3f4] ss:$8 sps:$4 sm:$0xff]  }
 0x66c   : > { %v16238_v42 = vpop.eup %16237  ;;  %16257 = vrcp.f32 %v6427_v33  ;;  %v6435_v60 = vadd.f32 1.0, %v16236_v46  ;;  %8127 = vmatprep.subr.bf16.mxu1 %v14858_v48  ;;  %v13256_v4 = vmul.f32 -1.442695, %v20609_v18  ;;  %v13263_v40 = vmul.f32 -1.442695, %v20613_v0 }
 0x66d   : > { %v16240_v55 = vpop.eup %16239  ;;  %16259 = vrcp.f32 %v6428_v25  ;;  %v6436_v10 = vadd.f32 1.0, %v16238_v42  ;;  %v13264_v48 = vmul.f32 -1.442695, %v20616_v49 }
 0x66e   : > { %v16242_v59 = vpop.eup %16241  ;;  %v6914_v58 = vmul.f32 %v16240_v55, %v20536_v38  ;;  %16261 = vrcp.f32 %v6435_v60 }
 0x66f   : > { %v16244_v26 = vpop.eup %16243  ;;  %16263 = vrcp.f32 %v6436_v10  ;;  %8128 = vmatpush1.bf16.msra.mxu1 %v14856_v63  ;;  %v5982_v21 = vpop.f32.mrb[240].mxu0  ;;  %v6795_v38 = vmul.f32 %v16242_v59, %v20539_v8  ;;  %v14862_v10 = vld [vmem:[#allocation7 + $0x3f0] ss:$8 sps:$4 sm:$0xff]  }
 0x670   : > { %v16246_v5 = vpop.eup %16245  ;;  %16265 = vpow2.f32 %v13255_v56  ;;  %v6978_v22 = vpack.c.bf16 %v6914_v58, %v6906_v34  ;;  %8129 = vmatprep.subr.bf16.mxu1 %v14861_v17  ;;  %v20626_v1 = vadd.f32 %v5982_v21, %v20506_v23  ;;  %v5984_v15 = vpop.f32.mrb[241].mxu0 }
 0x671   : > { %v16248_v61 = vpop.eup %16247  ;;  %v6803_v28 = vmul.f32 %v16246_v5, %v20546_v29  ;;  %16267 = vpow2.f32 %v13256_v4  ;;  %v20631_v33 = vadd.f32 %v5984_v15, %v20531_v57  ;;  %v5986_v44 = vpop.f32.mrb[242].mxu0 }
 0x672   : > { %v16250_v46 = vpop.eup %16249  ;;  %v6443_v25 = vadd.f32 1.0, %v16248_v61  ;;  %16269 = vpow2.f32 %v13263_v40  ;;  %8090 = vmatprep.mubr.bf16.mxu1 %v6978_v22  ;;  %v20634_v63 = vadd.f32 %v5986_v44, %v20506_v23  ;;  %v5988_v42 = vpop.f32.mrb[243].mxu0  ;;  %v13271_v55 = vmul.f32 -1.442695, %v20626_v1 }
 0x673   : > { %v16252_v60 = vpop.eup %16251  ;;  %v6923_v56 = vpack.c.bf16 %v6803_v28, %v6795_v38  ;;  %v6444_v17 = vadd.f32 1.0, %v16250_v46  ;;  %16271 = vpow2.f32 %v13264_v48  ;;  %8091 = vmatmul.mubr.bf16.gmra.mrb[92].mxu1 %v6977_v39  ;;  %v20638_v4 = vadd.f32 %v5988_v42, %v20531_v57 }
 0x674   : > { %v16254_v8 = vpop.eup %16253  ;;  %16273 = vrcp.f32 %v6443_v25  ;;  %v6451_v29 = vadd.f32 1.0, %v16252_v60  ;;  %8130 = vmatpush1.bf16.msra.mxu1 %v14859_v32  ;;  %v13272_v58 = vmul.f32 -1.442695, %v20631_v33  ;;  %v6796_v48 = vmul.f32 %v16244_v26, %v20542_v53 }
 0x675   : > { %v16256_v59 = vpop.eup %16255  ;;  %16275 = vrcp.f32 %v6444_v17  ;;  %v6452_v34 = vadd.f32 1.0, %v16254_v8  ;;  %8131 = vmatprep.subr.bf16.mxu1 %v14864_v31  ;;  %v13279_v21 = vmul.f32 -1.442695, %v20634_v63  ;;  %v13280_v22 = vmul.f32 -1.442695, %v20638_v4 }
 0x676   : > { %v16258_v40 = vpop.eup %16257  ;;  %v6804_v39 = vmul.f32 %v16256_v59, %v20556_v36  ;;  %16277 = vrcp.f32 %v6451_v29 }
 0x677   : > { %v16260_v5 = vpop.eup %16259  ;;  %16279 = vrcp.f32 %v6452_v34  ;;  %v5992_v32 = vpop.f32.mrb[244].mxu0 }
 0x678   : > { %v16262_v15 = vpop.eup %16261  ;;  %16281 = vpow2.f32 %v13271_v55  ;;  %8132 = vmatpush1.bf16.msra.mxu1 %v14862_v10  ;;  %v6924_v61 = vpack.c.bf16 %v6804_v39, %v6796_v48  ;;  %v20646_v38 = vadd.f32 %v5992_v32, %v20506_v23  ;;  %v5994_v28 = vpop.f32.mrb[245].mxu0  ;;  %v6812_v53 = vmul.f32 %v16260_v5, %v20562_v7 }
 0x679   : > { %v16264_v31 = vpop.eup %16263  ;;  %v6819_v36 = vmul.f32 %v16262_v15, %v20566_v43  ;;  %16283 = vpow2.f32 %v13272_v58  ;;  %v20651_v26 = vadd.f32 %v5994_v28, %v20531_v57  ;;  %v5996_v44 = vpop.f32.mrb[246].mxu0  ;;  %v6811_v7 = vmul.f32 %v16258_v40, %v20559_v51 }
 0x67a   : > { %v16266_v46 = vpop.eup %16265  ;;  %v6820_v25 = vmul.f32 %v16264_v31, %v20570_v62  ;;  %16285 = vpow2.f32 %v13279_v21  ;;  %8133 = vmatprep.mubr.bf16.mxu1 %v6924_v61  ;;  %v13287_v42 = vmul.f32 -1.442695, %v20646_v38  ;;  %v20656_v60 = vadd.f32 %v5996_v44, %v20506_v23  ;;  %v5998_v17 = vpop.f32.mrb[247].mxu0 }
 0x67b   : > { %v16268_v8 = vpop.eup %16267  ;;  %v6459_v43 = vadd.f32 1.0, %v16266_v46  ;;  %16287 = vpow2.f32 %v13280_v22  ;;  %8134 = vmatmul.mubr.bf16.vlgmr.msra.gmra.mrb[64].mxu1 %v6923_v56  ;;  %v20660_v29 = vadd.f32 %v5998_v17, %v20531_v57  ;;  %v13288_v58 = vmul.f32 -1.442695, %v20651_v26 }
 0x67c   : > { %v16270_v55 = vpop.eup %16269  ;;  %v6460_v10 = vadd.f32 1.0, %v16268_v8  ;;  %16289 = vpow2.f32 %v13287_v42  ;;  %v6932_v62 = vpack.c.bf16 %v6820_v25, %v6812_v53  ;;  %v6931_v48 = vpack.c.bf16 %v6819_v36, %v6811_v7 }
 0x67d   : > { %v16272_v59 = vpop.eup %16271  ;;  %16291 = vrcp.f32 %v6459_v43  ;;  %v6467_v34 = vadd.f32 1.0, %v16270_v55  ;;  %v13295_v51 = vmul.f32 -1.442695, %v20656_v60  ;;  %v13296_v40 = vmul.f32 -1.442695, %v20660_v29 }
 0x67e   : > { %v16274_v39 = vpop.eup %16273  ;;  %16293 = vrcp.f32 %v6460_v10  ;;  %v6468_v21 = vadd.f32 1.0, %v16272_v59  ;;  %8143 = vmatprep.mubr.bf16.mxu1 %v6932_v62 }
 0x67f   : > { %v16276_v56 = vpop.eup %16275  ;;  %16295 = vrcp.f32 %v6467_v34  ;;  %v6002_v5 = vpop.f32.mrb[248].mxu0  ;;  %v6827_v8 = vmul.f32 %v16274_v39, %v20583_v16 }
 0x680   : > { %v16278_v22 = vpop.eup %16277  ;;  %16297 = vrcp.f32 %v6468_v21  ;;  %v20666_v32 = vadd.f32 %v6002_v5, %v20506_v23  ;;  %v6004_v15 = vpop.f32.mrb[249].mxu0  ;;  %v6828_v28 = vmul.f32 %v16276_v56, %v20586_v30 }
 0x681   : > { %v16280_v61 = vpop.eup %16279  ;;  %v6835_v31 = vmul.f32 %v16278_v22, %v20590_v2  ;;  %16299 = vpow2.f32 %v13288_v58  ;;  %v6006_v53 = vpop.f32.mrb[250].mxu0  ;;  %v20673_v25 = vadd.f32 %v6004_v15, %v20531_v57 }
 0x682   : > { %v16282_v36 = vpop.eup %16281  ;;  %v6836_v44 = vmul.f32 %v16280_v61, %v20594_v50  ;;  %16301 = vpow2.f32 %v13295_v51  ;;  %v13303_v46 = vmul.f32 -1.442695, %v20666_v32  ;;  %v6008_v42 = vpop.f32.mrb[251].mxu0  ;;  %v20677_v30 = vadd.f32 %v6006_v53, %v20506_v23 }
 0x683   : > { %v16284_v17 = vpop.eup %16283  ;;  %v6475_v7 = vadd.f32 1.0, %v16282_v36  ;;  %16303 = vpow2.f32 %v13296_v40  ;;  %8144 = vmatmul.mubr.bf16.gmra.mrb[68].mxu1 %v6931_v48  ;;  %v20680_v50 = vadd.f32 %v6008_v42, %v20531_v57  ;;  %v6939_v59 = vpack.c.bf16 %v6835_v31, %v6827_v8 }
 0x684   : > { %v16286_v2 = vpop.eup %16285  ;;  %v6476_v43 = vadd.f32 1.0, %v16284_v17  ;;  %16305 = vpow2.f32 %v13303_v46  ;;  %v6940_v55 = vpack.c.bf16 %v6836_v44, %v6828_v28  ;;  %v13304_v58 = vmul.f32 -1.442695, %v20673_v25 }
 0x685   : > { %v16288_v10 = vpop.eup %16287  ;;  %16307 = vrcp.f32 %v6475_v7  ;;  %v6483_v62 = vadd.f32 1.0, %v16286_v2  ;;  %v13311_v21 = vmul.f32 -1.442695, %v20677_v30  ;;  %v13312_v40 = vmul.f32 -1.442695, %v20680_v50 }
 0x686   : > { %v16290_v34 = vpop.eup %16289  ;;  %16309 = vrcp.f32 %v6476_v43  ;;  %v6484_v16 = vadd.f32 1.0, %v16288_v10  ;;  %8153 = vmatprep.mubr.bf16.mxu1 %v6940_v55 }
 0x687   : > { %v16292_v48 = vpop.eup %16291  ;;  %16311 = vrcp.f32 %v6483_v62  ;;  %v6491_v39 = vadd.f32 1.0, %v16290_v34  ;;  %v6012_v51 = vpop.f32.mrb[252].mxu0 }
 0x688   : > { %v16294_v56 = vpop.eup %16293  ;;  %16313 = vrcp.f32 %v6484_v16  ;;  %v20686_v5 = vadd.f32 %v6012_v51, %v20506_v23  ;;  %v6014_v22 = vpop.f32.mrb[253].mxu0  ;;  %v6843_v61 = vmul.f32 %v16292_v48, %v20606_v35 }
 0x689   : > { %v16296_v15 = vpop.eup %16295  ;;  %16315 = vrcp.f32 %v6491_v39  ;;  %v6016_v28 = vpop.f32.mrb[254].mxu0  ;;  %v20692_v44 = vadd.f32 %v6014_v22, %v20531_v57  ;;  %v6844_v17 = vmul.f32 %v16294_v56, %v20609_v18 }
 0x68a   : > { %v16298_v31 = vpop.eup %16297  ;;  %v6851_v53 = vmul.f32 %v16296_v15, %v20613_v0  ;;  %16317 = vpow2.f32 %v13304_v58  ;;  %v13319_v36 = vmul.f32 -1.442695, %v20686_v5  ;;  %v6018_v46 = vpop.f32.mrb[255].mxu0  ;;  %v20697_v35 = vadd.f32 %v6016_v28, %v20506_v23 }
 0x68b   : > { %v16300_v42 = vpop.eup %16299  ;;  %v6852_v8 = vmul.f32 %v16298_v31, %v20616_v49  ;;  %16319 = vpow2.f32 %v13311_v21  ;;  %8154 = vmatmul.mubr.bf16.gmra.mrb[72].mxu1 %v6939_v59  ;;  %v20700_v0 = vadd.f32 %v6018_v46, %v20531_v57  ;;  %v13320_v49 = vmul.f32 -1.442695, %v20692_v44 }
 0x68c   : > { %v16302_v7 = vpop.eup %16301  ;;  %v6492_v2 = vadd.f32 1.0, %v16300_v42  ;;  %16321 = vpow2.f32 %v13312_v40  ;;  %v6947_v43 = vpack.c.bf16 %v6851_v53, %v6843_v61  ;;  %v13327_v23 = vmul.f32 -1.442695, %v20697_v35 }
 0x68d   : > { %v16304_v55 = vpop.eup %16303  ;;  %v6499_v10 = vadd.f32 1.0, %v16302_v7  ;;  %16323 = vpow2.f32 %v13319_v36  ;;  %v6948_v62 = vpack.c.bf16 %v6852_v8, %v6844_v17  ;;  %v13328_v57 = vmul.f32 -1.442695, %v20700_v0 }
 0x68e   : > { %v16306_v34 = vpop.eup %16305  ;;  %16325 = vrcp.f32 %v6492_v2  ;;  %v6500_v18 = vadd.f32 1.0, %v16304_v55 }
 0x68f   : > { %v16308_v59 = vpop.eup %16307  ;;  %16327 = vrcp.f32 %v6499_v10  ;;  %8163 = vmatprep.mubr.bf16.mxu1 %v6948_v62  ;;  %v6507_v51 = vadd.f32 1.0, %v16306_v34 }
 0x690   : > { %v16310_v16 = vpop.eup %16309  ;;  %16329 = vrcp.f32 %v6500_v18  ;;  %v6859_v39 = vmul.f32 %v16308_v59, %v20626_v1 }
 0x691   : > { %v16312_v58 = vpop.eup %16311  ;;  %16331 = vpow2.f32 %v13320_v49  ;;  %v6860_v40 = vmul.f32 %v16310_v16, %v20631_v33 }
 0x692   : > { %v16314_v48 = vpop.eup %16313  ;;  %v6867_v21 = vmul.f32 %v16312_v58, %v20634_v63  ;;  %16333 = vpow2.f32 %v13327_v23 }
 0x693   : > { %v16316_v56 = vpop.eup %16315  ;;  %v6868_v22 = vmul.f32 %v16314_v48, %v20638_v4  ;;  %8164 = vmatmul.mubr.bf16.gmra.mrb[76].mxu1 %v6947_v43  ;;  %16335 = vpow2.f32 %v13328_v57 }
 0x694   : > { %v16318_v15 = vpop.eup %16317  ;;  %v6955_v61 = vpack.c.bf16 %v6867_v21, %v6859_v39  ;;  %16337 = vrcp.f32 %v6507_v51  ;;  %v6875_v17 = vmul.f32 %v16316_v56, %v20646_v38 }
 0x695   : > { %v16320_v28 = vpop.eup %16319  ;;  %v6508_v31 = vadd.f32 1.0, %v16318_v15  ;;  %v6956_v53 = vpack.c.bf16 %v6868_v22, %v6860_v40 }
 0x696   : > { %v16322_v36 = vpop.eup %16321  ;;  %v6515_v1 = vadd.f32 1.0, %v16320_v28 }
 0x697   : > { %v16324_v46 = vpop.eup %16323  ;;  %16339 = vrcp.f32 %v6508_v31  ;;  %v6516_v63 = vadd.f32 1.0, %v16322_v36  ;;  %8173 = vmatprep.mubr.bf16.mxu1 %v6956_v53  ;;  %v8546_v31 = vld [vmem:[#allocation9 + $0x1e0] sm:$0xff] }
 0x698   : > { %v16326_v42 = vpop.eup %16325  ;;  %16341 = vrcp.f32 %v6515_v1  ;;  %v6523_v7 = vadd.f32 1.0, %v16324_v46  ;;  %v8550_v1 = vld [vmem:[#allocation9 + $0x200] sm:$0xff] }
 0x699   : > { %v16328_v33 = vpop.eup %16327  ;;  %16343 = vrcp.f32 %v6516_v63  ;;  %v6876_v2 = vmul.f32 %v16326_v42, %v20651_v26  ;;  %v8554_v46 = vld [vmem:[#allocation9 + $0x220] sm:$0xff] }
 0x69a   : > { %v16330_v4 = vpop.eup %16329  ;;  %v6883_v8 = vmul.f32 %v16328_v33, %v20656_v60  ;;  %16345 = vrcp.f32 %v6523_v7  ;;  %v13555_v63 = vcombine.low %v8550_v1, %v8554_v46  ;;  %v8566_v33 = vld [vmem:[#allocation9 + $0x280] sm:$0xff] }
 0x69b   : > { %v6884_v43 = vmul.f32 %v16330_v4, %v20660_v29  ;;  %8174 = vmatmul.mubr.bf16.gmra.mrb[80].mxu1 %v6955_v61  ;;  %v16332_v55 = vpop.eup %16331  ;;  %v8570_v4 = vld [vmem:[#allocation9 + $0x2a0] sm:$0xff] }
 0x69c   : > { %v6963_v10 = vpack.c.bf16 %v6883_v8, %v6875_v17  ;;  %v16334_v62 = vpop.eup %16333  ;;  %v6524_v34 = vadd.f32 1.0, %v16332_v55  ;;  %v13572_v17 = vcombine.high %v8566_v33, %v8570_v4  ;;  %v13571_v8 = vcombine.low %v8566_v33, %v8570_v4  ;;  %v8574_v7 = vld [vmem:[#allocation9 + $0x2c0] sm:$0xff] }
 0x69d   : > { %v6964_v18 = vpack.c.bf16 %v6884_v43, %v6876_v2  ;;  %v16336_v49 = vpop.eup %16335  ;;  %v6531_v59 = vadd.f32 1.0, %v16334_v62  ;;  %v8578_v2 = vld [vmem:[#allocation9 + $0x2e0] sm:$0xff] }
 0x69e   : > { %16347 = vrcp.f32 %v6524_v34  ;;  %v6532_v23 = vadd.f32 1.0, %v16336_v49  ;;  %v16338_v38 = vpop.eup %16337  ;;  %v13580_v43 = vcombine.high %v8574_v7, %v8578_v2  ;;  %v13579_v55 = vcombine.low %v8574_v7, %v8578_v2  ;;  %v8586_v62 = vld [vmem:[#allocation9 + $0x320] sm:$0xff] }
 0x69f   : > { %8183 = vmatprep.mubr.bf16.mxu1 %v6964_v18  ;;  %16349 = vrcp.f32 %v6531_v59  ;;  %v6891_v29 = vmul.f32 %v16338_v38, %v20666_v32  ;;  %v8590_v49 = vld [vmem:[#allocation9 + $0x340] sm:$0xff] }
 0x6a0   : > { %16351 = vrcp.f32 %v6532_v23  ;;  %v8594_v59 = vld [vmem:[#allocation9 + $0x360] sm:$0xff] }
 0x6a1   : > { %v16340_v60 = vpop.eup %16339  ;;  %v13596_v23 = vcombine.high %v8590_v49, %v8594_v59  ;;  %v13595_v38 = vcombine.low %v8590_v49, %v8594_v59 }
 0x6a2   : > { %v16342_v16 = vpop.eup %16341  ;;  %v6892_v58 = vmul.f32 %v16340_v60, %v20673_v25  ;;  %v8598_v60 = vld [vmem:[#allocation9 + $0x380] sm:$0xff] }
 0x6a3   : > { %v16344_v26 = vpop.eup %16343  ;;  %v6899_v57 = vmul.f32 %v16342_v16, %v20677_v30  ;;  %8184 = vmatmul.mubr.bf16.gmra.mrb[84].mxu1 %v6963_v10  ;;  %v8582_v10 = vld [vmem:[#allocation9 + $0x300] sm:$0xff] }
 0x6a4   : > { %v6900_v48 = vmul.f32 %v16344_v26, %v20680_v50  ;;  %v16346_v51 = vpop.eup %16345  ;;  %v8542_v50 = vld [vmem:[#allocation9 + $0x1c0] sm:$0xff]  ;;  %v13588_v34 = vcombine.high %v8582_v10, %v8586_v62  ;;  %v13587_v18 = vcombine.low %v8582_v10, %v8586_v62 }
 0x6a5   : > { %v6971_v39 = vpack.c.bf16 %v6899_v57, %v6891_v29  ;;  %v6907_v15 = vmul.f32 %v16346_v51, %v20686_v5  ;;  %v13548_v53 = vcombine.high %v8542_v50, %v8546_v31  ;;  %v13547_v36 = vcombine.low %v8542_v50, %v8546_v31  ;;  %v8602_v16 = vld [vmem:[#allocation9 + $0x3a0] sm:$0xff]  ;;  %v20723_v51 = vld [vmem:[#allocation9 + $0x28] sm:$0xff] }
 0x6a6   : > { %v6972_v21 = vpack.c.bf16 %v6900_v48, %v6892_v58  ;;  %v13556_v5 = vcombine.high %v8550_v1, %v8554_v46  ;;  %v13604_v26 = vcombine.high %v8598_v60, %v8602_v16  ;;  %v13603_v29 = vcombine.low %v8598_v60, %v8602_v16  ;;  %v8606_v57 = vld [vmem:[#allocation9 + $0x3c0] sm:$0xff] }
 0x6a7   : > { %9311 = vmatprep.subr.bf16.mxu0 %v13548_v53  ;;  %v8610_v58 = vld [vmem:[#allocation9 + $0x3e0] sm:$0xff] }
 0x6a8   : > { %8193 = vmatprep.mubr.bf16.mxu1 %v6972_v21  ;;  %v16348_v56 = vpop.eup %16347  ;;  %9312 = vmatpush1.bf16.msra.mxu0 %v13547_v36  ;;  %v13612_v48 = vcombine.high %v8606_v57, %v8610_v58  ;;  %v20721_v21 = vld [vmem:[#allocation9 + $0x8] sm:$0xff] }
 0x6a9   : > { %v16350_v40 = vpop.eup %16349  ;;  %v6908_v32 = vmul.f32 %v16348_v56, %v20692_v44  ;;  %9313 = vmatprep.subr.bf16.mxu0 %v13556_v5  ;;  %v8562_v44 = vld [vmem:[#allocation9 + $0x260] sm:$0xff]  ;;  %v13494_v56 = vcombine.high %v20721_v21, %v20723_v51 }
 0x6aa   : > { %v16352_v22 = vpop.eup %16351  ;;  %v6915_v61 = vmul.f32 %v16350_v40, %v20697_v35  ;;  %v8558_v35 = vld [vmem:[#allocation9 + $0x240] sm:$0xff]  ;;  %v13493_v40 = vcombine.low %v20721_v21, %v20723_v51 }
 0x6ab   : > { %8194 = vmatmul.mubr.bf16.gmra.mrb[88].mxu1 %v6971_v39  ;;  %v6916_v30 = vmul.f32 %v16352_v22, %v20700_v0  ;;  %v13564_v42 = vcombine.high %v8558_v35, %v8562_v44  ;;  %v13563_v0 = vcombine.low %v8558_v35, %v8562_v44  ;;  %v13611_v39 = vcombine.low %v8606_v57, %v8610_v58  ;;  %v13329_v22 = vld [vmem:[%s22180_s9 + $0x2] ss:$4 sm:$0x3] }
 0x6ac   : > { %v6979_v28 = vpack.c.bf16 %v6915_v61, %v6907_v15  ;;  %9314 = vmatpush1.bf16.msra.mxu0 %v13555_v63  ;;  %v20733_v15 = vrot.slane %v13329_v22, %v22545_v45  ;;  %v20736_v61 = vrot.slane %v13329_v22, %v22546_v19 }
 0x6ad   : > { %v6980_v25 = vpack.c.bf16 %v6916_v30, %v6908_v32  ;;  %9315 = vmatprep.subr.bf16.mxu0 %v13564_v42 }
 0x6af   : > { %8203 = vmatprep.mubr.bf16.mxu1 %v6980_v25 }
 0x6b0   : > { %9316 = vmatpush1.bf16.msra.mxu0 %v13563_v0 }
 0x6b1   : > { %9317 = vmatprep.subr.bf16.mxu0 %v13572_v17 }
 0x6b3   : > { %8204 = vmatmul.mubr.bf16.gmra.mrb[92].mxu1 %v6979_v28 }
 0x6b4   : > { %9318 = vmatpush1.bf16.msra.mxu0 %v13571_v8 }
 0x6b5   : > { %9319 = vmatprep.subr.bf16.mxu0 %v13580_v43 }
 0x6b8   : > { %9320 = vmatpush1.bf16.msra.mxu0 %v13579_v55 }
 0x6b9   : > { %9321 = vmatprep.subr.bf16.mxu0 %v13588_v34 }
 0x6bc   : > { %9322 = vmatpush1.bf16.msra.mxu0 %v13587_v18 }
 0x6bd   : > { %9323 = vmatprep.subr.bf16.mxu0 %v13596_v23 }
 0x6c0   : > { %9324 = vmatpush1.bf16.msra.mxu0 %v13595_v38 }
 0x6c1   : > { %9325 = vmatprep.subr.bf16.mxu0 %v13604_v26 }
 0x6c4   : > { %9326 = vmatpush1.bf16.msra.mxu0 %v13603_v29 }
 0x6c5   : > { %9327 = vmatprep.subr.bf16.mxu0 %v13612_v48 }
 0x6c8   : > { %9328 = vmatpush1.bf16.msra.mxu0 %v13611_v39 }
 0x6c9   : > { %9410 = vmatprep.subr.bf16.mxu0 %v13494_v56 }
 0x74e   : > { %v8135_v32 = vpop.f32.mrb[64].mxu1 }
 0x74f   : > { %v20739_v30 = vadd.f32 %v8135_v32, %v20733_v15  ;;  %v8137_v28 = vpop.f32.mrb[65].mxu1 }
 0x750   : > { %v20742_v25 = vadd.f32 %v8137_v28, %v20736_v61  ;;  %v8139_v50 = vpop.f32.mrb[66].mxu1 }
 0x751   : > { %v13458_v31 = vmul.f32 -1.442695, %v20739_v30  ;;  %v20746_v53 = vadd.f32 %v8139_v50, %v20733_v15  ;;  %v8141_v36 = vpop.f32.mrb[67].mxu1 }
 0x752   : > { %v13459_v1 = vmul.f32 -1.442695, %v20742_v25  ;;  %v20750_v46 = vadd.f32 %v8141_v36, %v20736_v61 }
 0x753   : > { %16353 = vpow2.f32 %v13458_v31  ;;  %v13460_v5 = vmul.f32 -1.442695, %v20746_v53 }
 0x754   : > { %16355 = vpow2.f32 %v13459_v1  ;;  %v13461_v63 = vmul.f32 -1.442695, %v20750_v46 }
 0x755   : > { %16357 = vpow2.f32 %v13460_v5 }
 0x756   : > { %16359 = vpow2.f32 %v13461_v63  ;;  %v8145_v35 = vpop.f32.mrb[68].mxu1 }
 0x757   : > { %v20755_v44 = vadd.f32 %v8145_v35, %v20733_v15  ;;  %v8147_v42 = vpop.f32.mrb[69].mxu1 }
 0x758   : > { %v20758_v0 = vadd.f32 %v8147_v42, %v20736_v61  ;;  %v8149_v33 = vpop.f32.mrb[70].mxu1 }
 0x759   : > { %v13462_v4 = vmul.f32 -1.442695, %v20755_v44  ;;  %v20762_v17 = vadd.f32 %v8149_v33, %v20733_v15  ;;  %v8151_v8 = vpop.f32.mrb[71].mxu1 }
 0x75a   : > { %v13463_v7 = vmul.f32 -1.442695, %v20758_v0  ;;  %v20766_v2 = vadd.f32 %v8151_v8, %v20736_v61 }
 0x75b   : > { %16361 = vpow2.f32 %v13462_v4  ;;  %v13464_v43 = vmul.f32 -1.442695, %v20762_v17 }
 0x75c   : > { %16363 = vpow2.f32 %v13463_v7  ;;  %v13465_v55 = vmul.f32 -1.442695, %v20766_v2 }
 0x75d   : > { %v16354_v10 = vpop.eup %16353  ;;  %16365 = vpow2.f32 %v13464_v43 }
 0x75e   : > { %v16356_v62 = vpop.eup %16355  ;;  %v8310_v34 = vadd.f32 1.0, %v16354_v10  ;;  %16367 = vpow2.f32 %v13465_v55  ;;  %v8155_v18 = vpop.f32.mrb[72].mxu1 }
 0x75f   : > { %v16358_v49 = vpop.eup %16357  ;;  %v8311_v59 = vadd.f32 1.0, %v16356_v62  ;;  %v20771_v23 = vadd.f32 %v8155_v18, %v20733_v15  ;;  %v8157_v38 = vpop.f32.mrb[73].mxu1 }
 0x760   : > { %v16360_v60 = vpop.eup %16359  ;;  %16369 = vrcp.f32 %v8310_v34  ;;  %v8312_v16 = vadd.f32 1.0, %v16358_v49  ;;  %v20774_v26 = vadd.f32 %v8157_v38, %v20736_v61  ;;  %v8159_v29 = vpop.f32.mrb[74].mxu1  ;;  %v20802_v38 = vld [vmem:[#allocation9 + $0x68] sm:$0xff] }
 0x761   : > { %16371 = vrcp.f32 %v8311_v59  ;;  %v8313_v57 = vadd.f32 1.0, %v16360_v60  ;;  %v13466_v58 = vmul.f32 -1.442695, %v20771_v23  ;;  %v20778_v48 = vadd.f32 %v8159_v29, %v20733_v15  ;;  %v8161_v39 = vpop.f32.mrb[75].mxu1  ;;  %v20800_v59 = vld [vmem:[#allocation9 + $0x48] sm:$0xff] }
 0x762   : > { %16373 = vrcp.f32 %v8312_v16  ;;  %v13467_v56 = vmul.f32 -1.442695, %v20774_v26  ;;  %v20782_v22 = vadd.f32 %v8161_v39, %v20736_v61  ;;  %v20805_v29 = vld [vmem:[#allocation9 + $0x88] sm:$0xff] }
 0x763   : > { %16375 = vrcp.f32 %v8313_v57  ;;  %v13468_v32 = vmul.f32 -1.442695, %v20778_v48  ;;  %v20807_v57 = vld [vmem:[#allocation9 + $0xa8] sm:$0xff] }
 0x764   : > { %16377 = vpow2.f32 %v13466_v58  ;;  %v13469_v28 = vmul.f32 -1.442695, %v20782_v22 }
 0x765   : > { %v16362_v50 = vpop.eup %16361  ;;  %16379 = vpow2.f32 %v13467_v56 }
 0x766   : > { %v16364_v31 = vpop.eup %16363  ;;  %v8314_v36 = vadd.f32 1.0, %v16362_v50  ;;  %16381 = vpow2.f32 %v13468_v32  ;;  %v8165_v1 = vpop.f32.mrb[76].mxu1 }
 0x767   : > { %v16366_v5 = vpop.eup %16365  ;;  %v8315_v63 = vadd.f32 1.0, %v16364_v31  ;;  %16383 = vpow2.f32 %v13469_v28  ;;  %v20787_v35 = vadd.f32 %v8165_v1, %v20733_v15  ;;  %v8167_v42 = vpop.f32.mrb[77].mxu1  ;;  %v13502_v31 = vcombine.high %v20800_v59, %v20802_v38 }
 0x768   : > { %v16368_v33 = vpop.eup %16367  ;;  %16385 = vrcp.f32 %v8314_v36  ;;  %v8316_v4 = vadd.f32 1.0, %v16366_v5  ;;  %v20790_v8 = vadd.f32 %v8167_v42, %v20736_v61  ;;  %v8169_v7 = vpop.f32.mrb[78].mxu1 }
 0x769   : > { %16387 = vrcp.f32 %v8315_v63  ;;  %v8317_v43 = vadd.f32 1.0, %v16368_v33  ;;  %v13470_v55 = vmul.f32 -1.442695, %v20787_v35  ;;  %v20794_v10 = vadd.f32 %v8169_v7, %v20733_v15  ;;  %v8171_v62 = vpop.f32.mrb[79].mxu1 }
 0x76a   : > { %v16370_v34 = vpop.eup %16369  ;;  %16389 = vrcp.f32 %v8316_v4  ;;  %v13471_v18 = vmul.f32 -1.442695, %v20790_v8  ;;  %v20798_v49 = vadd.f32 %v8171_v62, %v20736_v61  ;;  %v13510_v63 = vcombine.high %v20805_v29, %v20807_v57 }
 0x76b   : > { %v16372_v60 = vpop.eup %16371  ;;  %16391 = vrcp.f32 %v8317_v43  ;;  %v13472_v16 = vmul.f32 -1.442695, %v20794_v10  ;;  %v8406_v28 = vmul.f32 %v16370_v34, %v20739_v30 }
 0x76c   : > { %v16374_v58 = vpop.eup %16373  ;;  %v8407_v39 = vmul.f32 %v16372_v60, %v20742_v25  ;;  %16393 = vpow2.f32 %v13470_v55  ;;  %v13473_v56 = vmul.f32 -1.442695, %v20798_v49  ;;  %v13501_v25 = vcombine.low %v20800_v59, %v20802_v38  ;;  %v20919_v59 = vld [vmem:[#allocation9 + $0x168] sm:$0xff] }
 0x76d   : > { %v16376_v32 = vpop.eup %16375  ;;  %v8408_v50 = vmul.f32 %v16374_v58, %v20746_v53  ;;  %16395 = vpow2.f32 %v13471_v18  ;;  %v20836_v18 = vadd.f32 %v8406_v28, %v19630_v47 }
 0x76e   : > { %v16378_v36 = vpop.eup %16377  ;;  %v8409_v1 = vmul.f32 %v16376_v32, %v20750_v46  ;;  %16397 = vpow2.f32 %v13472_v16  ;;  %v8175_v5 = vpop.f32.mrb[80].mxu1  ;;  %v20827_v46 = vadd.f32 %v8407_v39, %v19621_v37  ;;  %v20841_v37 = vld [vmem:[#allocation9 + $0xe8] sm:$0xff] }
 0x76f   : > { %v16380_v42 = vpop.eup %16379  ;;  %v20821_v30 = vadd.f32 %v8408_v50, %v19615_v11  ;;  %v8318_v53 = vadd.f32 1.0, %v16378_v36  ;;  %16399 = vpow2.f32 %v13473_v56  ;;  %v20824_v33 = vadd.f32 %v8175_v5, %v20733_v15  ;;  %v8177_v4 = vpop.f32.mrb[81].mxu1  ;;  %v20839_v56 = vld [vmem:[#allocation9 + $0xc8] sm:$0xff] }
 0x770   : > { %v16382_v7 = vpop.eup %16381  ;;  %v20830_v43 = vadd.f32 %v8409_v1, %v19624_v9  ;;  %v8319_v55 = vadd.f32 1.0, %v16380_v42  ;;  %v20833_v62 = vadd.f32 %v8177_v4, %v20736_v61  ;;  %v8179_v34 = vpop.f32.mrb[82].mxu1  ;;  %v13518_v4 = vcombine.high %v20839_v56, %v20841_v37 }
 0x771   : > { %v16384_v11 = vpop.eup %16383  ;;  %16401 = vrcp.f32 %v8318_v53  ;;  %v8320_v60 = vadd.f32 1.0, %v16382_v7  ;;  %v13474_v16 = vmul.f32 -1.442695, %v20824_v33  ;;  %v8181_v58 = vpop.f32.mrb[83].mxu1  ;;  %v20850_v28 = vpack.c.bf16 %v20821_v30, %v20836_v18 }
 0x772   : > { %v16386_v9 = vpop.eup %16385  ;;  %v20845_v39 = vpack.c.bf16 %v20830_v43, %v20827_v46  ;;  %16403 = vrcp.f32 %v8319_v55  ;;  %v8321_v32 = vadd.f32 1.0, %v16384_v11  ;;  %v13475_v50 = vmul.f32 -1.442695, %v20833_v62 }
 0x773   : > { %v16388_v47 = vpop.eup %16387  ;;  %16405 = vrcp.f32 %v8320_v60  ;;  %v20853_v36 = vadd.f32 %v8179_v34, %v20733_v15  ;;  %v20856_v1 = vadd.f32 %v8181_v58, %v20736_v61  ;;  %v13509_v53 = vcombine.low %v20805_v29, %v20807_v57 }
 0x774   : > { %v16390_v5 = vpop.eup %16389  ;;  %v8411_v42 = vmul.f32 %v16388_v47, %v20758_v0  ;;  %16407 = vrcp.f32 %v8321_v32  ;;  %9329 = vmatprep.mubr.bf16.mxu0 %v20845_v39  ;;  %v8410_v55 = vmul.f32 %v16386_v9, %v20755_v44 }
 0x775   : > { %v16392_v7 = vpop.eup %16391  ;;  %v8412_v34 = vmul.f32 %v16390_v5, %v20762_v17  ;;  %16409 = vpow2.f32 %v13474_v16  ;;  %v13476_v11 = vmul.f32 -1.442695, %v20853_v36  ;;  %9330 = vmatmul.mubr.bf16.vlgmr.msra.gmra.mrb[0].mxu0 %v20850_v28  ;;  %v13477_v32 = vmul.f32 -1.442695, %v20856_v1 }
 0x776   : > { %v16394_v0 = vpop.eup %16393  ;;  %v20869_v60 = vadd.f32 %v8411_v42, %v19663_v27  ;;  %v8413_v58 = vmul.f32 %v16392_v7, %v20766_v2  ;;  %16411 = vpow2.f32 %v13475_v50  ;;  %9411 = vmatpush1.bf16.msra.mxu0 %v13493_v40  ;;  %v8185_v44 = vpop.f32.mrb[84].mxu1 }
 0x777   : > { %v16396_v17 = vpop.eup %16395  ;;  %v20877_v16 = vadd.f32 %v8412_v34, %v19671_v20  ;;  %v8322_v9 = vadd.f32 1.0, %v16394_v0  ;;  %16413 = vpow2.f32 %v13476_v11  ;;  %v20880_v47 = vadd.f32 %v8185_v44, %v20733_v15  ;;  %v8187_v27 = vpop.f32.mrb[85].mxu1  ;;  %9412 = vmatprep.subr.bf16.mxu0 %v13502_v31  ;;  %v20892_v31 = vld [vmem:[#allocation9 + $0x108] sm:$0xff] }
 0x778   : > { %v16398_v2 = vpop.eup %16397  ;;  %v20883_v50 = vadd.f32 %v8413_v58, %v19677_v52  ;;  %v8323_v5 = vadd.f32 1.0, %v16396_v17  ;;  %16415 = vpow2.f32 %v13477_v32  ;;  %v20886_v21 = vadd.f32 %v8187_v27, %v20736_v61  ;;  %v8189_v51 = vpop.f32.mrb[86].mxu1  ;;  %v20894_v11 = vld [vmem:[#allocation9 + $0x128] sm:$0xff] }
 0x779   : > { %v16400_v40 = vpop.eup %16399  ;;  %v20889_v20 = vadd.f32 %v8410_v55, %v19683_v13  ;;  %16417 = vrcp.f32 %v8322_v9  ;;  %v8324_v42 = vadd.f32 1.0, %v16398_v2  ;;  %v13478_v7 = vmul.f32 -1.442695, %v20880_v47  ;;  %v8191_v34 = vpop.f32.mrb[87].mxu1  ;;  %v20917_v17 = vld [vmem:[#allocation9 + $0x148] sm:$0xff] }
 0x77a   : > { %v20898_v52 = vpack.c.bf16 %v20883_v50, %v20869_v60  ;;  %16419 = vrcp.f32 %v8323_v5  ;;  %v8325_v0 = vadd.f32 1.0, %v16400_v40  ;;  %v13479_v58 = vmul.f32 -1.442695, %v20886_v21  ;;  %9413 = vmatpush1.bf16.msra.mxu0 %v13501_v25 }
 0x77b   : > { %v16402_v13 = vpop.eup %16401  ;;  %v20906_v55 = vpack.c.bf16 %v20877_v16, %v20889_v20  ;;  %16421 = vrcp.f32 %v8324_v42  ;;  %v20909_v32 = vadd.f32 %v8189_v51, %v20733_v15  ;;  %v20912_v44 = vadd.f32 %v8191_v34, %v20736_v61  ;;  %9414 = vmatprep.subr.bf16.mxu0 %v13510_v63 }
 0x77c   : > { %v16404_v38 = vpop.eup %16403  ;;  %v8414_v25 = vmul.f32 %v16402_v13, %v20771_v23  ;;  %16423 = vrcp.f32 %v8325_v0  ;;  %9339 = vmatprep.mubr.bf16.mxu0 %v20898_v52  ;;  %v13517_v9 = vcombine.low %v20839_v56, %v20841_v37  ;;  %v13526_v27 = vcombine.high %v20892_v31, %v20894_v11 }
 0x77d   : > { %v16406_v2 = vpop.eup %16405  ;;  %v8415_v5 = vmul.f32 %v16404_v38, %v20774_v26  ;;  %16425 = vpow2.f32 %v13478_v7  ;;  %v13480_v63 = vmul.f32 -1.442695, %v20909_v32  ;;  %v13481_v51 = vmul.f32 -1.442695, %v20912_v44  ;;  %9340 = vmatmul.mubr.bf16.gmra.mrb[4].mxu0 %v20906_v55 }
 0x77e   : > { %v16408_v23 = vpop.eup %16407  ;;  %v8416_v40 = vmul.f32 %v16406_v2, %v20778_v48  ;;  %16427 = vpow2.f32 %v13479_v58  ;;  %9415 = vmatpush1.bf16.msra.mxu0 %v13509_v53  ;;  %v8195_v42 = vpop.f32.mrb[88].mxu1  ;;  %v13525_v34 = vcombine.low %v20892_v31, %v20894_v11  ;;  %v13534_v26 = vcombine.high %v20917_v17, %v20919_v59 }
 0x77f   : > { %v16410_v7 = vpop.eup %16409  ;;  %v20940_v0 = vadd.f32 %v8414_v25, %v19734_v3  ;;  %v8417_v13 = vmul.f32 %v16408_v23, %v20782_v22  ;;  %16429 = vpow2.f32 %v13480_v63  ;;  %v20944_v48 = vadd.f32 %v8195_v42, %v20733_v15  ;;  %v8197_v58 = vpop.f32.mrb[89].mxu1  ;;  %9416 = vmatprep.subr.bf16.mxu0 %v13518_v4 }
 0x780   : > { %v16412_v29 = vpop.eup %16411  ;;  %v20950_v57 = vadd.f32 %v8416_v40, %v19744_v24  ;;  %v8326_v53 = vadd.f32 1.0, %v16410_v7  ;;  %16431 = vpow2.f32 %v13481_v51  ;;  %v20953_v3 = vadd.f32 %v8197_v58, %v20736_v61  ;;  %v8199_v31 = vpop.f32.mrb[90].mxu1 }
 0x781   : > { %v16414_v22 = vpop.eup %16413  ;;  %v20956_v11 = vadd.f32 %v8415_v5, %v19750_v6  ;;  %v20959_v38 = vadd.f32 %v8417_v13, %v19753_v12  ;;  %v8327_v25 = vadd.f32 1.0, %v16412_v29  ;;  %v20962_v56 = vadd.f32 %v8199_v31, %v20733_v15  ;;  %v8201_v37 = vpop.f32.mrb[91].mxu1  ;;  %v20969_v6 = vld [vmem:[#allocation9 + $0x188] sm:$0xff] }
 0x782   : > { %v16416_v24 = vpop.eup %16415  ;;  %v20966_v4 = vpack.c.bf16 %v20950_v57, %v20940_v0  ;;  %16433 = vrcp.f32 %v8326_v53  ;;  %v8328_v2 = vadd.f32 1.0, %v16414_v22  ;;  %v13482_v63 = vmul.f32 -1.442695, %v20944_v48  ;;  %9417 = vmatpush1.bf16.msra.mxu0 %v13517_v9  ;;  %v20971_v5 = vld [vmem:[#allocation9 + $0x1a8] sm:$0xff] }
 0x783   : > { %v16418_v12 = vpop.eup %16417  ;;  %v20975_v51 = vpack.c.bf16 %v20959_v38, %v20956_v11  ;;  %16435 = vrcp.f32 %v8327_v25  ;;  %v8329_v23 = vadd.f32 1.0, %v16416_v24  ;;  %v13483_v40 = vmul.f32 -1.442695, %v20953_v3  ;;  %9418 = vmatprep.subr.bf16.mxu0 %v13526_v27 }
 0x784   : > { %v16420_v42 = vpop.eup %16419  ;;  %v8418_v7 = vmul.f32 %v16418_v12, %v20787_v35  ;;  %16437 = vrcp.f32 %v8328_v2  ;;  %v13484_v9 = vmul.f32 -1.442695, %v20962_v56  ;;  %v20981_v13 = vadd.f32 %v8201_v37, %v20736_v61 }
 0x785   : > { %v16422_v58 = vpop.eup %16421  ;;  %v8419_v29 = vmul.f32 %v16420_v42, %v20790_v8  ;;  %16439 = vrcp.f32 %v8329_v23  ;;  %9349 = vmatprep.mubr.bf16.mxu0 %v20975_v51  ;;  %v13533_v53 = vcombine.low %v20917_v17, %v20919_v59  ;;  %v13542_v27 = vcombine.high %v20969_v6, %v20971_v5 }
 0x786   : > { %v16424_v31 = vpop.eup %16423  ;;  %v8420_v35 = vmul.f32 %v16422_v58, %v20794_v10  ;;  %16441 = vpow2.f32 %v13482_v63  ;;  %v13485_v22 = vmul.f32 -1.442695, %v20981_v13  ;;  %9350 = vmatmul.mubr.bf16.gmra.mrb[8].mxu0 %v20966_v4  ;;  %v8205_v25 = vpop.f32.mrb[92].mxu1  ;;  %v13541_v8 = vcombine.low %v20969_v6, %v20971_v5 }
 0x787   : > { %v16426_v37 = vpop.eup %16425  ;;  %v20995_v24 = vadd.f32 %v8418_v7, %v19789_v41  ;;  %v8421_v2 = vmul.f32 %v16424_v31, %v20798_v49  ;;  %16443 = vpow2.f32 %v13483_v40  ;;  %9419 = vmatpush1.bf16.msra.mxu0 %v13525_v34  ;;  %v20999_v12 = vadd.f32 %v8205_v25, %v20733_v15  ;;  %v8207_v10 = vpop.f32.mrb[93].mxu1  ;;  %v22604_v49 = vld [vmem:[#allocation81_spill] sm:$0xff]  ;;  %v22606_v40 = vld [vmem:[#allocation83_spill] sm:$0xff] }
 0x788   : > { %v16428_v63 = vpop.eup %16427  ;;  %v21002_v23 = vadd.f32 %v8420_v35, %v19796_v54  ;;  %v8330_v42 = vadd.f32 1.0, %v16426_v37  ;;  %16445 = vpow2.f32 %v13484_v9  ;;  %v21005_v6 = vadd.f32 %v8207_v10, %v20736_v61  ;;  %v8209_v5 = vpop.f32.mrb[94].mxu1  ;;  %9420 = vmatprep.subr.bf16.mxu0 %v13534_v26  ;;  %v8543_v31 = vld [vmem:[#allocation9 + $0x1c8] sm:$0xff] }
 0x789   : > { %v16430_v41 = vpop.eup %16429  ;;  %v21011_v34 = vadd.f32 %v8419_v29, %v22604_v49  ;;  %v21014_v7 = vadd.f32 %v8421_v2, %v22606_v40  ;;  %v8331_v58 = vadd.f32 1.0, %v16428_v63  ;;  %16447 = vpow2.f32 %v13485_v22  ;;  %v8211_v54 = vpop.f32.mrb[95].mxu1  ;;  %v8547_v9 = vld [vmem:[#allocation9 + $0x1e8] sm:$0xff] }
 0x78a   : > { %22603 = vst [vmem:[#allocation55_spill] sm:$0xff] %v21002_v23  ;;  %v16432_v35 = vpop.eup %16431  ;;  %16449 = vrcp.f32 %v8330_v42  ;;  %v8332_v25 = vadd.f32 1.0, %v16430_v41  ;;  %v13486_v37 = vmul.f32 -1.442695, %v20999_v12  ;;  %v13487_v17 = vmul.f32 -1.442695, %v21005_v6 }
 0x78b   : > { %22605 = vst [vmem:[#allocation54_spill] sm:$0xff] %v21011_v34  ;;  %22607 = vst [vmem:[#allocation89_spill] sm:$0xff] %v21014_v7  ;;  %v21020_v59 = vpack.c.bf16 %v21014_v7, %v21011_v34  ;;  %16451 = vrcp.f32 %v8331_v58  ;;  %v8333_v26 = vadd.f32 1.0, %v16432_v35  ;;  %v21023_v29 = vadd.f32 %v8209_v5, %v20733_v15  ;;  %9421 = vmatpush1.bf16.msra.mxu0 %v13533_v53  ;;  %v8551_v15 = vld [vmem:[#allocation9 + $0x208] sm:$0xff]  ;;  %v22609_v34 = vld [vmem:[#allocation79_spill] sm:$0xff] }
 0x78c   : > { %v16434_v22 = vpop.eup %16433  ;;  %v21027_v2 = vpack.c.bf16 %v21002_v23, %v20995_v24  ;;  %16453 = vrcp.f32 %v8332_v25  ;;  %v21030_v10 = vadd.f32 %v8211_v54, %v20736_v61  ;;  %9422 = vmatprep.subr.bf16.mxu0 %v13542_v27  ;;  %v13550_v63 = vcombine.high %v8543_v31, %v8547_v9  ;;  %v8555_v5 = vld [vmem:[#allocation9 + $0x228] sm:$0xff] }
 0x78d   : > { %v16436_v42 = vpop.eup %16435  ;;  %16455 = vrcp.f32 %v8333_v26  ;;  %v13488_v41 = vmul.f32 -1.442695, %v21023_v29  ;;  %9359 = vmatprep.mubr.bf16.mxu0 %v21020_v59  ;;  %v8422_v27 = vmul.f32 %v16434_v22, %v20824_v33  ;;  %v13549_v54 = vcombine.low %v8543_v31, %v8547_v9  ;;  %v8559_v31 = vld [vmem:[#allocation9 + $0x248] sm:$0xff]  ;;  %v22612_v22 = vld [vmem:[#allocation67_spill] sm:$0xff] }
 0x78e   : > { %v16438_v53 = vpop.eup %16437  ;;  %v8423_v49 = vmul.f32 %v16436_v42, %v20833_v62  ;;  %16457 = vpow2.f32 %v13486_v37  ;;  %v13489_v40 = vmul.f32 -1.442695, %v21030_v10  ;;  %9360 = vmatmul.mubr.bf16.gmra.mrb[12].mxu0 %v21027_v2  ;;  %v13558_v26 = vcombine.high %v8551_v15, %v8555_v5  ;;  %v22608_v37 = vld [vmem:[#allocation84_spill] sm:$0xff]  ;;  %v8563_v9 = vld [vmem:[#allocation9 + $0x268] sm:$0xff] }
 0x78f   : > { %v16440_v61 = vpop.eup %16439  ;;  %v8424_v58 = vmul.f32 %v16438_v53, %v20853_v36  ;;  %16459 = vpow2.f32 %v13487_v17  ;;  %9423 = vmatpush1.bf16.msra.mxu0 %v13541_v8  ;;  %v22610_v36 = vld [vmem:[#allocation78_spill] sm:$0xff] }
 0x790   : > { %v16442_v35 = vpop.eup %16441  ;;  %v8425_v25 = vmul.f32 %v16440_v61, %v20856_v1  ;;  %16461 = vpow2.f32 %v13488_v41  ;;  %9424 = vmatprep.subr.bf16.mxu0 %v13550_v63  ;;  %v21044_v33 = vadd.f32 %v8423_v49, %v22609_v34  ;;  %v21050_v63 = vadd.f32 %v8422_v27, %v22612_v22 }
 0x791   : > { %v16444_v62 = vpop.eup %16443  ;;  %v21041_v42 = vadd.f32 %v8424_v58, %v22608_v37  ;;  %v8334_v7 = vadd.f32 1.0, %v16442_v35  ;;  %16463 = vpow2.f32 %v13489_v40  ;;  %v13557_v49 = vcombine.low %v8551_v15, %v8555_v5 }
 0x792   : > { %v16446_v23 = vpop.eup %16445  ;;  %v21047_v17 = vadd.f32 %v8425_v25, %v22610_v36  ;;  %v8335_v8 = vadd.f32 1.0, %v16444_v62  ;;  %v13566_v27 = vcombine.high %v8559_v31, %v8563_v9  ;;  %v13565_v37 = vcombine.low %v8559_v31, %v8563_v9 }
 0x793   : > { %v16448_v1 = vpop.eup %16447  ;;  %16465 = vrcp.f32 %v8334_v7  ;;  %v8336_v41 = vadd.f32 1.0, %v16446_v23  ;;  %9425 = vmatpush1.bf16.msra.mxu0 %v13549_v54  ;;  %v21058_v58 = vpack.c.bf16 %v21041_v42, %v21050_v63  ;;  %v8567_v7 = vld [vmem:[#allocation9 + $0x288] sm:$0xff] }
 0x794   : > { %22611 = vst [vmem:[#allocation53_spill] sm:$0xff] %v21047_v17  ;;  %v16450_v53 = vpop.eup %16449  ;;  %v21054_v40 = vpack.c.bf16 %v21047_v17, %v21044_v33  ;;  %16467 = vrcp.f32 %v8335_v8  ;;  %v8337_v34 = vadd.f32 1.0, %v16448_v1  ;;  %9426 = vmatprep.subr.bf16.mxu0 %v13558_v26  ;;  %v8571_v54 = vld [vmem:[#allocation9 + $0x2a8] sm:$0xff]  ;;  %v22613_v8 = vld [vmem:[#allocation64_spill] sm:$0xff] }
 0x795   : > { %v16452_v61 = vpop.eup %16451  ;;  %16469 = vrcp.f32 %v8336_v41  ;;  %v8426_v62 = vmul.f32 %v16450_v53, %v20880_v47  ;;  %v13574_v22 = vcombine.high %v8567_v7, %v8571_v54  ;;  %v22617_v47 = vld [vmem:[#allocation56_spill] sm:$0xff]  ;;  %v8579_v17 = vld [vmem:[#allocation9 + $0x2e8] sm:$0xff] }
 0x796   : > { %v16454_v35 = vpop.eup %16453  ;;  %v8427_v23 = vmul.f32 %v16452_v61, %v20886_v21  ;;  %16471 = vrcp.f32 %v8337_v34  ;;  %9369 = vmatprep.mubr.bf16.mxu0 %v21054_v40  ;;  %v22615_v34 = vld [vmem:[#allocation57_spill] sm:$0xff] }
 0x797   : > { %v16456_v25 = vpop.eup %16455  ;;  %v8428_v15 = vmul.f32 %v16454_v35, %v20909_v32  ;;  %9370 = vmatmul.mubr.bf16.gmra.mrb[16].mxu0 %v21058_v58  ;;  %v8575_v35 = vld [vmem:[#allocation9 + $0x2c8] sm:$0xff] }
 0x798   : > { %v16458_v5 = vpop.eup %16457  ;;  %v8429_v26 = vmul.f32 %v16456_v25, %v20912_v44  ;;  %9427 = vmatpush1.bf16.msra.mxu0 %v13557_v49  ;;  %v21070_v61 = vadd.f32 %v8427_v23, %v22615_v34  ;;  %v22619_v49 = vld [vmem:[#allocation70_spill] sm:$0xff]  ;;  %v13573_v23 = vcombine.low %v8567_v7, %v8571_v54  ;;  %v13581_v34 = vcombine.low %v8575_v35, %v8579_v17 }
 0x799   : > { %v16460_v36 = vpop.eup %16459  ;;  %v21067_v21 = vadd.f32 %v8428_v15, %v22613_v8  ;;  %v8338_v1 = vadd.f32 1.0, %v16458_v5  ;;  %9428 = vmatprep.subr.bf16.mxu0 %v13566_v27  ;;  %v21076_v31 = vadd.f32 %v8426_v62, %v22619_v49  ;;  %v8587_v8 = vld [vmem:[#allocation9 + $0x328] sm:$0xff]  ;;  %v22622_v49 = vld [vmem:[#allocation87_spill] sm:$0xff] }
 0x79a   : > { %v16462_v41 = vpop.eup %16461  ;;  %22616 = vst [vmem:[#allocation59_spill] sm:$0xff] %v21070_v61  ;;  %v21073_v32 = vadd.f32 %v8429_v26, %v22617_v47  ;;  %v8339_v53 = vadd.f32 1.0, %v16460_v36  ;;  %v13582_v26 = vcombine.high %v8575_v35, %v8579_v17  ;;  %v8583_v36 = vld [vmem:[#allocation9 + $0x308] sm:$0xff] }
 0x79b   : > { %22614 = vst [vmem:[#allocation90_spill] sm:$0xff] %v21067_v21  ;;  %v16464_v44 = vpop.eup %16463  ;;  %16473 = vrcp.f32 %v8338_v1  ;;  %v8340_v9 = vadd.f32 1.0, %v16462_v41  ;;  %v21084_v5 = vpack.c.bf16 %v21067_v21, %v21076_v31  ;;  %v13590_v47 = vcombine.high %v8583_v36, %v8587_v8 }
 0x79c   : > { %22618 = vst [vmem:[#allocation58_spill] sm:$0xff] %v21073_v32  ;;  %v21080_v27 = vpack.c.bf16 %v21073_v32, %v21070_v61  ;;  %16475 = vrcp.f32 %v8339_v53  ;;  %v8341_v25 = vadd.f32 1.0, %v16464_v44  ;;  %9429 = vmatpush1.bf16.msra.mxu0 %v13565_v37  ;;  %v22620_v53 = vld [vmem:[#allocation76_spill] sm:$0xff]  ;;  %v8595_v32 = vld [vmem:[#allocation9 + $0x368] sm:$0xff]  ;;  %v13589_v17 = vcombine.low %v8583_v36, %v8587_v8 }
 0x79d   : > { %v16466_v15 = vpop.eup %16465  ;;  %16477 = vrcp.f32 %v8340_v9  ;;  %9430 = vmatprep.subr.bf16.mxu0 %v13574_v22  ;;  %v14979_v61 = vld [vmem:[#allocation10 + $0x260] ss:$8 sps:$4 sm:$0xff]  }
 0x79e   : > { %v16468_v62 = vpop.eup %16467  ;;  %16479 = vrcp.f32 %v8341_v25  ;;  %9379 = vmatprep.mubr.bf16.mxu0 %v21080_v27  ;;  %v8430_v54 = vmul.f32 %v16466_v15, %v20944_v48  ;;  %v22626_v48 = vld [vmem:[#allocation16_spill] sm:$0xff] }
 0x79f   : > { %v16470_v1 = vpop.eup %16469  ;;  %v8431_v41 = vmul.f32 %v16468_v62, %v20953_v3  ;;  %9380 = vmatmul.mubr.bf16.gmra.mrb[20].mxu0 %v21084_v5  ;;  %v22624_v3 = vld [vmem:[#allocation82_spill] sm:$0xff]  ;;  %v8591_v62 = vld [vmem:[#allocation9 + $0x348] sm:$0xff] }
 0x7a0   : > { %v16472_v7 = vpop.eup %16471  ;;  %v8432_v37 = vmul.f32 %v16470_v1, %v20962_v56  ;;  %9431 = vmatpush1.bf16.msra.mxu0 %v13573_v23  ;;  %v21102_v15 = vadd.f32 %v8430_v54, %v22626_v48  ;;  %v8603_v54 = vld [vmem:[#allocation9 + $0x3a8] sm:$0xff]  ;;  %v13597_v8 = vcombine.low %v8591_v62, %v8595_v32  ;;  %v22632_v48 = vld [vmem:[#allocation86_spill] sm:$0xff] }
 0x7a1   : > { %v8433_v22 = vmul.f32 %v16472_v7, %v20981_v13  ;;  %9432 = vmatprep.subr.bf16.mxu0 %v13582_v26  ;;  %v21096_v9 = vadd.f32 %v8431_v41, %v22622_v49  ;;  %v13598_v26 = vcombine.high %v8591_v62, %v8595_v32  ;;  %v8599_v7 = vld [vmem:[#allocation9 + $0x388] sm:$0xff]  ;;  %v22630_v49 = vld [vmem:[#allocation91_spill] sm:$0xff] }
 0x7a2   : > { %v21093_v44 = vadd.f32 %v8432_v37, %v22620_v53  ;;  %22627 = vst [vmem:[#allocation60_spill] sm:$0xff] %v21102_v15  ;;  %v13605_v32 = vcombine.low %v8599_v7, %v8603_v54 }
 0x7a3   : > { %22623 = vst [vmem:[#allocation63_spill] sm:$0xff] %v21096_v9  ;;  %v21099_v25 = vadd.f32 %v8433_v22, %v22624_v3 }
 0x7a4   : > { %22621 = vst [vmem:[#allocation61_spill] sm:$0xff] %v21093_v44  ;;  %9433 = vmatpush1.bf16.msra.mxu0 %v13581_v34  ;;  %v21110_v23 = vpack.c.bf16 %v21093_v44, %v21102_v15 }
 0x7a5   : > { %22625 = vst [vmem:[#allocation62_spill] sm:$0xff] %v21099_v25  ;;  %v16474_v56 = vpop.eup %16473  ;;  %v21106_v13 = vpack.c.bf16 %v21099_v25, %v21096_v9  ;;  %9434 = vmatprep.subr.bf16.mxu0 %v13590_v47  ;;  %v22628_v47 = vld [vmem:[#allocation77_spill] sm:$0xff] }
 0x7a6   : > { %v16476_v35 = vpop.eup %16475  ;;  %v8434_v34 = vmul.f32 %v16474_v56, %v20999_v12  ;;  %v8607_v12 = vld [vmem:[#allocation9 + $0x3c8] sm:$0xff] }
 0x7a7   : > { %v16478_v1 = vpop.eup %16477  ;;  %v8435_v41 = vmul.f32 %v16476_v35, %v21005_v6  ;;  %9389 = vmatprep.mubr.bf16.mxu0 %v21106_v13  ;;  %v13606_v6 = vcombine.high %v8599_v7, %v8603_v54  ;;  %v8611_v56 = vld [vmem:[#allocation9 + $0x3e8] sm:$0xff]  ;;  %v14868_v54 = vld [vmem:[#allocation10 + $0x10] ss:$8 sps:$4 sm:$0xff]  }
 0x7a8   : > { %v16480_v37 = vpop.eup %16479  ;;  %v8436_v22 = vmul.f32 %v16478_v1, %v21023_v29  ;;  %9390 = vmatmul.mubr.bf16.gmra.mrb[24].mxu0 %v21110_v23  ;;  %v22634_v29 = vld [vmem:[#allocation80_spill] sm:$0xff] }
 0x7a9   : > { %v8437_v36 = vmul.f32 %v16480_v37, %v21030_v10  ;;  %9435 = vmatpush1.bf16.msra.mxu0 %v13589_v17  ;;  %v21122_v3 = vadd.f32 %v8435_v41, %v22630_v49  ;;  %v21128_v1 = vadd.f32 %v8434_v34, %v22634_v29  ;;  %v13614_v17 = vcombine.high %v8607_v12, %v8611_v56  ;;  %v14867_v41 = vld [vmem:[#allocation10 + $0x4] ss:$8 sps:$4 sm:$0xff]   ;;  %v8488_v37 = vld [vmem:[#allocation9 + $0x10] sm:$0xff]  ;;  %v14871_v29 = vld [vmem:[#allocation10 + $0x20] ss:$8 sps:$4 sm:$0xff]  }
 0x7aa   : > { %v21119_v53 = vadd.f32 %v8436_v22, %v22628_v47  ;;  %9436 = vmatprep.subr.bf16.mxu0 %v13598_v26  ;;  %v14865_v26 = vld [vmem:[#allocation10] ss:$8 sps:$4 sm:$0xff]   ;;  %v8492_v22 = vld [vmem:[#allocation9 + $0x30] sm:$0xff]  ;;  %11490 = vmatprep.subr.bf16.mxu1 %v14867_v41  ;;  %v13613_v34 = vcombine.low %v8607_v12, %v8611_v56  ;;  %v14873_v49 = vld [vmem:[#allocation10 + $0x24] ss:$8 sps:$4 sm:$0xff]  }
 0x7ab   : > { %22631 = vst [vmem:[#allocation75_spill] sm:$0xff] %v21122_v3  ;;  %v21125_v35 = vadd.f32 %v8437_v36, %v22632_v48  ;;  %22635 = vst [vmem:[#allocation73_spill] sm:$0xff] %v21128_v1  ;;  %v13496_v7 = vcombine.high %v8488_v37, %v8492_v22  ;;  %11491 = vmatpush1.bf16.msra.mxu1 %v14865_v26  ;;  %v14870_v36 = vld [vmem:[#allocation10 + $0x14] ss:$8 sps:$4 sm:$0xff]   ;;  %v14874_v26 = vld [vmem:[#allocation10 + $0x30] ss:$8 sps:$4 sm:$0xff]  }
 0x7ac   : > { %22629 = vst [vmem:[#allocation65_spill] sm:$0xff] %v21119_v53  ;;  %v21136_v62 = vpack.c.bf16 %v21119_v53, %v21128_v1  ;;  %v8500_v47 = vld [vmem:[#allocation9 + $0x70] sm:$0xff]  ;;  %11492 = vmatprep.subr.bf16.mxu1 %v14870_v36  ;;  %v14877_v36 = vld [vmem:[#allocation10 + $0x40] ss:$8 sps:$4 sm:$0xff]  }
 0x7ad   : > { %22633 = vst [vmem:[#allocation74_spill] sm:$0xff] %v21125_v35  ;;  %v21132_v10 = vpack.c.bf16 %v21125_v35, %v21122_v3  ;;  %9437 = vmatpush1.bf16.msra.mxu0 %v13597_v8  ;;  %v8496_v8 = vld [vmem:[#allocation9 + $0x50] sm:$0xff] }
 0x7ae   : > { %9438 = vmatprep.subr.bf16.mxu0 %v13606_v6  ;;  %v13495_v6 = vcombine.low %v8488_v37, %v8492_v22  ;;  %v13504_v48 = vcombine.high %v8496_v8, %v8500_v47  ;;  %v8504_v41 = vld [vmem:[#allocation9 + $0x90] sm:$0xff]  ;;  %v13503_v12 = vcombine.low %v8496_v8, %v8500_v47 }
 0x7af   : > { %9399 = vmatprep.mubr.bf16.mxu0 %v21132_v10  ;;  %11493 = vmatpush1.bf16.msra.mxu1 %v14868_v54  ;;  %v14876_v56 = vld [vmem:[#allocation10 + $0x34] ss:$8 sps:$4 sm:$0xff]  }
 0x7b0   : > { %9400 = vmatmul.mubr.bf16.gmra.mrb[28].mxu0 %v21136_v62  ;;  %11494 = vmatprep.subr.bf16.mxu1 %v14873_v49  ;;  %v8512_v37 = vld [vmem:[#allocation9 + $0xd0] sm:$0xff] }
 0x7b1   : > { %9439 = vmatpush1.bf16.msra.mxu0 %v13605_v32  ;;  %9442 = vmatprep.mubr.bf16.mxu0 %v20845_v39  ;;  %v8508_v32 = vld [vmem:[#allocation9 + $0xb0] sm:$0xff] }
 0x7b2   : > { %9440 = vmatprep.subr.bf16.mxu0 %v13614_v17  ;;  %v13512_v17 = vcombine.high %v8504_v41, %v8508_v32  ;;  %v8516_v22 = vld [vmem:[#allocation9 + $0xf0] sm:$0xff] }
 0x7b3   : > { %11495 = vmatpush1.bf16.msra.mxu1 %v14871_v29  ;;  %v13520_v54 = vcombine.high %v8512_v37, %v8516_v22  ;;  %v8520_v49 = vld [vmem:[#allocation9 + $0x110] sm:$0xff]  ;;  %v13519_v8 = vcombine.low %v8512_v37, %v8516_v22 }
 0x7b4   : > { %11496 = vmatprep.subr.bf16.mxu1 %v14876_v56  ;;  %v14882_v47 = vld [vmem:[#allocation10 + $0x54] ss:$8 sps:$4 sm:$0xff]   ;;  %v14880_v29 = vld [vmem:[#allocation10 + $0x50] ss:$8 sps:$4 sm:$0xff]  }
 0x7b5   : > { %9441 = vmatpush1.bf16.msra.mxu0 %v13613_v34  ;;  %v14879_v34 = vld [vmem:[#allocation10 + $0x44] ss:$8 sps:$4 sm:$0xff]  }
 0x7b6   : > { %9523 = vmatprep.subr.bf16.mxu0 %v13496_v7  ;;  %v13511_v7 = vcombine.low %v8504_v41, %v8508_v32  ;;  %v8532_v41 = vld [vmem:[#allocation9 + $0x170] sm:$0xff]  ;;  %v14885_v32 = vld [vmem:[#allocation10 + $0x64] ss:$8 sps:$4 sm:$0xff]  }
 0x7b7   : > { %11497 = vmatpush1.bf16.msra.mxu1 %v14874_v26  ;;  %v14883_v26 = vld [vmem:[#allocation10 + $0x60] ss:$8 sps:$4 sm:$0xff]  }
 0x7b8   : > { %9443 = vmatmul.mubr.bf16.vlgmr.msra.gmra.mrb[32].mxu0 %v20850_v28  ;;  %11498 = vmatprep.subr.bf16.mxu1 %v14879_v34  ;;  %v8536_v34 = vld [vmem:[#allocation9 + $0x190] sm:$0xff] }
 0x7b9   : > { %9524 = vmatpush1.bf16.msra.mxu0 %v13495_v6  ;;  %9452 = vmatprep.mubr.bf16.mxu0 %v20898_v52  ;;  %v8524_v6 = vld [vmem:[#allocation9 + $0x130] sm:$0xff] }
 0x7ba   : > { %9525 = vmatprep.subr.bf16.mxu0 %v13504_v48  ;;  %v13528_v48 = vcombine.high %v8520_v49, %v8524_v6  ;;  %v13527_v56 = vcombine.low %v8520_v49, %v8524_v6  ;;  %v14886_v49 = vld [vmem:[#allocation10 + $0x70] ss:$8 sps:$4 sm:$0xff]  }
 0x7bb   : > { %11499 = vmatpush1.bf16.msra.mxu1 %v14877_v36  ;;  %v8544_v36 = vld [vmem:[#allocation9 + $0x1d0] sm:$0xff] }
 0x7bc   : > { %11500 = vmatprep.subr.bf16.mxu1 %v14882_v47 }
 0x7bd   : > { %9526 = vmatpush1.bf16.msra.mxu0 %v13503_v12  ;;  %v8528_v12 = vld [vmem:[#allocation9 + $0x150] sm:$0xff] }
 0x7be   : > { %9527 = vmatprep.subr.bf16.mxu0 %v13512_v17  ;;  %v13536_v17 = vcombine.high %v8528_v12, %v8532_v41  ;;  %v13535_v37 = vcombine.low %v8528_v12, %v8532_v41 }
 0x7bf   : > { %11501 = vmatpush1.bf16.msra.mxu1 %v14880_v29  ;;  %v8552_v29 = vld [vmem:[#allocation9 + $0x210] sm:$0xff] }
 0x7c0   : > { %9453 = vmatmul.mubr.bf16.gmra.mrb[36].mxu0 %v20906_v55  ;;  %11502 = vmatprep.subr.bf16.mxu1 %v14885_v32  ;;  %v8556_v32 = vld [vmem:[#allocation9 + $0x230] sm:$0xff] }
 0x7c1   : > { %9528 = vmatpush1.bf16.msra.mxu0 %v13511_v7  ;;  %9462 = vmatprep.mubr.bf16.mxu0 %v20975_v51  ;;  %v8540_v7 = vld [vmem:[#allocation9 + $0x1b0] sm:$0xff]  ;;  %v13560_v41 = vcombine.high %v8552_v29, %v8556_v32 }
 0x7c2   : > { %9529 = vmatprep.subr.bf16.mxu0 %v13520_v54  ;;  %v13544_v22 = vcombine.high %v8536_v34, %v8540_v7  ;;  %v14888_v54 = vld [vmem:[#allocation10 + $0x74] ss:$8 sps:$4 sm:$0xff]   ;;  %v13543_v6 = vcombine.low %v8536_v34, %v8540_v7  ;;  %v14892_v7 = vld [vmem:[#allocation10 + $0x90] ss:$8 sps:$4 sm:$0xff]  }
 0x7c3   : > { %11503 = vmatpush1.bf16.msra.mxu1 %v14883_v26  ;;  %v8560_v26 = vld [vmem:[#allocation9 + $0x250] sm:$0xff] }
 0x7c4   : > { %11504 = vmatprep.subr.bf16.mxu1 %v14888_v54  ;;  %v8564_v34 = vld [vmem:[#allocation9 + $0x270] sm:$0xff]  ;;  %v14897_v54 = vld [vmem:[#allocation10 + $0xa4] ss:$8 sps:$4 sm:$0xff]  }
 0x7c5   : > { %9530 = vmatpush1.bf16.msra.mxu0 %v13519_v8  ;;  %v8548_v8 = vld [vmem:[#allocation9 + $0x1f0] sm:$0xff] }
 0x7c6   : > { %9531 = vmatprep.subr.bf16.mxu0 %v13528_v48  ;;  %v13552_v47 = vcombine.high %v8544_v36, %v8548_v8  ;;  %v14891_v48 = vld [vmem:[#allocation10 + $0x84] ss:$8 sps:$4 sm:$0xff]   ;;  %v13551_v12 = vcombine.low %v8544_v36, %v8548_v8  ;;  %v13567_v36 = vcombine.low %v8560_v26, %v8564_v34 }
 0x7c7   : > { %11505 = vmatpush1.bf16.msra.mxu1 %v14886_v49  ;;  %v8568_v49 = vld [vmem:[#allocation9 + $0x290] sm:$0xff] }
 0x7c8   : > { %9463 = vmatmul.mubr.bf16.gmra.mrb[40].mxu0 %v20966_v4  ;;  %11506 = vmatprep.subr.bf16.mxu1 %v14891_v48  ;;  %v8572_v48 = vld [vmem:[#allocation9 + $0x2b0] sm:$0xff] }
 0x7c9   : > { %9532 = vmatpush1.bf16.msra.mxu0 %v13527_v56  ;;  %9472 = vmatprep.mubr.bf16.mxu0 %v21020_v59  ;;  %v14889_v56 = vld [vmem:[#allocation10 + $0x80] ss:$8 sps:$4 sm:$0xff]   ;;  %v13576_v8 = vcombine.high %v8568_v49, %v8572_v48 }
 0x7ca   : > { %9533 = vmatprep.subr.bf16.mxu0 %v13536_v17  ;;  %v14894_v17 = vld [vmem:[#allocation10 + $0x94] ss:$8 sps:$4 sm:$0xff]  }
 0x7cb   : > { %11507 = vmatpush1.bf16.msra.mxu1 %v14889_v56  ;;  %v8576_v56 = vld [vmem:[#allocation9 + $0x2d0] sm:$0xff] }
 0x7cc   : > { %11508 = vmatprep.subr.bf16.mxu1 %v14894_v17  ;;  %v14903_v17 = vld [vmem:[#allocation10 + $0xc4] ss:$8 sps:$4 sm:$0xff]  }
 0x7cd   : > { %9534 = vmatpush1.bf16.msra.mxu0 %v13535_v37  ;;  %v13559_v37 = vcombine.low %v8552_v29, %v8556_v32  ;;  %v8580_v29 = vld [vmem:[#allocation9 + $0x2f0] sm:$0xff] }
 0x7ce   : > { %9535 = vmatprep.subr.bf16.mxu0 %v13544_v22  ;;  %v13568_v22 = vcombine.high %v8560_v26, %v8564_v34  ;;  %v14898_v32 = vld [vmem:[#allocation10 + $0xb0] ss:$8 sps:$4 sm:$0xff]   ;;  %v13583_v26 = vcombine.low %v8576_v56, %v8580_v29 }
 0x7cf   : > { %11509 = vmatpush1.bf16.msra.mxu1 %v14892_v7  ;;  %v8584_v7 = vld [vmem:[#allocation9 + $0x310] sm:$0xff] }
 0x7d0   : > { %9473 = vmatmul.mubr.bf16.gmra.mrb[44].mxu0 %v21027_v2  ;;  %11510 = vmatprep.subr.bf16.mxu1 %v14897_v54  ;;  %v8588_v54 = vld [vmem:[#allocation9 + $0x330] sm:$0xff] }
 0x7d1   : > { %9536 = vmatpush1.bf16.msra.mxu0 %v13543_v6  ;;  %9482 = vmatprep.mubr.bf16.mxu0 %v21054_v40  ;;  %v14895_v6 = vld [vmem:[#allocation10 + $0xa0] ss:$8 sps:$4 sm:$0xff]   ;;  %v13592_v34 = vcombine.high %v8584_v7, %v8588_v54 }
 0x7d2   : > { %9537 = vmatprep.subr.bf16.mxu0 %v13552_v47  ;;  %v14900_v47 = vld [vmem:[#allocation10 + $0xb4] ss:$8 sps:$4 sm:$0xff]  }
 0x7d3   : > { %11511 = vmatpush1.bf16.msra.mxu1 %v14895_v6  ;;  %v8592_v6 = vld [vmem:[#allocation9 + $0x350] sm:$0xff] }
 0x7d4   : > { %11512 = vmatprep.subr.bf16.mxu1 %v14900_v47  ;;  %v14909_v47 = vld [vmem:[#allocation10 + $0xe4] ss:$8 sps:$4 sm:$0xff]  }
 0x7d5   : > { %9538 = vmatpush1.bf16.msra.mxu0 %v13551_v12  ;;  %v13575_v12 = vcombine.low %v8568_v49, %v8572_v48  ;;  %v8596_v49 = vld [vmem:[#allocation9 + $0x370] sm:$0xff] }
 0x7d6   : > { %9539 = vmatprep.subr.bf16.mxu0 %v13560_v41  ;;  %v13584_v41 = vcombine.high %v8576_v56, %v8580_v29  ;;  %v14904_v48 = vld [vmem:[#allocation10 + $0xd0] ss:$8 sps:$4 sm:$0xff]   ;;  %v13599_v56 = vcombine.low %v8592_v6, %v8596_v49 }
 0x7d7   : > { %11513 = vmatpush1.bf16.msra.mxu1 %v14898_v32  ;;  %v8600_v32 = vld [vmem:[#allocation9 + $0x390] sm:$0xff] }
 0x7d8   : > { %9483 = vmatmul.mubr.bf16.gmra.mrb[48].mxu0 %v21058_v58  ;;  %11514 = vmatprep.subr.bf16.mxu1 %v14903_v17  ;;  %v8604_v17 = vld [vmem:[#allocation9 + $0x3b0] sm:$0xff] }
 0x7d9   : > { %9540 = vmatpush1.bf16.msra.mxu0 %v13559_v37  ;;  %9492 = vmatprep.mubr.bf16.mxu0 %v21080_v27  ;;  %v14901_v37 = vld [vmem:[#allocation10 + $0xc0] ss:$8 sps:$4 sm:$0xff]   ;;  %v13608_v29 = vcombine.high %v8600_v32, %v8604_v17 }
 0x7da   : > { %9541 = vmatprep.subr.bf16.mxu0 %v13568_v22  ;;  %v14906_v22 = vld [vmem:[#allocation10 + $0xd4] ss:$8 sps:$4 sm:$0xff]  }
 0x7db   : > { %11515 = vmatpush1.bf16.msra.mxu1 %v14901_v37  ;;  %v8608_v37 = vld [vmem:[#allocation9 + $0x3d0] sm:$0xff] }
 0x7dc   : > { %11516 = vmatprep.subr.bf16.mxu1 %v14906_v22  ;;  %v14915_v22 = vld [vmem:[#allocation10 + $0x104] ss:$8 sps:$4 sm:$0xff]  }
 0x7dd   : > { %9542 = vmatpush1.bf16.msra.mxu0 %v13567_v36  ;;  %v13591_v36 = vcombine.low %v8584_v7, %v8588_v54  ;;  %v8612_v7 = vld [vmem:[#allocation9 + $0x3f0] sm:$0xff] }
 0x7de   : > { %9543 = vmatprep.subr.bf16.mxu0 %v13576_v8  ;;  %v13600_v8 = vcombine.high %v8592_v6, %v8596_v49  ;;  %v14910_v54 = vld [vmem:[#allocation10 + $0xf0] ss:$8 sps:$4 sm:$0xff]   ;;  %v13615_v6 = vcombine.low %v8608_v37, %v8612_v7 }
 0x7df   : > { %11517 = vmatpush1.bf16.msra.mxu1 %v14904_v48  ;;  %v8489_v48 = vld [vmem:[#allocation9 + $0x18] sm:$0xff] }
 0x7e0   : > { %9493 = vmatmul.mubr.bf16.gmra.mrb[52].mxu0 %v21084_v5  ;;  %11518 = vmatprep.subr.bf16.mxu1 %v14909_v47  ;;  %v8493_v47 = vld [vmem:[#allocation9 + $0x38] sm:$0xff] }
 0x7e1   : > { %9544 = vmatpush1.bf16.msra.mxu0 %v13575_v12  ;;  %9502 = vmatprep.mubr.bf16.mxu0 %v21106_v13  ;;  %v14907_v12 = vld [vmem:[#allocation10 + $0xe0] ss:$8 sps:$4 sm:$0xff]   ;;  %v13498_v49 = vcombine.high %v8489_v48, %v8493_v47 }
 0x7e2   : > { %9545 = vmatprep.subr.bf16.mxu0 %v13584_v41  ;;  %v14912_v41 = vld [vmem:[#allocation10 + $0xf4] ss:$8 sps:$4 sm:$0xff]  }
 0x7e3   : > { %11519 = vmatpush1.bf16.msra.mxu1 %v14907_v12  ;;  %v13497_v12 = vcombine.low %v8489_v48, %v8493_v47 }
 0x7e4   : > { %11520 = vmatprep.subr.bf16.mxu1 %v14912_v41 }
 0x7e5   : > { %9546 = vmatpush1.bf16.msra.mxu0 %v13583_v26  ;;  %v13607_v26 = vcombine.low %v8600_v32, %v8604_v17  ;;  %v8505_v17 = vld [vmem:[#allocation9 + $0x98] sm:$0xff] }
 0x7e6   : > { %9547 = vmatprep.subr.bf16.mxu0 %v13592_v34  ;;  %v13616_v34 = vcombine.high %v8608_v37, %v8612_v7  ;;  %v8517_v37 = vld [vmem:[#allocation9 + $0xf8] sm:$0xff] }
 0x7e7   : > { %11521 = vmatpush1.bf16.msra.mxu1 %v14910_v54  ;;  %v8513_v54 = vld [vmem:[#allocation9 + $0xd8] sm:$0xff] }
 0x7e8   : > { %9503 = vmatmul.mubr.bf16.gmra.mrb[56].mxu0 %v21110_v23  ;;  %11603 = vmatprep.subr.bf16.mxu1 %v14915_v22  ;;  %v8525_v22 = vld [vmem:[#allocation9 + $0x138] sm:$0xff]  ;;  %v13521_v48 = vcombine.low %v8513_v54, %v8517_v37 }
 0x7e9   : > { %9548 = vmatpush1.bf16.msra.mxu0 %v13591_v36  ;;  %9512 = vmatprep.mubr.bf16.mxu0 %v21132_v10  ;;  %v8497_v36 = vld [vmem:[#allocation9 + $0x58] sm:$0xff] }
 0x7ea   : > { %9549 = vmatprep.subr.bf16.mxu0 %v13600_v8  ;;  %v8501_v8 = vld [vmem:[#allocation9 + $0x78] sm:$0xff] }
 0x7eb   : > { %v13506_v32 = vcombine.high %v8497_v36, %v8501_v8 }
 0x7ed   : > { %9550 = vmatpush1.bf16.msra.mxu0 %v13599_v56  ;;  %v8509_v56 = vld [vmem:[#allocation9 + $0xb8] sm:$0xff] }
 0x7ee   : > { %9551 = vmatprep.subr.bf16.mxu0 %v13608_v29  ;;  %v13505_v29 = vcombine.low %v8497_v36, %v8501_v8  ;;  %v13514_v41 = vcombine.high %v8505_v17, %v8509_v56  ;;  %v13513_v7 = vcombine.low %v8505_v17, %v8509_v56 }
 0x7f0   : > { %9513 = vmatmul.mubr.bf16.gmra.mrb[60].mxu0 %v21136_v62 }
 0x7f1   : > { %9552 = vmatpush1.bf16.msra.mxu0 %v13607_v26  ;;  %9555 = vmatprep.mubr.bf16.mxu0 %v20845_v39  ;;  %v13522_v26 = vcombine.high %v8513_v54, %v8517_v37 }
 0x7f2   : > { %9553 = vmatprep.subr.bf16.mxu0 %v13616_v34  ;;  %v8521_v34 = vld [vmem:[#allocation9 + $0x118] sm:$0xff] }
 0x7f3   : > { %v13530_v47 = vcombine.high %v8521_v34, %v8525_v22  ;;  %v13529_v36 = vcombine.low %v8521_v34, %v8525_v22 }
 0x7f5   : > { %9554 = vmatpush1.bf16.msra.mxu0 %v13615_v6  ;;  %v8529_v6 = vld [vmem:[#allocation9 + $0x158] sm:$0xff] }
 0x7f6   : > { %9636 = vmatprep.subr.bf16.mxu0 %v13498_v49  ;;  %v8533_v49 = vld [vmem:[#allocation9 + $0x178] sm:$0xff] }
 0x7f7   : > { %v13538_v8 = vcombine.high %v8529_v6, %v8533_v49  ;;  %v13537_v17 = vcombine.low %v8529_v6, %v8533_v49 }
 0x7f8   : > { %9556 = vmatmul.mubr.bf16.vlgmr.msra.gmra.mrb[64].mxu0 %v20850_v28 }
 0x7f9   : > { %9637 = vmatpush1.bf16.msra.mxu0 %v13497_v12  ;;  %9565 = vmatprep.mubr.bf16.mxu0 %v20898_v52  ;;  %v8537_v12 = vld [vmem:[#allocation9 + $0x198] sm:$0xff] }
 0x7fa   : > { %9638 = vmatprep.subr.bf16.mxu0 %v13506_v32  ;;  %v8541_v32 = vld [vmem:[#allocation9 + $0x1b8] sm:$0xff] }
 0x7fb   : > { %v13546_v56 = vcombine.high %v8537_v12, %v8541_v32  ;;  %v13545_v54 = vcombine.low %v8537_v12, %v8541_v32 }
 0x7fd   : > { %9639 = vmatpush1.bf16.msra.mxu0 %v13505_v29  ;;  %v8545_v29 = vld [vmem:[#allocation9 + $0x1d8] sm:$0xff] }
 0x7fe   : > { %9640 = vmatprep.subr.bf16.mxu0 %v13514_v41  ;;  %v8549_v41 = vld [vmem:[#allocation9 + $0x1f8] sm:$0xff] }
 0x7ff   : > { %v13554_v37 = vcombine.high %v8545_v29, %v8549_v41  ;;  %v13553_v34 = vcombine.low %v8545_v29, %v8549_v41 }
 0x800   : > { %9566 = vmatmul.mubr.bf16.gmra.mrb[68].mxu0 %v20906_v55 }
 0x801   : > { %9641 = vmatpush1.bf16.msra.mxu0 %v13513_v7  ;;  %9575 = vmatprep.mubr.bf16.mxu0 %v20975_v51  ;;  %v8553_v7 = vld [vmem:[#allocation9 + $0x218] sm:$0xff] }
 0x802   : > { %9642 = vmatprep.subr.bf16.mxu0 %v13522_v26  ;;  %v8557_v26 = vld [vmem:[#allocation9 + $0x238] sm:$0xff] }
 0x803   : > { %v13562_v22 = vcombine.high %v8553_v7, %v8557_v26  ;;  %v13561_v6 = vcombine.low %v8553_v7, %v8557_v26 }
 0x805   : > { %9643 = vmatpush1.bf16.msra.mxu0 %v13521_v48  ;;  %v8561_v48 = vld [vmem:[#allocation9 + $0x258] sm:$0xff] }
 0x806   : > { %9644 = vmatprep.subr.bf16.mxu0 %v13530_v47  ;;  %v8565_v47 = vld [vmem:[#allocation9 + $0x278] sm:$0xff] }
 0x807   : > { %v13570_v49 = vcombine.high %v8561_v48, %v8565_v47  ;;  %v13569_v12 = vcombine.low %v8561_v48, %v8565_v47 }
 0x808   : > { %9576 = vmatmul.mubr.bf16.gmra.mrb[72].mxu0 %v20966_v4 }
 0x809   : > { %9645 = vmatpush1.bf16.msra.mxu0 %v13529_v36  ;;  %9585 = vmatprep.mubr.bf16.mxu0 %v21020_v59  ;;  %v8569_v36 = vld [vmem:[#allocation9 + $0x298] sm:$0xff] }
 0x80a   : > { %9646 = vmatprep.subr.bf16.mxu0 %v13538_v8  ;;  %v8573_v8 = vld [vmem:[#allocation9 + $0x2b8] sm:$0xff] }
 0x80b   : > { %v13578_v32 = vcombine.high %v8569_v36, %v8573_v8  ;;  %v13577_v29 = vcombine.low %v8569_v36, %v8573_v8 }
 0x80d   : > { %9647 = vmatpush1.bf16.msra.mxu0 %v13537_v17  ;;  %v8577_v17 = vld [vmem:[#allocation9 + $0x2d8] sm:$0xff] }
 0x80e   : > { %9648 = vmatprep.subr.bf16.mxu0 %v13546_v56  ;;  %v8581_v56 = vld [vmem:[#allocation9 + $0x2f8] sm:$0xff] }
 0x80f   : > { %v13586_v41 = vcombine.high %v8577_v17, %v8581_v56  ;;  %v13585_v7 = vcombine.low %v8577_v17, %v8581_v56 }
 0x810   : > { %9586 = vmatmul.mubr.bf16.gmra.mrb[76].mxu0 %v21027_v2 }
 0x811   : > { %9649 = vmatpush1.bf16.msra.mxu0 %v13545_v54  ;;  %9595 = vmatprep.mubr.bf16.mxu0 %v21054_v40  ;;  %v8585_v54 = vld [vmem:[#allocation9 + $0x318] sm:$0xff] }
 0x812   : > { %9650 = vmatprep.subr.bf16.mxu0 %v13554_v37  ;;  %v8589_v37 = vld [vmem:[#allocation9 + $0x338] sm:$0xff] }
 0x813   : > { %v13594_v26 = vcombine.high %v8585_v54, %v8589_v37  ;;  %v13593_v48 = vcombine.low %v8585_v54, %v8589_v37 }
 0x815   : > { %9651 = vmatpush1.bf16.msra.mxu0 %v13553_v34  ;;  %v8593_v34 = vld [vmem:[#allocation9 + $0x358] sm:$0xff] }
 0x816   : > { %9652 = vmatprep.subr.bf16.mxu0 %v13562_v22  ;;  %v8597_v22 = vld [vmem:[#allocation9 + $0x378] sm:$0xff] }
 0x817   : > { %v13602_v47 = vcombine.high %v8593_v34, %v8597_v22  ;;  %v13601_v36 = vcombine.low %v8593_v34, %v8597_v22 }
 0x818   : > { %9596 = vmatmul.mubr.bf16.gmra.mrb[80].mxu0 %v21058_v58 }
 0x819   : > { %9653 = vmatpush1.bf16.msra.mxu0 %v13561_v6  ;;  %9605 = vmatprep.mubr.bf16.mxu0 %v21080_v27  ;;  %v8601_v6 = vld [vmem:[#allocation9 + $0x398] sm:$0xff] }
 0x81a   : > { %9654 = vmatprep.subr.bf16.mxu0 %v13570_v49  ;;  %v8605_v49 = vld [vmem:[#allocation9 + $0x3b8] sm:$0xff] }
 0x81b   : > { %v13610_v8 = vcombine.high %v8601_v6, %v8605_v49  ;;  %v13609_v17 = vcombine.low %v8601_v6, %v8605_v49 }
 0x81d   : > { %9655 = vmatpush1.bf16.msra.mxu0 %v13569_v12  ;;  %v8609_v12 = vld [vmem:[#allocation9 + $0x3d8] sm:$0xff] }
 0x81e   : > { %9656 = vmatprep.subr.bf16.mxu0 %v13578_v32  ;;  %v8613_v32 = vld [vmem:[#allocation9 + $0x3f8] sm:$0xff] }
 0x81f   : > { %v13618_v56 = vcombine.high %v8609_v12, %v8613_v32 }
 0x820   : > { %9606 = vmatmul.mubr.bf16.gmra.mrb[84].mxu0 %v21084_v5 }
 0x821   : > { %9657 = vmatpush1.bf16.msra.mxu0 %v13577_v29  ;;  %9615 = vmatprep.mubr.bf16.mxu0 %v21106_v13  ;;  %v13617_v29 = vcombine.low %v8609_v12, %v8613_v32 }
 0x822   : > { %9658 = vmatprep.subr.bf16.mxu0 %v13586_v41  ;;  %v21180_v41 = vld [vmem:[%s22181_s10 + $0x2] ss:$4 sm:$0xff] }
 0x823   : > { %v21184_v54 = vrot.slane %v21180_v41, %v22545_v45 }
 0x825   : > { %9659 = vmatpush1.bf16.msra.mxu0 %v13585_v7 }
 0x826   : > { %9660 = vmatprep.subr.bf16.mxu0 %v13594_v26 }
 0x828   : > { %9616 = vmatmul.mubr.bf16.gmra.mrb[88].mxu0 %v21110_v23 }
 0x829   : > { %9661 = vmatpush1.bf16.msra.mxu0 %v13593_v48  ;;  %9625 = vmatprep.mubr.bf16.mxu0 %v21132_v10 }
 0x82a   : > { %9662 = vmatprep.subr.bf16.mxu0 %v13602_v47 }
 0x82d   : > { %9663 = vmatpush1.bf16.msra.mxu0 %v13601_v36 }
 0x82e   : > { %9664 = vmatprep.subr.bf16.mxu0 %v13610_v8 }
 0x830   : > { %9626 = vmatmul.mubr.bf16.gmra.mrb[92].mxu0 %v21136_v62 }
 0x831   : > { %9665 = vmatpush1.bf16.msra.mxu0 %v13609_v17  ;;  %9668 = vmatprep.mubr.bf16.mxu0 %v20845_v39  ;;  %v21188_v39 = vrot.slane %v21180_v41, %v22546_v19 }
 0x832   : > { %9666 = vmatprep.subr.bf16.mxu0 %v13618_v56 }
 0x835   : > { %9667 = vmatpush1.bf16.msra.mxu0 %v13617_v29 }
 0x838   : > { %9669 = vmatmul.mubr.bf16.vlgmr.msra.gmra.mrb[96].mxu0 %v20850_v28 }
 0x839   : > { %9678 = vmatprep.mubr.bf16.mxu0 %v20898_v52 }
 0x840   : > { %9679 = vmatmul.mubr.bf16.gmra.mrb[100].mxu0 %v20906_v55 }
 0x841   : > { %9688 = vmatprep.mubr.bf16.mxu0 %v20975_v51 }
 0x848   : > { %9689 = vmatmul.mubr.bf16.gmra.mrb[104].mxu0 %v20966_v4  ;;  %v9331_v28 = vpop.f32.mrb[0].mxu0 }
 0x849   : > { %9698 = vmatprep.mubr.bf16.mxu0 %v21020_v59  ;;  %v21193_v52 = vadd.f32 %v9331_v28, %v21184_v54  ;;  %v9333_v55 = vpop.f32.mrb[1].mxu0 }
 0x84a   : > { %v21196_v51 = vadd.f32 %v9333_v55, %v21188_v39  ;;  %v9335_v37 = vpop.f32.mrb[2].mxu0 }
 0x84b   : > { %v13619_v7 = vmul.f32 -1.442695, %v21193_v52  ;;  %v21200_v26 = vadd.f32 %v9335_v37, %v21184_v54  ;;  %v9337_v34 = vpop.f32.mrb[3].mxu0 }
 0x84c   : > { %v13620_v22 = vmul.f32 -1.442695, %v21196_v51  ;;  %v21204_v4 = vadd.f32 %v9337_v34, %v21188_v39 }
 0x84d   : > { %16481 = vpow2.f32 %v13619_v7  ;;  %v13627_v59 = vmul.f32 -1.442695, %v21200_v26 }
 0x84e   : > { %16483 = vpow2.f32 %v13620_v22  ;;  %v13628_v48 = vmul.f32 -1.442695, %v21204_v4 }
 0x84f   : > { %16485 = vpow2.f32 %v13627_v59 }
 0x850   : > { %16487 = vpow2.f32 %v13628_v48  ;;  %9699 = vmatmul.mubr.bf16.gmra.mrb[108].mxu0 %v21027_v2  ;;  %v9341_v47 = vpop.f32.mrb[4].mxu0 }
 0x851   : > { %9708 = vmatprep.mubr.bf16.mxu0 %v21054_v40  ;;  %v21211_v6 = vadd.f32 %v9341_v47, %v21184_v54  ;;  %v9343_v49 = vpop.f32.mrb[5].mxu0 }
 0x852   : > { %v21214_v36 = vadd.f32 %v9343_v49, %v21188_v39  ;;  %v9345_v8 = vpop.f32.mrb[6].mxu0 }
 0x853   : > { %v13635_v12 = vmul.f32 -1.442695, %v21211_v6  ;;  %v21218_v32 = vadd.f32 %v9345_v8, %v21184_v54  ;;  %v9347_v17 = vpop.f32.mrb[7].mxu0 }
 0x854   : > { %v13636_v56 = vmul.f32 -1.442695, %v21214_v36  ;;  %v21222_v2 = vadd.f32 %v9347_v17, %v21188_v39 }
 0x855   : > { %16489 = vpow2.f32 %v13635_v12  ;;  %v13643_v40 = vmul.f32 -1.442695, %v21218_v32 }
 0x856   : > { %16491 = vpow2.f32 %v13636_v56  ;;  %v13644_v29 = vmul.f32 -1.442695, %v21222_v2 }
 0x857   : > { %v16482_v28 = vpop.eup %16481  ;;  %16493 = vpow2.f32 %v13643_v40 }
 0x858   : > { %v16484_v55 = vpop.eup %16483  ;;  %v10133_v37 = vadd.f32 1.0, %v16482_v28  ;;  %16495 = vpow2.f32 %v13644_v29  ;;  %9709 = vmatmul.mubr.bf16.gmra.mrb[112].mxu0 %v21058_v58 }
 0x859   : > { %v16486_v7 = vpop.eup %16485  ;;  %v10134_v34 = vadd.f32 1.0, %v16484_v55  ;;  %9718 = vmatprep.mubr.bf16.mxu0 %v21080_v27  ;;  %v9351_v22 = vpop.f32.mrb[8].mxu0 }
 0x85a   : > { %v16488_v59 = vpop.eup %16487  ;;  %16497 = vrcp.f32 %v10133_v37  ;;  %v10141_v48 = vadd.f32 1.0, %v16486_v7  ;;  %v21229_v47 = vadd.f32 %v9351_v22, %v21184_v54  ;;  %v9353_v49 = vpop.f32.mrb[9].mxu0 }
 0x85b   : > { %16499 = vrcp.f32 %v10134_v34  ;;  %v10142_v8 = vadd.f32 1.0, %v16488_v59  ;;  %v21232_v12 = vadd.f32 %v9353_v49, %v21188_v39  ;;  %v9355_v17 = vpop.f32.mrb[10].mxu0 }
 0x85c   : > { %16501 = vrcp.f32 %v10141_v48  ;;  %v13651_v58 = vmul.f32 -1.442695, %v21229_v47  ;;  %v21236_v56 = vadd.f32 %v9355_v17, %v21184_v54  ;;  %v9357_v27 = vpop.f32.mrb[11].mxu0 }
 0x85d   : > { %16503 = vrcp.f32 %v10142_v8  ;;  %v13652_v40 = vmul.f32 -1.442695, %v21232_v12  ;;  %v21240_v29 = vadd.f32 %v9357_v27, %v21188_v39 }
 0x85e   : > { %16505 = vpow2.f32 %v13651_v58  ;;  %v13659_v28 = vmul.f32 -1.442695, %v21236_v56 }
 0x85f   : > { %v16490_v55 = vpop.eup %16489  ;;  %16507 = vpow2.f32 %v13652_v40  ;;  %v13660_v37 = vmul.f32 -1.442695, %v21240_v29 }
 0x860   : > { %v16492_v7 = vpop.eup %16491  ;;  %v10149_v34 = vadd.f32 1.0, %v16490_v55  ;;  %16509 = vpow2.f32 %v13659_v28  ;;  %9719 = vmatmul.mubr.bf16.gmra.mrb[116].mxu0 %v21084_v5 }
 0x861   : > { %v16494_v22 = vpop.eup %16493  ;;  %v10150_v59 = vadd.f32 1.0, %v16492_v7  ;;  %16511 = vpow2.f32 %v13660_v37  ;;  %9728 = vmatprep.mubr.bf16.mxu0 %v21106_v13  ;;  %v9361_v48 = vpop.f32.mrb[12].mxu0 }
 0x862   : > { %v16496_v49 = vpop.eup %16495  ;;  %16513 = vrcp.f32 %v10149_v34  ;;  %v10157_v8 = vadd.f32 1.0, %v16494_v22  ;;  %v21247_v17 = vadd.f32 %v9361_v48, %v21184_v54  ;;  %v9363_v58 = vpop.f32.mrb[13].mxu0 }
 0x863   : > { %16515 = vrcp.f32 %v10150_v59  ;;  %v10158_v27 = vadd.f32 1.0, %v16496_v49  ;;  %v21250_v40 = vadd.f32 %v9363_v58, %v21188_v39  ;;  %v9365_v28 = vpop.f32.mrb[14].mxu0 }
 0x864   : > { %v16498_v5 = vpop.eup %16497  ;;  %16517 = vrcp.f32 %v10157_v8  ;;  %v13667_v55 = vmul.f32 -1.442695, %v21247_v17  ;;  %v21254_v13 = vadd.f32 %v9365_v28, %v21184_v54  ;;  %v9367_v37 = vpop.f32.mrb[15].mxu0 }
 0x865   : > { %v16500_v7 = vpop.eup %16499  ;;  %16519 = vrcp.f32 %v10158_v27  ;;  %v13668_v34 = vmul.f32 -1.442695, %v21250_v40  ;;  %v21258_v22 = vadd.f32 %v9367_v37, %v21188_v39  ;;  %v10517_v8 = vmul.f32 %v16498_v5, %v21193_v52 }
 0x866   : > { %v16502_v59 = vpop.eup %16501  ;;  %16521 = vpow2.f32 %v13667_v55  ;;  %v13675_v48 = vmul.f32 -1.442695, %v21254_v13  ;;  %v10518_v27 = vmul.f32 %v16500_v7, %v21196_v51  ;;  %v14918_v7 = vld [vmem:[#allocation10 + $0x114] ss:$8 sps:$4 sm:$0xff]  }
 0x867   : > { %v16504_v49 = vpop.eup %16503  ;;  %v10525_v58 = vmul.f32 %v16502_v59, %v21200_v26  ;;  %16523 = vpow2.f32 %v13668_v34  ;;  %v13676_v28 = vmul.f32 -1.442695, %v21258_v22  ;;  %v14913_v59 = vld [vmem:[#allocation10 + $0x100] ss:$8 sps:$4 sm:$0xff]  }
 0x868   : > { %v16506_v35 = vpop.eup %16505  ;;  %v10526_v3 = vmul.f32 %v16504_v49, %v21204_v4  ;;  %16525 = vpow2.f32 %v13675_v48  ;;  %9729 = vmatmul.mubr.bf16.gmra.mrb[120].mxu0 %v21110_v23 }
 0x869   : > { %v16508_v37 = vpop.eup %16507  ;;  %v10645_v55 = vpack.c.bf16 %v10525_v58, %v10517_v8  ;;  %v10165_v53 = vadd.f32 1.0, %v16506_v35  ;;  %16527 = vpow2.f32 %v13676_v28  ;;  %9738 = vmatprep.mubr.bf16.mxu0 %v21132_v10 }
 0x86a   : > { %v16510_v52 = vpop.eup %16509  ;;  %v10166_v5 = vadd.f32 1.0, %v16508_v37  ;;  %v9371_v26 = vpop.f32.mrb[16].mxu0  ;;  %v10646_v34 = vpack.c.bf16 %v10526_v3, %v10518_v27  ;;  %v14916_v27 = vld [vmem:[#allocation10 + $0x110] ss:$8 sps:$4 sm:$0xff]  }
 0x86b   : > { %v16512_v1 = vpop.eup %16511  ;;  %16529 = vrcp.f32 %v10165_v53  ;;  %v10173_v25 = vadd.f32 1.0, %v16510_v52  ;;  %v21269_v51 = vadd.f32 %v9371_v26, %v21184_v54  ;;  %v9373_v4 = vpop.f32.mrb[17].mxu0  ;;  %v14921_v26 = vld [vmem:[#allocation10 + $0x124] ss:$8 sps:$4 sm:$0xff]  }
 0x86c   : > { %v16514_v23 = vpop.eup %16513  ;;  %16531 = vrcp.f32 %v10166_v5  ;;  %v10174_v48 = vadd.f32 1.0, %v16512_v1  ;;  %v21272_v35 = vadd.f32 %v9373_v4, %v21188_v39  ;;  %v9375_v10 = vpop.f32.mrb[18].mxu0  ;;  %11522 = vmatprep.mubr.bf16.mxu1 %v10646_v34 }
 0x86d   : > { %v16516_v49 = vpop.eup %16515  ;;  %16533 = vrcp.f32 %v10173_v25  ;;  %v13683_v3 = vmul.f32 -1.442695, %v21269_v51  ;;  %v21276_v53 = vadd.f32 %v9375_v10, %v21184_v54  ;;  %v9377_v8 = vpop.f32.mrb[19].mxu0  ;;  %11523 = vmatmul.mubr.bf16.vlgmr.msra.gmra.mrb[96].mxu1 %v10645_v55  ;;  %v10533_v52 = vmul.f32 %v16514_v23, %v21211_v6 }
 0x86e   : > { %v16518_v58 = vpop.eup %16517  ;;  %16535 = vrcp.f32 %v10174_v48  ;;  %v13684_v28 = vmul.f32 -1.442695, %v21272_v35  ;;  %v21280_v1 = vadd.f32 %v9377_v8, %v21188_v39  ;;  %11604 = vmatpush1.bf16.msra.mxu1 %v14913_v59  ;;  %v10534_v34 = vmul.f32 %v16516_v49, %v21214_v36  ;;  %v14919_v8 = vld [vmem:[#allocation10 + $0x120] ss:$8 sps:$4 sm:$0xff]  }
 0x86f   : > { %v16520_v37 = vpop.eup %16519  ;;  %v10541_v25 = vmul.f32 %v16518_v58, %v21218_v32  ;;  %16537 = vpow2.f32 %v13683_v3  ;;  %v13691_v5 = vmul.f32 -1.442695, %v21276_v53  ;;  %11605 = vmatprep.subr.bf16.mxu1 %v14918_v7 }
 0x870   : > { %v16522_v55 = vpop.eup %16521  ;;  %v10542_v4 = vmul.f32 %v16520_v37, %v21222_v2  ;;  %16539 = vpow2.f32 %v13684_v28  ;;  %v13692_v48 = vmul.f32 -1.442695, %v21280_v1  ;;  %9739 = vmatmul.mubr.bf16.gmra.mrb[124].mxu0 %v21136_v62  ;;  %v14924_v62 = vld [vmem:[#allocation10 + $0x134] ss:$8 sps:$4 sm:$0xff]  }
 0x871   : > { %v16524_v59 = vpop.eup %16523  ;;  %v10181_v10 = vadd.f32 1.0, %v16522_v55  ;;  %16541 = vpow2.f32 %v13691_v5  ;;  %v10653_v6 = vpack.c.bf16 %v10541_v25, %v10533_v52 }
 0x872   : > { %v16526_v32 = vpop.eup %16525  ;;  %v10182_v23 = vadd.f32 1.0, %v16524_v59  ;;  %16543 = vpow2.f32 %v13692_v48  ;;  %v9381_v3 = vpop.f32.mrb[20].mxu0  ;;  %11606 = vmatpush1.bf16.msra.mxu1 %v14916_v27  ;;  %v10654_v7 = vpack.c.bf16 %v10542_v4, %v10534_v34  ;;  %v14922_v48 = vld [vmem:[#allocation10 + $0x130] ss:$8 sps:$4 sm:$0xff]  }
 0x873   : > { %v16528_v58 = vpop.eup %16527  ;;  %16545 = vrcp.f32 %v10181_v10  ;;  %v10189_v36 = vadd.f32 1.0, %v16526_v32  ;;  %v21290_v2 = vadd.f32 %v9381_v3, %v21184_v54  ;;  %v9383_v49 = vpop.f32.mrb[21].mxu0  ;;  %11607 = vmatprep.subr.bf16.mxu1 %v14921_v26  ;;  %v14927_v32 = vld [vmem:[#allocation10 + $0x144] ss:$8 sps:$4 sm:$0xff]  }
 0x874   : > { %16547 = vrcp.f32 %v10182_v23  ;;  %v10190_v28 = vadd.f32 1.0, %v16528_v58  ;;  %v21293_v37 = vadd.f32 %v9383_v49, %v21188_v39  ;;  %v9385_v52 = vpop.f32.mrb[22].mxu0  ;;  %11532 = vmatprep.mubr.bf16.mxu1 %v10654_v7 }
 0x875   : > { %v16530_v25 = vpop.eup %16529  ;;  %16549 = vrcp.f32 %v10189_v36  ;;  %v13699_v27 = vmul.f32 -1.442695, %v21290_v2  ;;  %v21297_v5 = vadd.f32 %v9385_v52, %v21184_v54  ;;  %v9387_v55 = vpop.f32.mrb[23].mxu0  ;;  %11533 = vmatmul.mubr.bf16.gmra.mrb[100].mxu1 %v10653_v6 }
 0x876   : > { %v16532_v34 = vpop.eup %16531  ;;  %16551 = vrcp.f32 %v10190_v28  ;;  %v13700_v26 = vmul.f32 -1.442695, %v21293_v37  ;;  %v21301_v4 = vadd.f32 %v9387_v55, %v21188_v39  ;;  %11608 = vmatpush1.bf16.msra.mxu1 %v14919_v8  ;;  %v10549_v3 = vmul.f32 %v16530_v25, %v21229_v47  ;;  %v14925_v25 = vld [vmem:[#allocation10 + $0x140] ss:$8 sps:$4 sm:$0xff]  }
 0x877   : > { %v16534_v59 = vpop.eup %16533  ;;  %16553 = vpow2.f32 %v13699_v27  ;;  %v13707_v10 = vmul.f32 -1.442695, %v21297_v5  ;;  %11609 = vmatprep.subr.bf16.mxu1 %v14924_v62  ;;  %v10550_v36 = vmul.f32 %v16532_v34, %v21232_v12 }
 0x878   : > { %v16536_v23 = vpop.eup %16535  ;;  %v10557_v6 = vmul.f32 %v16534_v59, %v21236_v56  ;;  %16555 = vpow2.f32 %v13700_v26  ;;  %v13708_v7 = vmul.f32 -1.442695, %v21301_v4 }
 0x879   : > { %v16538_v58 = vpop.eup %16537  ;;  %v10558_v8 = vmul.f32 %v16536_v23, %v21240_v29  ;;  %16557 = vpow2.f32 %v13707_v10  ;;  %v14930_v29 = vld [vmem:[#allocation10 + $0x154] ss:$8 sps:$4 sm:$0xff]  }
 0x87a   : > { %v16540_v49 = vpop.eup %16539  ;;  %v10197_v28 = vadd.f32 1.0, %v16538_v58  ;;  %16559 = vpow2.f32 %v13708_v7  ;;  %11610 = vmatpush1.bf16.msra.mxu1 %v14922_v48  ;;  %v10661_v62 = vpack.c.bf16 %v10557_v6, %v10549_v3 }
 0x87b   : > { %v16542_v52 = vpop.eup %16541  ;;  %v10198_v27 = vadd.f32 1.0, %v16540_v49  ;;  %v9391_v55 = vpop.f32.mrb[24].mxu0  ;;  %v10662_v47 = vpack.c.bf16 %v10558_v8, %v10550_v36  ;;  %11611 = vmatprep.subr.bf16.mxu1 %v14927_v32  ;;  %v14928_v49 = vld [vmem:[#allocation10 + $0x150] ss:$8 sps:$4 sm:$0xff]  }
 0x87c   : > { %v16544_v56 = vpop.eup %16543  ;;  %16561 = vrcp.f32 %v10197_v28  ;;  %v10205_v26 = vadd.f32 1.0, %v16542_v52  ;;  %v21310_v59 = vadd.f32 %v9391_v55, %v21184_v54  ;;  %v9393_v12 = vpop.f32.mrb[25].mxu0 }
 0x87d   : > { %v16546_v34 = vpop.eup %16545  ;;  %16563 = vrcp.f32 %v10198_v27  ;;  %v10206_v10 = vadd.f32 1.0, %v16544_v56  ;;  %v21313_v48 = vadd.f32 %v9393_v12, %v21188_v39  ;;  %v9395_v23 = vpop.f32.mrb[26].mxu0  ;;  %11542 = vmatprep.mubr.bf16.mxu1 %v10662_v47  ;;  %v14933_v47 = vld [vmem:[#allocation10 + $0x164] ss:$8 sps:$4 sm:$0xff]  }
 0x87e   : > { %v16548_v3 = vpop.eup %16547  ;;  %16565 = vrcp.f32 %v10205_v26  ;;  %v13715_v32 = vmul.f32 -1.442695, %v21310_v59  ;;  %v21317_v6 = vadd.f32 %v9395_v23, %v21184_v54  ;;  %v9397_v7 = vpop.f32.mrb[27].mxu0  ;;  %11543 = vmatmul.mubr.bf16.gmra.mrb[104].mxu1 %v10661_v62  ;;  %v10565_v52 = vmul.f32 %v16546_v34, %v21247_v17 }
 0x87f   : > { %v16550_v58 = vpop.eup %16549  ;;  %16567 = vrcp.f32 %v10206_v10  ;;  %v13716_v36 = vmul.f32 -1.442695, %v21313_v48  ;;  %v21321_v8 = vadd.f32 %v9397_v7, %v21188_v39  ;;  %11612 = vmatpush1.bf16.msra.mxu1 %v14925_v25  ;;  %v10566_v56 = vmul.f32 %v16548_v3, %v21250_v40  ;;  %v14936_v3 = vld [vmem:[#allocation10 + $0x174] ss:$8 sps:$4 sm:$0xff]  }
 0x880   : > { %v16552_v28 = vpop.eup %16551  ;;  %v10573_v27 = vmul.f32 %v16550_v58, %v21254_v13  ;;  %16569 = vpow2.f32 %v13715_v32  ;;  %v13723_v55 = vmul.f32 -1.442695, %v21317_v6  ;;  %11613 = vmatprep.subr.bf16.mxu1 %v14930_v29  ;;  %v14931_v29 = vld [vmem:[#allocation10 + $0x160] ss:$8 sps:$4 sm:$0xff]  }
 0x881   : > { %v16554_v62 = vpop.eup %16553  ;;  %v10574_v26 = vmul.f32 %v16552_v28, %v21258_v22  ;;  %16571 = vpow2.f32 %v13716_v36  ;;  %v13724_v12 = vmul.f32 -1.442695, %v21321_v8 }
 0x882   : > { %v16556_v25 = vpop.eup %16555  ;;  %v10213_v10 = vadd.f32 1.0, %v16554_v62  ;;  %16573 = vpow2.f32 %v13723_v55  ;;  %v10669_v23 = vpack.c.bf16 %v10573_v27, %v10565_v52 }
 0x883   : > { %v16558_v17 = vpop.eup %16557  ;;  %v10214_v34 = vadd.f32 1.0, %v16556_v25  ;;  %16575 = vpow2.f32 %v13724_v12  ;;  %v9401_v13 = vpop.f32.mrb[28].mxu0  ;;  %11614 = vmatpush1.bf16.msra.mxu1 %v14928_v49  ;;  %v10670_v32 = vpack.c.bf16 %v10574_v26, %v10566_v56  ;;  %v14934_v12 = vld [vmem:[#allocation10 + $0x170] ss:$8 sps:$4 sm:$0xff]  }
 0x884   : > { %v16560_v7 = vpop.eup %16559  ;;  %16577 = vrcp.f32 %v10213_v10  ;;  %v10221_v58 = vadd.f32 1.0, %v16558_v17  ;;  %v21330_v40 = vadd.f32 %v9401_v13, %v21184_v54  ;;  %v9403_v22 = vpop.f32.mrb[29].mxu0  ;;  %11615 = vmatprep.subr.bf16.mxu1 %v14933_v47  ;;  %v22636_v17 = vld [vmem:[#allocation68_spill] sm:$0xff] }
 0x885   : > { %16579 = vrcp.f32 %v10214_v34  ;;  %v10222_v36 = vadd.f32 1.0, %v16560_v7  ;;  %v21333_v28 = vadd.f32 %v9403_v22, %v21188_v39  ;;  %v9405_v52 = vpop.f32.mrb[30].mxu0  ;;  %11552 = vmatprep.mubr.bf16.mxu1 %v10670_v32  ;;  %v21346_v34 = vrot.slane %v21180_v41, %v22636_v17  ;;  %v14939_v13 = vld [vmem:[#allocation10 + $0x184] ss:$8 sps:$4 sm:$0xff]  }
 0x886   : > { %v16562_v27 = vpop.eup %16561  ;;  %16581 = vrcp.f32 %v10221_v58  ;;  %v13731_v49 = vmul.f32 -1.442695, %v21330_v40  ;;  %v21337_v55 = vadd.f32 %v9405_v52, %v21184_v54  ;;  %v9407_v62 = vpop.f32.mrb[31].mxu0  ;;  %11553 = vmatmul.mubr.bf16.gmra.mrb[108].mxu1 %v10669_v23  ;;  %v22637_v54 = vld [vmem:[#allocation69_spill] sm:$0xff] }
 0x887   : > { %v16564_v56 = vpop.eup %16563  ;;  %16583 = vrcp.f32 %v10222_v36  ;;  %v13732_v47 = vmul.f32 -1.442695, %v21333_v28  ;;  %v21341_v26 = vadd.f32 %v9407_v62, %v21188_v39  ;;  %11616 = vmatpush1.bf16.msra.mxu1 %v14931_v29  ;;  %v21350_v23 = vrot.slane %v21180_v41, %v22637_v54 }
 0x888   : > { %v16566_v25 = vpop.eup %16565  ;;  %16585 = vpow2.f32 %v13731_v49  ;;  %v13739_v10 = vmul.f32 -1.442695, %v21337_v55  ;;  %11617 = vmatprep.subr.bf16.mxu1 %v14936_v3  ;;  %v10581_v39 = vmul.f32 %v16562_v27, %v21269_v51  ;;  %v10582_v22 = vmul.f32 %v16564_v56, %v21272_v35 }
 0x889   : > { %v16568_v32 = vpop.eup %16567  ;;  %v10589_v29 = vmul.f32 %v16566_v25, %v21276_v53  ;;  %16587 = vpow2.f32 %v13732_v47  ;;  %v13740_v7 = vmul.f32 -1.442695, %v21341_v26  ;;  %v14937_v47 = vld [vmem:[#allocation10 + $0x180] ss:$8 sps:$4 sm:$0xff]  }
 0x88a   : > { %v16570_v58 = vpop.eup %16569  ;;  %v10590_v36 = vmul.f32 %v16568_v32, %v21280_v1  ;;  %16589 = vpow2.f32 %v13739_v10  ;;  %v14942_v10 = vld [vmem:[#allocation10 + $0x194] ss:$8 sps:$4 sm:$0xff]  }
 0x88b   : > { %v16572_v3 = vpop.eup %16571  ;;  %v10229_v52 = vadd.f32 1.0, %v16570_v58  ;;  %16591 = vpow2.f32 %v13740_v7  ;;  %v9444_v41 = vpop.f32.mrb[32].mxu0  ;;  %11618 = vmatpush1.bf16.msra.mxu1 %v14934_v12  ;;  %v10677_v49 = vpack.c.bf16 %v10589_v29, %v10581_v39 }
 0x88c   : > { %v16574_v62 = vpop.eup %16573  ;;  %v10230_v17 = vadd.f32 1.0, %v16572_v3  ;;  %v21358_v51 = vadd.f32 %v9444_v41, %v21346_v34  ;;  %v9446_v53 = vpop.f32.mrb[33].mxu0  ;;  %v10678_v27 = vpack.c.bf16 %v10590_v36, %v10582_v22  ;;  %11619 = vmatprep.subr.bf16.mxu1 %v14939_v13  ;;  %v14940_v3 = vld [vmem:[#allocation10 + $0x190] ss:$8 sps:$4 sm:$0xff]  }
 0x88d   : > { %v16576_v25 = vpop.eup %16575  ;;  %16593 = vrcp.f32 %v10229_v52  ;;  %v10237_v35 = vadd.f32 1.0, %v16574_v62  ;;  %v21361_v1 = vadd.f32 %v9446_v53, %v21350_v23  ;;  %v9448_v56 = vpop.f32.mrb[34].mxu0  ;;  %v14945_v53 = vld [vmem:[#allocation10 + $0x1a4] ss:$8 sps:$4 sm:$0xff]  }
 0x88e   : > { %v16578_v54 = vpop.eup %16577  ;;  %16595 = vrcp.f32 %v10230_v17  ;;  %v10238_v12 = vadd.f32 1.0, %v16576_v25  ;;  %v13621_v32 = vmul.f32 -1.442695, %v21358_v51  ;;  %v21365_v39 = vadd.f32 %v9448_v56, %v21346_v34  ;;  %v9450_v29 = vpop.f32.mrb[35].mxu0  ;;  %11562 = vmatprep.mubr.bf16.mxu1 %v10678_v27 }
 0x88f   : > { %v16580_v7 = vpop.eup %16579  ;;  %16597 = vrcp.f32 %v10237_v35  ;;  %v13622_v13 = vmul.f32 -1.442695, %v21361_v1  ;;  %v21369_v58 = vadd.f32 %v9450_v29, %v21350_v23  ;;  %11563 = vmatmul.mubr.bf16.gmra.mrb[112].mxu1 %v10677_v49  ;;  %v10597_v41 = vmul.f32 %v16578_v54, %v21290_v2 }
 0x890   : > { %v16582_v22 = vpop.eup %16581  ;;  %16599 = vrcp.f32 %v10238_v12  ;;  %v13629_v36 = vmul.f32 -1.442695, %v21365_v39  ;;  %11620 = vmatpush1.bf16.msra.mxu1 %v14937_v47  ;;  %v10598_v25 = vmul.f32 %v16580_v7, %v21293_v37 }
 0x891   : > { %v16584_v52 = vpop.eup %16583  ;;  %v10605_v62 = vmul.f32 %v16582_v22, %v21297_v5  ;;  %16601 = vpow2.f32 %v13621_v32  ;;  %v13630_v17 = vmul.f32 -1.442695, %v21369_v58  ;;  %11621 = vmatprep.subr.bf16.mxu1 %v14942_v10  ;;  %v14943_v32 = vld [vmem:[#allocation10 + $0x1a0] ss:$8 sps:$4 sm:$0xff]  }
 0x892   : > { %v16586_v27 = vpop.eup %16585  ;;  %v10606_v49 = vmul.f32 %v16584_v52, %v21301_v4  ;;  %16603 = vpow2.f32 %v13622_v13  ;;  %v14948_v13 = vld [vmem:[#allocation10 + $0x1b4] ss:$8 sps:$4 sm:$0xff]  }
 0x893   : > { %v16588_v35 = vpop.eup %16587  ;;  %v10245_v56 = vadd.f32 1.0, %v16586_v27  ;;  %16605 = vpow2.f32 %v13629_v36  ;;  %v9454_v47 = vpop.f32.mrb[36].mxu0  ;;  %v10685_v12 = vpack.c.bf16 %v10605_v62, %v10597_v41 }
 0x894   : > { %v16590_v29 = vpop.eup %16589  ;;  %v10246_v2 = vadd.f32 1.0, %v16588_v35  ;;  %16607 = vpow2.f32 %v13630_v17  ;;  %v21378_v5 = vadd.f32 %v9454_v47, %v21346_v34  ;;  %v9456_v54 = vpop.f32.mrb[37].mxu0  ;;  %11622 = vmatpush1.bf16.msra.mxu1 %v14940_v3  ;;  %v10686_v10 = vpack.c.bf16 %v10606_v49, %v10598_v25  ;;  %v14946_v49 = vld [vmem:[#allocation10 + $0x1b0] ss:$8 sps:$4 sm:$0xff]   ;;  %v14951_v47 = vld [vmem:[#allocation10 + $0x1c4] ss:$8 sps:$4 sm:$0xff]  }
 0x895   : > { %v16592_v22 = vpop.eup %16591  ;;  %16609 = vrcp.f32 %v10245_v56  ;;  %v10253_v37 = vadd.f32 1.0, %v16590_v29  ;;  %v21381_v4 = vadd.f32 %v9456_v54, %v21350_v23  ;;  %v9458_v7 = vpop.f32.mrb[38].mxu0  ;;  %11623 = vmatprep.subr.bf16.mxu1 %v14945_v53 }
 0x896   : > { %16611 = vrcp.f32 %v10246_v2  ;;  %v10254_v36 = vadd.f32 1.0, %v16592_v22  ;;  %v13637_v52 = vmul.f32 -1.442695, %v21378_v5  ;;  %v21385_v41 = vadd.f32 %v9458_v7, %v21346_v34  ;;  %v9460_v62 = vpop.f32.mrb[39].mxu0  ;;  %11572 = vmatprep.mubr.bf16.mxu1 %v10686_v10 }
 0x897   : > { %v16594_v3 = vpop.eup %16593  ;;  %16613 = vrcp.f32 %v10253_v37  ;;  %v13638_v17 = vmul.f32 -1.442695, %v21381_v4  ;;  %v21389_v27 = vadd.f32 %v9460_v62, %v21350_v23  ;;  %11573 = vmatmul.mubr.bf16.gmra.mrb[116].mxu1 %v10685_v12 }
 0x898   : > { %v16596_v25 = vpop.eup %16595  ;;  %16615 = vrcp.f32 %v10254_v36  ;;  %v13645_v53 = vmul.f32 -1.442695, %v21385_v41  ;;  %11624 = vmatpush1.bf16.msra.mxu1 %v14943_v32  ;;  %v10613_v2 = vmul.f32 %v16594_v3, %v21310_v59 }
 0x899   : > { %v16598_v35 = vpop.eup %16597  ;;  %16617 = vpow2.f32 %v13637_v52  ;;  %v13646_v56 = vmul.f32 -1.442695, %v21389_v27  ;;  %11625 = vmatprep.subr.bf16.mxu1 %v14948_v13  ;;  %v10614_v12 = vmul.f32 %v16596_v25, %v21313_v48 }
 0x89a   : > { %v16600_v29 = vpop.eup %16599  ;;  %v10621_v54 = vmul.f32 %v16598_v35, %v21317_v6  ;;  %16619 = vpow2.f32 %v13638_v17  ;;  %v14949_v17 = vld [vmem:[#allocation10 + $0x1c0] ss:$8 sps:$4 sm:$0xff]  }
 0x89b   : > { %v16602_v10 = vpop.eup %16601  ;;  %v10622_v22 = vmul.f32 %v16600_v29, %v21321_v8  ;;  %16621 = vpow2.f32 %v13645_v53  ;;  %v9464_v32 = vpop.f32.mrb[40].mxu0 }
 0x89c   : > { %v16604_v37 = vpop.eup %16603  ;;  %v10135_v7 = vadd.f32 1.0, %v16602_v10  ;;  %16623 = vpow2.f32 %v13646_v56  ;;  %v21398_v36 = vadd.f32 %v9464_v32, %v21346_v34  ;;  %v9466_v13 = vpop.f32.mrb[41].mxu0  ;;  %11626 = vmatpush1.bf16.msra.mxu1 %v14946_v49  ;;  %v10693_v52 = vpack.c.bf16 %v10621_v54, %v10613_v2  ;;  %v14954_v49 = vld [vmem:[#allocation10 + $0x1d4] ss:$8 sps:$4 sm:$0xff]  }
 0x89d   : > { %v16606_v59 = vpop.eup %16605  ;;  %v10136_v62 = vadd.f32 1.0, %v16604_v37  ;;  %v21401_v6 = vadd.f32 %v9466_v13, %v21350_v23  ;;  %v9468_v3 = vpop.f32.mrb[42].mxu0  ;;  %v10694_v48 = vpack.c.bf16 %v10622_v22, %v10614_v12  ;;  %11627 = vmatprep.subr.bf16.mxu1 %v14951_v47  ;;  %v14952_v37 = vld [vmem:[#allocation10 + $0x1d0] ss:$8 sps:$4 sm:$0xff]  }
 0x89e   : > { %v16608_v8 = vpop.eup %16607  ;;  %16625 = vrcp.f32 %v10135_v7  ;;  %v10143_v25 = vadd.f32 1.0, %v16606_v59  ;;  %v13653_v53 = vmul.f32 -1.442695, %v21398_v36  ;;  %v21405_v35 = vadd.f32 %v9468_v3, %v21346_v34  ;;  %v9470_v56 = vpop.f32.mrb[43].mxu0 }
 0x89f   : > { %v16610_v29 = vpop.eup %16609  ;;  %16627 = vrcp.f32 %v10136_v62  ;;  %v10144_v2 = vadd.f32 1.0, %v16608_v8  ;;  %v13654_v54 = vmul.f32 -1.442695, %v21401_v6  ;;  %v21409_v10 = vadd.f32 %v9470_v56, %v21350_v23  ;;  %11582 = vmatprep.mubr.bf16.mxu1 %v10694_v48  ;;  %v14957_v62 = vld [vmem:[#allocation10 + $0x1e4] ss:$8 sps:$4 sm:$0xff]  }
 0x8a0   : > { %v16612_v47 = vpop.eup %16611  ;;  %16629 = vrcp.f32 %v10143_v25  ;;  %v13661_v12 = vmul.f32 -1.442695, %v21405_v35  ;;  %11583 = vmatmul.mubr.bf16.gmra.mrb[120].mxu1 %v10693_v52  ;;  %v10629_v13 = vmul.f32 %v16610_v29, %v21330_v40 }
 0x8a1   : > { %v16614_v22 = vpop.eup %16613  ;;  %16631 = vrcp.f32 %v10144_v2  ;;  %v13662_v32 = vmul.f32 -1.442695, %v21409_v10  ;;  %11628 = vmatpush1.bf16.msra.mxu1 %v14949_v17  ;;  %v10630_v48 = vmul.f32 %v16612_v47, %v21333_v28 }
 0x8a2   : > { %v16616_v7 = vpop.eup %16615  ;;  %v10637_v59 = vmul.f32 %v16614_v22, %v21337_v55  ;;  %16633 = vpow2.f32 %v13653_v53  ;;  %11629 = vmatprep.subr.bf16.mxu1 %v14954_v49 }
 0x8a3   : > { %v16618_v3 = vpop.eup %16617  ;;  %v10638_v8 = vmul.f32 %v16616_v7, %v21341_v26  ;;  %16635 = vpow2.f32 %v13654_v54  ;;  %v9474_v52 = vpop.f32.mrb[44].mxu0  ;;  %v14955_v26 = vld [vmem:[#allocation10 + $0x1e0] ss:$8 sps:$4 sm:$0xff]  }
 0x8a4   : > { %v16620_v25 = vpop.eup %16619  ;;  %v10151_v56 = vadd.f32 1.0, %v16618_v3  ;;  %16637 = vpow2.f32 %v13661_v12  ;;  %v21418_v17 = vadd.f32 %v9474_v52, %v21346_v34  ;;  %v9476_v2 = vpop.f32.mrb[45].mxu0  ;;  %v10701_v40 = vpack.c.bf16 %v10637_v59, %v10629_v13  ;;  %v14960_v13 = vld [vmem:[#allocation10 + $0x1f4] ss:$8 sps:$4 sm:$0xff]  }
 0x8a5   : > { %v16622_v29 = vpop.eup %16621  ;;  %v10152_v55 = vadd.f32 1.0, %v16620_v25  ;;  %16639 = vpow2.f32 %v13662_v32  ;;  %v21421_v53 = vadd.f32 %v9476_v2, %v21350_v23  ;;  %11630 = vmatpush1.bf16.msra.mxu1 %v14952_v37  ;;  %v9478_v28 = vpop.f32.mrb[46].mxu0  ;;  %v10702_v49 = vpack.c.bf16 %v10638_v8, %v10630_v48 }
 0x8a6   : > { %v16624_v54 = vpop.eup %16623  ;;  %16641 = vrcp.f32 %v10151_v56  ;;  %v10159_v47 = vadd.f32 1.0, %v16622_v29  ;;  %v13669_v12 = vmul.f32 -1.442695, %v21418_v17  ;;  %v21425_v22 = vadd.f32 %v9478_v28, %v21346_v34  ;;  %v9480_v7 = vpop.f32.mrb[47].mxu0  ;;  %11631 = vmatprep.subr.bf16.mxu1 %v14957_v62  ;;  %v14958_v62 = vld [vmem:[#allocation10 + $0x1f0] ss:$8 sps:$4 sm:$0xff]  }
 0x8a7   : > { %16643 = vrcp.f32 %v10152_v55  ;;  %v10160_v32 = vadd.f32 1.0, %v16624_v54  ;;  %v13670_v59 = vmul.f32 -1.442695, %v21421_v53  ;;  %v21429_v37 = vadd.f32 %v9480_v7, %v21350_v23  ;;  %11592 = vmatprep.mubr.bf16.mxu1 %v10702_v49  ;;  %v14963_v56 = vld [vmem:[#allocation10 + $0x204] ss:$8 sps:$4 sm:$0xff]  }
 0x8a8   : > { %v16626_v3 = vpop.eup %16625  ;;  %16645 = vrcp.f32 %v10159_v47  ;;  %v13677_v48 = vmul.f32 -1.442695, %v21425_v22  ;;  %11593 = vmatmul.mubr.bf16.gmra.mrb[124].mxu1 %v10701_v40 }
 0x8a9   : > { %v16628_v8 = vpop.eup %16627  ;;  %16647 = vrcp.f32 %v10160_v32  ;;  %v13678_v52 = vmul.f32 -1.442695, %v21429_v37  ;;  %11632 = vmatpush1.bf16.msra.mxu1 %v14955_v26  ;;  %v10519_v29 = vmul.f32 %v16626_v3, %v21358_v51 }
 0x8aa   : > { %v16630_v25 = vpop.eup %16629  ;;  %16649 = vpow2.f32 %v13669_v12  ;;  %11633 = vmatprep.subr.bf16.mxu1 %v14960_v13  ;;  %v10520_v40 = vmul.f32 %v16628_v8, %v21361_v1 }
 0x8ab   : > { %v16632_v2 = vpop.eup %16631  ;;  %v10527_v55 = vmul.f32 %v16630_v25, %v21365_v39  ;;  %16651 = vpow2.f32 %v13670_v59  ;;  %v9484_v28 = vpop.f32.mrb[48].mxu0 }
 0x8ac   : > { %v16634_v49 = vpop.eup %16633  ;;  %v10528_v54 = vmul.f32 %v16632_v2, %v21369_v58  ;;  %16653 = vpow2.f32 %v13677_v48  ;;  %v21438_v26 = vadd.f32 %v9484_v28, %v21346_v34  ;;  %v9486_v47 = vpop.f32.mrb[49].mxu0  ;;  %v14961_v48 = vld [vmem:[#allocation10 + $0x200] ss:$8 sps:$4 sm:$0xff]  }
 0x8ad   : > { %v16636_v12 = vpop.eup %16635  ;;  %v10647_v7 = vpack.c.bf16 %v10527_v55, %v10519_v29  ;;  %v10167_v13 = vadd.f32 1.0, %v16634_v49  ;;  %16655 = vpow2.f32 %v13678_v52  ;;  %v21441_v51 = vadd.f32 %v9486_v47, %v21350_v23  ;;  %11634 = vmatpush1.bf16.msra.mxu1 %v14958_v62  ;;  %v9488_v39 = vpop.f32.mrb[50].mxu0  ;;  %v14966_v29 = vld [vmem:[#allocation10 + $0x214] ss:$8 sps:$4 sm:$0xff]   ;;  %v14964_v47 = vld [vmem:[#allocation10 + $0x210] ss:$8 sps:$4 sm:$0xff]  }
 0x8ae   : > { %v16638_v32 = vpop.eup %16637  ;;  %v10168_v59 = vadd.f32 1.0, %v16636_v12  ;;  %v21444_v1 = vadd.f32 %v9488_v39, %v21346_v34  ;;  %v9490_v58 = vpop.f32.mrb[51].mxu0  ;;  %v10648_v3 = vpack.c.bf16 %v10528_v54, %v10520_v40  ;;  %11716 = vmatprep.subr.bf16.mxu1 %v14963_v56  ;;  %v13685_v2 = vmul.f32 -1.442695, %v21438_v26 }
 0x8af   : > { %v16640_v8 = vpop.eup %16639  ;;  %16657 = vrcp.f32 %v10167_v13  ;;  %v10175_v25 = vadd.f32 1.0, %v16638_v32  ;;  %v21448_v52 = vadd.f32 %v9490_v58, %v21350_v23  ;;  %v13686_v28 = vmul.f32 -1.442695, %v21441_v51 }
 0x8b0   : > { %v16642_v62 = vpop.eup %16641  ;;  %16659 = vrcp.f32 %v10168_v59  ;;  %v10176_v55 = vadd.f32 1.0, %v16640_v8  ;;  %11635 = vmatprep.mubr.bf16.mxu1 %v10648_v3  ;;  %v13693_v40 = vmul.f32 -1.442695, %v21444_v1  ;;  %v14969_v59 = vld [vmem:[#allocation10 + $0x224] ss:$8 sps:$4 sm:$0xff]  }
 0x8b1   : > { %v16644_v49 = vpop.eup %16643  ;;  %16661 = vrcp.f32 %v10175_v25  ;;  %11636 = vmatmul.mubr.bf16.vlgmr.msra.gmra.mrb[96].mxu1 %v10647_v7  ;;  %v13694_v54 = vmul.f32 -1.442695, %v21448_v52  ;;  %v10535_v13 = vmul.f32 %v16642_v62, %v21378_v5 }
 0x8b2   : > { %v16646_v56 = vpop.eup %16645  ;;  %16663 = vrcp.f32 %v10176_v55  ;;  %11717 = vmatpush1.bf16.msra.mxu1 %v14961_v48 }
 0x8b3   : > { %v16648_v12 = vpop.eup %16647  ;;  %v10543_v39 = vmul.f32 %v16646_v56, %v21385_v41  ;;  %16665 = vpow2.f32 %v13685_v2  ;;  %v9494_v32 = vpop.f32.mrb[52].mxu0  ;;  %11718 = vmatprep.subr.bf16.mxu1 %v14966_v29  ;;  %v10536_v29 = vmul.f32 %v16644_v49, %v21381_v4  ;;  %v14967_v56 = vld [vmem:[#allocation10 + $0x220] ss:$8 sps:$4 sm:$0xff]  }
 0x8b4   : > { %v16650_v58 = vpop.eup %16649  ;;  %v10544_v3 = vmul.f32 %v16648_v12, %v21389_v27  ;;  %16667 = vpow2.f32 %v13686_v28  ;;  %v21457_v7 = vadd.f32 %v9494_v32, %v21346_v34  ;;  %v9496_v8 = vpop.f32.mrb[53].mxu0 }
 0x8b5   : > { %v16652_v25 = vpop.eup %16651  ;;  %v10183_v48 = vadd.f32 1.0, %v16650_v58  ;;  %16669 = vpow2.f32 %v13693_v40  ;;  %v21460_v55 = vadd.f32 %v9496_v8, %v21350_v23  ;;  %v9498_v5 = vpop.f32.mrb[54].mxu0  ;;  %v10655_v41 = vpack.c.bf16 %v10543_v39, %v10535_v13  ;;  %v14972_v13 = vld [vmem:[#allocation10 + $0x234] ss:$8 sps:$4 sm:$0xff]  }
 0x8b6   : > { %v16654_v2 = vpop.eup %16653  ;;  %v10184_v62 = vadd.f32 1.0, %v16652_v25  ;;  %16671 = vpow2.f32 %v13694_v54  ;;  %11719 = vmatpush1.bf16.msra.mxu1 %v14964_v47  ;;  %v21464_v27 = vadd.f32 %v9498_v5, %v21346_v34  ;;  %v9500_v28 = vpop.f32.mrb[55].mxu0  ;;  %v13701_v40 = vmul.f32 -1.442695, %v21457_v7 }
 0x8b7   : > { %v16656_v12 = vpop.eup %16655  ;;  %16673 = vrcp.f32 %v10183_v48  ;;  %v10191_v32 = vadd.f32 1.0, %v16654_v2  ;;  %v21468_v58 = vadd.f32 %v9500_v28, %v21350_v23  ;;  %11720 = vmatprep.subr.bf16.mxu1 %v14969_v59  ;;  %v13702_v49 = vmul.f32 -1.442695, %v21460_v55  ;;  %v14970_v48 = vld [vmem:[#allocation10 + $0x230] ss:$8 sps:$4 sm:$0xff]  }
 0x8b8   : > { %16675 = vrcp.f32 %v10184_v62  ;;  %v10192_v4 = vadd.f32 1.0, %v16656_v12  ;;  %v10656_v54 = vpack.c.bf16 %v10544_v3, %v10536_v29  ;;  %v13709_v39 = vmul.f32 -1.442695, %v21464_v27  ;;  %v14975_v2 = vld [vmem:[#allocation10 + $0x244] ss:$8 sps:$4 sm:$0xff]  }
 0x8b9   : > { %v16658_v47 = vpop.eup %16657  ;;  %16677 = vrcp.f32 %v10191_v32  ;;  %v13710_v25 = vmul.f32 -1.442695, %v21468_v58 }
 0x8ba   : > { %v16660_v8 = vpop.eup %16659  ;;  %16679 = vrcp.f32 %v10192_v4  ;;  %11645 = vmatprep.mubr.bf16.mxu1 %v10656_v54  ;;  %11721 = vmatpush1.bf16.msra.mxu1 %v14967_v56  ;;  %v10551_v4 = vmul.f32 %v16658_v47, %v21398_v36 }
 0x8bb   : > { %v16662_v5 = vpop.eup %16661  ;;  %16681 = vpow2.f32 %v13701_v40  ;;  %11646 = vmatmul.mubr.bf16.gmra.mrb[100].mxu1 %v10655_v41  ;;  %v9504_v59 = vpop.f32.mrb[56].mxu0  ;;  %11722 = vmatprep.subr.bf16.mxu1 %v14972_v13  ;;  %v10552_v32 = vmul.f32 %v16660_v8, %v21401_v6  ;;  %v14978_v8 = vld [vmem:[#allocation10 + $0x254] ss:$8 sps:$4 sm:$0xff]  }
 0x8bc   : > { %v16664_v62 = vpop.eup %16663  ;;  %v10559_v3 = vmul.f32 %v16662_v5, %v21405_v35  ;;  %16683 = vpow2.f32 %v13702_v49  ;;  %v21475_v29 = vadd.f32 %v9504_v59, %v21346_v34  ;;  %v9506_v28 = vpop.f32.mrb[57].mxu0  ;;  %v14973_v5 = vld [vmem:[#allocation10 + $0x240] ss:$8 sps:$4 sm:$0xff]  }
 0x8bd   : > { %v16666_v12 = vpop.eup %16665  ;;  %v10560_v56 = vmul.f32 %v16664_v62, %v21409_v10  ;;  %16685 = vpow2.f32 %v13709_v39  ;;  %v21480_v40 = vadd.f32 %v9506_v28, %v21350_v23  ;;  %v9508_v41 = vpop.f32.mrb[58].mxu0 }
 0x8be   : > { %v16668_v13 = vpop.eup %16667  ;;  %v10199_v54 = vadd.f32 1.0, %v16666_v12  ;;  %16687 = vpow2.f32 %v13710_v25  ;;  %11723 = vmatpush1.bf16.msra.mxu1 %v14970_v48  ;;  %v21484_v35 = vadd.f32 %v9508_v41, %v21346_v34  ;;  %v9510_v49 = vpop.f32.mrb[59].mxu0  ;;  %v13717_v36 = vmul.f32 -1.442695, %v21475_v29 }
 0x8bf   : > { %v16670_v59 = vpop.eup %16669  ;;  %v10200_v6 = vadd.f32 1.0, %v16668_v13  ;;  %v21487_v10 = vadd.f32 %v9510_v49, %v21350_v23  ;;  %v10664_v39 = vpack.c.bf16 %v10560_v56, %v10552_v32  ;;  %11724 = vmatprep.subr.bf16.mxu1 %v14975_v2  ;;  %v10663_v47 = vpack.c.bf16 %v10559_v3, %v10551_v4  ;;  %v14976_v32 = vld [vmem:[#allocation10 + $0x250] ss:$8 sps:$4 sm:$0xff]   ;;  %v14981_v3 = vld [vmem:[#allocation10 + $0x264] ss:$8 sps:$4 sm:$0xff]  }
 0x8c0   : > { %v16672_v62 = vpop.eup %16671  ;;  %16689 = vrcp.f32 %v10199_v54  ;;  %v10207_v28 = vadd.f32 1.0, %v16670_v59  ;;  %v13718_v12 = vmul.f32 -1.442695, %v21480_v40  ;;  %v13725_v13 = vmul.f32 -1.442695, %v21484_v35 }
 0x8c1   : > { %v16674_v25 = vpop.eup %16673  ;;  %16691 = vrcp.f32 %v10200_v6  ;;  %v10208_v48 = vadd.f32 1.0, %v16672_v62  ;;  %11655 = vmatprep.mubr.bf16.mxu1 %v10664_v39  ;;  %v13726_v56 = vmul.f32 -1.442695, %v21487_v10  ;;  %v21499_v6 = vld [vmem:[%s22181_s10 + $0x2] ss:$4 sm:$0xff] }
 0x8c2   : > { %v16676_v41 = vpop.eup %16675  ;;  %16693 = vrcp.f32 %v10207_v28  ;;  %11725 = vmatpush1.bf16.msra.mxu1 %v14973_v5  ;;  %v22638_v5 = vld [vmem:[#allocation51_spill] sm:$0xff]  ;;  %v22639_v62 = vld [vmem:[#allocation52_spill] sm:$0xff] }
 0x8c3   : > { %v16678_v2 = vpop.eup %16677  ;;  %16695 = vrcp.f32 %v10208_v48  ;;  %11656 = vmatmul.mubr.bf16.gmra.mrb[104].mxu1 %v10663_v47  ;;  %v9514_v54 = vpop.f32.mrb[60].mxu0  ;;  %11726 = vmatprep.subr.bf16.mxu1 %v14978_v8  ;;  %v21503_v39 = vrot.slane %v21499_v6, %v22638_v5  ;;  %v21507_v28 = vrot.slane %v21499_v6, %v22639_v62  ;;  %v10568_v44 = vmul.f32 %v16676_v41, %v21421_v53 }
 0x8c4   : > { %v16680_v4 = vpop.eup %16679  ;;  %16697 = vpow2.f32 %v13717_v36  ;;  %v21494_v49 = vadd.f32 %v9514_v54, %v21346_v34  ;;  %v9516_v59 = vpop.f32.mrb[61].mxu0  ;;  %v10575_v36 = vmul.f32 %v16678_v2, %v21425_v22  ;;  %v10567_v22 = vmul.f32 %v16674_v25, %v21418_v17  ;;  %v14984_v2 = vld [vmem:[#allocation10 + $0x274] ss:$8 sps:$4 sm:$0xff]  }
 0x8c5   : > { %v16682_v8 = vpop.eup %16681  ;;  %v10576_v47 = vmul.f32 %v16680_v4, %v21429_v37  ;;  %16699 = vpow2.f32 %v13718_v12  ;;  %v21512_v48 = vadd.f32 %v9516_v59, %v21350_v23  ;;  %v9518_v54 = vpop.f32.mrb[62].mxu0 }
 0x8c6   : > { %v16684_v9 = vpop.eup %16683  ;;  %v10215_v15 = vadd.f32 1.0, %v16682_v8  ;;  %16701 = vpow2.f32 %v13725_v13  ;;  %11727 = vmatpush1.bf16.msra.mxu1 %v14976_v32  ;;  %v21516_v5 = vadd.f32 %v9518_v54, %v21346_v34  ;;  %v9520_v62 = vpop.f32.mrb[63].mxu0  ;;  %v13733_v41 = vmul.f32 -1.442695, %v21494_v49 }
 0x8c7   : > { %v16686_v21 = vpop.eup %16685  ;;  %v10216_v37 = vadd.f32 1.0, %v16684_v9  ;;  %16703 = vpow2.f32 %v13726_v56  ;;  %v21520_v12 = vadd.f32 %v9520_v62, %v21350_v23  ;;  %11728 = vmatprep.subr.bf16.mxu1 %v14981_v3  ;;  %v10672_v13 = vpack.c.bf16 %v10576_v47, %v10568_v44  ;;  %v14982_v23 = vld [vmem:[#allocation10 + $0x270] ss:$8 sps:$4 sm:$0xff]   ;;  %v14987_v44 = vld [vmem:[#allocation10 + $0x284] ss:$8 sps:$4 sm:$0xff]  }
 0x8c8   : > { %v16688_v4 = vpop.eup %16687  ;;  %16705 = vrcp.f32 %v10215_v15  ;;  %v10223_v53 = vadd.f32 1.0, %v16686_v21  ;;  %v13734_v32 = vmul.f32 -1.442695, %v21512_v48  ;;  %v10671_v59 = vpack.c.bf16 %v10575_v36, %v10567_v22 }
 0x8c9   : > { %16707 = vrcp.f32 %v10216_v37  ;;  %v10224_v34 = vadd.f32 1.0, %v16688_v4  ;;  %v13741_v9 = vmul.f32 -1.442695, %v21516_v5  ;;  %11665 = vmatprep.mubr.bf16.mxu1 %v10672_v13  ;;  %v13742_v15 = vmul.f32 -1.442695, %v21520_v12 }
 0x8ca   : > { %v16690_v8 = vpop.eup %16689  ;;  %16709 = vrcp.f32 %v10223_v53  ;;  %11729 = vmatpush1.bf16.msra.mxu1 %v14979_v61 }
 0x8cb   : > { %v16692_v17 = vpop.eup %16691  ;;  %16711 = vrcp.f32 %v10224_v34  ;;  %11666 = vmatmul.mubr.bf16.gmra.mrb[108].mxu1 %v10671_v59  ;;  %v9557_v21 = vpop.f32.mrb[64].mxu0  ;;  %11730 = vmatprep.subr.bf16.mxu1 %v14984_v2 }
 0x8cc   : > { %v16694_v25 = vpop.eup %16693  ;;  %16713 = vpow2.f32 %v13733_v41  ;;  %v21527_v56 = vadd.f32 %v9557_v21, %v21503_v39  ;;  %v9559_v3 = vpop.f32.mrb[65].mxu0  ;;  %v10584_v47 = vmul.f32 %v16692_v17, %v21441_v51  ;;  %v14985_v41 = vld [vmem:[#allocation10 + $0x280] ss:$8 sps:$4 sm:$0xff]  }
 0x8cd   : > { %v16696_v36 = vpop.eup %16695  ;;  %v10591_v61 = vmul.f32 %v16694_v25, %v21444_v1  ;;  %16715 = vpow2.f32 %v13734_v32  ;;  %v21532_v54 = vadd.f32 %v9559_v3, %v21507_v28  ;;  %v9561_v62 = vpop.f32.mrb[66].mxu0  ;;  %v10583_v1 = vmul.f32 %v16690_v8, %v21438_v26  ;;  %v14990_v32 = vld [vmem:[#allocation10 + $0x294] ss:$8 sps:$4 sm:$0xff]  }
 0x8ce   : > { %v16698_v22 = vpop.eup %16697  ;;  %v10592_v37 = vmul.f32 %v16696_v36, %v21448_v52  ;;  %16717 = vpow2.f32 %v13741_v9  ;;  %v13623_v2 = vmul.f32 -1.442695, %v21527_v56  ;;  %11731 = vmatpush1.bf16.msra.mxu1 %v14982_v23  ;;  %v21537_v4 = vadd.f32 %v9561_v62, %v21503_v39  ;;  %v9563_v53 = vpop.f32.mrb[67].mxu0  ;;  %v14993_v62 = vld [vmem:[#allocation10 + $0x2a4] ss:$8 sps:$4 sm:$0xff]  }
 0x8cf   : > { %v16700_v51 = vpop.eup %16699  ;;  %v10231_v13 = vadd.f32 1.0, %v16698_v22  ;;  %16719 = vpow2.f32 %v13742_v15  ;;  %v21541_v34 = vadd.f32 %v9563_v53, %v21507_v28  ;;  %11732 = vmatprep.subr.bf16.mxu1 %v14987_v44  ;;  %v13624_v21 = vmul.f32 -1.442695, %v21532_v54  ;;  %v14988_v15 = vld [vmem:[#allocation10 + $0x290] ss:$8 sps:$4 sm:$0xff]  }
 0x8d0   : > { %v16702_v52 = vpop.eup %16701  ;;  %v10232_v59 = vadd.f32 1.0, %v16700_v51  ;;  %16721 = vpow2.f32 %v13623_v2  ;;  %v10680_v9 = vpack.c.bf16 %v10592_v37, %v10584_v47  ;;  %v10679_v25 = vpack.c.bf16 %v10591_v61, %v10583_v1 }
 0x8d1   : > { %v16704_v23 = vpop.eup %16703  ;;  %16723 = vrcp.f32 %v10231_v13  ;;  %v10239_v17 = vadd.f32 1.0, %v16702_v52  ;;  %v13631_v8 = vmul.f32 -1.442695, %v21537_v4  ;;  %v13632_v36 = vmul.f32 -1.442695, %v21541_v34 }
 0x8d2   : > { %v16706_v3 = vpop.eup %16705  ;;  %16725 = vrcp.f32 %v10232_v59  ;;  %v10240_v26 = vadd.f32 1.0, %v16704_v23  ;;  %11675 = vmatprep.mubr.bf16.mxu1 %v10680_v9  ;;  %11733 = vmatpush1.bf16.msra.mxu1 %v14985_v41  ;;  %v14991_v9 = vld [vmem:[#allocation10 + $0x2a0] ss:$8 sps:$4 sm:$0xff]  }
 0x8d3   : > { %v16708_v44 = vpop.eup %16707  ;;  %16727 = vrcp.f32 %v10239_v17  ;;  %11676 = vmatmul.mubr.bf16.gmra.mrb[112].mxu1 %v10679_v25  ;;  %v9567_v47 = vpop.f32.mrb[68].mxu0  ;;  %11734 = vmatprep.subr.bf16.mxu1 %v14990_v32  ;;  %v10599_v17 = vmul.f32 %v16706_v3, %v21457_v7 }
 0x8d4   : > { %v16710_v22 = vpop.eup %16709  ;;  %16729 = vrcp.f32 %v10240_v26  ;;  %v21547_v61 = vadd.f32 %v9567_v47, %v21503_v39  ;;  %v9569_v37 = vpop.f32.mrb[69].mxu0  ;;  %v10600_v53 = vmul.f32 %v16708_v44, %v21460_v55 }
 0x8d5   : > { %v16712_v2 = vpop.eup %16711  ;;  %v10607_v41 = vmul.f32 %v16710_v22, %v21464_v27  ;;  %16731 = vpow2.f32 %v13624_v21  ;;  %v9571_v51 = vpop.f32.mrb[70].mxu0  ;;  %v21554_v52 = vadd.f32 %v9569_v37, %v21507_v28  ;;  %v14996_v21 = vld [vmem:[#allocation10 + $0x2b4] ss:$8 sps:$4 sm:$0xff]  }
 0x8d6   : > { %v16714_v1 = vpop.eup %16713  ;;  %v10608_v13 = vmul.f32 %v16712_v2, %v21468_v58  ;;  %16733 = vpow2.f32 %v13631_v8  ;;  %v13639_v32 = vmul.f32 -1.442695, %v21547_v61  ;;  %11735 = vmatpush1.bf16.msra.mxu1 %v14988_v15  ;;  %v9573_v59 = vpop.f32.mrb[71].mxu0  ;;  %v21558_v27 = vadd.f32 %v9571_v51, %v21503_v39 }
 0x8d7   : > { %v16716_v23 = vpop.eup %16715  ;;  %v10247_v55 = vadd.f32 1.0, %v16714_v1  ;;  %16735 = vpow2.f32 %v13632_v36  ;;  %11736 = vmatprep.subr.bf16.mxu1 %v14993_v62  ;;  %v21561_v26 = vadd.f32 %v9573_v59, %v21507_v28  ;;  %v10687_v47 = vpack.c.bf16 %v10607_v41, %v10599_v17  ;;  %v14994_v36 = vld [vmem:[#allocation10 + $0x2b0] ss:$8 sps:$4 sm:$0xff]  }
 0x8d8   : > { %v16718_v58 = vpop.eup %16717  ;;  %v10248_v25 = vadd.f32 1.0, %v16716_v23  ;;  %16737 = vpow2.f32 %v13639_v32  ;;  %v10688_v8 = vpack.c.bf16 %v10608_v13, %v10600_v53  ;;  %v13640_v3 = vmul.f32 -1.442695, %v21554_v52  ;;  %v14999_v53 = vld [vmem:[#allocation10 + $0x2c4] ss:$8 sps:$4 sm:$0xff]  }
 0x8d9   : > { %v16720_v15 = vpop.eup %16719  ;;  %16739 = vrcp.f32 %v10247_v55  ;;  %v10255_v44 = vadd.f32 1.0, %v16718_v58  ;;  %v13647_v2 = vmul.f32 -1.442695, %v21558_v27  ;;  %v13648_v41 = vmul.f32 -1.442695, %v21561_v26 }
 0x8da   : > { %v16722_v22 = vpop.eup %16721  ;;  %16741 = vrcp.f32 %v10248_v25  ;;  %v10256_v7 = vadd.f32 1.0, %v16720_v15  ;;  %11685 = vmatprep.mubr.bf16.mxu1 %v10688_v8  ;;  %11737 = vmatpush1.bf16.msra.mxu1 %v14991_v9  ;;  %v14997_v8 = vld [vmem:[#allocation10 + $0x2c0] ss:$8 sps:$4 sm:$0xff]  }
 0x8db   : > { %v16724_v62 = vpop.eup %16723  ;;  %16743 = vrcp.f32 %v10255_v44  ;;  %v10137_v37 = vadd.f32 1.0, %v16722_v22  ;;  %11686 = vmatmul.mubr.bf16.gmra.mrb[116].mxu1 %v10687_v47  ;;  %v9577_v51 = vpop.f32.mrb[72].mxu0  ;;  %11738 = vmatprep.subr.bf16.mxu1 %v14996_v21 }
 0x8dc   : > { %v16726_v1 = vpop.eup %16725  ;;  %16745 = vrcp.f32 %v10256_v7  ;;  %v21567_v13 = vadd.f32 %v9577_v51, %v21503_v39  ;;  %v9579_v32 = vpop.f32.mrb[73].mxu0  ;;  %v10615_v9 = vmul.f32 %v16724_v62, %v21475_v29 }
 0x8dd   : > { %v16728_v59 = vpop.eup %16727  ;;  %16747 = vrcp.f32 %v10137_v37  ;;  %v9581_v23 = vpop.f32.mrb[74].mxu0  ;;  %v21573_v58 = vadd.f32 %v9579_v32, %v21507_v28  ;;  %v10616_v44 = vmul.f32 %v16726_v1, %v21480_v40  ;;  %v15000_v1 = vld [vmem:[#allocation10 + $0x2d0] ss:$8 sps:$4 sm:$0xff]  }
 0x8de   : > { %v16730_v17 = vpop.eup %16729  ;;  %v10623_v55 = vmul.f32 %v16728_v59, %v21484_v35  ;;  %16749 = vpow2.f32 %v13640_v3  ;;  %v13655_v21 = vmul.f32 -1.442695, %v21567_v13  ;;  %11739 = vmatpush1.bf16.msra.mxu1 %v14994_v36  ;;  %v9583_v25 = vpop.f32.mrb[75].mxu0  ;;  %v21578_v29 = vadd.f32 %v9581_v23, %v21503_v39  ;;  %v15002_v35 = vld [vmem:[#allocation10 + $0x2d4] ss:$8 sps:$4 sm:$0xff]  }
 0x8df   : > { %v16732_v15 = vpop.eup %16731  ;;  %v10624_v47 = vmul.f32 %v16730_v17, %v21487_v10  ;;  %16751 = vpow2.f32 %v13647_v2  ;;  %11740 = vmatprep.subr.bf16.mxu1 %v14999_v53  ;;  %v21581_v3 = vadd.f32 %v9583_v25, %v21507_v28  ;;  %v13656_v2 = vmul.f32 -1.442695, %v21573_v58 }
 0x8e0   : > { %v16734_v22 = vpop.eup %16733  ;;  %v10138_v7 = vadd.f32 1.0, %v16732_v15  ;;  %16753 = vpow2.f32 %v13648_v41  ;;  %v10695_v36 = vpack.c.bf16 %v10623_v55, %v10615_v9  ;;  %v13663_v41 = vmul.f32 -1.442695, %v21578_v29  ;;  %v15005_v9 = vld [vmem:[#allocation10 + $0x2e4] ss:$8 sps:$4 sm:$0xff]  }
 0x8e1   : > { %v16736_v62 = vpop.eup %16735  ;;  %v10145_v37 = vadd.f32 1.0, %v16734_v22  ;;  %16755 = vpow2.f32 %v13655_v21  ;;  %v10696_v51 = vpack.c.bf16 %v10624_v47, %v10616_v44  ;;  %v13664_v17 = vmul.f32 -1.442695, %v21581_v3 }
 0x8e2   : > { %v16738_v40 = vpop.eup %16737  ;;  %16757 = vrcp.f32 %v10138_v7  ;;  %v10146_v10 = vadd.f32 1.0, %v16736_v62  ;;  %11741 = vmatpush1.bf16.msra.mxu1 %v14997_v8  ;;  %v15003_v62 = vld [vmem:[#allocation10 + $0x2e0] ss:$8 sps:$4 sm:$0xff]  }
 0x8e3   : > { %v16740_v53 = vpop.eup %16739  ;;  %16759 = vrcp.f32 %v10145_v37  ;;  %v10153_v32 = vadd.f32 1.0, %v16738_v40  ;;  %11695 = vmatprep.mubr.bf16.mxu1 %v10696_v51  ;;  %v9587_v59 = vpop.f32.mrb[76].mxu0  ;;  %11742 = vmatprep.subr.bf16.mxu1 %v15002_v35 }
 0x8e4   : > { %v16742_v23 = vpop.eup %16741  ;;  %16761 = vrcp.f32 %v10146_v10  ;;  %11696 = vmatmul.mubr.bf16.gmra.mrb[120].mxu1 %v10695_v36  ;;  %v21587_v55 = vadd.f32 %v9587_v59, %v21503_v39  ;;  %v9589_v21 = vpop.f32.mrb[77].mxu0  ;;  %v10631_v8 = vmul.f32 %v16740_v53, %v21494_v49  ;;  %v15008_v10 = vld [vmem:[#allocation10 + $0x2f4] ss:$8 sps:$4 sm:$0xff]  }
 0x8e5   : > { %v16744_v25 = vpop.eup %16743  ;;  %16763 = vrcp.f32 %v10153_v32  ;;  %v21591_v15 = vadd.f32 %v9589_v21, %v21507_v28  ;;  %v9591_v44 = vpop.f32.mrb[78].mxu0  ;;  %v10632_v35 = vmul.f32 %v16742_v23, %v21512_v48 }
 0x8e6   : > { %v16746_v47 = vpop.eup %16745  ;;  %v10639_v22 = vmul.f32 %v16744_v25, %v21516_v5  ;;  %16765 = vpow2.f32 %v13656_v2  ;;  %v13671_v7 = vmul.f32 -1.442695, %v21587_v55  ;;  %11743 = vmatpush1.bf16.msra.mxu1 %v15000_v1  ;;  %v9593_v36 = vpop.f32.mrb[79].mxu0  ;;  %v21599_v40 = vadd.f32 %v9591_v44, %v21503_v39  ;;  %v15011_v25 = vld [vmem:[#allocation10 + $0x304] ss:$8 sps:$4 sm:$0xff]  }
 0x8e7   : > { %v16748_v37 = vpop.eup %16747  ;;  %v10640_v51 = vmul.f32 %v16746_v47, %v21520_v12  ;;  %16767 = vpow2.f32 %v13663_v41  ;;  %v13672_v49 = vmul.f32 -1.442695, %v21591_v15  ;;  %11744 = vmatprep.subr.bf16.mxu1 %v15005_v9  ;;  %v21602_v5 = vadd.f32 %v9593_v36, %v21507_v28  ;;  %v15006_v41 = vld [vmem:[#allocation10 + $0x2f0] ss:$8 sps:$4 sm:$0xff]  }
 0x8e8   : > { %v16750_v48 = vpop.eup %16749  ;;  %16769 = vpow2.f32 %v13664_v17  ;;  %v10703_v2 = vpack.c.bf16 %v10639_v22, %v10631_v8  ;;  %v13679_v9 = vmul.f32 -1.442695, %v21599_v40 }
 0x8e9   : > { %v16752_v1 = vpop.eup %16751  ;;  %v10154_v53 = vadd.f32 1.0, %v16750_v48  ;;  %16771 = vpow2.f32 %v13671_v7  ;;  %v10704_v32 = vpack.c.bf16 %v10640_v51, %v10632_v35  ;;  %v13680_v47 = vmul.f32 -1.442695, %v21602_v5 }
 0x8ea   : > { %v16754_v59 = vpop.eup %16753  ;;  %v10161_v12 = vadd.f32 1.0, %v16752_v1  ;;  %16773 = vpow2.f32 %v13672_v49  ;;  %11745 = vmatpush1.bf16.msra.mxu1 %v15003_v62  ;;  %v10521_v49 = vmul.f32 %v16748_v37, %v21527_v56  ;;  %v15057_v56 = vld [vmem:[%s22179_s8 + $0x40] sm:$0xff]   ;;  %v15059_v37 = vld [vmem:[%s22179_s8 + $0x48] sm:$0xff]  }
 0x8eb   : > { %v16756_v23 = vpop.eup %16755  ;;  %16775 = vrcp.f32 %v10154_v53  ;;  %v10162_v21 = vadd.f32 1.0, %v16754_v59  ;;  %11705 = vmatprep.mubr.bf16.mxu1 %v10704_v32  ;;  %v9597_v17 = vpop.f32.mrb[80].mxu0  ;;  %11746 = vmatprep.subr.bf16.mxu1 %v15008_v10 }
 0x8ec   : > { %v16758_v44 = vpop.eup %16757  ;;  %16777 = vrcp.f32 %v10161_v12  ;;  %v10169_v8 = vadd.f32 1.0, %v16756_v23  ;;  %11706 = vmatmul.mubr.bf16.gmra.mrb[124].mxu1 %v10703_v2  ;;  %v21607_v35 = vadd.f32 %v9597_v17, %v21503_v39  ;;  %v9599_v22 = vpop.f32.mrb[81].mxu0  ;;  %v15009_v17 = vld [vmem:[#allocation10 + $0x300] ss:$8 sps:$4 sm:$0xff]   ;;  %13927 = vmatprep.subr.bf16.mxu0 %v15057_v56 }
 0x8ed   : > { %v16760_v7 = vpop.eup %16759  ;;  %16779 = vrcp.f32 %v10162_v21  ;;  %v21610_v36 = vadd.f32 %v9599_v22, %v21507_v28  ;;  %v9601_v62 = vpop.f32.mrb[82].mxu0  ;;  %v10522_v53 = vmul.f32 %v16758_v44, %v21532_v54 }
 0x8ee   : > { %v16762_v51 = vpop.eup %16761  ;;  %v10529_v10 = vmul.f32 %v16760_v7, %v21537_v4  ;;  %16781 = vrcp.f32 %v10169_v8  ;;  %v13687_v48 = vmul.f32 -1.442695, %v21607_v35  ;;  %11747 = vmatpush1.bf16.msra.mxu1 %v15006_v41  ;;  %v9603_v2 = vpop.f32.mrb[83].mxu0  ;;  %v15058_v4 = vld [vmem:[%s22179_s8] sm:$0xff]   ;;  %v15014_v8 = vld [vmem:[#allocation10 + $0x314] ss:$8 sps:$4 sm:$0xff]  }
 0x8ef   : > { %v16764_v1 = vpop.eup %16763  ;;  %v10530_v32 = vmul.f32 %v16762_v51, %v21541_v34  ;;  %16783 = vpow2.f32 %v13679_v9  ;;  %v13688_v59 = vmul.f32 -1.442695, %v21610_v36  ;;  %11829 = vmatprep.subr.bf16.mxu1 %v15011_v25  ;;  %v21628_v34 = vadd.f32 %v9601_v62, %v21503_v39  ;;  %13928 = vmatpush3.bf16.msra.mxu0 %v15058_v4  ;;  %v15061_v51 = vld [vmem:[%s22179_s8 + $0x50] sm:$0xff]  }
 0x8f0   : > { %v16766_v12 = vpop.eup %16765  ;;  %v10649_v54 = vpack.c.bf16 %v10529_v10, %v10521_v49  ;;  %16785 = vpow2.f32 %v13680_v47  ;;  %v21631_v21 = vadd.f32 %v9603_v2, %v21507_v28  ;;  %v15060_v47 = vld [vmem:[%s22179_s8 + $0x8] sm:$0xff]   ;;  %13929 = vmatprep.subr.bf16.mxu0 %v15059_v37  ;;  %v15012_v4 = vld [vmem:[#allocation10 + $0x310] ss:$8 sps:$4 sm:$0xff]  }
 0x8f1   : > { %v16768_v41 = vpop.eup %16767  ;;  %v10170_v23 = vadd.f32 1.0, %v16766_v12  ;;  %16787 = vpow2.f32 %v13687_v48  ;;  %v10650_v9 = vpack.c.bf16 %v10530_v32, %v10522_v53  ;;  %v13695_v48 = vmul.f32 -1.442695, %v21628_v34 }
 0x8f2   : > { %v16770_v25 = vpop.eup %16769  ;;  %v10177_v44 = vadd.f32 1.0, %v16768_v41  ;;  %16789 = vpow2.f32 %v13688_v59  ;;  %v13696_v56 = vmul.f32 -1.442695, %v21631_v21 }
 0x8f3   : > { %v16772_v22 = vpop.eup %16771  ;;  %16791 = vrcp.f32 %v10170_v23  ;;  %v10178_v7 = vadd.f32 1.0, %v16770_v25  ;;  %11748 = vmatprep.mubr.bf16.mxu1 %v10650_v9  ;;  %v9607_v62 = vpop.f32.mrb[84].mxu0  ;;  %v15017_v9 = vld [vmem:[#allocation10 + $0x324] ss:$8 sps:$4 sm:$0xff]   ;;  %13930 = vmatpush3.bf16.msra.mxu0 %v15060_v47  ;;  %v15062_v25 = vld [vmem:[%s22179_s8 + $0x10] sm:$0xff]  }
 0x8f4   : > { %v16774_v49 = vpop.eup %16773  ;;  %16793 = vrcp.f32 %v10177_v44  ;;  %v10185_v10 = vadd.f32 1.0, %v16772_v22  ;;  %11749 = vmatmul.mubr.bf16.vlgmr.msra.gmra.mrb[96].mxu1 %v10649_v54  ;;  %v21641_v2 = vadd.f32 %v9607_v62, %v21503_v39  ;;  %v9609_v53 = vpop.f32.mrb[85].mxu0  ;;  %13931 = vmatprep.subr.bf16.mxu0 %v15061_v51 }
 0x8f5   : > { %v16776_v32 = vpop.eup %16775  ;;  %16795 = vrcp.f32 %v10178_v7  ;;  %v10186_v59 = vadd.f32 1.0, %v16774_v49  ;;  %11830 = vmatpush1.bf16.msra.mxu1 %v15009_v17  ;;  %v21645_v37 = vadd.f32 %v9609_v53, %v21507_v28  ;;  %v9611_v12 = vpop.f32.mrb[86].mxu0  ;;  %v10537_v17 = vmul.f32 %v16764_v1, %v21547_v61 }
 0x8f6   : > { %v16778_v41 = vpop.eup %16777  ;;  %16797 = vrcp.f32 %v10185_v10  ;;  %v13703_v23 = vmul.f32 -1.442695, %v21641_v2  ;;  %11831 = vmatprep.subr.bf16.mxu1 %v15014_v8  ;;  %v9613_v54 = vpop.f32.mrb[87].mxu0  ;;  %v15063_v8 = vld [vmem:[%s22179_s8 + $0x58] sm:$0xff]   ;;  %v10538_v47 = vmul.f32 %v16776_v32, %v21554_v52  ;;  %v21660_v10 = vadd.f32 %v9611_v12, %v21503_v39 }
 0x8f7   : > { %v16780_v44 = vpop.eup %16779  ;;  %v10545_v22 = vmul.f32 %v16778_v41, %v21558_v27  ;;  %16799 = vrcp.f32 %v10186_v59  ;;  %v13704_v7 = vmul.f32 -1.442695, %v21645_v37  ;;  %v21663_v27 = vadd.f32 %v9613_v54, %v21507_v28  ;;  %v15015_v41 = vld [vmem:[#allocation10 + $0x320] ss:$8 sps:$4 sm:$0xff]   ;;  %13932 = vmatpush3.bf16.msra.mxu0 %v15062_v25  ;;  %v15064_v52 = vld [vmem:[%s22179_s8 + $0x18] sm:$0xff]  }
 0x8f8   : > { %v16782_v62 = vpop.eup %16781  ;;  %v10546_v49 = vmul.f32 %v16780_v44, %v21561_v26  ;;  %16801 = vpow2.f32 %v13695_v48  ;;  %13933 = vmatprep.subr.bf16.mxu0 %v15063_v8  ;;  %v13711_v54 = vmul.f32 -1.442695, %v21660_v10 }
 0x8f9   : > { %v16784_v61 = vpop.eup %16783  ;;  %16803 = vpow2.f32 %v13696_v56  ;;  %11832 = vmatpush1.bf16.msra.mxu1 %v15012_v4  ;;  %v10657_v1 = vpack.c.bf16 %v10545_v22, %v10537_v17  ;;  %v15020_v56 = vld [vmem:[#allocation10 + $0x334] ss:$8 sps:$4 sm:$0xff]   ;;  %v13712_v17 = vmul.f32 -1.442695, %v21663_v27 }
 0x8fa   : > { %v16786_v51 = vpop.eup %16785  ;;  %v10193_v53 = vadd.f32 1.0, %v16784_v61  ;;  %16805 = vpow2.f32 %v13703_v23  ;;  %v10658_v59 = vpack.c.bf16 %v10546_v49, %v10538_v47  ;;  %11833 = vmatprep.subr.bf16.mxu1 %v15017_v9  ;;  %v15018_v49 = vld [vmem:[#allocation10 + $0x330] ss:$8 sps:$4 sm:$0xff]  }
 0x8fb   : > { %v16788_v26 = vpop.eup %16787  ;;  %v10194_v48 = vadd.f32 1.0, %v16786_v51  ;;  %16807 = vpow2.f32 %v13704_v7  ;;  %v9617_v32 = vpop.f32.mrb[88].mxu0  ;;  %13934 = vmatpush3.bf16.msra.mxu0 %v15064_v52 }
 0x8fc   : > { %v16790_v4 = vpop.eup %16789  ;;  %16809 = vrcp.f32 %v10193_v53  ;;  %v10201_v12 = vadd.f32 1.0, %v16788_v26  ;;  %11758 = vmatprep.mubr.bf16.mxu1 %v10658_v59  ;;  %v21670_v23 = vadd.f32 %v9617_v32, %v21503_v39  ;;  %v9619_v9 = vpop.f32.mrb[89].mxu0  ;;  %v10553_v59 = vmul.f32 %v16782_v62, %v21567_v13 }
 0x8fd   : > { %v16792_v25 = vpop.eup %16791  ;;  %16811 = vrcp.f32 %v10194_v48  ;;  %v10202_v44 = vadd.f32 1.0, %v16790_v4  ;;  %11759 = vmatmul.mubr.bf16.gmra.mrb[100].mxu1 %v10657_v1  ;;  %v21674_v22 = vadd.f32 %v9619_v9, %v21507_v28  ;;  %v9621_v7 = vpop.f32.mrb[90].mxu0  ;;  %v15023_v48 = vld [vmem:[#allocation10 + $0x344] ss:$8 sps:$4 sm:$0xff]  }
 0x8fe   : > { %v16794_v8 = vpop.eup %16793  ;;  %16813 = vrcp.f32 %v10201_v12  ;;  %11834 = vmatpush1.bf16.msra.mxu1 %v15015_v41  ;;  %v13719_v47 = vmul.f32 -1.442695, %v21670_v23  ;;  %v21678_v61 = vadd.f32 %v9621_v7, %v21503_v39  ;;  %v9623_v51 = vpop.f32.mrb[91].mxu0  ;;  %v10554_v41 = vmul.f32 %v16792_v25, %v21573_v58 }
 0x8ff   : > { %v16796_v53 = vpop.eup %16795  ;;  %v10561_v1 = vmul.f32 %v16794_v8, %v21578_v29  ;;  %16815 = vrcp.f32 %v10202_v44  ;;  %11835 = vmatprep.subr.bf16.mxu1 %v15020_v56  ;;  %v13720_v26 = vmul.f32 -1.442695, %v21674_v22  ;;  %v21687_v52 = vadd.f32 %v9623_v51, %v21507_v28  ;;  %v15021_v56 = vld [vmem:[#allocation10 + $0x340] ss:$8 sps:$4 sm:$0xff]   ;;  %v22640_v51 = vld [vmem:[#allocation66_spill] sm:$0xff] }
 0x900   : > { %v16798_v32 = vpop.eup %16797  ;;  %v10562_v4 = vmul.f32 %v16796_v53, %v21581_v3  ;;  %16817 = vpow2.f32 %v13711_v54  ;;  %v13727_v12 = vmul.f32 -1.442695, %v21678_v61  ;;  %v15026_v3 = vld [vmem:[#allocation10 + $0x354] ss:$8 sps:$4 sm:$0xff]  }
 0x901   : > { %v16800_v9 = vpop.eup %16799  ;;  %16819 = vpow2.f32 %v13712_v17  ;;  %v10665_v13 = vpack.c.bf16 %v10561_v1, %v10553_v59  ;;  %v13728_v59 = vmul.f32 -1.442695, %v21687_v52 }
 0x902   : > { %v16802_v29 = vpop.eup %16801  ;;  %16821 = vpow2.f32 %v13719_v47  ;;  %11836 = vmatpush1.bf16.msra.mxu1 %v15018_v49  ;;  %v10666_v62 = vpack.c.bf16 %v10562_v4, %v10554_v41  ;;  %v21694_v47 = vrot.slane %v21499_v6, %v22640_v51 }
 0x903   : > { %v16804_v44 = vpop.eup %16803  ;;  %v10209_v7 = vadd.f32 1.0, %v16802_v29  ;;  %16823 = vpow2.f32 %v13720_v26  ;;  %11837 = vmatprep.subr.bf16.mxu1 %v15023_v48  ;;  %v9627_v58 = vpop.f32.mrb[92].mxu0 }
 0x904   : > { %v16806_v54 = vpop.eup %16805  ;;  %v10210_v25 = vadd.f32 1.0, %v16804_v44  ;;  %16825 = vpow2.f32 %v13727_v12  ;;  %11768 = vmatprep.mubr.bf16.mxu1 %v10666_v62  ;;  %v21690_v17 = vadd.f32 %v9627_v58, %v21503_v39  ;;  %v9629_v8 = vpop.f32.mrb[93].mxu0  ;;  %v15024_v12 = vld [vmem:[#allocation10 + $0x350] ss:$8 sps:$4 sm:$0xff]  }
 0x905   : > { %v16808_v49 = vpop.eup %16807  ;;  %16827 = vrcp.f32 %v10209_v7  ;;  %v10217_v53 = vadd.f32 1.0, %v16806_v54  ;;  %11769 = vmatmul.mubr.bf16.gmra.mrb[104].mxu1 %v10665_v13  ;;  %v21698_v1 = vadd.f32 %v9629_v8, %v21507_v28  ;;  %v9631_v26 = vpop.f32.mrb[94].mxu0  ;;  %v10569_v7 = vmul.f32 %v16798_v32, %v21587_v55  ;;  %v15029_v54 = vld [vmem:[#allocation10 + $0x364] ss:$8 sps:$4 sm:$0xff]  }
 0x906   : > { %v16810_v48 = vpop.eup %16809  ;;  %16829 = vrcp.f32 %v10210_v25  ;;  %v10218_v41 = vadd.f32 1.0, %v16808_v49  ;;  %11838 = vmatpush1.bf16.msra.mxu1 %v15021_v56  ;;  %v13735_v4 = vmul.f32 -1.442695, %v21690_v17  ;;  %v21702_v29 = vadd.f32 %v9631_v26, %v21503_v39  ;;  %v9633_v62 = vpop.f32.mrb[95].mxu0  ;;  %v15032_v26 = vld [vmem:[#allocation10 + $0x374] ss:$8 sps:$4 sm:$0xff]  }
 0x907   : > { %v16812_v44 = vpop.eup %16811  ;;  %v10577_v13 = vmul.f32 %v16810_v48, %v21599_v40  ;;  %16831 = vrcp.f32 %v10217_v53  ;;  %11839 = vmatprep.subr.bf16.mxu1 %v15026_v3  ;;  %v13736_v58 = vmul.f32 -1.442695, %v21698_v1  ;;  %v10570_v56 = vmul.f32 %v16800_v9, %v21591_v15  ;;  %v15027_v15 = vld [vmem:[#allocation10 + $0x360] ss:$8 sps:$4 sm:$0xff]  }
 0x908   : > { %v16814_v25 = vpop.eup %16813  ;;  %v10578_v8 = vmul.f32 %v16812_v44, %v21602_v5  ;;  %16833 = vrcp.f32 %v10218_v41  ;;  %v13743_v39 = vmul.f32 -1.442695, %v21702_v29  ;;  %v21712_v55 = vrot.slane %v21499_v6, %v22602_v14 }
 0x909   : > { %v16816_v51 = vpop.eup %16815  ;;  %16835 = vpow2.f32 %v13728_v59  ;;  %v10673_v49 = vpack.c.bf16 %v10577_v13, %v10569_v7  ;;  %v21715_v32 = vadd.f32 %v9633_v62, %v21507_v28  ;;  %v15030_v13 = vld [vmem:[#allocation10 + $0x370] ss:$8 sps:$4 sm:$0xff]  }
 0x90a   : > { %v16818_v40 = vpop.eup %16817  ;;  %16837 = vpow2.f32 %v13735_v4  ;;  %11840 = vmatpush1.bf16.msra.mxu1 %v15024_v12  ;;  %v10674_v3 = vpack.c.bf16 %v10578_v8, %v10570_v56 }
 0x90b   : > { %v16820_v9 = vpop.eup %16819  ;;  %v10225_v5 = vadd.f32 1.0, %v16818_v40  ;;  %16839 = vpow2.f32 %v13736_v58  ;;  %11841 = vmatprep.subr.bf16.mxu1 %v15029_v54  ;;  %v9670_v53 = vpop.f32.mrb[96].mxu0  ;;  %v13744_v7 = vmul.f32 -1.442695, %v21715_v32 }
 0x90c   : > { %v16822_v59 = vpop.eup %16821  ;;  %v10226_v48 = vadd.f32 1.0, %v16820_v9  ;;  %16841 = vpow2.f32 %v13743_v39  ;;  %11778 = vmatprep.mubr.bf16.mxu1 %v10674_v3  ;;  %v21718_v14 = vadd.f32 %v9670_v53, %v21694_v47  ;;  %v9672_v6 = vpop.f32.mrb[97].mxu0  ;;  %v10585_v3 = vmul.f32 %v16814_v25, %v21607_v35 }
 0x90d   : > { %v16824_v41 = vpop.eup %16823  ;;  %16843 = vrcp.f32 %v10225_v5  ;;  %v10233_v28 = vadd.f32 1.0, %v16822_v59  ;;  %11779 = vmatmul.mubr.bf16.gmra.mrb[108].mxu1 %v10673_v49  ;;  %v21721_v4 = vadd.f32 %v9672_v6, %v21712_v55  ;;  %v9674_v12 = vpop.f32.mrb[98].mxu0  ;;  %v15035_v49 = vld [vmem:[#allocation10 + $0x384] ss:$8 sps:$4 sm:$0xff]   ;;  %v10586_v53 = vmul.f32 %v16816_v51, %v21610_v36  ;;  %v15038_v51 = vld [vmem:[#allocation10 + $0x394] ss:$8 sps:$4 sm:$0xff]  }
 0x90e   : > { %v16826_v62 = vpop.eup %16825  ;;  %16845 = vrcp.f32 %v10226_v48  ;;  %v10234_v44 = vadd.f32 1.0, %v16824_v41  ;;  %11842 = vmatpush1.bf16.msra.mxu1 %v15027_v15  ;;  %v21725_v58 = vadd.f32 %v9674_v12, %v21694_v47  ;;  %v9676_v54 = vpop.f32.mrb[99].mxu0  ;;  %v13625_v39 = vmul.f32 -1.442695, %v21718_v14  ;;  %v15033_v41 = vld [vmem:[#allocation10 + $0x380] ss:$8 sps:$4 sm:$0xff]  }
 0x90f   : > { %v16828_v56 = vpop.eup %16827  ;;  %16847 = vrcp.f32 %v10233_v28  ;;  %v10241_v8 = vadd.f32 1.0, %v16826_v62  ;;  %11843 = vmatprep.subr.bf16.mxu1 %v15032_v26  ;;  %v13626_v15 = vmul.f32 -1.442695, %v21721_v4  ;;  %v21735_v26 = vadd.f32 %v9676_v54, %v21712_v55 }
 0x910   : > { %v16830_v40 = vpop.eup %16829  ;;  %v10593_v9 = vmul.f32 %v16828_v56, %v21628_v34  ;;  %16849 = vrcp.f32 %v10234_v44  ;;  %v13633_v48 = vmul.f32 -1.442695, %v21725_v58 }
 0x911   : > { %v16832_v5 = vpop.eup %16831  ;;  %v10594_v59 = vmul.f32 %v16830_v40, %v21631_v21  ;;  %16851 = vrcp.f32 %v10241_v8 }
 0x912   : > { %v16834_v6 = vpop.eup %16833  ;;  %16853 = vpow2.f32 %v13744_v7  ;;  %11844 = vmatpush1.bf16.msra.mxu1 %v15030_v13  ;;  %v10681_v35 = vpack.c.bf16 %v10593_v9, %v10585_v3 }
 0x913   : > { %v16836_v25 = vpop.eup %16835  ;;  %16855 = vpow2.f32 %v13625_v39  ;;  %v10682_v34 = vpack.c.bf16 %v10594_v59, %v10586_v53  ;;  %11845 = vmatprep.subr.bf16.mxu1 %v15035_v49  ;;  %v9680_v28 = vpop.f32.mrb[100].mxu0  ;;  %v13634_v39 = vmul.f32 -1.442695, %v21735_v26  ;;  %v15036_v53 = vld [vmem:[#allocation10 + $0x390] ss:$8 sps:$4 sm:$0xff]  }
 0x914   : > { %v16838_v12 = vpop.eup %16837  ;;  %v10242_v36 = vadd.f32 1.0, %v16836_v25  ;;  %16857 = vpow2.f32 %v13626_v15  ;;  %v21738_v21 = vadd.f32 %v9680_v28, %v21694_v47  ;;  %v9682_v62 = vpop.f32.mrb[101].mxu0  ;;  %v10601_v25 = vmul.f32 %v16832_v5, %v21641_v2  ;;  %v15041_v28 = vld [vmem:[#allocation10 + $0x3a4] ss:$8 sps:$4 sm:$0xff]  }
 0x915   : > { %v16840_v44 = vpop.eup %16839  ;;  %v10249_v7 = vadd.f32 1.0, %v16838_v12  ;;  %16859 = vpow2.f32 %v13633_v48  ;;  %11788 = vmatprep.mubr.bf16.mxu1 %v10682_v34  ;;  %v21741_v13 = vadd.f32 %v9682_v62, %v21712_v55  ;;  %v9684_v54 = vpop.f32.mrb[102].mxu0 }
 0x916   : > { %v16842_v56 = vpop.eup %16841  ;;  %16861 = vrcp.f32 %v10242_v36  ;;  %v10250_v8 = vadd.f32 1.0, %v16840_v44  ;;  %11789 = vmatmul.mubr.bf16.gmra.mrb[112].mxu1 %v10681_v35  ;;  %v21745_v49 = vadd.f32 %v9684_v54, %v21694_v47  ;;  %v9686_v40 = vpop.f32.mrb[103].mxu0  ;;  %v13641_v15 = vmul.f32 -1.442695, %v21738_v21 }
 0x917   : > { %v16844_v3 = vpop.eup %16843  ;;  %16863 = vrcp.f32 %v10249_v7  ;;  %v10257_v9 = vadd.f32 1.0, %v16842_v56  ;;  %11846 = vmatpush1.bf16.msra.mxu1 %v15033_v41  ;;  %v21749_v59 = vadd.f32 %v9686_v40, %v21712_v55  ;;  %v13642_v35 = vmul.f32 -1.442695, %v21741_v13 }
 0x918   : > { %v16846_v48 = vpop.eup %16845  ;;  %v10609_v34 = vmul.f32 %v16844_v3, %v21660_v10  ;;  %16865 = vrcp.f32 %v10250_v8  ;;  %11847 = vmatprep.subr.bf16.mxu1 %v15038_v51  ;;  %v10602_v36 = vmul.f32 %v16834_v6, %v21645_v37  ;;  %v13649_v62 = vmul.f32 -1.442695, %v21745_v49  ;;  %v15039_v51 = vld [vmem:[#allocation10 + $0x3a0] ss:$8 sps:$4 sm:$0xff]  }
 0x919   : > { %v16848_v12 = vpop.eup %16847  ;;  %v10610_v41 = vmul.f32 %v16846_v48, %v21663_v27  ;;  %16867 = vrcp.f32 %v10257_v9  ;;  %v13650_v7 = vmul.f32 -1.442695, %v21749_v59  ;;  %v15044_v27 = vld [vmem:[#allocation10 + $0x3b4] ss:$8 sps:$4 sm:$0xff]  }
 0x91a   : > { %v16850_v44 = vpop.eup %16849  ;;  %16869 = vpow2.f32 %v13634_v39  ;;  %v10689_v2 = vpack.c.bf16 %v10609_v34, %v10601_v25 }
 0x91b   : > { %v16852_v5 = vpop.eup %16851  ;;  %16871 = vpow2.f32 %v13641_v15  ;;  %11848 = vmatpush1.bf16.msra.mxu1 %v15036_v53  ;;  %v10690_v10 = vpack.c.bf16 %v10610_v41, %v10602_v36  ;;  %v9690_v54 = vpop.f32.mrb[104].mxu0  ;;  %v10617_v53 = vmul.f32 %v16848_v12, %v21670_v23  ;;  %v15042_v36 = vld [vmem:[#allocation10 + $0x3b0] ss:$8 sps:$4 sm:$0xff]  }
 0x91c   : > { %v16854_v56 = vpop.eup %16853  ;;  %v21759_v8 = vmul.f32 %v16852_v5, %v21678_v61  ;;  %16873 = vpow2.f32 %v13642_v35  ;;  %11849 = vmatprep.subr.bf16.mxu1 %v15041_v28  ;;  %v21762_v37 = vadd.f32 %v9690_v54, %v21694_v47  ;;  %v9692_v6 = vpop.f32.mrb[105].mxu0 }
 0x91d   : > { %v16856_v39 = vpop.eup %16855  ;;  %v10258_v40 = vadd.f32 1.0, %v16854_v56  ;;  %16875 = vpow2.f32 %v13649_v62  ;;  %11798 = vmatprep.mubr.bf16.mxu1 %v10690_v10  ;;  %v21765_v3 = vadd.f32 %v9692_v6, %v21712_v55  ;;  %v9694_v9 = vpop.f32.mrb[106].mxu0  ;;  %v10618_v10 = vmul.f32 %v16850_v44, %v21674_v22 }
 0x91e   : > { %v16858_v15 = vpop.eup %16857  ;;  %v10139_v61 = vadd.f32 1.0, %v16856_v39  ;;  %16877 = vpow2.f32 %v13650_v7  ;;  %11799 = vmatmul.mubr.bf16.gmra.mrb[116].mxu1 %v10689_v2  ;;  %v21769_v48 = vadd.f32 %v9694_v9, %v21694_v47  ;;  %v9696_v25 = vpop.f32.mrb[107].mxu0  ;;  %v13657_v28 = vmul.f32 -1.442695, %v21762_v37  ;;  %v15047_v7 = vld [vmem:[#allocation10 + $0x3c4] ss:$8 sps:$4 sm:$0xff]  }
 0x91f   : > { %v16860_v34 = vpop.eup %16859  ;;  %16879 = vrcp.f32 %v10258_v40  ;;  %v10140_v35 = vadd.f32 1.0, %v16858_v15  ;;  %11850 = vmatpush1.bf16.msra.mxu1 %v15039_v51  ;;  %v21773_v41 = vadd.f32 %v9696_v25, %v21712_v55  ;;  %v13658_v12 = vmul.f32 -1.442695, %v21765_v3  ;;  %v15045_v40 = vld [vmem:[#allocation10 + $0x3c0] ss:$8 sps:$4 sm:$0xff]  }
 0x920   : > { %v16862_v62 = vpop.eup %16861  ;;  %16881 = vrcp.f32 %v10139_v61  ;;  %v10147_v23 = vadd.f32 1.0, %v16860_v34  ;;  %11851 = vmatprep.subr.bf16.mxu1 %v15044_v27  ;;  %v10697_v2 = vpack.c.bf16 %v21759_v8, %v10617_v53  ;;  %v13665_v54 = vmul.f32 -1.442695, %v21769_v48 }
 0x921   : > { %v16864_v5 = vpop.eup %16863  ;;  %v10626_v51 = vmul.f32 %v16862_v62, %v21687_v52  ;;  %16883 = vrcp.f32 %v10140_v35  ;;  %v13666_v6 = vmul.f32 -1.442695, %v21773_v41  ;;  %v15050_v52 = vld [vmem:[#allocation10 + $0x3d4] ss:$8 sps:$4 sm:$0xff]  }
 0x922   : > { %v16866_v56 = vpop.eup %16865  ;;  %16885 = vrcp.f32 %v10147_v23 }
 0x923   : > { %v16868_v39 = vpop.eup %16867  ;;  %16887 = vpow2.f32 %v13657_v28  ;;  %11852 = vmatpush1.bf16.msra.mxu1 %v15042_v36  ;;  %v10698_v27 = vpack.c.bf16 %v10626_v51, %v10618_v10  ;;  %v9700_v9 = vpop.f32.mrb[108].mxu0  ;;  %v10633_v28 = vmul.f32 %v16864_v5, %v21690_v17  ;;  %v15053_v5 = vld [vmem:[#allocation10 + $0x3e4] ss:$8 sps:$4 sm:$0xff]  }
 0x924   : > { %v16870_v15 = vpop.eup %16869  ;;  %v21782_v8 = vmul.f32 %v16868_v39, %v21702_v29  ;;  %16889 = vpow2.f32 %v13658_v12  ;;  %11853 = vmatprep.subr.bf16.mxu1 %v15047_v7  ;;  %v21785_v22 = vadd.f32 %v9700_v9, %v21694_v47  ;;  %v9702_v44 = vpop.f32.mrb[109].mxu0  ;;  %v15048_v7 = vld [vmem:[#allocation10 + $0x3d0] ss:$8 sps:$4 sm:$0xff]  }
 0x925   : > { %v16872_v53 = vpop.eup %16871  ;;  %v10148_v61 = vadd.f32 1.0, %v16870_v15  ;;  %16891 = vpow2.f32 %v13665_v54  ;;  %11808 = vmatprep.mubr.bf16.mxu1 %v10698_v27  ;;  %v21788_v25 = vadd.f32 %v9702_v44, %v21712_v55  ;;  %v9704_v34 = vpop.f32.mrb[110].mxu0 }
 0x926   : > { %v16874_v35 = vpop.eup %16873  ;;  %v10155_v29 = vadd.f32 1.0, %v16872_v53  ;;  %16893 = vpow2.f32 %v13666_v6  ;;  %11809 = vmatmul.mubr.bf16.gmra.mrb[120].mxu1 %v10697_v2  ;;  %v21792_v36 = vadd.f32 %v9704_v34, %v21694_v47  ;;  %v9706_v62 = vpop.f32.mrb[111].mxu0  ;;  %v13673_v17 = vmul.f32 -1.442695, %v21785_v22 }
 0x927   : > { %v16876_v23 = vpop.eup %16875  ;;  %16895 = vrcp.f32 %v10148_v61  ;;  %v10156_v12 = vadd.f32 1.0, %v16874_v35  ;;  %11854 = vmatpush1.bf16.msra.mxu1 %v15045_v40  ;;  %v21795_v10 = vadd.f32 %v9706_v62, %v21712_v55  ;;  %v10705_v2 = vpack.c.bf16 %v21782_v8, %v10633_v28  ;;  %v15051_v35 = vld [vmem:[#allocation10 + $0x3e0] ss:$8 sps:$4 sm:$0xff]   ;;  %v15056_v62 = vld [vmem:[#allocation10 + $0x3f4] ss:$8 sps:$4 sm:$0xff]  }
 0x928   : > { %v16878_v51 = vpop.eup %16877  ;;  %16897 = vrcp.f32 %v10155_v29  ;;  %v10163_v54 = vadd.f32 1.0, %v16876_v23  ;;  %11855 = vmatprep.subr.bf16.mxu1 %v15050_v52  ;;  %v13674_v27 = vmul.f32 -1.442695, %v21788_v25  ;;  %v10634_v40 = vmul.f32 %v16866_v56, %v21698_v1 }
 0x929   : > { %v16880_v6 = vpop.eup %16879  ;;  %16899 = vrcp.f32 %v10156_v12  ;;  %v10164_v39 = vadd.f32 1.0, %v16878_v51  ;;  %v13681_v44 = vmul.f32 -1.442695, %v21792_v36  ;;  %v13682_v52 = vmul.f32 -1.442695, %v21795_v10 }
 0x92a   : > { %v16882_v9 = vpop.eup %16881  ;;  %v10642_v15 = vmul.f32 %v16880_v6, %v21715_v32  ;;  %16901 = vrcp.f32 %v10163_v54 }
 0x92b   : > { %v16884_v53 = vpop.eup %16883  ;;  %16903 = vrcp.f32 %v10164_v39  ;;  %11856 = vmatpush1.bf16.msra.mxu1 %v15048_v7  ;;  %v9710_v61 = vpop.f32.mrb[112].mxu0  ;;  %v10523_v32 = vmul.f32 %v16882_v9, %v21718_v14  ;;  %v15054_v9 = vld [vmem:[#allocation10 + $0x3f0] ss:$8 sps:$4 sm:$0xff]  }
 0x92c   : > { %v16886_v8 = vpop.eup %16885  ;;  %16905 = vpow2.f32 %v13673_v17  ;;  %v10706_v34 = vpack.c.bf16 %v10642_v15, %v10634_v40  ;;  %11857 = vmatprep.subr.bf16.mxu1 %v15053_v5  ;;  %v21805_v28 = vadd.f32 %v9710_v61, %v21694_v47  ;;  %v9712_v1 = vpop.f32.mrb[113].mxu0 }
 0x92d   : > { %v16888_v56 = vpop.eup %16887  ;;  %v10531_v29 = vmul.f32 %v16886_v8, %v21725_v58  ;;  %16907 = vpow2.f32 %v13674_v27  ;;  %v21810_v23 = vadd.f32 %v9712_v1, %v21712_v55  ;;  %v9714_v12 = vpop.f32.mrb[114].mxu0 }
 0x92e   : > { %v16890_v7 = vpop.eup %16889  ;;  %v10171_v51 = vadd.f32 1.0, %v16888_v56  ;;  %16909 = vpow2.f32 %v13681_v44  ;;  %11818 = vmatprep.mubr.bf16.mxu1 %v10706_v34  ;;  %v21813_v54 = vadd.f32 %v9714_v12, %v21694_v47  ;;  %v9716_v17 = vpop.f32.mrb[115].mxu0  ;;  %v13689_v27 = vmul.f32 -1.442695, %v21805_v28 }
 0x92f   : > { %v16892_v5 = vpop.eup %16891  ;;  %v10651_v6 = vpack.c.bf16 %v10531_v29, %v10523_v32  ;;  %v10172_v39 = vadd.f32 1.0, %v16890_v7  ;;  %16911 = vpow2.f32 %v13682_v52  ;;  %11819 = vmatmul.mubr.bf16.gmra.mrb[124].mxu1 %v10705_v2  ;;  %v21817_v40 = vadd.f32 %v9716_v17, %v21712_v55 }
 0x930   : > { %v16894_v14 = vpop.eup %16893  ;;  %16913 = vrcp.f32 %v10171_v51  ;;  %v10179_v58 = vadd.f32 1.0, %v16892_v5  ;;  %11858 = vmatpush1.bf16.msra.mxu1 %v15051_v35  ;;  %v13690_v61 = vmul.f32 -1.442695, %v21810_v23  ;;  %v10524_v52 = vmul.f32 %v16884_v53, %v21721_v4 }
 0x931   : > { %v16896_v15 = vpop.eup %16895  ;;  %16915 = vrcp.f32 %v10172_v39  ;;  %v10180_v44 = vadd.f32 1.0, %v16894_v14  ;;  %11859 = vmatprep.subr.bf16.mxu1 %v15056_v62  ;;  %v13697_v34 = vmul.f32 -1.442695, %v21813_v54  ;;  %v13698_v1 = vmul.f32 -1.442695, %v21817_v40 }
 0x932   : > { %v16898_v8 = vpop.eup %16897  ;;  %v10532_v2 = vmul.f32 %v16896_v15, %v21735_v26  ;;  %16917 = vrcp.f32 %v10179_v58 }
 0x933   : > { %v16900_v35 = vpop.eup %16899  ;;  %16919 = vrcp.f32 %v10180_v44  ;;  %v9720_v56 = vpop.f32.mrb[116].mxu0 }
 0x934   : > { %v16902_v32 = vpop.eup %16901  ;;  %16921 = vpow2.f32 %v13689_v27  ;;  %11860 = vmatpush1.bf16.msra.mxu1 %v15054_v9  ;;  %v10652_v29 = vpack.c.bf16 %v10532_v2, %v10524_v52  ;;  %v21825_v62 = vadd.f32 %v9720_v56, %v21694_v47  ;;  %v9722_v12 = vpop.f32.mrb[117].mxu0  ;;  %v10540_v4 = vmul.f32 %v16900_v35, %v21741_v13 }
 0x935   : > { %v16904_v7 = vpop.eup %16903  ;;  %v10547_v26 = vmul.f32 %v16902_v32, %v21745_v49  ;;  %16923 = vpow2.f32 %v13690_v61  ;;  %v21830_v53 = vadd.f32 %v9722_v12, %v21712_v55  ;;  %v9724_v51 = vpop.f32.mrb[118].mxu0  ;;  %v10539_v13 = vmul.f32 %v16898_v8, %v21738_v21 }
 0x936   : > { %v16906_v17 = vpop.eup %16905  ;;  %v10548_v5 = vmul.f32 %v16904_v7, %v21749_v59  ;;  %16925 = vpow2.f32 %v13697_v34  ;;  %11861 = vmatprep.mubr.bf16.mxu1 %v10652_v29  ;;  %v13705_v39 = vmul.f32 -1.442695, %v21825_v62  ;;  %v21835_v14 = vadd.f32 %v9724_v51, %v21694_v47  ;;  %v9726_v58 = vpop.f32.mrb[119].mxu0 }
 0x937   : > { %v16908_v27 = vpop.eup %16907  ;;  %v10187_v49 = vadd.f32 1.0, %v16906_v17  ;;  %16927 = vpow2.f32 %v13698_v1  ;;  %11862 = vmatmul.mubr.bf16.vlgmr.msra.gmra.mrb[96].mxu1 %v10651_v6  ;;  %v21839_v9 = vadd.f32 %v9726_v58, %v21712_v55  ;;  %v13706_v2 = vmul.f32 -1.442695, %v21830_v53 }
 0x938   : > { %v16910_v15 = vpop.eup %16909  ;;  %v10188_v44 = vadd.f32 1.0, %v16908_v27  ;;  %16929 = vpow2.f32 %v13705_v39  ;;  %v10660_v59 = vpack.c.bf16 %v10548_v5, %v10540_v4  ;;  %v10659_v34 = vpack.c.bf16 %v10547_v26, %v10539_v13 }
 0x939   : > { %v16912_v61 = vpop.eup %16911  ;;  %16931 = vrcp.f32 %v10187_v49  ;;  %v10195_v52 = vadd.f32 1.0, %v16910_v15  ;;  %v13713_v21 = vmul.f32 -1.442695, %v21835_v14  ;;  %v13714_v8 = vmul.f32 -1.442695, %v21839_v9 }
 0x93a   : > { %v16914_v35 = vpop.eup %16913  ;;  %16933 = vrcp.f32 %v10188_v44  ;;  %v10196_v56 = vadd.f32 1.0, %v16912_v61  ;;  %11871 = vmatprep.mubr.bf16.mxu1 %v10660_v59 }
 0x93b   : > { %v16916_v6 = vpop.eup %16915  ;;  %16935 = vrcp.f32 %v10195_v52  ;;  %v9730_v1 = vpop.f32.mrb[120].mxu0  ;;  %v10555_v49 = vmul.f32 %v16914_v35, %v21762_v37 }
 0x93c   : > { %v16918_v32 = vpop.eup %16917  ;;  %16937 = vrcp.f32 %v10196_v56  ;;  %v21845_v29 = vadd.f32 %v9730_v1, %v21694_v47  ;;  %v9732_v12 = vpop.f32.mrb[121].mxu0  ;;  %v10556_v4 = vmul.f32 %v16916_v6, %v21765_v3 }
 0x93d   : > { %v16920_v7 = vpop.eup %16919  ;;  %v10563_v26 = vmul.f32 %v16918_v32, %v21769_v48  ;;  %16939 = vpow2.f32 %v13706_v2  ;;  %v9734_v51 = vpop.f32.mrb[122].mxu0  ;;  %v21852_v58 = vadd.f32 %v9732_v12, %v21712_v55 }
 0x93e   : > { %v16922_v17 = vpop.eup %16921  ;;  %v10564_v5 = vmul.f32 %v16920_v7, %v21773_v41  ;;  %16941 = vpow2.f32 %v13713_v21  ;;  %v13721_v39 = vmul.f32 -1.442695, %v21845_v29  ;;  %v9736_v27 = vpop.f32.mrb[123].mxu0  ;;  %v21856_v3 = vadd.f32 %v9734_v51, %v21694_v47 }
 0x93f   : > { %v16924_v13 = vpop.eup %16923  ;;  %v10203_v15 = vadd.f32 1.0, %v16922_v17  ;;  %16943 = vpow2.f32 %v13714_v8  ;;  %11872 = vmatmul.mubr.bf16.gmra.mrb[100].mxu1 %v10659_v34  ;;  %v21859_v41 = vadd.f32 %v9736_v27, %v21712_v55  ;;  %v10667_v2 = vpack.c.bf16 %v10563_v26, %v10555_v49 }
 0x940   : > { %v16926_v48 = vpop.eup %16925  ;;  %v10204_v44 = vadd.f32 1.0, %v16924_v13  ;;  %16945 = vpow2.f32 %v13721_v39  ;;  %v10668_v59 = vpack.c.bf16 %v10564_v5, %v10556_v4  ;;  %v13722_v35 = vmul.f32 -1.442695, %v21852_v58 }
 0x941   : > { %v16928_v61 = vpop.eup %16927  ;;  %16947 = vrcp.f32 %v10203_v15  ;;  %v10211_v52 = vadd.f32 1.0, %v16926_v48  ;;  %v13729_v6 = vmul.f32 -1.442695, %v21856_v3  ;;  %v13730_v32 = vmul.f32 -1.442695, %v21859_v41 }
 0x942   : > { %v16930_v56 = vpop.eup %16929  ;;  %16949 = vrcp.f32 %v10204_v44  ;;  %v10212_v37 = vadd.f32 1.0, %v16928_v61  ;;  %11881 = vmatprep.mubr.bf16.mxu1 %v10668_v59 }
 0x943   : > { %v16932_v34 = vpop.eup %16931  ;;  %16951 = vrcp.f32 %v10211_v52  ;;  %v10219_v21 = vadd.f32 1.0, %v16930_v56  ;;  %v9740_v8 = vpop.f32.mrb[124].mxu0 }
 0x944   : > { %v16934_v1 = vpop.eup %16933  ;;  %16953 = vrcp.f32 %v10212_v37  ;;  %v21865_v12 = vadd.f32 %v9740_v8, %v21694_v47  ;;  %v9742_v7 = vpop.f32.mrb[125].mxu0  ;;  %v10571_v26 = vmul.f32 %v16932_v34, %v21785_v22 }
 0x945   : > { %v16936_v4 = vpop.eup %16935  ;;  %16955 = vrcp.f32 %v10219_v21  ;;  %v9744_v51 = vpop.f32.mrb[126].mxu0  ;;  %v21871_v27 = vadd.f32 %v9742_v7, %v21712_v55  ;;  %v10572_v15 = vmul.f32 %v16934_v1, %v21788_v25 }
 0x946   : > { %v16938_v17 = vpop.eup %16937  ;;  %v10579_v5 = vmul.f32 %v16936_v4, %v21792_v36  ;;  %16957 = vpow2.f32 %v13722_v35  ;;  %v13737_v39 = vmul.f32 -1.442695, %v21865_v12  ;;  %v9746_v13 = vpop.f32.mrb[127].mxu0  ;;  %v21876_v22 = vadd.f32 %v9744_v51, %v21694_v47 }
 0x947   : > { %v16940_v49 = vpop.eup %16939  ;;  %v10580_v48 = vmul.f32 %v16938_v17, %v21795_v10  ;;  %16959 = vpow2.f32 %v13729_v6  ;;  %11882 = vmatmul.mubr.bf16.gmra.mrb[104].mxu1 %v10667_v2  ;;  %v21879_v36 = vadd.f32 %v9746_v13, %v21712_v55  ;;  %v13738_v10 = vmul.f32 -1.442695, %v21871_v27 }
 0x948   : > { %v16942_v44 = vpop.eup %16941  ;;  %v10220_v59 = vadd.f32 1.0, %v16940_v49  ;;  %16961 = vpow2.f32 %v13730_v32  ;;  %v10675_v61 = vpack.c.bf16 %v10579_v5, %v10571_v26  ;;  %v13745_v47 = vmul.f32 -1.442695, %v21876_v22 }
 0x949   : > { %v16944_v52 = vpop.eup %16943  ;;  %v10227_v56 = vadd.f32 1.0, %v16942_v44  ;;  %16963 = vpow2.f32 %v13737_v39  ;;  %v10676_v37 = vpack.c.bf16 %v10580_v48, %v10572_v15  ;;  %v13746_v55 = vmul.f32 -1.442695, %v21879_v36 }
 0x94a   : > { %v16946_v35 = vpop.eup %16945  ;;  %16965 = vrcp.f32 %v10220_v59  ;;  %v10228_v25 = vadd.f32 1.0, %v16944_v52 }
 0x94b   : > { %v16948_v2 = vpop.eup %16947  ;;  %16967 = vrcp.f32 %v10227_v56  ;;  %11891 = vmatprep.mubr.bf16.mxu1 %v10676_v37  ;;  %v10235_v32 = vadd.f32 1.0, %v16946_v35 }
 0x94c   : > { %v16950_v34 = vpop.eup %16949  ;;  %16969 = vrcp.f32 %v10228_v25  ;;  %v10587_v8 = vmul.f32 %v16948_v2, %v21805_v28 }
 0x94d   : > { %v16952_v21 = vpop.eup %16951  ;;  %16971 = vpow2.f32 %v13738_v10  ;;  %v10588_v4 = vmul.f32 %v16950_v34, %v21810_v23 }
 0x94e   : > { %v16954_v6 = vpop.eup %16953  ;;  %v10595_v1 = vmul.f32 %v16952_v21, %v21813_v54  ;;  %16973 = vpow2.f32 %v13745_v47 }
 0x94f   : > { %v16956_v7 = vpop.eup %16955  ;;  %v10596_v26 = vmul.f32 %v16954_v6, %v21817_v40  ;;  %11892 = vmatmul.mubr.bf16.gmra.mrb[108].mxu1 %v10675_v61  ;;  %16975 = vpow2.f32 %v13746_v55 }
 0x950   : > { %v16958_v51 = vpop.eup %16957  ;;  %v10683_v17 = vpack.c.bf16 %v10595_v1, %v10587_v8  ;;  %16977 = vrcp.f32 %v10235_v32  ;;  %v10603_v44 = vmul.f32 %v16956_v7, %v21825_v62 }
 0x951   : > { %v16960_v5 = vpop.eup %16959  ;;  %v10236_v39 = vadd.f32 1.0, %v16958_v51  ;;  %v10684_v13 = vpack.c.bf16 %v10596_v26, %v10588_v4 }
 0x952   : > { %v16962_v49 = vpop.eup %16961  ;;  %v10243_v28 = vadd.f32 1.0, %v16960_v5 }
 0x953   : > { %v16964_v15 = vpop.eup %16963  ;;  %16979 = vrcp.f32 %v10236_v39  ;;  %v10244_v54 = vadd.f32 1.0, %v16962_v49  ;;  %11901 = vmatprep.mubr.bf16.mxu1 %v10684_v13  ;;  %v15066_v49 = vld [vmem:[%s22179_s8 + $0x20] sm:$0xff]  }
 0x954   : > { %v16966_v48 = vpop.eup %16965  ;;  %16981 = vrcp.f32 %v10243_v28  ;;  %v10251_v61 = vadd.f32 1.0, %v16964_v15  ;;  %v15071_v28 = vld [vmem:[%s22179_s8 + $0x78] sm:$0xff]  }
 0x955   : > { %v16968_v23 = vpop.eup %16967  ;;  %16983 = vrcp.f32 %v10244_v54  ;;  %v10604_v52 = vmul.f32 %v16966_v48, %v21830_v53  ;;  %v15072_v15 = vld [vmem:[%s22179_s8 + $0x38] sm:$0xff]   ;;  %v13747_v54 = vld [vmem:[%s22180_s9 + $0x3] ss:$4 sm:$0x3] }
 0x956   : > { %v16970_v40 = vpop.eup %16969  ;;  %v10611_v59 = vmul.f32 %v16968_v23, %v21835_v14  ;;  %16985 = vrcp.f32 %v10251_v61  ;;  %v21928_v48 = vrot.slane %v13747_v54, %v22545_v45  ;;  %v21931_v23 = vrot.slane %v13747_v54, %v22546_v19 }
 0x957   : > { %v10612_v56 = vmul.f32 %v16970_v40, %v21839_v9  ;;  %11902 = vmatmul.mubr.bf16.gmra.mrb[112].mxu1 %v10683_v17  ;;  %v16972_v37 = vpop.eup %16971 }
 0x958   : > { %v10691_v35 = vpack.c.bf16 %v10611_v59, %v10603_v44  ;;  %v16974_v25 = vpop.eup %16973  ;;  %v10252_v10 = vadd.f32 1.0, %v16972_v37 }
 0x959   : > { %v10692_v2 = vpack.c.bf16 %v10612_v56, %v10604_v52  ;;  %v16976_v47 = vpop.eup %16975  ;;  %v10259_v34 = vadd.f32 1.0, %v16974_v25 }
 0x95a   : > { %16987 = vrcp.f32 %v10252_v10  ;;  %v10260_v55 = vadd.f32 1.0, %v16976_v47  ;;  %v16978_v62 = vpop.eup %16977 }
 0x95b   : > { %11911 = vmatprep.mubr.bf16.mxu1 %v10692_v2  ;;  %16989 = vrcp.f32 %v10259_v34  ;;  %v10619_v9 = vmul.f32 %v16978_v62, %v21845_v29 }
 0x95c   : > { %16991 = vrcp.f32 %v10260_v55 }
 0x95d   : > { %v16980_v14 = vpop.eup %16979 }
 0x95e   : > { %v16982_v21 = vpop.eup %16981  ;;  %v10620_v8 = vmul.f32 %v16980_v14, %v21852_v58 }
 0x95f   : > { %v16984_v53 = vpop.eup %16983  ;;  %v10627_v6 = vmul.f32 %v16982_v21, %v21856_v3  ;;  %11912 = vmatmul.mubr.bf16.gmra.mrb[116].mxu1 %v10691_v35 }
 0x960   : > { %v10628_v1 = vmul.f32 %v16984_v53, %v21859_v41  ;;  %v16986_v4 = vpop.eup %16985  ;;  %v15065_v41 = vld [vmem:[%s22179_s8 + $0x60] sm:$0xff]  }
 0x961   : > { %v10699_v32 = vpack.c.bf16 %v10627_v6, %v10619_v9  ;;  %v10635_v5 = vmul.f32 %v16986_v4, %v21865_v12  ;;  %13935 = vmatprep.subr.bf16.mxu0 %v15065_v41  ;;  %v15067_v12 = vld [vmem:[%s22179_s8 + $0x68] sm:$0xff]  }
 0x962   : > { %v10700_v7 = vpack.c.bf16 %v10628_v1, %v10620_v8  ;;  %13936 = vmatpush3.bf16.msra.mxu0 %v15066_v49 }
 0x963   : > { %13937 = vmatprep.subr.bf16.mxu0 %v15067_v12 }
 0x964   : > { %11921 = vmatprep.mubr.bf16.mxu1 %v10700_v7  ;;  %v16988_v26 = vpop.eup %16987 }
 0x965   : > { %v16990_v51 = vpop.eup %16989  ;;  %v10636_v29 = vmul.f32 %v16988_v26, %v21871_v27  ;;  %v15068_v27 = vld [vmem:[%s22179_s8 + $0x28] sm:$0xff]  }
 0x966   : > { %v16992_v17 = vpop.eup %16991  ;;  %v10643_v39 = vmul.f32 %v16990_v51, %v21876_v22  ;;  %13938 = vmatpush3.bf16.msra.mxu0 %v15068_v27  ;;  %v15069_v22 = vld [vmem:[%s22179_s8 + $0x70] sm:$0xff]  }
 0x967   : > { %11922 = vmatmul.mubr.bf16.gmra.mrb[120].mxu1 %v10699_v32  ;;  %v10644_v3 = vmul.f32 %v16992_v17, %v21879_v36  ;;  %v15070_v36 = vld [vmem:[%s22179_s8 + $0x30] sm:$0xff]   ;;  %13939 = vmatprep.subr.bf16.mxu0 %v15069_v22 }
 0x968   : > { %v10707_v13 = vpack.c.bf16 %v10643_v39, %v10635_v5 }
 0x969   : > { %v10708_v58 = vpack.c.bf16 %v10644_v3, %v10636_v29 }
 0x96a   : > { %13940 = vmatpush3.bf16.msra.mxu0 %v15070_v36 }
 0x96b   : > { %11931 = vmatprep.mubr.bf16.mxu1 %v10708_v58  ;;  %13941 = vmatprep.subr.bf16.mxu0 %v15071_v28 }
 0x96e   : > { %13942 = vmatpush3.bf16.msra.mxu0 %v15072_v15 }
 0x96f   : > { %11932 = vmatmul.mubr.bf16.gmra.mrb[124].mxu1 %v10707_v13 }
 0xa0a   : > { %v11863_v40 = vpop.f32.mrb[96].mxu1 }
 0xa0b   : > { %v21934_v44 = vadd.f32 %v11863_v40, %v21928_v48  ;;  %v11865_v59 = vpop.f32.mrb[97].mxu1 }
 0xa0c   : > { %v21937_v61 = vadd.f32 %v11865_v59, %v21931_v23  ;;  %v11867_v52 = vpop.f32.mrb[98].mxu1 }
 0xa0d   : > { %v13876_v56 = vmul.f32 -1.442695, %v21934_v44  ;;  %v21941_v37 = vadd.f32 %v11867_v52, %v21928_v48  ;;  %v11869_v35 = vpop.f32.mrb[99].mxu1 }
 0xa0e   : > { %v13877_v45 = vmul.f32 -1.442695, %v21937_v61  ;;  %v21945_v19 = vadd.f32 %v11869_v35, %v21931_v23 }
 0xa0f   : > { %16993 = vpow2.f32 %v13876_v56  ;;  %v13878_v25 = vmul.f32 -1.442695, %v21941_v37 }
 0xa10   : > { %16995 = vpow2.f32 %v13877_v45  ;;  %v13879_v10 = vmul.f32 -1.442695, %v21945_v19 }
 0xa11   : > { %16997 = vpow2.f32 %v13878_v25 }
 0xa12   : > { %16999 = vpow2.f32 %v13879_v10  ;;  %v11873_v2 = vpop.f32.mrb[100].mxu1 }
 0xa13   : > { %v21950_v47 = vadd.f32 %v11873_v2, %v21928_v48  ;;  %v11875_v34 = vpop.f32.mrb[101].mxu1 }
 0xa14   : > { %v21953_v55 = vadd.f32 %v11875_v34, %v21931_v23  ;;  %v11877_v62 = vpop.f32.mrb[102].mxu1 }
 0xa15   : > { %v13880_v14 = vmul.f32 -1.442695, %v21950_v47  ;;  %v21957_v21 = vadd.f32 %v11877_v62, %v21928_v48  ;;  %v11879_v53 = vpop.f32.mrb[103].mxu1 }
 0xa16   : > { %v13881_v9 = vmul.f32 -1.442695, %v21953_v55  ;;  %v21961_v6 = vadd.f32 %v11879_v53, %v21931_v23 }
 0xa17   : > { %17001 = vpow2.f32 %v13880_v14  ;;  %v13882_v8 = vmul.f32 -1.442695, %v21957_v21 }
 0xa18   : > { %17003 = vpow2.f32 %v13881_v9  ;;  %v13883_v1 = vmul.f32 -1.442695, %v21961_v6 }
 0xa19   : > { %v16994_v32 = vpop.eup %16993  ;;  %17005 = vpow2.f32 %v13882_v8 }
 0xa1a   : > { %v16996_v7 = vpop.eup %16995  ;;  %v12038_v4 = vadd.f32 1.0, %v16994_v32  ;;  %17007 = vpow2.f32 %v13883_v1  ;;  %v11883_v26 = vpop.f32.mrb[104].mxu1 }
 0xa1b   : > { %v16998_v51 = vpop.eup %16997  ;;  %v12039_v17 = vadd.f32 1.0, %v16996_v7  ;;  %v21966_v5 = vadd.f32 %v11883_v26, %v21928_v48  ;;  %v11885_v39 = vpop.f32.mrb[105].mxu1 }
 0xa1c   : > { %v17000_v29 = vpop.eup %16999  ;;  %17009 = vrcp.f32 %v12038_v4  ;;  %v12040_v3 = vadd.f32 1.0, %v16998_v51  ;;  %v21969_v13 = vadd.f32 %v11885_v39, %v21931_v23  ;;  %v11887_v58 = vpop.f32.mrb[106].mxu1 }
 0xa1d   : > { %17011 = vrcp.f32 %v12039_v17  ;;  %v12041_v41 = vadd.f32 1.0, %v17000_v29  ;;  %v13884_v49 = vmul.f32 -1.442695, %v21966_v5  ;;  %v21973_v12 = vadd.f32 %v11887_v58, %v21928_v48  ;;  %v11889_v27 = vpop.f32.mrb[107].mxu1 }
 0xa1e   : > { %17013 = vrcp.f32 %v12040_v3  ;;  %v13885_v22 = vmul.f32 -1.442695, %v21969_v13  ;;  %v21977_v36 = vadd.f32 %v11889_v27, %v21931_v23 }
 0xa1f   : > { %17015 = vrcp.f32 %v12041_v41  ;;  %v13886_v28 = vmul.f32 -1.442695, %v21973_v12 }
 0xa20   : > { %17017 = vpow2.f32 %v13884_v49  ;;  %v13887_v15 = vmul.f32 -1.442695, %v21977_v36 }
 0xa21   : > { %v17002_v54 = vpop.eup %17001  ;;  %17019 = vpow2.f32 %v13885_v22 }
 0xa22   : > { %v17004_v40 = vpop.eup %17003  ;;  %v12042_v59 = vadd.f32 1.0, %v17002_v54  ;;  %17021 = vpow2.f32 %v13886_v28  ;;  %v11893_v52 = vpop.f32.mrb[108].mxu1 }
 0xa23   : > { %v17006_v56 = vpop.eup %17005  ;;  %v12043_v35 = vadd.f32 1.0, %v17004_v40  ;;  %17023 = vpow2.f32 %v13887_v15  ;;  %v21982_v45 = vadd.f32 %v11893_v52, %v21928_v48  ;;  %v11895_v25 = vpop.f32.mrb[109].mxu1 }
 0xa24   : > { %v17008_v10 = vpop.eup %17007  ;;  %17025 = vrcp.f32 %v12042_v59  ;;  %v12044_v2 = vadd.f32 1.0, %v17006_v56  ;;  %v21985_v34 = vadd.f32 %v11895_v25, %v21931_v23  ;;  %v11897_v62 = vpop.f32.mrb[110].mxu1 }
 0xa25   : > { %17027 = vrcp.f32 %v12043_v35  ;;  %v12045_v14 = vadd.f32 1.0, %v17008_v10  ;;  %v13888_v53 = vmul.f32 -1.442695, %v21982_v45  ;;  %v21989_v9 = vadd.f32 %v11897_v62, %v21928_v48  ;;  %v11899_v8 = vpop.f32.mrb[111].mxu1 }
 0xa26   : > { %v17010_v1 = vpop.eup %17009  ;;  %17029 = vrcp.f32 %v12044_v2  ;;  %v13889_v32 = vmul.f32 -1.442695, %v21985_v34  ;;  %v21993_v7 = vadd.f32 %v11899_v8, %v21931_v23 }
 0xa27   : > { %v17012_v4 = vpop.eup %17011  ;;  %v12134_v26 = vmul.f32 %v17010_v1, %v21934_v44  ;;  %17031 = vrcp.f32 %v12045_v14  ;;  %v13890_v51 = vmul.f32 -1.442695, %v21989_v9 }
 0xa28   : > { %v17014_v17 = vpop.eup %17013  ;;  %v12135_v39 = vmul.f32 %v17012_v4, %v21937_v61  ;;  %17033 = vpow2.f32 %v13888_v53  ;;  %v13891_v29 = vmul.f32 -1.442695, %v21993_v7 }
 0xa29   : > { %v17016_v3 = vpop.eup %17015  ;;  %v12136_v58 = vmul.f32 %v17014_v17, %v21941_v37  ;;  %17035 = vpow2.f32 %v13889_v32  ;;  %v12166_v49 = vadd.f32 %v12134_v26, %v20836_v18 }
 0xa2a   : > { %v17018_v41 = vpop.eup %17017  ;;  %v12137_v27 = vmul.f32 %v17016_v3, %v21945_v19  ;;  %17037 = vpow2.f32 %v13890_v51  ;;  %v11903_v44 = vpop.f32.mrb[112].mxu1  ;;  %v12167_v37 = vadd.f32 %v12135_v39, %v20827_v46 }
 0xa2b   : > { %v17020_v22 = vpop.eup %17019  ;;  %v12168_v28 = vadd.f32 %v12136_v58, %v20821_v30  ;;  %v12046_v15 = vadd.f32 1.0, %v17018_v41  ;;  %17039 = vpow2.f32 %v13891_v29  ;;  %v22004_v61 = vadd.f32 %v11903_v44, %v21928_v48  ;;  %v11905_v54 = vpop.f32.mrb[113].mxu1 }
 0xa2c   : > { %v17022_v40 = vpop.eup %17021  ;;  %v12169_v59 = vadd.f32 %v12137_v27, %v20830_v43  ;;  %v12047_v52 = vadd.f32 1.0, %v17020_v22  ;;  %v22009_v18 = vadd.f32 %v11905_v54, %v21931_v23  ;;  %v11907_v19 = vpop.f32.mrb[114].mxu1 }
 0xa2d   : > { %v17024_v56 = vpop.eup %17023  ;;  %v12198_v35 = vpack.c.bf16 %v12168_v28, %v12166_v49  ;;  %17041 = vrcp.f32 %v12046_v15  ;;  %v12048_v30 = vadd.f32 1.0, %v17022_v40  ;;  %v13892_v25 = vmul.f32 -1.442695, %v22004_v61  ;;  %v11909_v10 = vpop.f32.mrb[115].mxu1 }
 0xa2e   : > { %v17026_v2 = vpop.eup %17025  ;;  %17043 = vrcp.f32 %v12047_v52  ;;  %v12049_v62 = vadd.f32 1.0, %v17024_v56  ;;  %v13893_v14 = vmul.f32 -1.442695, %v22009_v18  ;;  %v22014_v46 = vadd.f32 %v11907_v19, %v21928_v48 }
 0xa2f   : > { %v17028_v43 = vpop.eup %17027  ;;  %v12138_v53 = vmul.f32 %v17026_v2, %v21950_v47  ;;  %17045 = vrcp.f32 %v12048_v30  ;;  %v22018_v8 = vadd.f32 %v11909_v10, %v21931_v23  ;;  %v12199_v1 = vpack.c.bf16 %v12169_v59, %v12167_v37 }
 0xa30   : > { %v17030_v32 = vpop.eup %17029  ;;  %v12139_v4 = vmul.f32 %v17028_v43, %v21953_v55  ;;  %17047 = vrcp.f32 %v12049_v62  ;;  %v13894_v26 = vmul.f32 -1.442695, %v22014_v46 }
 0xa31   : > { %v17032_v51 = vpop.eup %17031  ;;  %v12140_v17 = vmul.f32 %v17030_v32, %v21957_v21  ;;  %17049 = vpow2.f32 %v13892_v25  ;;  %v13895_v39 = vmul.f32 -1.442695, %v22018_v8  ;;  %12381 = vmatprep.mubr.bf16.mxu0 %v12199_v1  ;;  %v12170_v47 = vadd.f32 %v12138_v53, %v20889_v20 }
 0xa32   : > { %v17034_v29 = vpop.eup %17033  ;;  %v12171_v3 = vadd.f32 %v12139_v4, %v20869_v60  ;;  %v12141_v58 = vmul.f32 %v17032_v51, %v21961_v6  ;;  %17051 = vpow2.f32 %v13893_v14  ;;  %12382 = vmatmul.mubr.bf16.vlgmr.msra.gmra.mrb[128].mxu0 %v12198_v35  ;;  %v11913_v55 = vpop.f32.mrb[116].mxu1 }
 0xa33   : > { %v17036_v41 = vpop.eup %17035  ;;  %v12172_v49 = vadd.f32 %v12140_v17, %v20877_v16  ;;  %v12050_v27 = vadd.f32 1.0, %v17034_v29  ;;  %17053 = vpow2.f32 %v13894_v26  ;;  %v22029_v21 = vadd.f32 %v11913_v55, %v21928_v48  ;;  %v11915_v44 = vpop.f32.mrb[117].mxu1 }
 0xa34   : > { %v17038_v22 = vpop.eup %17037  ;;  %v12173_v28 = vadd.f32 %v12141_v58, %v20883_v50  ;;  %v12051_v20 = vadd.f32 1.0, %v17036_v41  ;;  %17055 = vpow2.f32 %v13895_v39  ;;  %v22033_v60 = vadd.f32 %v11915_v44, %v21931_v23  ;;  %v11917_v6 = vpop.f32.mrb[118].mxu1 }
 0xa35   : > { %v17040_v15 = vpop.eup %17039  ;;  %v12200_v54 = vpack.c.bf16 %v12172_v49, %v12170_v47  ;;  %17057 = vrcp.f32 %v12050_v27  ;;  %v12052_v40 = vadd.f32 1.0, %v17038_v22  ;;  %v13896_v16 = vmul.f32 -1.442695, %v22029_v21  ;;  %v11919_v37 = vpop.f32.mrb[119].mxu1 }
 0xa36   : > { %17059 = vrcp.f32 %v12051_v20  ;;  %v12053_v59 = vadd.f32 1.0, %v17040_v15  ;;  %v13897_v52 = vmul.f32 -1.442695, %v22033_v60  ;;  %v22038_v19 = vadd.f32 %v11917_v6, %v21928_v48 }
 0xa37   : > { %v17042_v50 = vpop.eup %17041  ;;  %17061 = vrcp.f32 %v12052_v40  ;;  %v22041_v56 = vadd.f32 %v11919_v37, %v21931_v23  ;;  %v12201_v35 = vpack.c.bf16 %v12173_v28, %v12171_v3 }
 0xa38   : > { %v17044_v30 = vpop.eup %17043  ;;  %v12142_v25 = vmul.f32 %v17042_v50, %v21966_v5  ;;  %17063 = vrcp.f32 %v12053_v59  ;;  %v13898_v10 = vmul.f32 -1.442695, %v22038_v19 }
 0xa39   : > { %v17046_v2 = vpop.eup %17045  ;;  %v12143_v62 = vmul.f32 %v17044_v30, %v21969_v13  ;;  %17065 = vpow2.f32 %v13896_v16  ;;  %v13899_v14 = vmul.f32 -1.442695, %v22041_v56  ;;  %12389 = vmatprep.mubr.bf16.mxu0 %v12201_v35 }
 0xa3a   : > { %v17048_v43 = vpop.eup %17047  ;;  %v12144_v53 = vmul.f32 %v17046_v2, %v21973_v12  ;;  %17067 = vpow2.f32 %v13897_v52  ;;  %12390 = vmatmul.mubr.bf16.gmra.mrb[132].mxu0 %v12200_v54  ;;  %v11923_v1 = vpop.f32.mrb[120].mxu1  ;;  %v12174_v4 = vadd.f32 %v12142_v25, %v20940_v0 }
 0xa3b   : > { %v17050_v32 = vpop.eup %17049  ;;  %v12145_v5 = vmul.f32 %v17048_v43, %v21977_v36  ;;  %17069 = vpow2.f32 %v13898_v10  ;;  %v22051_v26 = vadd.f32 %v11923_v1, %v21928_v48  ;;  %v11925_v13 = vpop.f32.mrb[121].mxu1  ;;  %v12175_v3 = vadd.f32 %v12143_v62, %v20956_v11  ;;  %v22642_v62 = vld [vmem:[#allocation55_spill] sm:$0xff]  ;;  %v22643_v1 = vld [vmem:[#allocation89_spill] sm:$0xff] }
 0xa3c   : > { %v17052_v51 = vpop.eup %17051  ;;  %v12176_v17 = vadd.f32 %v12144_v53, %v20950_v57  ;;  %v12054_v39 = vadd.f32 1.0, %v17050_v32  ;;  %17071 = vpow2.f32 %v13899_v14  ;;  %v22055_v12 = vadd.f32 %v11925_v13, %v21931_v23  ;;  %v11927_v29 = vpop.f32.mrb[122].mxu1 }
 0xa3d   : > { %v17054_v47 = vpop.eup %17053  ;;  %v12177_v0 = vadd.f32 %v12145_v5, %v20959_v38  ;;  %v12055_v36 = vadd.f32 1.0, %v17052_v51  ;;  %v22060_v58 = vadd.f32 %v11927_v29, %v21928_v48  ;;  %v11929_v55 = vpop.f32.mrb[123].mxu1  ;;  %v13900_v27 = vmul.f32 -1.442695, %v22051_v26 }
 0xa3e   : > { %v17056_v41 = vpop.eup %17055  ;;  %v12202_v49 = vpack.c.bf16 %v12176_v17, %v12174_v4  ;;  %17073 = vrcp.f32 %v12054_v39  ;;  %v12056_v57 = vadd.f32 1.0, %v17054_v47  ;;  %v13901_v28 = vmul.f32 -1.442695, %v22055_v12 }
 0xa3f   : > { %v17058_v44 = vpop.eup %17057  ;;  %17075 = vrcp.f32 %v12055_v36  ;;  %v12057_v22 = vadd.f32 1.0, %v17056_v41  ;;  %v22065_v11 = vadd.f32 %v11929_v55, %v21931_v23  ;;  %v13902_v6 = vmul.f32 -1.442695, %v22060_v58 }
 0xa40   : > { %v17060_v38 = vpop.eup %17059  ;;  %v12146_v20 = vmul.f32 %v17058_v44, %v21982_v45  ;;  %17077 = vrcp.f32 %v12056_v57  ;;  %v12203_v15 = vpack.c.bf16 %v12177_v0, %v12175_v3  ;;  %v22641_v45 = vld [vmem:[#allocation54_spill] sm:$0xff] }
 0xa41   : > { %v17062_v54 = vpop.eup %17061  ;;  %v12147_v40 = vmul.f32 %v17060_v38, %v21985_v34  ;;  %17079 = vrcp.f32 %v12057_v22  ;;  %v13903_v16 = vmul.f32 -1.442695, %v22065_v11 }
 0xa42   : > { %v17064_v37 = vpop.eup %17063  ;;  %v12178_v59 = vadd.f32 %v12146_v20, %v20995_v24  ;;  %v12148_v52 = vmul.f32 %v17062_v54, %v21989_v9  ;;  %17081 = vpow2.f32 %v13900_v27  ;;  %12397 = vmatprep.mubr.bf16.mxu0 %v12203_v15  ;;  %v11933_v50 = vpop.f32.mrb[124].mxu1  ;;  %v22644_v54 = vld [vmem:[#allocation53_spill] sm:$0xff] }
 0xa43   : > { %v17066_v35 = vpop.eup %17065  ;;  %v12179_v30 = vadd.f32 %v12147_v40, %v22641_v45  ;;  %v12149_v25 = vmul.f32 %v17064_v37, %v21993_v7  ;;  %17083 = vpow2.f32 %v13901_v28  ;;  %12398 = vmatmul.mubr.bf16.gmra.mrb[136].mxu0 %v12202_v49  ;;  %v22076_v34 = vadd.f32 %v11933_v50, %v21928_v48  ;;  %v11935_v10 = vpop.f32.mrb[125].mxu1 }
 0xa44   : > { %v17068_v2 = vpop.eup %17067  ;;  %v12180_v14 = vadd.f32 %v12148_v52, %v22642_v62  ;;  %v12058_v24 = vadd.f32 1.0, %v17066_v35  ;;  %17085 = vpow2.f32 %v13902_v6  ;;  %v22080_v9 = vadd.f32 %v11935_v10, %v21931_v23  ;;  %v11937_v43 = vpop.f32.mrb[126].mxu1 }
 0xa45   : > { %v17070_v53 = vpop.eup %17069  ;;  %v12181_v32 = vadd.f32 %v12149_v25, %v22643_v1  ;;  %v12059_v4 = vadd.f32 1.0, %v17068_v2  ;;  %17087 = vpow2.f32 %v13903_v16  ;;  %v13904_v7 = vmul.f32 -1.442695, %v22076_v34  ;;  %v11939_v5 = vpop.f32.mrb[127].mxu1 }
 0xa46   : > { %v17072_v13 = vpop.eup %17071  ;;  %v12204_v51 = vpack.c.bf16 %v12180_v14, %v12178_v59  ;;  %17089 = vrcp.f32 %v12058_v24  ;;  %v12060_v17 = vadd.f32 1.0, %v17070_v53  ;;  %v13905_v39 = vmul.f32 -1.442695, %v22080_v9  ;;  %v22645_v14 = vld [vmem:[#allocation90_spill] sm:$0xff]  ;;  %v22646_v53 = vld [vmem:[#allocation59_spill] sm:$0xff] }
 0xa47   : > { %17091 = vrcp.f32 %v12059_v4  ;;  %v12061_v29 = vadd.f32 1.0, %v17072_v13  ;;  %v22086_v47 = vadd.f32 %v11937_v43, %v21928_v48  ;;  %v22089_v3 = vadd.f32 %v11939_v5, %v21931_v23 }
 0xa48   : > { %v17074_v0 = vpop.eup %17073  ;;  %17093 = vrcp.f32 %v12060_v17  ;;  %v12205_v36 = vpack.c.bf16 %v12181_v32, %v12179_v30  ;;  %v22647_v32 = vld [vmem:[#allocation58_spill] sm:$0xff] }
 0xa49   : > { %v17076_v55 = vpop.eup %17075  ;;  %v12150_v41 = vmul.f32 %v17074_v0, %v22004_v61  ;;  %17095 = vrcp.f32 %v12061_v29  ;;  %v13906_v49 = vmul.f32 -1.442695, %v22086_v47  ;;  %v13907_v57 = vmul.f32 -1.442695, %v22089_v3 }
 0xa4a   : > { %v17078_v27 = vpop.eup %17077  ;;  %v12151_v44 = vmul.f32 %v17076_v55, %v22009_v18  ;;  %17097 = vpow2.f32 %v13904_v7  ;;  %12405 = vmatprep.mubr.bf16.mxu0 %v12205_v36 }
 0xa4b   : > { %v17080_v48 = vpop.eup %17079  ;;  %v12152_v23 = vmul.f32 %v17078_v27, %v22014_v46  ;;  %17099 = vpow2.f32 %v13905_v39  ;;  %12406 = vmatmul.mubr.bf16.gmra.mrb[140].mxu0 %v12204_v51  ;;  %v12182_v38 = vadd.f32 %v12150_v41, %v21050_v63  ;;  %v22648_v41 = vld [vmem:[#allocation60_spill] sm:$0xff] }
 0xa4c   : > { %v17082_v22 = vpop.eup %17081  ;;  %v12153_v28 = vmul.f32 %v17080_v48, %v22018_v8  ;;  %17101 = vpow2.f32 %v13906_v49  ;;  %v12183_v18 = vadd.f32 %v12151_v44, %v21044_v33  ;;  %v22650_v44 = vld [vmem:[#allocation63_spill] sm:$0xff] }
 0xa4d   : > { %v17084_v61 = vpop.eup %17083  ;;  %v12184_v20 = vadd.f32 %v12152_v23, %v21041_v42  ;;  %v12062_v6 = vadd.f32 1.0, %v17082_v22  ;;  %17103 = vpow2.f32 %v13907_v57  ;;  %v22649_v57 = vld [vmem:[#allocation61_spill] sm:$0xff]  ;;  %v22651_v23 = vld [vmem:[#allocation62_spill] sm:$0xff] }
 0xa4e   : > { %v17086_v15 = vpop.eup %17085  ;;  %v12185_v40 = vadd.f32 %v12153_v28, %v22644_v54  ;;  %v12063_v16 = vadd.f32 1.0, %v17084_v61 }
 0xa4f   : > { %v17088_v46 = vpop.eup %17087  ;;  %v12206_v37 = vpack.c.bf16 %v12184_v20, %v12182_v38  ;;  %17105 = vrcp.f32 %v12062_v6  ;;  %v12064_v59 = vadd.f32 1.0, %v17086_v15 }
 0xa50   : > { %v17090_v52 = vpop.eup %17089  ;;  %17107 = vrcp.f32 %v12063_v16  ;;  %v12065_v8 = vadd.f32 1.0, %v17088_v46  ;;  %v12207_v50 = vpack.c.bf16 %v12185_v40, %v12183_v18  ;;  %v22652_v18 = vld [vmem:[#allocation73_spill] sm:$0xff]  ;;  %v22654_v46 = vld [vmem:[#allocation75_spill] sm:$0xff] }
 0xa51   : > { %v17092_v35 = vpop.eup %17091  ;;  %v12154_v63 = vmul.f32 %v17090_v52, %v22029_v21  ;;  %17109 = vrcp.f32 %v12064_v59  ;;  %v22653_v40 = vld [vmem:[#allocation65_spill] sm:$0xff]  ;;  %v22655_v59 = vld [vmem:[#allocation74_spill] sm:$0xff] }
 0xa52   : > { %v17094_v42 = vpop.eup %17093  ;;  %v12155_v45 = vmul.f32 %v17092_v35, %v22033_v60  ;;  %17111 = vrcp.f32 %v12065_v8  ;;  %12413 = vmatprep.mubr.bf16.mxu0 %v12207_v50 }
 0xa53   : > { %v17096_v33 = vpop.eup %17095  ;;  %v12156_v30 = vmul.f32 %v17094_v42, %v22038_v19  ;;  %12414 = vmatmul.mubr.bf16.gmra.mrb[144].mxu0 %v12206_v37  ;;  %v12186_v62 = vadd.f32 %v12154_v63, %v21076_v31 }
 0xa54   : > { %v17098_v25 = vpop.eup %17097  ;;  %v12157_v10 = vmul.f32 %v17096_v33, %v22041_v56  ;;  %v12187_v1 = vadd.f32 %v12155_v45, %v22646_v53 }
 0xa55   : > { %v17100_v2 = vpop.eup %17099  ;;  %v12188_v24 = vadd.f32 %v12156_v30, %v22645_v14  ;;  %v12066_v43 = vadd.f32 1.0, %v17098_v25 }
 0xa56   : > { %v17102_v21 = vpop.eup %17101  ;;  %v12189_v60 = vadd.f32 %v12157_v10, %v22647_v32  ;;  %v12067_v4 = vadd.f32 1.0, %v17100_v2 }
 0xa57   : > { %v17104_v7 = vpop.eup %17103  ;;  %v12208_v5 = vpack.c.bf16 %v12188_v24, %v12186_v62  ;;  %17113 = vrcp.f32 %v12066_v43  ;;  %v12068_v19 = vadd.f32 1.0, %v17102_v21 }
 0xa58   : > { %17115 = vrcp.f32 %v12067_v4  ;;  %v12069_v13 = vadd.f32 1.0, %v17104_v7  ;;  %v12209_v51 = vpack.c.bf16 %v12189_v60, %v12187_v1 }
 0xa59   : > { %v17106_v56 = vpop.eup %17105  ;;  %17117 = vrcp.f32 %v12068_v19 }
 0xa5a   : > { %v17108_v17 = vpop.eup %17107  ;;  %v12158_v31 = vmul.f32 %v17106_v56, %v22051_v26  ;;  %17119 = vrcp.f32 %v12069_v13  ;;  %12421 = vmatprep.mubr.bf16.mxu0 %v12209_v51 }
 0xa5b   : > { %v17110_v39 = vpop.eup %17109  ;;  %v12159_v29 = vmul.f32 %v17108_v17, %v22055_v12  ;;  %12422 = vmatmul.mubr.bf16.gmra.mrb[148].mxu0 %v12208_v5 }
 0xa5c   : > { %v17112_v0 = vpop.eup %17111  ;;  %v12160_v36 = vmul.f32 %v17110_v39, %v22060_v58  ;;  %v12190_v49 = vadd.f32 %v12158_v31, %v22648_v41 }
 0xa5d   : > { %v12161_v55 = vmul.f32 %v17112_v0, %v22065_v11  ;;  %v12191_v48 = vadd.f32 %v12159_v29, %v22650_v44 }
 0xa5e   : > { %v12192_v27 = vadd.f32 %v12160_v36, %v22649_v57 }
 0xa5f   : > { %v12193_v22 = vadd.f32 %v12161_v55, %v22651_v23 }
 0xa60   : > { %v12210_v26 = vpack.c.bf16 %v12192_v27, %v12190_v49 }
 0xa61   : > { %v17114_v28 = vpop.eup %17113  ;;  %v12211_v61 = vpack.c.bf16 %v12193_v22, %v12191_v48 }
 0xa62   : > { %v17116_v38 = vpop.eup %17115  ;;  %v12162_v12 = vmul.f32 %v17114_v28, %v22076_v34 }
 0xa63   : > { %v17118_v20 = vpop.eup %17117  ;;  %v12163_v58 = vmul.f32 %v17116_v38, %v22080_v9  ;;  %12429 = vmatprep.mubr.bf16.mxu0 %v12211_v61 }
 0xa64   : > { %v17120_v11 = vpop.eup %17119  ;;  %v12164_v6 = vmul.f32 %v17118_v20, %v22086_v47  ;;  %12430 = vmatmul.mubr.bf16.gmra.mrb[152].mxu0 %v12210_v26  ;;  %v12194_v54 = vadd.f32 %v12162_v12, %v22652_v18  ;;  %v22129_v47 = vld [vmem:[%s22182_s11] ss:$0 sm:$0xff] }
 0xa65   : > { %v12165_v15 = vmul.f32 %v17120_v11, %v22089_v3  ;;  %v12195_v37 = vadd.f32 %v12163_v58, %v22654_v46 }
 0xa66   : > { %v12196_v16 = vadd.f32 %v12164_v6, %v22653_v40 }
 0xa67   : > { %v12197_v52 = vadd.f32 %v12165_v15, %v22655_v59 }
 0xa68   : > { %v12212_v34 = vpack.c.bf16 %v12196_v16, %v12194_v54 }
 0xa69   : > { %v12213_v8 = vpack.c.bf16 %v12197_v52, %v12195_v37 }
 0xa6b   : > { %12437 = vmatprep.mubr.bf16.mxu0 %v12213_v8 }
 0xa6c   : > { %12438 = vmatmul.mubr.bf16.gmra.mrb[156].mxu0 %v12212_v34 }
 0xb05   : > { %v13943_v9 = vpop.f32.mrb[128].mxu0 }
 0xb06   : > { %v13944_v3 = vpop.f32.mrb[129].mxu0 }
 0xb07   : > { %v13945_v50 = vadd.f32 %v13944_v3, %v13943_v9  ;;  %v13946_v35 = vpop.f32.mrb[130].mxu0 }
 0xb08   : > { %v13947_v63 = vpop.f32.mrb[131].mxu0 }
 0xb09   : > { %v12384_v42 = vadd.f32 %v13945_v50, %v22129_v47  ;;  %v13948_v45 = vadd.f32 %v13947_v63, %v13946_v35 }
 0xb0b   : > { %12446 = vst [vmem:[%s22134_s13] sm:$0xff] %v12384_v42  ;;  %v12387_v33 = vadd.f32 %v13948_v45, %v22129_v47 }
 0xb0d   : > { %12447 = vst [vmem:[%s22134_s13 + $0x8] sm:$0xff] %v12387_v33  ;;  %v13949_v30 = vpop.f32.mrb[132].mxu0 }
 0xb0e   : > { %v13950_v25 = vpop.f32.mrb[133].mxu0 }
 0xb0f   : > { %v13951_v10 = vadd.f32 %v13950_v25, %v13949_v30  ;;  %v13952_v2 = vpop.f32.mrb[134].mxu0 }
 0xb10   : > { %v13953_v62 = vpop.f32.mrb[135].mxu0 }
 0xb11   : > { %v12392_v14 = vadd.f32 %v13951_v10, %v22129_v47  ;;  %v13954_v24 = vadd.f32 %v13953_v62, %v13952_v2 }
 0xb13   : > { %12448 = vst [vmem:[%s22134_s13 + $0x10] sm:$0xff] %v12392_v14  ;;  %v12395_v43 = vadd.f32 %v13954_v24, %v22129_v47 }
 0xb15   : > { %12449 = vst [vmem:[%s22134_s13 + $0x18] sm:$0xff] %v12395_v43 }
 0xb16   : > { %v13955_v21 = vpop.f32.mrb[136].mxu0 }
 0xb17   : > { %v13956_v53 = vpop.f32.mrb[137].mxu0 }
 0xb18   : > { %v13957_v1 = vadd.f32 %v13956_v53, %v13955_v21  ;;  %v13958_v32 = vpop.f32.mrb[138].mxu0 }
 0xb19   : > { %v13959_v60 = vpop.f32.mrb[139].mxu0 }
 0xb1a   : > { %v12400_v4 = vadd.f32 %v13957_v1, %v22129_v47  ;;  %v13960_v7 = vadd.f32 %v13959_v60, %v13958_v32 }
 0xb1c   : > { %12450 = vst [vmem:[%s22134_s13 + $0x20] sm:$0xff] %v12400_v4  ;;  %v12403_v5 = vadd.f32 %v13960_v7, %v22129_v47 }
 0xb1e   : > { %12451 = vst [vmem:[%s22134_s13 + $0x28] sm:$0xff] %v12403_v5  ;;  %v13961_v19 = vpop.f32.mrb[140].mxu0 }
 0xb1f   : > { %v13962_v13 = vpop.f32.mrb[141].mxu0 }
 0xb20   : > { %v13963_v51 = vadd.f32 %v13962_v13, %v13961_v19  ;;  %v13964_v56 = vpop.f32.mrb[142].mxu0 }
 0xb21   : > { %v13965_v17 = vpop.f32.mrb[143].mxu0 }
 0xb22   : > { %v12408_v31 = vadd.f32 %v13963_v51, %v22129_v47  ;;  %v13966_v39 = vadd.f32 %v13965_v17, %v13964_v56 }
 0xb24   : > { %12452 = vst [vmem:[%s22134_s13 + $0x30] sm:$0xff] %v12408_v31  ;;  %v12411_v29 = vadd.f32 %v13966_v39, %v22129_v47 }
 0xb26   : > { %12453 = vst [vmem:[%s22134_s13 + $0x38] sm:$0xff] %v12411_v29  ;;  %v13967_v0 = vpop.f32.mrb[144].mxu0 }
 0xb27   : > { %v13968_v36 = vpop.f32.mrb[145].mxu0 }
 0xb28   : > { %v13969_v55 = vadd.f32 %v13968_v36, %v13967_v0  ;;  %v13970_v41 = vpop.f32.mrb[146].mxu0 }
 0xb29   : > { %v13971_v49 = vpop.f32.mrb[147].mxu0 }
 0xb2a   : > { %v12416_v57 = vadd.f32 %v13969_v55, %v22129_v47  ;;  %v13972_v27 = vadd.f32 %v13971_v49, %v13970_v41 }
 0xb2c   : > { %12454 = vst [vmem:[%s22134_s13 + $0x40] sm:$0xff] %v12416_v57  ;;  %v12419_v44 = vadd.f32 %v13972_v27, %v22129_v47 }
 0xb2e   : > { %12455 = vst [vmem:[%s22134_s13 + $0x48] sm:$0xff] %v12419_v44  ;;  %v13973_v48 = vpop.f32.mrb[148].mxu0 }
 0xb2f   : > { %v13974_v23 = vpop.f32.mrb[149].mxu0 }
 0xb30   : > { %v13975_v22 = vadd.f32 %v13974_v23, %v13973_v48  ;;  %v13976_v26 = vpop.f32.mrb[150].mxu0 }
 0xb31   : > { %v13977_v28 = vpop.f32.mrb[151].mxu0 }
 0xb32   : > { %v12424_v61 = vadd.f32 %v13975_v22, %v22129_v47  ;;  %v13978_v38 = vadd.f32 %v13977_v28, %v13976_v26 }
 0xb34   : > { %12456 = vst [vmem:[%s22134_s13 + $0x50] sm:$0xff] %v12424_v61  ;;  %v12427_v12 = vadd.f32 %v13978_v38, %v22129_v47 }
 0xb36   : > { %12457 = vst [vmem:[%s22134_s13 + $0x58] sm:$0xff] %v12427_v12 }
 0xb37   : > { %v13979_v20 = vpop.f32.mrb[152].mxu0 }
 0xb38   : > { %v13980_v58 = vpop.f32.mrb[153].mxu0 }
 0xb39   : > { %v13981_v11 = vadd.f32 %v13980_v58, %v13979_v20  ;;  %v13982_v6 = vpop.f32.mrb[154].mxu0 }
 0xb3a   : > { %v13983_v15 = vpop.f32.mrb[155].mxu0 }
 0xb3b   : > { %v12432_v18 = vadd.f32 %v13981_v11, %v22129_v47  ;;  %v13984_v54 = vadd.f32 %v13983_v15, %v13982_v6 }
 0xb3d   : > { %12458 = vst [vmem:[%s22134_s13 + $0x60] sm:$0xff] %v12432_v18  ;;  %v12435_v40 = vadd.f32 %v13984_v54, %v22129_v47 }
 0xb3f   : > { %12459 = vst [vmem:[%s22134_s13 + $0x68] sm:$0xff] %v12435_v40  ;;  %v13985_v16 = vpop.f32.mrb[156].mxu0 }
 0xb40   : > { %v13986_v46 = vpop.f32.mrb[157].mxu0 }
 0xb41   : > { %v13987_v37 = vadd.f32 %v13986_v46, %v13985_v16  ;;  %v13988_v59 = vpop.f32.mrb[158].mxu0 }
 0xb42   : > { %v13989_v52 = vpop.f32.mrb[159].mxu0 }
 0xb43   : > { %v12440_v34 = vadd.f32 %v13987_v37, %v22129_v47  ;;  %v13990_v8 = vadd.f32 %v13989_v52, %v13988_v59 }
 0xb45   : > { %12460 = vst [vmem:[%s22134_s13 + $0x70] sm:$0xff] %v12440_v34  ;;  %v12443_v9 = vadd.f32 %v13990_v8, %v22129_v47 }
 0xb47   : > { %12461 = vst [vmem:[%s22134_s13 + $0x78] sm:$0xff] %v12443_v9 }
 0xb48 PF: > { %s26_s21 = sadd.s32 1, %s17314_s21  }
 0xb49   : > { %p23_p2 = scmp.ge.s32.totalorder %s26_s21, 4  }
 0xb4b   :  { %25 = sbr.rel (!%p23_p2) target bundleno = 6 (0x6), region = 128 }
 0xb52   :  { %12484 = vsyncpa [#allocation3], 1 }
 0xb53   :  { %12486 = vsyncpa [#allocation3 + $0x1], 1 }
 0xb54   :  { %12487 = vsyncpa [#allocation5], 1 }
 0xb55   :  { %12488 = vsyncpa [#allocation8], 1 }
 0xb56   :  { %12489 = vsyncpa [#allocation11], 1 }

</bundles_post_ra>
